<compile_context>
chip_gen: v5e
topology: v5e:2x2
jax: 0.10.0
libtpu: 0.0.40
codegen_flags: <defaults>
</compile_context>

<pallas_src>
import functools
import math

import jax
import jax.numpy as jnp
from jax.experimental import pallas as pl
from jax.experimental.pallas import tpu as pltpu

INPUT_SIZE = 784
HIDDEN = 1000
NUM_CLASSES = 10

# lane-aligned padded dims (multiples of 128)
IN_PAD = 896      # 784  -> 7*128
HID_PAD = 1024    # 1000 -> 8*128
CLS_PAD = 128     # 10   -> 128

LN_EPS = 1e-5
NEG = -1e30
TINY = 1e-30
HALF_LOG_2PI = 0.5 * math.log(2.0 * math.pi)

_VMEM = pl.BlockSpec(memory_space=pltpu.MemorySpace.VMEM)
_SMEM = pl.BlockSpec(memory_space=pltpu.MemorySpace.SMEM)


def _round_up(n, m):
    return ((n + m - 1) // m) * m


def _softplus(x):
    # log(1 + exp(x)), stable, basic ops only (lowers cleanly both in Mosaic and XLA).
    return jnp.maximum(x, 0.0) + jnp.log(1.0 + jnp.exp(-jnp.abs(x)))


def _layer_norm(h, gamma, beta):
    """LayerNorm over features (torch nn.LayerNorm, eps=1e-5).  Padded feature lanes
    of h are exactly 0 and gamma/beta are 0 there, so summing the padded width and
    dividing by the real feature count is exact, and padded lanes stay exactly 0."""
    inv_n = 1.0 / HIDDEN
    mu = jnp.sum(h, axis=1, keepdims=True) * inv_n
    ms = jnp.sum(h * h, axis=1, keepdims=True) * inv_n   # one-pass E[h^2]
    var = ms - mu * mu                                    # biased variance
    inv = jax.lax.rsqrt(var + LN_EPS)
    return (h - mu) * inv * gamma + beta


# ----------------------------------------------------------------------------------
# Fused single-block kernel (small-batch path)
# ----------------------------------------------------------------------------------
def _regularity_en_fused(h, feat_maskf, n_elems):
    """RegularityEN (training, x_history = stats(h), COMP_prev = 0) in one block."""
    s = jnp.sum(jnp.sum(h, axis=1, keepdims=True), axis=0, keepdims=True)
    ss = jnp.sum(jnp.sum(h * h, axis=1, keepdims=True), axis=0, keepdims=True)
    mean = s * (1.0 / n_elems)
    var_u = jnp.maximum((ss - n_elems * mean * mean) / (n_elems - 1.0), 0.0)  # unbiased
    std = jnp.sqrt(var_u)
    inv_std = 1.0 / jnp.maximum(std, TINY)
    z = (h - mean) * inv_std
    E = jnp.exp(-0.5 * (z * z)) * feat_maskf              # bounded in (0,1]: no max-shift
    S = jnp.sum(jnp.sum(E, axis=1, keepdims=True), axis=0, keepdims=True)
    sum_p = (jnp.log(jnp.maximum(S, TINY)) - jnp.log(jnp.maximum(std, TINY))
             - HALF_LOG_2PI)                              # = LSE(log_p)
    comp = _softplus(sum_p)                               # log(1 + sum exp(log_p))
    l_nml = _softplus(-sum_p)                             # = comp - sum_p
    return l_nml * h, mean, std, comp


def nnrnln_fused_kernel(x_ref, w1_ref, aux1_ref, w2_ref, aux2_ref, w3_ref, b3_ref,
                        out_ref, stats_ref):
    B = x_ref.shape[0]
    n_elems = float(B * HIDDEN)
    hid_lane = jax.lax.broadcasted_iota(jnp.int32, (1, HID_PAD), 1)
    feat_maskf = (hid_lane < HIDDEN).astype(jnp.float32)

    b1, g1, be1 = aux1_ref[0:1, :], aux1_ref[1:2, :], aux1_ref[2:3, :]
    b2, g2, be2 = aux2_ref[0:1, :], aux2_ref[1:2, :], aux2_ref[2:3, :]

    # fc1 (bf16 MXU, f32 acc) + LayerNorm + RegularityEN + ReLU
    h = jnp.dot(x_ref[...], w1_ref[...], preferred_element_type=jnp.float32) + b1
    h = _layer_norm(h, g1, be1)
    h, mean1, std1, comp1 = _regularity_en_fused(h, feat_maskf, n_elems)
    h = jnp.maximum(h, 0.0)

    # fc2 + LayerNorm + RegularityEN + ReLU
    h = jnp.dot(h.astype(jnp.bfloat16), w2_ref[...],
                preferred_element_type=jnp.float32) + b2
    h = _layer_norm(h, g2, be2)
    h, mean2, std2, comp2 = _regularity_en_fused(h, feat_maskf, n_elems)
    h = jnp.maximum(h, 0.0)

    # fc3 + log_softmax on 128-lane padded logits (padded classes -> -inf)
    logits = jnp.dot(h.astype(jnp.bfloat16), w3_ref[...],
                     preferred_element_type=jnp.float32) + b3_ref[...]
    cls_lane = jax.lax.broadcasted_iota(jnp.int32, (1, CLS_PAD), 1)
    logits = jnp.where(cls_lane < NUM_CLASSES, logits, NEG)
    m = jnp.max(logits, axis=1, keepdims=True)
    zl = logits - m
    out_ref[...] = zl - jnp.log(jnp.sum(jnp.exp(zl), axis=1, keepdims=True))

    # aux stats output, lane-dense rows: [mean, std, numel, COMP, 0, ...]
    lane = jax.lax.broadcasted_iota(jnp.int32, (1, 128), 1)

    def pack(mean, std, comp):
        return (jnp.where(lane == 0, mean, 0.0)
                + jnp.where(lane == 1, std, 0.0)
                + jnp.where(lane == 2, jnp.float32(n_elems), 0.0)
                + jnp.where(lane == 3, comp, 0.0))

    stats_ref[0:1, :] = pack(mean1, std1, comp1)
    stats_ref[1:2, :] = pack(mean2, std2, comp2)


def nnrnln_forward_fused(x, params):
    x2d = x.reshape(-1, INPUT_SIZE).astype(jnp.float32)         # mirrors x.view(-1, 784)
    B = x2d.shape[0]
    x_pad = jnp.pad(x2d, ((0, 0), (0, IN_PAD - INPUT_SIZE))).astype(jnp.bfloat16)

    args = (x_pad, params["w1"], params["aux1"], params["w2"], params["aux2"],
            params["w3"], params["b3"])
    out_pad, stats = pl.pallas_call(
        nnrnln_fused_kernel,
        out_shape=(jax.ShapeDtypeStruct((B, CLS_PAD), jnp.float32),
                   jax.ShapeDtypeStruct((2, 128), jnp.float32)),
        in_specs=[_VMEM] * len(args),
        out_specs=(_VMEM, _VMEM),
    )(*args)

    out = out_pad[:, :NUM_CLASSES]
    numel = jnp.float32(B * HIDDEN)
    x_history_stack = [jnp.float32(-1.0),
                       (stats[0, 0], stats[0, 1], numel),
                       (stats[1, 0], stats[1, 1], numel)]
    COMP_stack = [jnp.float32(-1.0), stats[0, 3], stats[1, 3]]
    return out, x_history_stack, COMP_stack


# ----------------------------------------------------------------------------------
# Batch-tiled multi-pass pipeline (large-batch path)
# ----------------------------------------------------------------------------------
def _row_maskf(tb, b_real):
    rows = jax.lax.broadcasted_iota(jnp.int32, (tb, 1), 0) + pl.program_id(0) * tb
    return (rows < b_real).astype(jnp.float32)


def _fc_ln_stats(a, w, aux, row_maskf, h_ref, pstat_ref):
    b, g, be = aux[0:1, :], aux[1:2, :], aux[2:3, :]
    h = jnp.dot(a, w, preferred_element_type=jnp.float32) + b
    h = _layer_norm(h, g, be)
    h = h * row_maskf                       # zero batch-padding rows -> exact global stats
    h_ref[...] = h
    s = jnp.sum(jnp.sum(h, axis=1, keepdims=True), axis=0, keepdims=True)
    ss = jnp.sum(jnp.sum(h * h, axis=1, keepdims=True), axis=0, keepdims=True)
    lane = jax.lax.broadcasted_iota(jnp.int32, (1, 128), 1)
    packed = jnp.where(lane == 0, s, 0.0) + jnp.where(lane == 1, ss, 0.0)
    pstat_ref[...] = jnp.broadcast_to(packed, (8, 128))


def fc1_ln_kernel(x_ref, w_ref, aux_ref, h_ref, pstat_ref, *, b_real, tb):
    _fc_ln_stats(x_ref[...], w_ref[...], aux_ref[...],
                 _row_maskf(tb, b_real), h_ref, pstat_ref)


def apply_fc_ln_kernel(scale_ref, hin_ref, w_ref, aux_ref, h_ref, pstat_ref,
                       *, b_real, tb):
    a = jnp.maximum(hin_ref[...] * scale_ref[0], 0.0).astype(jnp.bfloat16)
    _fc_ln_stats(a, w_ref[...], aux_ref[...], _row_maskf(tb, b_real), h_ref, pstat_ref)


def s_reduce_kernel(ms_ref, h_ref, pstat_ref, *, b_real, tb):
    mean = ms_ref[0]
    inv_std = ms_ref[1]
    lane = jax.lax.broadcasted_iota(jnp.int32, (1, HID_PAD), 1)
    feat_maskf = (lane < HIDDEN).astype(jnp.float32)
    z = (h_ref[...] - mean) * inv_std
    E = jnp.exp(-0.5 * (z * z)) * feat_maskf * _row_maskf(tb, b_real)
    S = jnp.sum(jnp.sum(E, axis=1, keepdims=True), axis=0, keepdims=True)
    out_lane = jax.lax.broadcasted_iota(jnp.int32, (1, 128), 1)
    pstat_ref[...] = jnp.broadcast_to(jnp.where(out_lane == 0, S, 0.0), (8, 128))


def apply_fc3_logsoftmax_kernel(scale_ref, h_ref, w3_ref, b3_ref, out_ref):
    a = jnp.maximum(h_ref[...] * scale_ref[0], 0.0).astype(jnp.bfloat16)
    logits = jnp.dot(a, w3_ref[...], preferred_element_type=jnp.float32) + b3_ref[...]
    cls_lane = jax.lax.broadcasted_iota(jnp.int32, (1, CLS_PAD), 1)
    logits = jnp.where(cls_lane < NUM_CLASSES, logits, NEG)
    m = jnp.max(logits, axis=1, keepdims=True)
    zl = logits - m
    out_ref[...] = zl - jnp.log(jnp.sum(jnp.exp(zl), axis=1, keepdims=True))


def _mean_std_from_sums(s, ss, n):
    mean = s / n
    var_u = jnp.maximum((ss - n * mean * mean) / (n - 1.0), 0.0)
    return mean, jnp.sqrt(var_u)


def _comp_lnml(S, std):
    sum_p = (jnp.log(jnp.maximum(S, TINY)) - jnp.log(jnp.maximum(std, TINY))
             - HALF_LOG_2PI)
    return _softplus(sum_p), _softplus(-sum_p)


def nnrnln_forward_tiled(x, params, *, tb=256):
    x2d = x.reshape(-1, INPUT_SIZE).astype(jnp.float32)
    B = x2d.shape[0]
    n = float(B * HIDDEN)

    tb = max(8, min(_round_up(tb, 8), _round_up(B, 8)))
    Bp = _round_up(B, tb)
    nt = Bp // tb
    x_pad = jnp.pad(x2d, ((0, Bp - B), (0, IN_PAD - INPUT_SIZE))).astype(jnp.bfloat16)

    # row-tiled activations; weights/aux have constant index maps (VMEM-resident)
    x_spec = pl.BlockSpec((tb, IN_PAD), lambda i: (i, 0))
    h_spec = pl.BlockSpec((tb, HID_PAD), lambda i: (i, 0))
    out_spec = pl.BlockSpec((tb, CLS_PAD), lambda i: (i, 0))
    w1_spec = pl.BlockSpec((IN_PAD, HID_PAD), lambda i: (0, 0))
    w2_spec = pl.BlockSpec((HID_PAD, HID_PAD), lambda i: (0, 0))
    w3_spec = pl.BlockSpec((HID_PAD, CLS_PAD), lambda i: (0, 0))
    aux_spec = pl.BlockSpec((8, HID_PAD), lambda i: (0, 0))
    b3_spec = pl.BlockSpec((1, CLS_PAD), lambda i: (0, 0))
    pstat_spec = pl.BlockSpec((8, 128), lambda i: (i, 0))

    h_shape = jax.ShapeDtypeStruct((Bp, HID_PAD), jnp.float32)
    pstat_shape = jax.ShapeDtypeStruct((nt * 8, 128), jnp.float32)
    cparams = pltpu.CompilerParams(dimension_semantics=("parallel",))

    # pass 1: h1 = LN(fc1(x)), per-tile partial [sum, sumsq]
    h1, p1 = pl.pallas_call(
        functools.partial(fc1_ln_kernel, b_real=B, tb=tb),
        grid=(nt,),
        in_specs=[x_spec, w1_spec, aux_spec],
        out_specs=(h_spec, pstat_spec),
        out_shape=(h_shape, pstat_shape),
        compiler_params=cparams,
    )(x_pad, params["w1"], params["aux1"])
    p1 = p1.reshape(nt, 8, 128)
    mean1, std1 = _mean_std_from_sums(jnp.sum(p1[:, 0, 0]), jnp.sum(p1[:, 0, 1]), n)

    # pass 2: S1 = sum exp(-0.5 z^2) over h1
    ms1 = jnp.stack([mean1, 1.0 / jnp.maximum(std1, TINY)])
    pS1 = pl.pallas_call(
        functools.partial(s_reduce_kernel, b_real=B, tb=tb),
        grid=(nt,),
        in_specs=[_SMEM, h_spec],
        out_specs=pstat_spec,
        out_shape=pstat_shape,
        compiler_params=cparams,
    )(ms1, h1)
    S1 = jnp.sum(pS1.reshape(nt, 8, 128)[:, 0, 0])
    comp1, lnml1 = _comp_lnml(S1, std1)

    # pass 3: h2 = LN(fc2(relu(l_nml1 * h1))), per-tile partial [sum, sumsq]
    h2, p2 = pl.pallas_call(
        functools.partial(apply_fc_ln_kernel, b_real=B, tb=tb),
        grid=(nt,),
        in_specs=[_SMEM, h_spec, w2_spec, aux_spec],
        out_specs=(h_spec, pstat_spec),
        out_shape=(h_shape, pstat_shape),
        compiler_params=cparams,
    )(lnml1.reshape(1), h1, params["w2"], params["aux2"])
    p2 = p2.reshape(nt, 8, 128)
    mean2, std2 = _mean_std_from_sums(jnp.sum(p2[:, 0, 0]), jnp.sum(p2[:, 0, 1]), n)

    # pass 4: S2 over h2
    ms2 = jnp.stack([mean2, 1.0 / jnp.maximum(std2, TINY)])
    pS2 = pl.pallas_call(
        functools.partial(s_reduce_kernel, b_real=B, tb=tb),
        grid=(nt,),
        in_specs=[_SMEM, h_spec],
        out_specs=pstat_spec,
        out_shape=pstat_shape,
        compiler_params=cparams,
    )(ms2, h2)
    S2 = jnp.sum(pS2.reshape(nt, 8, 128)[:, 0, 0])
    comp2, lnml2 = _comp_lnml(S2, std2)

    # pass 5: out = log_softmax(fc3(relu(l_nml2 * h2)))
    out_pad = pl.pallas_call(
        apply_fc3_logsoftmax_kernel,
        grid=(nt,),
        in_specs=[_SMEM, h_spec, w3_spec, b3_spec],
        out_specs=out_spec,
        out_shape=jax.ShapeDtypeStruct((Bp, CLS_PAD), jnp.float32),
        compiler_params=cparams,
    )(lnml2.reshape(1), h2, params["w3"], params["b3"])

    out = out_pad[:B, :NUM_CLASSES]
    numel = jnp.float32(n)
    x_history_stack = [jnp.float32(-1.0), (mean1, std1, numel), (mean2, std2, numel)]
    COMP_stack = [jnp.float32(-1.0), comp1, comp2]
    return out, x_history_stack, COMP_stack


_fused_jit = jax.jit(nnrnln_forward_fused)
_tiled_jit = jax.jit(nnrnln_forward_tiled, static_argnames=("tb",))


def nnrnln_forward(x, params, *, tb=256, fused_max_rows=256):
    """NNRNLN forward with default args.  Returns (log_probs, x_history_stack,
    COMP_stack).  Small batches use the single fused kernel (weight-DMA-bound
    regime, no launch overhead); larger batches use the batch-tiled pipeline."""
    n_rows = math.prod(x.shape) // INPUT_SIZE
    if n_rows <= fused_max_rows:
        return _fused_jit(x, params)
    return _tiled_jit(x, params, tb=tb)


def init_params(key):
    """PyTorch defaults: Linear weight/bias ~ U(-1/sqrt(fan_in), 1/sqrt(fan_in));
    LayerNorm weight=1, bias=0.  Weights stored [in, out] (pre-transposed),
    zero-padded to lane-aligned shapes, bf16 for the MXU.  Per-layer bias/gamma/beta
    packed into one (8, HID_PAD) f32 array (rows 0/1/2) -> one small DMA per layer."""
    ks = jax.random.split(key, 6)

    def linear(kw, kb, fan_in, fan_out, in_pad, out_pad):
        bound = 1.0 / math.sqrt(fan_in)
        w = jax.random.uniform(kw, (fan_in, fan_out), jnp.float32, -bound, bound)
        b = jax.random.uniform(kb, (1, fan_out), jnp.float32, -bound, bound)
        w = jnp.pad(w, ((0, in_pad - fan_in), (0, out_pad - fan_out)))
        b = jnp.pad(b, ((0, 0), (0, out_pad - fan_out)))
        return w.astype(jnp.bfloat16), b

    w1, b1 = linear(ks[0], ks[1], INPUT_SIZE, HIDDEN, IN_PAD, HID_PAD)
    w2, b2 = linear(ks[2], ks[3], HIDDEN, HIDDEN, HID_PAD, HID_PAD)
    w3, b3 = linear(ks[4], ks[5], HIDDEN, NUM_CLASSES, HID_PAD, CLS_PAD)

    gamma = jnp.pad(jnp.ones((1, HIDDEN), jnp.float32), ((0, 0), (0, HID_PAD - HIDDEN)))
    beta = jnp.zeros((1, HID_PAD), jnp.float32)

    def pack_aux(b, g, be):
        return jnp.concatenate([b, g, be, jnp.zeros((5, HID_PAD), jnp.float32)], axis=0)

    return dict(w1=w1, aux1=pack_aux(b1, gamma, beta),
                w2=w2, aux2=pack_aux(b2, gamma, beta),
                w3=w3, b3=b3)


if __name__ == "__main__":
    key = jax.random.PRNGKey(0)
    kx, kp = jax.random.split(key)
    params = init_params(kp)

    # Small batch (MNIST-style 1x28x28 = 784): dispatcher picks the fused kernel.
    x_small = jax.random.normal(kx, (8, 1, 28, 28), jnp.float32)
    out_s, hist_s, comp_s = nnrnln_forward(x_small, params)
    jax.block_until_ready(out_s)
    assert out_s.shape == (8, NUM_CLASSES)
    row_sums = jnp.sum(jnp.exp(out_s), axis=1)
    assert jnp.allclose(row_sums, jnp.ones_like(row_sums), atol=1e-4), row_sums
    assert bool(jnp.isfinite(comp_s[1])) and bool(jnp.isfinite(comp_s[2])), comp_s
    assert bool(jnp.isfinite(hist_s[1][0])) and bool(jnp.isfinite(hist_s[1][1])), hist_s

    # Larger batch: exercise the batch-tiled multi-pass pipeline (40 rows, 16-row
    # tiles -> 3 tiles with 8 masked padding rows) and cross-check against the
    # fused single-block kernel.
    x_big = jax.random.normal(jax.random.fold_in(kx, 1), (40, 1, 28, 28), jnp.float32)
    out_f, hist_f, comp_f = _fused_jit(x_big, params)
    out_t, hist_t, comp_t = _tiled_jit(x_big, params, tb=16)
    jax.block_until_ready(out_t)
    assert out_t.shape == (40, NUM_CLASSES)
    rs_t = jnp.sum(jnp.exp(out_t), axis=1)
    assert jnp.allclose(rs_t, jnp.ones_like(rs_t), atol=1e-4), rs_t
    assert jnp.allclose(out_t, out_f, atol=2e-2, rtol=2e-2), \
        float(jnp.max(jnp.abs(out_t - out_f)))
    checks = ((hist_t[1][0], hist_f[1][0]), (hist_t[1][1], hist_f[1][1]),
              (hist_t[2][0], hist_f[2][0]), (hist_t[2][1], hist_f[2][1]),
              (comp_t[1], comp_f[1]), (comp_t[2], comp_f[2]))
    for a, b in checks:
        assert jnp.allclose(a, b, atol=1e-2, rtol=1e-2), (a, b)

    print("KERNEL_OK")
</pallas_src>

<mosaic_0001>
module attributes {stable_mosaic.version = 11 : i64} {
  func.func @nnrnln_fused_kernel(%arg0: memref<8x896xbf16, #tpu.memory_space<vmem>>, %arg1: memref<896x1024xbf16, #tpu.memory_space<vmem>>, %arg2: memref<8x1024xf32, #tpu.memory_space<vmem>>, %arg3: memref<1024x1024xbf16, #tpu.memory_space<vmem>>, %arg4: memref<8x1024xf32, #tpu.memory_space<vmem>>, %arg5: memref<1024x128xbf16, #tpu.memory_space<vmem>>, %arg6: memref<1x128xf32, #tpu.memory_space<vmem>>, %arg7: memref<8x128xf32, #tpu.memory_space<vmem>>, %arg8: memref<2x128xf32, #tpu.memory_space<vmem>>) attributes {dimension_semantics = [], scalar_prefetch = 0 : i64, scratch_operands = 0 : i64, tpu.core_type = #tpu.core_type<tc>} {
    %0 = tpu.iota {dimensions = array<i32: 1>} : vector<1x1024xi32>
    %c1000_i32 = arith.constant 1000 : i32
    %1 = vector.broadcast %c1000_i32 : i32 to vector<1x1024xi32>
    %2 = arith.cmpi slt, %0, %1 : vector<1x1024xi32>
    %3 = arith.extui %2 : vector<1x1024xi1> to vector<1x1024xi32>
    %4 = arith.sitofp %3 : vector<1x1024xi32> to vector<1x1024xf32>
    %c0 = arith.constant 0 : index
    %c0_0 = arith.constant 0 : index
    %5 = vector.load %arg2[%c0, %c0_0] : memref<8x1024xf32, #tpu.memory_space<vmem>>, vector<1x1024xf32>
    %c1 = arith.constant 1 : index
    %c0_1 = arith.constant 0 : index
    %6 = vector.load %arg2[%c1, %c0_1] : memref<8x1024xf32, #tpu.memory_space<vmem>>, vector<1x1024xf32>
    %c2 = arith.constant 2 : index
    %c0_2 = arith.constant 0 : index
    %7 = vector.load %arg2[%c2, %c0_2] : memref<8x1024xf32, #tpu.memory_space<vmem>>, vector<1x1024xf32>
    %c0_3 = arith.constant 0 : index
    %c0_4 = arith.constant 0 : index
    %8 = vector.load %arg4[%c0_3, %c0_4] : memref<8x1024xf32, #tpu.memory_space<vmem>>, vector<1x1024xf32>
    %c1_5 = arith.constant 1 : index
    %c0_6 = arith.constant 0 : index
    %9 = vector.load %arg4[%c1_5, %c0_6] : memref<8x1024xf32, #tpu.memory_space<vmem>>, vector<1x1024xf32>
    %c2_7 = arith.constant 2 : index
    %c0_8 = arith.constant 0 : index
    %10 = vector.load %arg4[%c2_7, %c0_8] : memref<8x1024xf32, #tpu.memory_space<vmem>>, vector<1x1024xf32>
    %c0_9 = arith.constant 0 : index
    %c0_10 = arith.constant 0 : index
    %11 = vector.load %arg0[%c0_9, %c0_10] : memref<8x896xbf16, #tpu.memory_space<vmem>>, vector<8x896xbf16>
    %c0_11 = arith.constant 0 : index
    %c0_12 = arith.constant 0 : index
    %12 = vector.load %arg1[%c0_11, %c0_12] : memref<896x1024xbf16, #tpu.memory_space<vmem>>, vector<896x1024xbf16>
    %cst = arith.constant dense<0.000000e+00> : vector<8x1024xf32>
    %13 = tpu.matmul %11, %12, %cst {dimension_numbers = #tpu.dot_dimension_numbers<[1], [0], [0], [1], [0, 0, 1, 1], [], []>} : vector<8x896xbf16>, vector<896x1024xbf16>, vector<8x1024xf32> -> vector<8x1024xf32>
    %14 = vector.broadcast %5 : vector<1x1024xf32> to vector<8x1024xf32>
    %15 = arith.addf %13, %14 : vector<8x1024xf32>
    %cst_13 = arith.constant dense<0.000000e+00> : vector<8xf32>
    %16 = vector.multi_reduction <add>, %15, %cst_13 [1] : vector<8x1024xf32> to vector<8xf32>
    %17 = vector.shape_cast %16 : vector<8xf32> to vector<8x1xf32>
    %cst_14 = arith.constant 1.000000e-03 : f32
    %18 = vector.broadcast %cst_14 : f32 to vector<8x1xf32>
    %19 = arith.mulf %17, %18 : vector<8x1xf32>
    %20 = arith.mulf %15, %15 : vector<8x1024xf32>
    %cst_15 = arith.constant dense<0.000000e+00> : vector<8xf32>
    %21 = vector.multi_reduction <add>, %20, %cst_15 [1] : vector<8x1024xf32> to vector<8xf32>
    %22 = vector.shape_cast %21 : vector<8xf32> to vector<8x1xf32>
    %cst_16 = arith.constant 1.000000e-03 : f32
    %23 = vector.broadcast %cst_16 : f32 to vector<8x1xf32>
    %24 = arith.mulf %22, %23 : vector<8x1xf32>
    %25 = arith.mulf %19, %19 : vector<8x1xf32>
    %26 = arith.subf %24, %25 : vector<8x1xf32>
    %cst_17 = arith.constant 9.99999974E-6 : f32
    %27 = vector.broadcast %cst_17 : f32 to vector<8x1xf32>
    %28 = arith.addf %26, %27 : vector<8x1xf32>
    %29 = math.rsqrt %28 : vector<8x1xf32>
    %30 = vector.broadcast %19 : vector<8x1xf32> to vector<8x1024xf32>
    %31 = arith.subf %15, %30 : vector<8x1024xf32>
    %32 = vector.broadcast %29 : vector<8x1xf32> to vector<8x1024xf32>
    %33 = arith.mulf %31, %32 : vector<8x1024xf32>
    %34 = vector.broadcast %6 : vector<1x1024xf32> to vector<8x1024xf32>
    %35 = arith.mulf %33, %34 : vector<8x1024xf32>
    %36 = vector.broadcast %7 : vector<1x1024xf32> to vector<8x1024xf32>
    %37 = arith.addf %35, %36 : vector<8x1024xf32>
    %cst_18 = arith.constant dense<0.000000e+00> : vector<8xf32>
    %38 = vector.multi_reduction <add>, %37, %cst_18 [1] : vector<8x1024xf32> to vector<8xf32>
    %39 = vector.shape_cast %38 : vector<8xf32> to vector<8x1xf32>
    %cst_19 = arith.constant dense<0.000000e+00> : vector<1xf32>
    %40 = vector.multi_reduction <add>, %39, %cst_19 [0] : vector<8x1xf32> to vector<1xf32>
    %41 = vector.shape_cast %40 : vector<1xf32> to vector<1x1xf32>
    %42 = arith.mulf %37, %37 : vector<8x1024xf32>
    %cst_20 = arith.constant dense<0.000000e+00> : vector<8xf32>
    %43 = vector.multi_reduction <add>, %42, %cst_20 [1] : vector<8x1024xf32> to vector<8xf32>
    %44 = vector.shape_cast %43 : vector<8xf32> to vector<8x1xf32>
    %cst_21 = arith.constant dense<0.000000e+00> : vector<1xf32>
    %45 = vector.multi_reduction <add>, %44, %cst_21 [0] : vector<8x1xf32> to vector<1xf32>
    %46 = vector.shape_cast %45 : vector<1xf32> to vector<1x1xf32>
    %cst_22 = arith.constant 1.250000e-04 : f32
    %47 = vector.broadcast %cst_22 : f32 to vector<1x1xf32>
    %48 = arith.mulf %41, %47 : vector<1x1xf32>
    %cst_23 = arith.constant 8.000000e+03 : f32
    %49 = vector.broadcast %cst_23 : f32 to vector<1x1xf32>
    %50 = arith.mulf %49, %48 : vector<1x1xf32>
    %51 = arith.mulf %50, %48 : vector<1x1xf32>
    %52 = arith.subf %46, %51 : vector<1x1xf32>
    %cst_24 = arith.constant 7.999000e+03 : f32
    %53 = vector.broadcast %cst_24 : f32 to vector<1x1xf32>
    %54 = arith.divf %52, %53 : vector<1x1xf32>
    %cst_25 = arith.constant 0.000000e+00 : f32
    %55 = vector.broadcast %cst_25 : f32 to vector<1x1xf32>
    %56 = arith.maximumf %54, %55 : vector<1x1xf32>
    %57 = math.sqrt %56 : vector<1x1xf32>
    %cst_26 = arith.constant 1.000000e-30 : f32
    %58 = vector.broadcast %cst_26 : f32 to vector<1x1xf32>
    %59 = arith.maximumf %57, %58 : vector<1x1xf32>
    %cst_27 = arith.constant 1.000000e+00 : f32
    %60 = vector.broadcast %cst_27 : f32 to vector<1x1xf32>
    %61 = arith.divf %60, %59 : vector<1x1xf32>
    %62 = vector.broadcast %48 : vector<1x1xf32> to vector<8x1024xf32>
    %63 = arith.subf %37, %62 : vector<8x1024xf32>
    %64 = vector.broadcast %61 : vector<1x1xf32> to vector<8x1024xf32>
    %65 = arith.mulf %63, %64 : vector<8x1024xf32>
    %66 = arith.mulf %65, %65 : vector<8x1024xf32>
    %cst_28 = arith.constant -5.000000e-01 : f32
    %67 = vector.broadcast %cst_28 : f32 to vector<8x1024xf32>
    %68 = arith.mulf %67, %66 : vector<8x1024xf32>
    %69 = math.exp %68 : vector<8x1024xf32>
    %70 = vector.broadcast %4 : vector<1x1024xf32> to vector<8x1024xf32>
    %71 = arith.mulf %69, %70 : vector<8x1024xf32>
    %cst_29 = arith.constant dense<0.000000e+00> : vector<8xf32>
    %72 = vector.multi_reduction <add>, %71, %cst_29 [1] : vector<8x1024xf32> to vector<8xf32>
    %73 = vector.shape_cast %72 : vector<8xf32> to vector<8x1xf32>
    %cst_30 = arith.constant dense<0.000000e+00> : vector<1xf32>
    %74 = vector.multi_reduction <add>, %73, %cst_30 [0] : vector<8x1xf32> to vector<1xf32>
    %75 = vector.shape_cast %74 : vector<1xf32> to vector<1x1xf32>
    %cst_31 = arith.constant 1.000000e-30 : f32
    %76 = vector.broadcast %cst_31 : f32 to vector<1x1xf32>
    %77 = arith.maximumf %75, %76 : vector<1x1xf32>
    %78 = math.log %77 : vector<1x1xf32>
    %cst_32 = arith.constant 1.000000e-30 : f32
    %79 = vector.broadcast %cst_32 : f32 to vector<1x1xf32>
    %80 = arith.maximumf %57, %79 : vector<1x1xf32>
    %81 = math.log %80 : vector<1x1xf32>
    %82 = arith.subf %78, %81 : vector<1x1xf32>
    %cst_33 = arith.constant 0.918938517 : f32
    %83 = vector.broadcast %cst_33 : f32 to vector<1x1xf32>
    %84 = arith.subf %82, %83 : vector<1x1xf32>
    %cst_34 = arith.constant 0.000000e+00 : f32
    %85 = vector.broadcast %cst_34 : f32 to vector<1x1xf32>
    %86 = arith.maximumf %84, %85 : vector<1x1xf32>
    %87 = math.absf %84 : vector<1x1xf32>
    %cst_35 = arith.constant 0.000000e+00 : f32
    %88 = vector.broadcast %cst_35 : f32 to vector<1x1xf32>
    %89 = arith.subf %88, %87 : vector<1x1xf32>
    %90 = math.exp %89 : vector<1x1xf32>
    %cst_36 = arith.constant 1.000000e+00 : f32
    %91 = vector.broadcast %cst_36 : f32 to vector<1x1xf32>
    %92 = arith.addf %91, %90 : vector<1x1xf32>
    %93 = math.log %92 : vector<1x1xf32>
    %94 = arith.addf %86, %93 : vector<1x1xf32>
    %cst_37 = arith.constant 0.000000e+00 : f32
    %95 = vector.broadcast %cst_37 : f32 to vector<1x1xf32>
    %96 = arith.subf %95, %84 : vector<1x1xf32>
    %cst_38 = arith.constant 0.000000e+00 : f32
    %97 = vector.broadcast %cst_38 : f32 to vector<1x1xf32>
    %98 = arith.maximumf %96, %97 : vector<1x1xf32>
    %99 = math.absf %96 : vector<1x1xf32>
    %cst_39 = arith.constant 0.000000e+00 : f32
    %100 = vector.broadcast %cst_39 : f32 to vector<1x1xf32>
    %101 = arith.subf %100, %99 : vector<1x1xf32>
    %102 = math.exp %101 : vector<1x1xf32>
    %cst_40 = arith.constant 1.000000e+00 : f32
    %103 = vector.broadcast %cst_40 : f32 to vector<1x1xf32>
    %104 = arith.addf %103, %102 : vector<1x1xf32>
    %105 = math.log %104 : vector<1x1xf32>
    %106 = arith.addf %98, %105 : vector<1x1xf32>
    %107 = vector.broadcast %106 : vector<1x1xf32> to vector<8x1024xf32>
    %108 = arith.mulf %107, %37 : vector<8x1024xf32>
    %cst_41 = arith.constant 0.000000e+00 : f32
    %109 = vector.broadcast %cst_41 : f32 to vector<8x1024xf32>
    %110 = arith.maximumf %108, %109 : vector<8x1024xf32>
    %111 = arith.truncf %110 : vector<8x1024xf32> to vector<8x1024xbf16>
    %c0_42 = arith.constant 0 : index
    %c0_43 = arith.constant 0 : index
    %112 = vector.load %arg3[%c0_42, %c0_43] : memref<1024x1024xbf16, #tpu.memory_space<vmem>>, vector<1024x1024xbf16>
    %cst_44 = arith.constant dense<0.000000e+00> : vector<8x1024xf32>
    %113 = tpu.matmul %111, %112, %cst_44 {dimension_numbers = #tpu.dot_dimension_numbers<[1], [0], [0], [1], [0, 0, 1, 1], [], []>} : vector<8x1024xbf16>, vector<1024x1024xbf16>, vector<8x1024xf32> -> vector<8x1024xf32>
    %114 = vector.broadcast %8 : vector<1x1024xf32> to vector<8x1024xf32>
    %115 = arith.addf %113, %114 : vector<8x1024xf32>
    %cst_45 = arith.constant dense<0.000000e+00> : vector<8xf32>
    %116 = vector.multi_reduction <add>, %115, %cst_45 [1] : vector<8x1024xf32> to vector<8xf32>
    %117 = vector.shape_cast %116 : vector<8xf32> to vector<8x1xf32>
    %cst_46 = arith.constant 1.000000e-03 : f32
    %118 = vector.broadcast %cst_46 : f32 to vector<8x1xf32>
    %119 = arith.mulf %117, %118 : vector<8x1xf32>
    %120 = arith.mulf %115, %115 : vector<8x1024xf32>
    %cst_47 = arith.constant dense<0.000000e+00> : vector<8xf32>
    %121 = vector.multi_reduction <add>, %120, %cst_47 [1] : vector<8x1024xf32> to vector<8xf32>
    %122 = vector.shape_cast %121 : vector<8xf32> to vector<8x1xf32>
    %cst_48 = arith.constant 1.000000e-03 : f32
    %123 = vector.broadcast %cst_48 : f32 to vector<8x1xf32>
    %124 = arith.mulf %122, %123 : vector<8x1xf32>
    %125 = arith.mulf %119, %119 : vector<8x1xf32>
    %126 = arith.subf %124, %125 : vector<8x1xf32>
    %cst_49 = arith.constant 9.99999974E-6 : f32
    %127 = vector.broadcast %cst_49 : f32 to vector<8x1xf32>
    %128 = arith.addf %126, %127 : vector<8x1xf32>
    %129 = math.rsqrt %128 : vector<8x1xf32>
    %130 = vector.broadcast %119 : vector<8x1xf32> to vector<8x1024xf32>
    %131 = arith.subf %115, %130 : vector<8x1024xf32>
    %132 = vector.broadcast %129 : vector<8x1xf32> to vector<8x1024xf32>
    %133 = arith.mulf %131, %132 : vector<8x1024xf32>
    %134 = vector.broadcast %9 : vector<1x1024xf32> to vector<8x1024xf32>
    %135 = arith.mulf %133, %134 : vector<8x1024xf32>
    %136 = vector.broadcast %10 : vector<1x1024xf32> to vector<8x1024xf32>
    %137 = arith.addf %135, %136 : vector<8x1024xf32>
    %cst_50 = arith.constant dense<0.000000e+00> : vector<8xf32>
    %138 = vector.multi_reduction <add>, %137, %cst_50 [1] : vector<8x1024xf32> to vector<8xf32>
    %139 = vector.shape_cast %138 : vector<8xf32> to vector<8x1xf32>
    %cst_51 = arith.constant dense<0.000000e+00> : vector<1xf32>
    %140 = vector.multi_reduction <add>, %139, %cst_51 [0] : vector<8x1xf32> to vector<1xf32>
    %141 = vector.shape_cast %140 : vector<1xf32> to vector<1x1xf32>
    %142 = arith.mulf %137, %137 : vector<8x1024xf32>
    %cst_52 = arith.constant dense<0.000000e+00> : vector<8xf32>
    %143 = vector.multi_reduction <add>, %142, %cst_52 [1] : vector<8x1024xf32> to vector<8xf32>
    %144 = vector.shape_cast %143 : vector<8xf32> to vector<8x1xf32>
    %cst_53 = arith.constant dense<0.000000e+00> : vector<1xf32>
    %145 = vector.multi_reduction <add>, %144, %cst_53 [0] : vector<8x1xf32> to vector<1xf32>
    %146 = vector.shape_cast %145 : vector<1xf32> to vector<1x1xf32>
    %cst_54 = arith.constant 1.250000e-04 : f32
    %147 = vector.broadcast %cst_54 : f32 to vector<1x1xf32>
    %148 = arith.mulf %141, %147 : vector<1x1xf32>
    %cst_55 = arith.constant 8.000000e+03 : f32
    %149 = vector.broadcast %cst_55 : f32 to vector<1x1xf32>
    %150 = arith.mulf %149, %148 : vector<1x1xf32>
    %151 = arith.mulf %150, %148 : vector<1x1xf32>
    %152 = arith.subf %146, %151 : vector<1x1xf32>
    %cst_56 = arith.constant 7.999000e+03 : f32
    %153 = vector.broadcast %cst_56 : f32 to vector<1x1xf32>
    %154 = arith.divf %152, %153 : vector<1x1xf32>
    %cst_57 = arith.constant 0.000000e+00 : f32
    %155 = vector.broadcast %cst_57 : f32 to vector<1x1xf32>
    %156 = arith.maximumf %154, %155 : vector<1x1xf32>
    %157 = math.sqrt %156 : vector<1x1xf32>
    %cst_58 = arith.constant 1.000000e-30 : f32
    %158 = vector.broadcast %cst_58 : f32 to vector<1x1xf32>
    %159 = arith.maximumf %157, %158 : vector<1x1xf32>
    %cst_59 = arith.constant 1.000000e+00 : f32
    %160 = vector.broadcast %cst_59 : f32 to vector<1x1xf32>
    %161 = arith.divf %160, %159 : vector<1x1xf32>
    %162 = vector.broadcast %148 : vector<1x1xf32> to vector<8x1024xf32>
    %163 = arith.subf %137, %162 : vector<8x1024xf32>
    %164 = vector.broadcast %161 : vector<1x1xf32> to vector<8x1024xf32>
    %165 = arith.mulf %163, %164 : vector<8x1024xf32>
    %166 = arith.mulf %165, %165 : vector<8x1024xf32>
    %cst_60 = arith.constant -5.000000e-01 : f32
    %167 = vector.broadcast %cst_60 : f32 to vector<8x1024xf32>
    %168 = arith.mulf %167, %166 : vector<8x1024xf32>
    %169 = math.exp %168 : vector<8x1024xf32>
    %170 = vector.broadcast %4 : vector<1x1024xf32> to vector<8x1024xf32>
    %171 = arith.mulf %169, %170 : vector<8x1024xf32>
    %cst_61 = arith.constant dense<0.000000e+00> : vector<8xf32>
    %172 = vector.multi_reduction <add>, %171, %cst_61 [1] : vector<8x1024xf32> to vector<8xf32>
    %173 = vector.shape_cast %172 : vector<8xf32> to vector<8x1xf32>
    %cst_62 = arith.constant dense<0.000000e+00> : vector<1xf32>
    %174 = vector.multi_reduction <add>, %173, %cst_62 [0] : vector<8x1xf32> to vector<1xf32>
    %175 = vector.shape_cast %174 : vector<1xf32> to vector<1x1xf32>
    %cst_63 = arith.constant 1.000000e-30 : f32
    %176 = vector.broadcast %cst_63 : f32 to vector<1x1xf32>
    %177 = arith.maximumf %175, %176 : vector<1x1xf32>
    %178 = math.log %177 : vector<1x1xf32>
    %cst_64 = arith.constant 1.000000e-30 : f32
    %179 = vector.broadcast %cst_64 : f32 to vector<1x1xf32>
    %180 = arith.maximumf %157, %179 : vector<1x1xf32>
    %181 = math.log %180 : vector<1x1xf32>
    %182 = arith.subf %178, %181 : vector<1x1xf32>
    %cst_65 = arith.constant 0.918938517 : f32
    %183 = vector.broadcast %cst_65 : f32 to vector<1x1xf32>
    %184 = arith.subf %182, %183 : vector<1x1xf32>
    %cst_66 = arith.constant 0.000000e+00 : f32
    %185 = vector.broadcast %cst_66 : f32 to vector<1x1xf32>
    %186 = arith.maximumf %184, %185 : vector<1x1xf32>
    %187 = math.absf %184 : vector<1x1xf32>
    %cst_67 = arith.constant 0.000000e+00 : f32
    %188 = vector.broadcast %cst_67 : f32 to vector<1x1xf32>
    %189 = arith.subf %188, %187 : vector<1x1xf32>
    %190 = math.exp %189 : vector<1x1xf32>
    %cst_68 = arith.constant 1.000000e+00 : f32
    %191 = vector.broadcast %cst_68 : f32 to vector<1x1xf32>
    %192 = arith.addf %191, %190 : vector<1x1xf32>
    %193 = math.log %192 : vector<1x1xf32>
    %194 = arith.addf %186, %193 : vector<1x1xf32>
    %cst_69 = arith.constant 0.000000e+00 : f32
    %195 = vector.broadcast %cst_69 : f32 to vector<1x1xf32>
    %196 = arith.subf %195, %184 : vector<1x1xf32>
    %cst_70 = arith.constant 0.000000e+00 : f32
    %197 = vector.broadcast %cst_70 : f32 to vector<1x1xf32>
    %198 = arith.maximumf %196, %197 : vector<1x1xf32>
    %199 = math.absf %196 : vector<1x1xf32>
    %cst_71 = arith.constant 0.000000e+00 : f32
    %200 = vector.broadcast %cst_71 : f32 to vector<1x1xf32>
    %201 = arith.subf %200, %199 : vector<1x1xf32>
    %202 = math.exp %201 : vector<1x1xf32>
    %cst_72 = arith.constant 1.000000e+00 : f32
    %203 = vector.broadcast %cst_72 : f32 to vector<1x1xf32>
    %204 = arith.addf %203, %202 : vector<1x1xf32>
    %205 = math.log %204 : vector<1x1xf32>
    %206 = arith.addf %198, %205 : vector<1x1xf32>
    %207 = vector.broadcast %206 : vector<1x1xf32> to vector<8x1024xf32>
    %208 = arith.mulf %207, %137 : vector<8x1024xf32>
    %cst_73 = arith.constant 0.000000e+00 : f32
    %209 = vector.broadcast %cst_73 : f32 to vector<8x1024xf32>
    %210 = arith.maximumf %208, %209 : vector<8x1024xf32>
    %211 = arith.truncf %210 : vector<8x1024xf32> to vector<8x1024xbf16>
    %c0_74 = arith.constant 0 : index
    %c0_75 = arith.constant 0 : index
    %212 = vector.load %arg5[%c0_74, %c0_75] : memref<1024x128xbf16, #tpu.memory_space<vmem>>, vector<1024x128xbf16>
    %cst_76 = arith.constant dense<0.000000e+00> : vector<8x128xf32>
    %213 = tpu.matmul %211, %212, %cst_76 {dimension_numbers = #tpu.dot_dimension_numbers<[1], [0], [0], [1], [0, 0, 1, 1], [], []>} : vector<8x1024xbf16>, vector<1024x128xbf16>, vector<8x128xf32> -> vector<8x128xf32>
    %c0_77 = arith.constant 0 : index
    %c0_78 = arith.constant 0 : index
    %214 = vector.load %arg6[%c0_77, %c0_78] : memref<1x128xf32, #tpu.memory_space<vmem>>, vector<1x128xf32>
    %215 = vector.broadcast %214 : vector<1x128xf32> to vector<8x128xf32>
    %216 = arith.addf %213, %215 : vector<8x128xf32>
    %217 = tpu.iota {dimensions = array<i32: 1>} : vector<1x128xi32>
    %c10_i32 = arith.constant 10 : i32
    %218 = vector.broadcast %c10_i32 : i32 to vector<1x128xi32>
    %219 = arith.cmpi slt, %217, %218 : vector<1x128xi32>
    %cst_79 = arith.constant -1.000000e+30 : f32
    %220 = vector.shape_cast %219 : vector<1x128xi1> to vector<1x128xi1>
    %221 = vector.broadcast %220 : vector<1x128xi1> to vector<8x128xi1>
    %222 = vector.broadcast %cst_79 : f32 to vector<8x128xf32>
    %223 = arith.select %221, %216, %222 : vector<8x128xi1>, vector<8x128xf32>
    %cst_80 = arith.constant dense<0xFF800000> : vector<8xf32>
    %224 = vector.multi_reduction <maximumf>, %223, %cst_80 [1] : vector<8x128xf32> to vector<8xf32>
    %225 = vector.shape_cast %224 : vector<8xf32> to vector<8x1xf32>
    %226 = vector.broadcast %225 : vector<8x1xf32> to vector<8x128xf32>
    %227 = arith.subf %223, %226 : vector<8x128xf32>
    %228 = math.exp %227 : vector<8x128xf32>
    %cst_81 = arith.constant dense<0.000000e+00> : vector<8xf32>
    %229 = vector.multi_reduction <add>, %228, %cst_81 [1] : vector<8x128xf32> to vector<8xf32>
    %230 = vector.shape_cast %229 : vector<8xf32> to vector<8x1xf32>
    %231 = math.log %230 : vector<8x1xf32>
    %232 = vector.broadcast %231 : vector<8x1xf32> to vector<8x128xf32>
    %233 = arith.subf %227, %232 : vector<8x128xf32>
    %c0_82 = arith.constant 0 : index
    %c0_83 = arith.constant 0 : index
    %234 = vector.load %arg7[%c0_82, %c0_83] : memref<8x128xf32, #tpu.memory_space<vmem>>, vector<8x128xf32>
    tpu.vector_store %arg7[%c0_82, %c0_83], %233 {strides = array<i32>} : memref<8x128xf32, #tpu.memory_space<vmem>>, vector<8x128xf32>,
    %235 = tpu.iota {dimensions = array<i32: 1>} : vector<1x128xi32>
    %c0_i32 = arith.constant 0 : i32
    %236 = vector.broadcast %c0_i32 : i32 to vector<1x128xi32>
    %237 = arith.cmpi eq, %235, %236 : vector<1x128xi32>
    %cst_84 = arith.constant 0.000000e+00 : f32
    %238 = vector.shape_cast %48 : vector<1x1xf32> to vector<1x1xf32>
    %239 = vector.broadcast %238 : vector<1x1xf32> to vector<1x128xf32>
    %240 = vector.broadcast %cst_84 : f32 to vector<1x128xf32>
    %241 = arith.select %237, %239, %240 : vector<1x128xi1>, vector<1x128xf32>
    %c1_i32 = arith.constant 1 : i32
    %242 = vector.broadcast %c1_i32 : i32 to vector<1x128xi32>
    %243 = arith.cmpi eq, %235, %242 : vector<1x128xi32>
    %cst_85 = arith.constant 0.000000e+00 : f32
    %244 = vector.shape_cast %57 : vector<1x1xf32> to vector<1x1xf32>
    %245 = vector.broadcast %244 : vector<1x1xf32> to vector<1x128xf32>
    %246 = vector.broadcast %cst_85 : f32 to vector<1x128xf32>
    %247 = arith.select %243, %245, %246 : vector<1x128xi1>, vector<1x128xf32>
    %248 = arith.addf %241, %247 : vector<1x128xf32>
    %c2_i32 = arith.constant 2 : i32
    %249 = vector.broadcast %c2_i32 : i32 to vector<1x128xi32>
    %250 = arith.cmpi eq, %235, %249 : vector<1x128xi32>
    %cst_86 = arith.constant 8.000000e+03 : f32
    %cst_87 = arith.constant 0.000000e+00 : f32
    %251 = vector.broadcast %cst_86 : f32 to vector<1x128xf32>
    %252 = vector.broadcast %cst_87 : f32 to vector<1x128xf32>
    %253 = arith.select %250, %251, %252 : vector<1x128xi1>, vector<1x128xf32>
    %254 = arith.addf %248, %253 : vector<1x128xf32>
    %c3_i32 = arith.constant 3 : i32
    %255 = vector.broadcast %c3_i32 : i32 to vector<1x128xi32>
    %256 = arith.cmpi eq, %235, %255 : vector<1x128xi32>
    %cst_88 = arith.constant 0.000000e+00 : f32
    %257 = vector.shape_cast %94 : vector<1x1xf32> to vector<1x1xf32>
    %258 = vector.broadcast %257 : vector<1x1xf32> to vector<1x128xf32>
    %259 = vector.broadcast %cst_88 : f32 to vector<1x128xf32>
    %260 = arith.select %256, %258, %259 : vector<1x128xi1>, vector<1x128xf32>
    %261 = arith.addf %254, %260 : vector<1x128xf32>
    %c0_89 = arith.constant 0 : index
    %c0_90 = arith.constant 0 : index
    %262 = vector.load %arg8[%c0_89, %c0_90] : memref<2x128xf32, #tpu.memory_space<vmem>>, vector<1x128xf32>
    tpu.vector_store %arg8[%c0_89, %c0_90], %261 {strides = array<i32>} : memref<2x128xf32, #tpu.memory_space<vmem>>, vector<1x128xf32>,
    %c0_i32_91 = arith.constant 0 : i32
    %263 = vector.broadcast %c0_i32_91 : i32 to vector<1x128xi32>
    %264 = arith.cmpi eq, %235, %263 : vector<1x128xi32>
    %cst_92 = arith.constant 0.000000e+00 : f32
    %265 = vector.shape_cast %148 : vector<1x1xf32> to vector<1x1xf32>
    %266 = vector.broadcast %265 : vector<1x1xf32> to vector<1x128xf32>
    %267 = vector.broadcast %cst_92 : f32 to vector<1x128xf32>
    %268 = arith.select %264, %266, %267 : vector<1x128xi1>, vector<1x128xf32>
    %c1_i32_93 = arith.constant 1 : i32
    %269 = vector.broadcast %c1_i32_93 : i32 to vector<1x128xi32>
    %270 = arith.cmpi eq, %235, %269 : vector<1x128xi32>
    %cst_94 = arith.constant 0.000000e+00 : f32
    %271 = vector.shape_cast %157 : vector<1x1xf32> to vector<1x1xf32>
    %272 = vector.broadcast %271 : vector<1x1xf32> to vector<1x128xf32>
    %273 = vector.broadcast %cst_94 : f32 to vector<1x128xf32>
    %274 = arith.select %270, %272, %273 : vector<1x128xi1>, vector<1x128xf32>
    %275 = arith.addf %268, %274 : vector<1x128xf32>
    %c2_i32_95 = arith.constant 2 : i32
    %276 = vector.broadcast %c2_i32_95 : i32 to vector<1x128xi32>
    %277 = arith.cmpi eq, %235, %276 : vector<1x128xi32>
    %cst_96 = arith.constant 8.000000e+03 : f32
    %cst_97 = arith.constant 0.000000e+00 : f32
    %278 = vector.broadcast %cst_96 : f32 to vector<1x128xf32>
    %279 = vector.broadcast %cst_97 : f32 to vector<1x128xf32>
    %280 = arith.select %277, %278, %279 : vector<1x128xi1>, vector<1x128xf32>
    %281 = arith.addf %275, %280 : vector<1x128xf32>
    %c3_i32_98 = arith.constant 3 : i32
    %282 = vector.broadcast %c3_i32_98 : i32 to vector<1x128xi32>
    %283 = arith.cmpi eq, %235, %282 : vector<1x128xi32>
    %cst_99 = arith.constant 0.000000e+00 : f32
    %284 = vector.shape_cast %194 : vector<1x1xf32> to vector<1x1xf32>
    %285 = vector.broadcast %284 : vector<1x1xf32> to vector<1x128xf32>
    %286 = vector.broadcast %cst_99 : f32 to vector<1x128xf32>
    %287 = arith.select %283, %285, %286 : vector<1x128xi1>, vector<1x128xf32>
    %288 = arith.addf %281, %287 : vector<1x128xf32>
    %c1_100 = arith.constant 1 : index
    %c0_101 = arith.constant 0 : index
    %289 = vector.load %arg8[%c1_100, %c0_101] : memref<2x128xf32, #tpu.memory_space<vmem>>, vector<1x128xf32>
    tpu.vector_store %arg8[%c1_100, %c0_101], %288 {strides = array<i32>} : memref<2x128xf32, #tpu.memory_space<vmem>>, vector<1x128xf32>,
    return
  }
}

</mosaic_0001>

<bundles_post_ra>
// kernel: nnrnln_forward_fused.1
= control target key start
LH: loop header
LB: loop body
LE: loop exit
PB: predicated region body
PF: predicated region fallthrough
CT: control target
= control target key end

     0   :  { %14 = vsyncpa [#allocation3], 0  ;;  %s14874_s0 = inlined_call_operand.vmem [shape: bf16[8,896], index: 0, kind: input, shape index: {}]   ;;  %s14875_s1 = inlined_call_operand.hbm [shape: bf16[896,1024], index: 1, kind: input, shape index: {}]   ;;  %s14876_s2 = inlined_call_operand.hbm [shape: f32[8,1024], index: 2, kind: input, shape index: {}]   ;;  %s14877_s3 = inlined_call_operand.hbm [shape: bf16[1024,1024], index: 3, kind: input, shape index: {}]   ;;  %s14878_s4 = inlined_call_operand.hbm [shape: f32[8,1024], index: 4, kind: input, shape index: {}]   ;;  %s14879_s5 = inlined_call_operand.hbm [shape: bf16[1024,128], index: 5, kind: input, shape index: {}]   ;;  %s14880_s6 = inlined_call_operand.hbm [shape: f32[1,128], index: 6, kind: input, shape index: {}]   ;;  %s14881_s7 = inlined_call_operand.hbm [shape: f32[8,128], index: 7, kind: output, shape index: {0}]   ;;  %s14882_s8 = inlined_call_operand.vmem [shape: f32[2,128], index: 8, kind: output, shape index: {1}]  }
   0x1   :  { %15 = vsyncpa [#allocation6], 0 }
   0x2   :  { %16 = vsyncpa [#allocation9], 0 }
   0x3   :  { %17 = vsyncpa [#allocation12], 0  ;;  %s39_s29 = sshll.u32 %s14876_s2, 4  ;;  %s40_s29 = int_to_ptr.hbm [resolvable:$true] %s39_s29 }
   0x4   :  { %18 = vsyncpa [#allocation4], 0  ;;  %s14229_s30 = smov [#allocation5]   ;;  %s63_s12 = sshll.u32 %s14878_s4, 4  ;;  %s64_s12 = int_to_ptr.hbm [resolvable:$true] %s63_s12 }
   0x5   :  { %s41_s9 = sshll.u32 %s14229_s30, 4  ;;  %s14230_s13 = smov [#allocation8]   ;;  %s42_s9 = int_to_ptr.vmem [resolvable:$true] %s41_s9 }
   0x6   :  { %44 = dma.hbm_to_vmem [thread:$0]  %s40_s29, 1024, %s42_s9, [#allocation6]  }
   0x7   :  { %s65_s14 = sshll.u32 %s14230_s13, 4  ;;  %s25_s17 = sshll.u32 %s14875_s1, 4  ;;  %s66_s14 = int_to_ptr.vmem [resolvable:$true] %s65_s14  ;;  %s26_s17 = int_to_ptr.hbm [resolvable:$true] %s25_s17 }
   0x8   :  { %68 = dma.hbm_to_vmem [thread:$0]  %s64_s12, 1024, %s66_s14, [#allocation9]  }
   0x9   :  { %s14231_s2 = smov [#allocation2]   ;;  %s49_s21 = sshll.u32 %s14877_s3, 4  ;;  %s50_s21 = int_to_ptr.hbm [resolvable:$true] %s49_s21 }
   0xa   :  { %s27_s18 = sshll.u32 %s14231_s2, 4  ;;  %s14232_s22 = smov 512   ;;  %s28_s18 = int_to_ptr.vmem [resolvable:$true] %s27_s18 }
   0xb   :  { %s14233_s4 = smov 32   ;;  %s14234_s23 = smov [#allocation7]  }
   0xc   :  { %33 = dma.hbm_to_vmem [thread:$0]  %s26_s17, 57344, %s28_s18, [#allocation3], %s14232_s22, %s14232_s22, %s14233_s4  }
   0xd   :  { %s51_s24 = sshll.u32 %s14234_s23, 4  ;;  %s73_s1 = sshll.u32 %s14879_s5, 4  ;;  %s52_s24 = int_to_ptr.vmem [resolvable:$true] %s51_s24  ;;  %s74_s1 = int_to_ptr.hbm [resolvable:$true] %s73_s1 }
   0xe   :  { %57 = dma.hbm_to_vmem [thread:$0]  %s50_s21, 65536, %s52_s24, [#allocation6], %s14232_s22, %s14232_s22, %s14233_s4  }
   0xf   :  { %s14235_s27 = smov [#allocation10]   ;;  %s87_s3 = sshll.u32 %s14880_s6, 4  ;;  %s88_s3 = int_to_ptr.hbm [resolvable:$true] %s87_s3 }
  0x10   :  { %s75_s28 = sshll.u32 %s14235_s27, 4  ;;  %s14236_s9 = smov 64   ;;  %s76_s28 = int_to_ptr.vmem [resolvable:$true] %s75_s28 }
  0x11   :  { %s14237_s10 = smov 4   ;;  %s14238_s11 = smov [#allocation11]  }
  0x12   :  { %81 = dma.hbm_to_vmem [thread:$0]  %s74_s1, 8192, %s76_s28, [#allocation9], %s14236_s9, %s14236_s9, %s14237_s10  }
  0x13   :  { %s89_s12 = sshll.u32 %s14238_s11, 4  ;;  %s90_s12 = int_to_ptr.vmem [resolvable:$true] %s89_s12 }
  0x14   :  { %92 = dma.hbm_to_vmem [thread:$0]  %s88_s3, 16, %s90_s12, [#allocation12]  }
  0x15   :  { %14219 = dma.done.wait [#allocation3], 57344  }
  0x16   :  { %14220 = vsyncadd [#allocation3], 4294909952 }
  0x17   :  { %14221 = dma.done.wait [#allocation6], 66560  }
  0x18   :  { %14222 = vsyncadd [#allocation6], 4294900736 }
  0x19   :  { %14223 = dma.done.wait [#allocation9], 9216  }
  0x1a   :  { %14224 = vsyncadd [#allocation9], 4294958080 }
  0x1b   :  { %14225 = dma.done.wait [#allocation12], 16  }
  0x1c   :  { %14226 = vsyncadd [#allocation12], 4294967280  ;;  %v9067_v0 = vld [vmem:[#allocation2 + $0x1c0] sm:$0xf]  ;;  %s8823_s23 = sshll.u32 %s14881_s7, 4  ;;  %s8824_s23 = int_to_ptr.hbm [resolvable:$true] %s8823_s23 }
  0x1d   :  { %v12999_v1 = vld [vmem:[#allocation2 + $0x1dc] sm:$0xf0] }
  0x1e   :  { %v9323_v2 = vld [vmem:[#allocation2 + $0x3c0] sm:$0xf]  ;;  %v9068_v3 = vor.u32 %v12999_v1, %v9067_v0 }
  0x1f   :  { %v13063_v4 = vld [vmem:[#allocation2 + $0x3dc] sm:$0xf0] }
  0x20   :  { %v9579_v5 = vld [vmem:[#allocation2 + $0x5c0] sm:$0xf]  ;;  %v9324_v7 = vor.u32 %v13063_v4, %v9323_v2  ;;  %2906 = vmatpush.bf16.msra.mxu0 %v9068_v3 }
  0x21   :  { %v13127_v6 = vld [vmem:[#allocation2 + $0x5dc] sm:$0xf0] }
  0x22   :  { %v9580_v8 = vor.u32 %v13127_v6, %v9579_v5  ;;  %v9835_v9 = vld [vmem:[#allocation2 + $0x7c0] sm:$0xf]  ;;  %2919 = vmatpush.bf16.msra.mxu1 %v9324_v7 }
  0x23   :  { %v13191_v10 = vld [vmem:[#allocation2 + $0x7dc] sm:$0xf0] }
  0x24   :  { %v9035_v11 = vld [vmem:[#allocation2 + $0x180] sm:$0xf]  ;;  %v9836_v12 = vor.u32 %v13191_v10, %v9835_v9  ;;  %2932 = vmatpush.bf16.msra.mxu2 %v9580_v8 }
  0x25   :  { %v12991_v13 = vld [vmem:[#allocation2 + $0x19c] sm:$0xf0] }
  0x26   :  { %v9291_v14 = vld [vmem:[#allocation2 + $0x380] sm:$0xf]  ;;  %v9036_v16 = vor.u32 %v12991_v13, %v9035_v11  ;;  %2945 = vmatpush.bf16.msra.mxu3 %v9836_v12 }
  0x27   :  { %v13055_v15 = vld [vmem:[#allocation2 + $0x39c] sm:$0xf0] }
  0x28   :  { %v9292_v17 = vor.u32 %v13055_v15, %v9291_v14  ;;  %v9547_v18 = vld [vmem:[#allocation2 + $0x580] sm:$0xf]  ;;  %2907 = vmatpush.bf16.msra.mxu0 %v9036_v16 }
  0x29   :  { %v13119_v19 = vld [vmem:[#allocation2 + $0x59c] sm:$0xf0] }
  0x2a   :  { %v9803_v20 = vld [vmem:[#allocation2 + $0x780] sm:$0xf]  ;;  %v9548_v21 = vor.u32 %v13119_v19, %v9547_v18  ;;  %2920 = vmatpush.bf16.msra.mxu1 %v9292_v17 }
  0x2b   :  { %v13183_v22 = vld [vmem:[#allocation2 + $0x79c] sm:$0xf0] }
  0x2c   :  { %v9003_v23 = vld [vmem:[#allocation2 + $0x140] sm:$0xf]  ;;  %v9804_v25 = vor.u32 %v13183_v22, %v9803_v20  ;;  %2933 = vmatpush.bf16.msra.mxu2 %v9548_v21 }
  0x2d   :  { %v12983_v24 = vld [vmem:[#allocation2 + $0x15c] sm:$0xf0] }
  0x2e   :  { %v9259_v26 = vld [vmem:[#allocation2 + $0x340] sm:$0xf]  ;;  %v9004_v29 = vor.u32 %v12983_v24, %v9003_v23  ;;  %2946 = vmatpush.bf16.msra.mxu3 %v9804_v25 }
  0x2f   :  { %v13047_v27 = vld [vmem:[#allocation2 + $0x35c] sm:$0xf0] }
  0x30   :  { %v9515_v28 = vld [vmem:[#allocation2 + $0x540] sm:$0xf]  ;;  %v9260_v33 = vor.u32 %v13047_v27, %v9259_v26  ;;  %2908 = vmatpush.bf16.msra.mxu0 %v9004_v29 }
  0x31   :  { %v13111_v30 = vld [vmem:[#allocation2 + $0x55c] sm:$0xf0] }
  0x32   :  { %v9771_v31 = vld [vmem:[#allocation2 + $0x740] sm:$0xf]  ;;  %v9516_v34 = vor.u32 %v13111_v30, %v9515_v28  ;;  %2921 = vmatpush.bf16.msra.mxu1 %v9260_v33 }
  0x33   :  { %v13175_v32 = vld [vmem:[#allocation2 + $0x75c] sm:$0xf0] }
  0x34   :  { %v8971_v35 = vld [vmem:[#allocation2 + $0x100] sm:$0xf]  ;;  %v9772_v38 = vor.u32 %v13175_v32, %v9771_v31  ;;  %2934 = vmatpush.bf16.msra.mxu2 %v9516_v34 }
  0x35   :  { %v12975_v36 = vld [vmem:[#allocation2 + $0x11c] sm:$0xf0] }
  0x36   :  { %v9227_v37 = vld [vmem:[#allocation2 + $0x300] sm:$0xf]  ;;  %v8972_v44 = vor.u32 %v12975_v36, %v8971_v35  ;;  %2947 = vmatpush.bf16.msra.mxu3 %v9772_v38  ;;  %v9069_v38 = vld [vmem:[#allocation2 + $0x1e0] sm:$0xf0] }
  0x37   :  { %v13039_v39 = vld [vmem:[#allocation2 + $0x31c] sm:$0xf0] }
  0x38   :  { %v9483_v40 = vld [vmem:[#allocation2 + $0x500] sm:$0xf]  ;;  %v9228_v45 = vor.u32 %v13039_v39, %v9227_v37  ;;  %2909 = vmatpush.bf16.msra.mxu0 %v8972_v44  ;;  %v12995_v37 = vld [vmem:[#allocation2 + $0x1c4] sm:$0xf] }
  0x39   :  { %v13103_v41 = vld [vmem:[#allocation2 + $0x51c] sm:$0xf0] }
  0x3a   :  { %v9739_v42 = vld [vmem:[#allocation2 + $0x700] sm:$0xf]  ;;  %v9484_v46 = vor.u32 %v13103_v41, %v9483_v40  ;;  %2922 = vmatpush.bf16.msra.mxu1 %v9228_v45 }
  0x3b   :  { %v13167_v43 = vld [vmem:[#allocation2 + $0x71c] sm:$0xf0] }
  0x3c   :  { %v8939_v47 = vld [vmem:[#allocation2 + $0xc0] sm:$0xf]  ;;  %v9740_v50 = vor.u32 %v13167_v43, %v9739_v42  ;;  %2935 = vmatpush.bf16.msra.mxu2 %v9484_v46  ;;  %v9072_v46 = vor.u32 %v12995_v37, %v9069_v38 }
  0x3d   :  { %v12967_v48 = vld [vmem:[#allocation2 + $0xdc] sm:$0xf0] }
  0x3e   :  { %v9195_v49 = vld [vmem:[#allocation2 + $0x2c0] sm:$0xf]  ;;  %v8940_v56 = vor.u32 %v12967_v48, %v8939_v47  ;;  %2948 = vmatpush.bf16.msra.mxu3 %v9740_v50  ;;  %v12987_v50 = vld [vmem:[#allocation2 + $0x184] sm:$0xf] }
  0x3f   :  { %v13031_v51 = vld [vmem:[#allocation2 + $0x2dc] sm:$0xf0] }
  0x40   :  { %v9451_v52 = vld [vmem:[#allocation2 + $0x4c0] sm:$0xf]  ;;  %v9196_v57 = vor.u32 %v13031_v51, %v9195_v49  ;;  %2910 = vmatpush.bf16.msra.mxu0 %v8940_v56  ;;  %v9037_v51 = vld [vmem:[#allocation2 + $0x1a0] sm:$0xf0] }
  0x41   :  { %v13095_v53 = vld [vmem:[#allocation2 + $0x4dc] sm:$0xf0] }
  0x42   :  { %v9707_v54 = vld [vmem:[#allocation2 + $0x6c0] sm:$0xf]  ;;  %v9452_v58 = vor.u32 %v13095_v53, %v9451_v52  ;;  %2923 = vmatpush.bf16.msra.mxu1 %v9196_v57 }
  0x43   :  { %v13159_v55 = vld [vmem:[#allocation2 + $0x6dc] sm:$0xf0] }
  0x44   :  { %v8907_v59 = vld [vmem:[#allocation2 + $0x80] sm:$0xf]  ;;  %v9708_v62 = vor.u32 %v13159_v55, %v9707_v54  ;;  %2936 = vmatpush.bf16.msra.mxu2 %v9452_v58 }
  0x45   :  { %v12959_v60 = vld [vmem:[#allocation2 + $0x9c] sm:$0xf0] }
  0x46   :  { %v9163_v61 = vld [vmem:[#allocation2 + $0x280] sm:$0xf]  ;;  %v8908_v4 = vor.u32 %v12959_v60, %v8907_v59  ;;  %2949 = vmatpush.bf16.msra.mxu3 %v9708_v62  ;;  %v9040_v59 = vor.u32 %v12987_v50, %v9037_v51  ;;  %v12979_v62 = vld [vmem:[#allocation2 + $0x144] sm:$0xf] }
  0x47   :  { %v13023_v63 = vld [vmem:[#allocation2 + $0x29c] sm:$0xf0] }
  0x48   :  { %v9419_v0 = vld [vmem:[#allocation2 + $0x480] sm:$0xf]  ;;  %v9164_v5 = vor.u32 %v13023_v63, %v9163_v61  ;;  %2911 = vmatpush.bf16.msra.mxu0 %v8908_v4  ;;  %v9005_v63 = vld [vmem:[#allocation2 + $0x160] sm:$0xf0] }
  0x49   :  { %v13087_v1 = vld [vmem:[#allocation2 + $0x49c] sm:$0xf0] }
  0x4a   :  { %v9675_v2 = vld [vmem:[#allocation2 + $0x680] sm:$0xf]  ;;  %v9420_v6 = vor.u32 %v13087_v1, %v9419_v0  ;;  %2924 = vmatpush.bf16.msra.mxu1 %v9164_v5 }
  0x4b   :  { %v13151_v3 = vld [vmem:[#allocation2 + $0x69c] sm:$0xf0] }
  0x4c   :  { %v8875_v7 = vld [vmem:[#allocation2 + $0x40] sm:$0xf]  ;;  %v9676_v10 = vor.u32 %v13151_v3, %v9675_v2  ;;  %2937 = vmatpush.bf16.msra.mxu2 %v9420_v6  ;;  %v173_v2 = vld [vmem:[%s14874_s0 + $0x8] sm:$0xff] }
  0x4d   :  { %v12951_v8 = vld [vmem:[#allocation2 + $0x5c] sm:$0xf0] }
  0x4e   :  { %v9131_v9 = vld [vmem:[#allocation2 + $0x240] sm:$0xf]  ;;  %v8876_v16 = vor.u32 %v12951_v8, %v8875_v7  ;;  %2950 = vmatpush.bf16.msra.mxu3 %v9676_v10  ;;  %v647_v8 = vunpack.c.l.b16 %v173_v2  ;;  %v648_v10 = vunpack.c.h.b16 %v173_v2 }
  0x4f   :  { %v13015_v11 = vld [vmem:[#allocation2 + $0x25c] sm:$0xf0] }
  0x50   :  { %v9387_v12 = vld [vmem:[#allocation2 + $0x440] sm:$0xf]  ;;  %v9132_v19 = vor.u32 %v13015_v11, %v9131_v9  ;;  %2912 = vmatpush.bf16.msra.mxu0 %v8876_v16  ;;  %v9008_v11 = vor.u32 %v12979_v62, %v9005_v63  ;;  %v12971_v16 = vld [vmem:[#allocation2 + $0x104] sm:$0xf] }
  0x51   :  { %v13079_v13 = vld [vmem:[#allocation2 + $0x45c] sm:$0xf0] }
  0x52   :  { %v9643_v14 = vld [vmem:[#allocation2 + $0x640] sm:$0xf]  ;;  %v9388_v20 = vor.u32 %v13079_v13, %v9387_v12  ;;  %2925 = vmatpush.bf16.msra.mxu1 %v9132_v19 }
  0x53   :  { %v13143_v15 = vld [vmem:[#allocation2 + $0x65c] sm:$0xf0] }
  0x54   :  { %v8843_v17 = vld [vmem:[#allocation2] sm:$0xf]  ;;  %v9644_v24 = vor.u32 %v13143_v15, %v9643_v14  ;;  %2938 = vmatpush.bf16.msra.mxu2 %v9388_v20  ;;  %v14315_v20 = vpack.c.b16 %v648_v10, %v648_v10  ;;  %v13123_v10 = vld [vmem:[#allocation2 + $0x5c4] sm:$0xf] }
  0x55   :  { %v12943_v18 = vld [vmem:[#allocation2 + $0x1c] sm:$0xf0] }
  0x56   :  { %v9099_v21 = vld [vmem:[#allocation2 + $0x200] sm:$0xf]  ;;  %v8844_v31 = vor.u32 %v12943_v18, %v8843_v17  ;;  %2951 = vmatpush.bf16.msra.mxu3 %v9644_v24  ;;  %v8973_v17 = vld [vmem:[#allocation2 + $0x120] sm:$0xf0]  ;;  %v14311_v18 = vpack.c.b16 %v647_v8, %v647_v8 }
  0x57   :  { %v13007_v22 = vld [vmem:[#allocation2 + $0x21c] sm:$0xf0]  ;;  %v13059_v8 = vld [vmem:[#allocation2 + $0x3c4] sm:$0xf] }
  0x58   :  { %v9355_v23 = vld [vmem:[#allocation2 + $0x400] sm:$0xf]  ;;  %v9100_v35 = vor.u32 %v13007_v22, %v9099_v21  ;;  %2913 = vmatpush.bf16.msra.mxu0 %v8844_v31 }
  0x59   :  { %v13071_v25 = vld [vmem:[#allocation2 + $0x41c] sm:$0xf0] }
  0x5a   :  { %v9611_v26 = vld [vmem:[#allocation2 + $0x600] sm:$0xf]  ;;  %v9356_v36 = vor.u32 %v13071_v25, %v9355_v23  ;;  %2926 = vmatpush.bf16.msra.mxu1 %v9100_v35 }
  0x5b   :  { %v13135_v27 = vld [vmem:[#allocation2 + $0x61c] sm:$0xf0] }
  0x5c   :  { %v10091_v28 = vld [vmem:[#allocation2 + $0x9c0] sm:$0xf]  ;;  %v9612_v39 = vor.u32 %v13135_v27, %v9611_v26  ;;  %2939 = vmatpush.bf16.msra.mxu2 %v9356_v36 }
  0x5d   :  { %v13255_v29 = vld [vmem:[#allocation2 + $0x9dc] sm:$0xf0] }
  0x5e   :  { %v10347_v30 = vld [vmem:[#allocation2 + $0xbc0] sm:$0xf]  ;;  %v10092_v40 = vor.u32 %v13255_v29, %v10091_v28  ;;  %2952 = vmatpush.bf16.msra.mxu3 %v9612_v39  ;;  %v8976_v28 = vor.u32 %v12971_v16, %v8973_v17 }
  0x5f   :  { %v13319_v32 = vld [vmem:[#allocation2 + $0xbdc] sm:$0xf0]  ;;  %2940 = vmatmul.bf16.vlgmr.msra.gmra.mxu2 %v14311_v18 }
  0x60   :  { %v10603_v33 = vld [vmem:[#allocation2 + $0xdc0] sm:$0xf]  ;;  %v10348_v41 = vor.u32 %v13319_v32, %v10347_v30  ;;  %2958 = vmatpush.bf16.msrb.mxu0 %v10092_v40  ;;  %v12963_v32 = vld [vmem:[#allocation2 + $0xc4] sm:$0xf] }
  0x61   :  { %v13383_v34 = vld [vmem:[#allocation2 + $0xddc] sm:$0xf0]  ;;  %2953 = vmatmul.bf16.vlgmr.msra.gmra.mxu3 %v14315_v20 }
  0x62   :  { %v10604_v42 = vor.u32 %v13383_v34, %v10603_v33  ;;  %v10059_v43 = vld [vmem:[#allocation2 + $0x980] sm:$0xf]  ;;  %2971 = vmatpush.bf16.msrb.mxu1 %v10348_v41  ;;  %2997 = vmatpush.bf16.msrb.mxu3 %v9072_v46  ;;  %v8941_v33 = vld [vmem:[#allocation2 + $0xe0] sm:$0xf0] }
  0x63   :  { %v13247_v44 = vld [vmem:[#allocation2 + $0x99c] sm:$0xf0]  ;;  %v8944_v40 = vor.u32 %v12963_v32, %v8941_v33  ;;  %v13115_v32 = vld [vmem:[#allocation2 + $0x584] sm:$0xf] }
  0x64   :  { %v10315_v45 = vld [vmem:[#allocation2 + $0xb80] sm:$0xf]  ;;  %v10060_v52 = vor.u32 %v13247_v44, %v10059_v43  ;;  %2984 = vmatpush.bf16.msrb.mxu2 %v10604_v42  ;;  %v12955_v44 = vld [vmem:[#allocation2 + $0x84] sm:$0xf] }
  0x65   :  { %v13311_v47 = vld [vmem:[#allocation2 + $0xb9c] sm:$0xf0] }
  0x66   :  { %v10571_v48 = vld [vmem:[#allocation2 + $0xd80] sm:$0xf]  ;;  %v10316_v54 = vor.u32 %v13311_v47, %v10315_v45  ;;  %2959 = vmatpush.bf16.msrb.mxu0 %v10060_v52  ;;  %2998 = vmatpush.bf16.msrb.mxu3 %v9040_v59  ;;  %v8909_v45 = vld [vmem:[#allocation2 + $0xa0] sm:$0xf0] }
  0x67   :  { %v13375_v49 = vld [vmem:[#allocation2 + $0xd9c] sm:$0xf0]  ;;  %v8912_v52 = vor.u32 %v12955_v44, %v8909_v45  ;;  %v13043_v45 = vld [vmem:[#allocation2 + $0x344] sm:$0xf] }
  0x68   :  { %v10027_v53 = vld [vmem:[#allocation2 + $0x940] sm:$0xf]  ;;  %v10572_v55 = vor.u32 %v13375_v49, %v10571_v48  ;;  %2972 = vmatpush.bf16.msrb.mxu1 %v10316_v54 }
  0x69   :  { %v13239_v56 = vld [vmem:[#allocation2 + $0x95c] sm:$0xf0] }
  0x6a   :  { %v10283_v57 = vld [vmem:[#allocation2 + $0xb40] sm:$0xf]  ;;  %v10028_v0 = vor.u32 %v13239_v56, %v10027_v53  ;;  %2985 = vmatpush.bf16.msrb.mxu2 %v10572_v55  ;;  %2999 = vmatpush.bf16.msrb.mxu3 %v9008_v11  ;;  %v12947_v56 = vld [vmem:[#allocation2 + $0x44] sm:$0xf] }
  0x6b   :  { %v13303_v58 = vld [vmem:[#allocation2 + $0xb5c] sm:$0xf0] }
  0x6c   :  { %v10539_v60 = vld [vmem:[#allocation2 + $0xd40] sm:$0xf]  ;;  %v10284_v1 = vor.u32 %v13303_v58, %v10283_v57  ;;  %2960 = vmatpush.bf16.msrb.mxu0 %v10028_v0  ;;  %v8877_v57 = vld [vmem:[#allocation2 + $0x60] sm:$0xf0] }
  0x6d   :  { %v13367_v61 = vld [vmem:[#allocation2 + $0xd5c] sm:$0xf0] }
  0x6e   :  { %v172_v3 = vld [vmem:[%s14874_s0] sm:$0xff]  ;;  %v10540_v4 = vor.u32 %v13367_v61, %v10539_v60  ;;  %2973 = vmatpush.bf16.msrb.mxu1 %v10284_v1  ;;  %3000 = vmatpush.bf16.msrb.mxu3 %v8976_v28 }
  0x6f   :  { %v9995_v5 = vld [vmem:[#allocation2 + $0x900] sm:$0xf]  ;;  %v645_v9 = vunpack.c.l.b16 %v172_v3  ;;  %v646_v15 = vunpack.c.h.b16 %v172_v3  ;;  %v175_v3 = vld [vmem:[%s14874_s0 + $0x18] sm:$0xf] }
  0x70   :  { %v13231_v6 = vld [vmem:[#allocation2 + $0x91c] sm:$0xf0]  ;;  %2986 = vmatpush.bf16.msrb.mxu2 %v10540_v4  ;;  %v8880_v4 = vor.u32 %v12947_v56, %v8877_v57  ;;  %v13035_v57 = vld [vmem:[#allocation2 + $0x304] sm:$0xf] }
  0x71   :  { %v10251_v7 = vld [vmem:[#allocation2 + $0xb00] sm:$0xf]  ;;  %v14313_v19 = vpack.c.b16 %v645_v9, %v645_v9  ;;  %v9996_v21 = vor.u32 %v13231_v6, %v9995_v5  ;;  %v14317_v22 = vpack.c.b16 %v646_v15, %v646_v15  ;;  %v12939_v5 = vld [vmem:[#allocation2 + $0x4] sm:$0xf]  ;;  %v651_v15 = vunpack.c.l.b16 %v175_v3 }
  0x72   :  { %v13295_v12 = vld [vmem:[#allocation2 + $0xb1c] sm:$0xf0]  ;;  %3001 = vmatpush.bf16.msrb.mxu3 %v8944_v40  ;;  %v8845_v6 = vld [vmem:[#allocation2 + $0x20] sm:$0xf0] }
  0x73   :  { %v10507_v13 = vld [vmem:[#allocation2 + $0xd00] sm:$0xf]  ;;  %v10252_v23 = vor.u32 %v13295_v12, %v10251_v7  ;;  %2914 = vmatmul.bf16.vlgmr.msra.gmra.mxu0 %v14313_v19  ;;  %2927 = vmatmul.bf16.vlgmr.msra.gmra.mxu1 %v14317_v22  ;;  %v174_v7 = vld [vmem:[%s14874_s0 + $0x10] sm:$0xff]  ;;  %v9325_v9 = vld [vmem:[#allocation2 + $0x3e0] sm:$0xf0] }
  0x74   :  { %v13359_v14 = vld [vmem:[#allocation2 + $0xd1c] sm:$0xf0]  ;;  %2961 = vmatpush.bf16.msrb.mxu0 %v9996_v21  ;;  %v9581_v12 = vld [vmem:[#allocation2 + $0x5e0] sm:$0xf0] }
  0x75   :  { %v10508_v24 = vor.u32 %v13359_v14, %v10507_v13  ;;  %v9963_v25 = vld [vmem:[#allocation2 + $0x8c0] sm:$0xf]  ;;  %2974 = vmatpush.bf16.msrb.mxu1 %v10252_v23  ;;  %v13187_v13 = vld [vmem:[#allocation2 + $0x7c4] sm:$0xf]  ;;  %v9584_v28 = vor.u32 %v13123_v10, %v9581_v12 }
  0x76   :  { %v13223_v26 = vld [vmem:[#allocation2 + $0x8dc] sm:$0xf0]  ;;  %3002 = vmatpush.bf16.msrb.mxu3 %v8912_v52  ;;  %v9837_v14 = vld [vmem:[#allocation2 + $0x7e0] sm:$0xf0] }
  0x77   :  { %v10219_v27 = vld [vmem:[#allocation2 + $0xac0] sm:$0xf]  ;;  %v9964_v34 = vor.u32 %v13223_v26, %v9963_v25  ;;  %2987 = vmatpush.bf16.msrb.mxu2 %v10508_v24  ;;  %v13251_v21 = vld [vmem:[#allocation2 + $0x9c4] sm:$0xf]  ;;  %v649_v24 = vunpack.c.l.b16 %v174_v7  ;;  %v650_v25 = vunpack.c.h.b16 %v174_v7  ;;  %v8848_v26 = vor.u32 %v12939_v5, %v8845_v6 }
  0x78   :  { %v13287_v29 = vld [vmem:[#allocation2 + $0xadc] sm:$0xf0]  ;;  %v10093_v23 = vld [vmem:[#allocation2 + $0x9e0] sm:$0xf0] }
  0x79   :  { %v10475_v30 = vld [vmem:[#allocation2 + $0xcc0] sm:$0xf]  ;;  %v10220_v35 = vor.u32 %v13287_v29, %v10219_v27  ;;  %2962 = vmatpush.bf16.msrb.mxu0 %v9964_v34  ;;  %v9328_v27 = vor.u32 %v13059_v8, %v9325_v9  ;;  %v9840_v29 = vor.u32 %v13187_v13, %v9837_v14  ;;  %v10096_v33 = vor.u32 %v13251_v21, %v10093_v23  ;;  %v9549_v34 = vld [vmem:[#allocation2 + $0x5a0] sm:$0xf0] }
  0x7a   :  { %v13351_v31 = vld [vmem:[#allocation2 + $0xcdc] sm:$0xf0]  ;;  %3003 = vmatpush.bf16.msrb.mxu3 %v8880_v4  ;;  %v14331_v40 = vpack.c.b16 %v649_v24, %v649_v24  ;;  %v13235_v52 = vld [vmem:[#allocation2 + $0x944] sm:$0xf] }
  0x7b   :  { %v10476_v36 = vor.u32 %v13351_v31, %v10475_v30  ;;  %v9931_v37 = vld [vmem:[#allocation2 + $0x880] sm:$0xf]  ;;  %2975 = vmatpush.bf16.msrb.mxu1 %v10220_v35  ;;  %v13051_v30 = vld [vmem:[#allocation2 + $0x384] sm:$0xf] }
  0x7c   :  { %v13215_v38 = vld [vmem:[#allocation2 + $0x89c] sm:$0xf0]  ;;  %v9293_v31 = vld [vmem:[#allocation2 + $0x3a0] sm:$0xf0] }
  0x7d   :  { %v10187_v39 = vld [vmem:[#allocation2 + $0xa80] sm:$0xf]  ;;  %v9932_v46 = vor.u32 %v13215_v38, %v9931_v37  ;;  %2988 = vmatpush.bf16.msrb.mxu2 %v10476_v36  ;;  %v13179_v35 = vld [vmem:[#allocation2 + $0x784] sm:$0xf]  ;;  %v14329_v37 = vpack.c.b16 %v651_v15, %v651_v15 }
  0x7e   :  { %v13279_v41 = vld [vmem:[#allocation2 + $0xa9c] sm:$0xf0]  ;;  %v9805_v36 = vld [vmem:[#allocation2 + $0x7a0] sm:$0xf0]  ;;  %3004 = vmatpush.bf16.msrb.mxu3 %v8848_v26 }
  0x7f   :  { %v10443_v42 = vld [vmem:[#allocation2 + $0xc80] sm:$0xf]  ;;  %v10188_v47 = vor.u32 %v13279_v41, %v10187_v39  ;;  %2963 = vmatpush.bf16.msrb.mxu0 %v9932_v46  ;;  %v13243_v38 = vld [vmem:[#allocation2 + $0x984] sm:$0xf]  ;;  %v14333_v41 = vpack.c.b16 %v650_v25, %v650_v25  ;;  %v9808_v44 = vor.u32 %v13179_v35, %v9805_v36 }
  0x80   :  { %v13343_v43 = vld [vmem:[#allocation2 + $0xc9c] sm:$0xf0]  ;;  %v10061_v39 = vld [vmem:[#allocation2 + $0x9a0] sm:$0xf0] }
  0x81   :  { %v10444_v48 = vor.u32 %v13343_v43, %v10443_v42  ;;  %v9899_v49 = vld [vmem:[#allocation2 + $0x840] sm:$0xf]  ;;  %2976 = vmatpush.bf16.msrb.mxu1 %v10188_v47  ;;  %v9296_v42 = vor.u32 %v13051_v30, %v9293_v31  ;;  %v9552_v43 = vor.u32 %v13115_v32, %v9549_v34  ;;  %v9261_v46 = vld [vmem:[#allocation2 + $0x360] sm:$0xf0]  ;;  %3005 = vmatmul.bf16.vlgmr.msrb.gmra.mxu3 %v14313_v19 }
  0x82   :  { %v13207_v50 = vld [vmem:[#allocation2 + $0x85c] sm:$0xf0]  ;;  %v13107_v47 = vld [vmem:[#allocation2 + $0x544] sm:$0xf]  ;;  %3049 = vmatpush.bf16.msra.mxu3 %v10096_v33 }
  0x83   :  { %v10155_v51 = vld [vmem:[#allocation2 + $0xa40] sm:$0xf]  ;;  %v9900_v59 = vor.u32 %v13207_v50, %v9899_v49  ;;  %2989 = vmatpush.bf16.msrb.mxu2 %v10444_v48  ;;  %v10064_v48 = vor.u32 %v13243_v38, %v10061_v39  ;;  %v9517_v49 = vld [vmem:[#allocation2 + $0x560] sm:$0xf0] }
  0x84   :  { %v13271_v53 = vld [vmem:[#allocation2 + $0xa5c] sm:$0xf0]  ;;  %v13171_v50 = vld [vmem:[#allocation2 + $0x744] sm:$0xf] }
  0x85   :  { %v10411_v54 = vld [vmem:[#allocation2 + $0xc40] sm:$0xf]  ;;  %v10156_v63 = vor.u32 %v13271_v53, %v10155_v51  ;;  %2964 = vmatpush.bf16.msrb.mxu0 %v9900_v59  ;;  %v9773_v51 = vld [vmem:[#allocation2 + $0x760] sm:$0xf0] }
  0x86   :  { %v13335_v55 = vld [vmem:[#allocation2 + $0xc5c] sm:$0xf0]  ;;  %v10029_v53 = vld [vmem:[#allocation2 + $0x960] sm:$0xf0]  ;;  %v9776_v56 = vor.u32 %v13171_v50, %v9773_v51  ;;  %3050 = vmatpush.bf16.msra.mxu3 %v10064_v48 }
  0x87   :  { %v9867_v58 = vld [vmem:[#allocation2 + $0x800] sm:$0xf]  ;;  %v10412_v0 = vor.u32 %v13335_v55, %v10411_v54  ;;  %2977 = vmatpush.bf16.msrb.mxu1 %v10156_v63  ;;  %v9264_v54 = vor.u32 %v13043_v45, %v9261_v46  ;;  %v9520_v55 = vor.u32 %v13107_v47, %v9517_v49  ;;  %v13099_v59 = vld [vmem:[#allocation2 + $0x504] sm:$0xf] }
  0x88   :  { %v13199_v60 = vld [vmem:[#allocation2 + $0x81c] sm:$0xf0]  ;;  %v9741_v63 = vld [vmem:[#allocation2 + $0x720] sm:$0xf0] }
  0x89   :  { %v10123_v61 = vld [vmem:[#allocation2 + $0xa00] sm:$0xf]  ;;  %v9868_v11 = vor.u32 %v13199_v60, %v9867_v58  ;;  %2990 = vmatpush.bf16.msrb.mxu2 %v10412_v0  ;;  %v9229_v58 = vld [vmem:[#allocation2 + $0x320] sm:$0xf0]  ;;  %v10032_v60 = vor.u32 %v13235_v52, %v10029_v53 }
  0x8a   :  { %v13263_v62 = vld [vmem:[#allocation2 + $0xa1c] sm:$0xf0]  ;;  %v13227_v0 = vld [vmem:[#allocation2 + $0x904] sm:$0xf] }
  0x8b   :  { %v10379_v1 = vld [vmem:[#allocation2 + $0xc00] sm:$0xf]  ;;  %v10124_v16 = vor.u32 %v13263_v62, %v10123_v61  ;;  %2965 = vmatpush.bf16.msrb.mxu0 %v9868_v11  ;;  %v9485_v61 = vld [vmem:[#allocation2 + $0x520] sm:$0xf0]  ;;  %3051 = vmatpush.bf16.msra.mxu3 %v10032_v60 }
  0x8c   :  { %v13327_v2 = vld [vmem:[#allocation2 + $0xc1c] sm:$0xf0]  ;;  %v13163_v62 = vld [vmem:[#allocation2 + $0x704] sm:$0xf]  ;;  %v9488_v3 = vor.u32 %v13099_v59, %v9485_v61 }
  0x8d   :  { %v10380_v17 = vor.u32 %v13327_v2, %v10379_v1  ;;  %2978 = vmatpush.bf16.msrb.mxu1 %v10124_v16  ;;  %v9997_v1 = vld [vmem:[#allocation2 + $0x920] sm:$0xf0]  ;;  %v9232_v2 = vor.u32 %v13035_v57, %v9229_v58  ;;  %v9744_v4 = vor.u32 %v13163_v62, %v9741_v63  ;;  %v9075_v62 = vld [vmem:[#allocation2 + $0x1c8] sm:$0xf] }
  0x8e   :  { %2966 = vmatmul.bf16.vlgmr.msrb.gmra.mxu0 %v14331_v40  ;;  %v13027_v5 = vld [vmem:[#allocation2 + $0x2c4] sm:$0xf]  ;;  %v10000_v8 = vor.u32 %v13227_v0, %v9997_v1  ;;  %v13000_v63 = vld [vmem:[#allocation2 + $0x1e4] sm:$0xf0] }
  0x8f   :  { %2991 = vmatpush.bf16.msrb.mxu2 %v10380_v17  ;;  %3010 = vmatpush.bf16.msra.mxu0 %v9328_v27  ;;  %v9197_v6 = vld [vmem:[#allocation2 + $0x2e0] sm:$0xf0] }
  0x90   :  { %2979 = vmatmul.bf16.vlgmr.msrb.gmra.mxu1 %v14333_v41  ;;  %v13091_v7 = vld [vmem:[#allocation2 + $0x4c4] sm:$0xf]  ;;  %v9200_v14 = vor.u32 %v13027_v5, %v9197_v6  ;;  %3052 = vmatpush.bf16.msra.mxu3 %v10000_v8 }
  0x91   :  { %3023 = vmatpush.bf16.msra.mxu1 %v9584_v28  ;;  %v9453_v9 = vld [vmem:[#allocation2 + $0x4e0] sm:$0xf0] }
  0x92   :  { %2992 = vmatmul.bf16.vlgmr.msrb.gmra.mxu2 %v14329_v37  ;;  %v13155_v10 = vld [vmem:[#allocation2 + $0x6c4] sm:$0xf]  ;;  %v9456_v15 = vor.u32 %v13091_v7, %v9453_v9  ;;  %v9076_v7 = vor.u32 %v13000_v63, %v9075_v62 }
  0x93   :  { %3036 = vmatpush.bf16.msra.mxu2 %v9840_v29  ;;  %3011 = vmatpush.bf16.msra.mxu0 %v9296_v42  ;;  %v9709_v11 = vld [vmem:[#allocation2 + $0x6e0] sm:$0xf0] }
  0x94   :  { %v13219_v12 = vld [vmem:[#allocation2 + $0x8c4] sm:$0xf]  ;;  %v9712_v16 = vor.u32 %v13155_v10, %v9709_v11 }
  0x95   :  { %3024 = vmatpush.bf16.msra.mxu1 %v9552_v43  ;;  %v9965_v13 = vld [vmem:[#allocation2 + $0x8e0] sm:$0xf0] }
  0x96   :  { %v13019_v17 = vld [vmem:[#allocation2 + $0x284] sm:$0xf]  ;;  %v9968_v24 = vor.u32 %v13219_v12, %v9965_v13  ;;  %v9043_v13 = vld [vmem:[#allocation2 + $0x188] sm:$0xf] }
  0x97   :  { %3037 = vmatpush.bf16.msra.mxu2 %v9808_v44  ;;  %3012 = vmatpush.bf16.msra.mxu0 %v9264_v54  ;;  %v9165_v21 = vld [vmem:[#allocation2 + $0x2a0] sm:$0xf0] }
  0x98   :  { %v13083_v23 = vld [vmem:[#allocation2 + $0x484] sm:$0xf]  ;;  %v9168_v30 = vor.u32 %v13019_v17, %v9165_v21  ;;  %3053 = vmatpush.bf16.msra.mxu3 %v9968_v24 }
  0x99   :  { %3025 = vmatpush.bf16.msra.mxu1 %v9520_v55  ;;  %v9421_v25 = vld [vmem:[#allocation2 + $0x4a0] sm:$0xf0] }
  0x9a   :  { %v13147_v26 = vld [vmem:[#allocation2 + $0x684] sm:$0xf]  ;;  %v9424_v31 = vor.u32 %v13083_v23, %v9421_v25 }
  0x9b   :  { %3038 = vmatpush.bf16.msra.mxu2 %v9776_v56  ;;  %3013 = vmatpush.bf16.msra.mxu0 %v9232_v2  ;;  %v9677_v27 = vld [vmem:[#allocation2 + $0x6a0] sm:$0xf0]  ;;  %v9331_v2 = vld [vmem:[#allocation2 + $0x3c8] sm:$0xf] }
  0x9c   :  { %v13211_v28 = vld [vmem:[#allocation2 + $0x884] sm:$0xf]  ;;  %v9680_v32 = vor.u32 %v13147_v26, %v9677_v27 }
  0x9d   :  { %3026 = vmatpush.bf16.msra.mxu1 %v9488_v3  ;;  %v9933_v29 = vld [vmem:[#allocation2 + $0x8a0] sm:$0xf0]  ;;  %v13064_v3 = vld [vmem:[#allocation2 + $0x3e4] sm:$0xf0] }
  0x9e   :  { %v13011_v33 = vld [vmem:[#allocation2 + $0x244] sm:$0xf]  ;;  %v9936_v36 = vor.u32 %v13211_v28, %v9933_v29  ;;  %v9332_v11 = vor.u32 %v13064_v3, %v9331_v2  ;;  %v9011_v29 = vld [vmem:[#allocation2 + $0x148] sm:$0xf] }
  0x9f   :  { %3039 = vmatpush.bf16.msra.mxu2 %v9744_v4  ;;  %3014 = vmatpush.bf16.msra.mxu0 %v9200_v14  ;;  %v9133_v34 = vld [vmem:[#allocation2 + $0x260] sm:$0xf0]  ;;  %v12992_v14 = vld [vmem:[#allocation2 + $0x1a4] sm:$0xf0] }
  0xa0   :  { %v13075_v35 = vld [vmem:[#allocation2 + $0x444] sm:$0xf]  ;;  %v9136_v45 = vor.u32 %v13011_v33, %v9133_v34  ;;  %3054 = vmatpush.bf16.msra.mxu3 %v9936_v36  ;;  %v9044_v23 = vor.u32 %v12992_v14, %v9043_v13 }
  0xa1   :  { %3027 = vmatpush.bf16.msra.mxu1 %v9456_v15  ;;  %v9389_v38 = vld [vmem:[#allocation2 + $0x460] sm:$0xf0]  ;;  %v9299_v15 = vld [vmem:[#allocation2 + $0x388] sm:$0xf] }
  0xa2   :  { %v13139_v39 = vld [vmem:[#allocation2 + $0x644] sm:$0xf]  ;;  %v9392_v48 = vor.u32 %v13075_v35, %v9389_v38 }
  0xa3   :  { %3040 = vmatpush.bf16.msra.mxu2 %v9712_v16  ;;  %v9645_v42 = vld [vmem:[#allocation2 + $0x660] sm:$0xf0]  ;;  %3015 = vmatpush.bf16.msra.mxu0 %v9168_v30  ;;  %v13056_v16 = vld [vmem:[#allocation2 + $0x3a4] sm:$0xf0] }
  0xa4   :  { %v13203_v43 = vld [vmem:[#allocation2 + $0x844] sm:$0xf]  ;;  %v9648_v49 = vor.u32 %v13139_v39, %v9645_v42  ;;  %v9300_v27 = vor.u32 %v13056_v16, %v9299_v15  ;;  %v12984_v30 = vld [vmem:[#allocation2 + $0x164] sm:$0xf0] }
  0xa5   :  { %v9901_v44 = vld [vmem:[#allocation2 + $0x860] sm:$0xf0]  ;;  %3028 = vmatpush.bf16.msra.mxu1 %v9424_v31  ;;  %v9267_v31 = vld [vmem:[#allocation2 + $0x348] sm:$0xf]  ;;  %v9012_v35 = vor.u32 %v12984_v30, %v9011_v29 }
  0xa6   :  { %v13003_v46 = vld [vmem:[#allocation2 + $0x204] sm:$0xf]  ;;  %v9904_v53 = vor.u32 %v13203_v43, %v9901_v44  ;;  %v8979_v44 = vld [vmem:[#allocation2 + $0x108] sm:$0xf] }
  0xa7   :  { %v9101_v47 = vld [vmem:[#allocation2 + $0x220] sm:$0xf0]  ;;  %3041 = vmatpush.bf16.msra.mxu2 %v9680_v32  ;;  %3016 = vmatpush.bf16.msra.mxu0 %v9136_v45  ;;  %v13048_v32 = vld [vmem:[#allocation2 + $0x364] sm:$0xf0] }
  0xa8   :  { %v13067_v50 = vld [vmem:[#allocation2 + $0x404] sm:$0xf]  ;;  %v9104_v60 = vor.u32 %v13003_v46, %v9101_v47  ;;  %3055 = vmatpush.bf16.msra.mxu3 %v9904_v53  ;;  %v9268_v42 = vor.u32 %v13048_v32, %v9267_v31  ;;  %v12976_v45 = vld [vmem:[#allocation2 + $0x124] sm:$0xf0] }
  0xa9   :  { %v9357_v51 = vld [vmem:[#allocation2 + $0x420] sm:$0xf0]  ;;  %3029 = vmatpush.bf16.msra.mxu1 %v9392_v48  ;;  %v9235_v46 = vld [vmem:[#allocation2 + $0x308] sm:$0xf] }
  0xaa   :  { %v13131_v52 = vld [vmem:[#allocation2 + $0x604] sm:$0xf]  ;;  %v9360_v0 = vor.u32 %v13067_v50, %v9357_v51  ;;  %v13040_v47 = vld [vmem:[#allocation2 + $0x324] sm:$0xf0]  ;;  %v8980_v50 = vor.u32 %v12976_v45, %v8979_v44 }
  0xab   :  { %v9613_v54 = vld [vmem:[#allocation2 + $0x620] sm:$0xf0]  ;;  %3042 = vmatpush.bf16.msra.mxu2 %v9648_v49  ;;  %3017 = vmatpush.bf16.msra.mxu0 %v9104_v60  ;;  %v8883_v16 = vld [vmem:[#allocation2 + $0x48] sm:$0xf] }
  0xac   :  { %v13195_v55 = vld [vmem:[#allocation2 + $0x804] sm:$0xf]  ;;  %v9616_v1 = vor.u32 %v13131_v52, %v9613_v54  ;;  %v9236_v54 = vor.u32 %v13040_v47, %v9235_v46  ;;  %v8851_v31 = vld [vmem:[#allocation2 + $0x8] sm:$0xf] }
  0xad   :  { %v9869_v56 = vld [vmem:[#allocation2 + $0x820] sm:$0xf0]  ;;  %3030 = vmatpush.bf16.msra.mxu1 %v9360_v0  ;;  %v10099_v44 = vld [vmem:[#allocation2 + $0x9c8] sm:$0xf] }
  0xae   :  { %v13315_v57 = vld [vmem:[#allocation2 + $0xbc4] sm:$0xf]  ;;  %v9872_v4 = vor.u32 %v13195_v55, %v9869_v56  ;;  %3018 = vmatmul.bf16.vlgmr.msra.gmra.mxu0 %v14317_v22  ;;  %v8947_v56 = vld [vmem:[#allocation2 + $0xc8] sm:$0xf] }
  0xaf   :  { %v10349_v58 = vld [vmem:[#allocation2 + $0xbe0] sm:$0xf0]  ;;  %3043 = vmatpush.bf16.msra.mxu2 %v9616_v1  ;;  %v13256_v45 = vld [vmem:[#allocation2 + $0x9e4] sm:$0xf0] }
  0xb0   :  { %v13379_v59 = vld [vmem:[#allocation2 + $0xdc4] sm:$0xf]  ;;  %v10352_v5 = vor.u32 %v13315_v57, %v10349_v58  ;;  %3056 = vmatpush.bf16.msra.mxu3 %v9872_v4  ;;  %3031 = vmatmul.bf16.vlgmr.msra.gmra.mxu1 %v14311_v18  ;;  %v12968_v57 = vld [vmem:[#allocation2 + $0xe4] sm:$0xf0] }
  0xb1   :  { %v10605_v61 = vld [vmem:[#allocation2 + $0xde0] sm:$0xf0]  ;;  %v9203_v58 = vld [vmem:[#allocation2 + $0x2c8] sm:$0xf]  ;;  %v8948_v62 = vor.u32 %v12968_v57, %v8947_v56 }
  0xb2   :  { %v10608_v6 = vor.u32 %v13379_v59, %v10605_v61  ;;  %v13307_v8 = vld [vmem:[#allocation2 + $0xb84] sm:$0xf]  ;;  %3062 = vmatpush.bf16.msrb.mxu0 %v10352_v5  ;;  %3044 = vmatmul.bf16.vlgmr.msra.gmra.mxu2 %v14315_v20  ;;  %v13032_v59 = vld [vmem:[#allocation2 + $0x2e4] sm:$0xf0] }
  0xb3   :  { %v10317_v9 = vld [vmem:[#allocation2 + $0xba0] sm:$0xf0]  ;;  %3088 = vmatpush.bf16.msrb.mxu2 %v9076_v7  ;;  %3057 = vmatmul.bf16.vlgmr.msra.gmra.mxu3 %v14331_v40  ;;  %v9204_v2 = vor.u32 %v13032_v59, %v9203_v58  ;;  %v8915_v4 = vld [vmem:[#allocation2 + $0x88] sm:$0xf] }
  0xb4   :  { %v13371_v10 = vld [vmem:[#allocation2 + $0xd84] sm:$0xf]  ;;  %v10320_v17 = vor.u32 %v13307_v8, %v10317_v9  ;;  %3075 = vmatpush.bf16.msrb.mxu1 %v10608_v6  ;;  %3101 = vmatpush.bf16.msrb.mxu3 %v9332_v11  ;;  %v12960_v5 = vld [vmem:[#allocation2 + $0xa4] sm:$0xf0] }
  0xb5   :  { %v10573_v12 = vld [vmem:[#allocation2 + $0xda0] sm:$0xf0]  ;;  %v9171_v6 = vld [vmem:[#allocation2 + $0x288] sm:$0xf] }
  0xb6   :  { %v10576_v21 = vor.u32 %v13371_v10, %v10573_v12  ;;  %v13299_v24 = vld [vmem:[#allocation2 + $0xb44] sm:$0xf]  ;;  %3063 = vmatpush.bf16.msrb.mxu0 %v10320_v17  ;;  %v13024_v7 = vld [vmem:[#allocation2 + $0x2a4] sm:$0xf0]  ;;  %v8916_v10 = vor.u32 %v12960_v5, %v8915_v4 }
  0xb7   :  { %v10285_v25 = vld [vmem:[#allocation2 + $0xb60] sm:$0xf0]  ;;  %3089 = vmatpush.bf16.msrb.mxu2 %v9044_v23  ;;  %v9172_v14 = vor.u32 %v13024_v7, %v9171_v6  ;;  %v12952_v17 = vld [vmem:[#allocation2 + $0x64] sm:$0xf0] }
  0xb8   :  { %v13363_v26 = vld [vmem:[#allocation2 + $0xd44] sm:$0xf]  ;;  %v10288_v33 = vor.u32 %v13299_v24, %v10285_v25  ;;  %3076 = vmatpush.bf16.msrb.mxu1 %v10576_v21  ;;  %3102 = vmatpush.bf16.msrb.mxu3 %v9300_v27  ;;  %v9139_v21 = vld [vmem:[#allocation2 + $0x248] sm:$0xf] }
  0xb9   :  { %v10541_v28 = vld [vmem:[#allocation2 + $0xd60] sm:$0xf0]  ;;  %v13016_v23 = vld [vmem:[#allocation2 + $0x264] sm:$0xf0] }
  0xba   :  { %v10544_v34 = vor.u32 %v13363_v26, %v10541_v28  ;;  %v13291_v36 = vld [vmem:[#allocation2 + $0xb04] sm:$0xf]  ;;  %3064 = vmatpush.bf16.msrb.mxu0 %v10288_v33  ;;  %v8884_v28 = vor.u32 %v12952_v17, %v8883_v16  ;;  %v9140_v32 = vor.u32 %v13016_v23, %v9139_v21  ;;  %v12944_v33 = vld [vmem:[#allocation2 + $0x24] sm:$0xf0] }
  0xbb   :  { %v10253_v38 = vld [vmem:[#allocation2 + $0xb20] sm:$0xf0]  ;;  %3090 = vmatpush.bf16.msrb.mxu2 %v9012_v35  ;;  %v13008_v35 = vld [vmem:[#allocation2 + $0x224] sm:$0xf0]  ;;  %v8852_v47 = vor.u32 %v12944_v33, %v8851_v31 }
  0xbc   :  { %v13355_v39 = vld [vmem:[#allocation2 + $0xd04] sm:$0xf]  ;;  %v10256_v48 = vor.u32 %v13291_v36, %v10253_v38  ;;  %3077 = vmatpush.bf16.msrb.mxu1 %v10544_v34  ;;  %3103 = vmatpush.bf16.msrb.mxu3 %v9268_v42  ;;  %v9107_v34 = vld [vmem:[#allocation2 + $0x208] sm:$0xf] }
  0xbd   :  { %v10509_v43 = vld [vmem:[#allocation2 + $0xd20] sm:$0xf0]  ;;  %v9587_v36 = vld [vmem:[#allocation2 + $0x5c8] sm:$0xf] }
  0xbe   :  { %v10512_v49 = vor.u32 %v13355_v39, %v10509_v43  ;;  %v13283_v51 = vld [vmem:[#allocation2 + $0xac4] sm:$0xf]  ;;  %3065 = vmatpush.bf16.msrb.mxu0 %v10256_v48  ;;  %v13128_v38 = vld [vmem:[#allocation2 + $0x5e4] sm:$0xf0] }
  0xbf   :  { %v10221_v52 = vld [vmem:[#allocation2 + $0xae0] sm:$0xf0]  ;;  %3091 = vmatpush.bf16.msrb.mxu2 %v8980_v50  ;;  %v9843_v39 = vld [vmem:[#allocation2 + $0x7c8] sm:$0xf]  ;;  %v9108_v50 = vor.u32 %v13008_v35, %v9107_v34 }
  0xc0   :  { %v13347_v53 = vld [vmem:[#allocation2 + $0xcc4] sm:$0xf]  ;;  %v10224_v60 = vor.u32 %v13283_v51, %v10221_v52  ;;  %3078 = vmatpush.bf16.msrb.mxu1 %v10512_v49  ;;  %3104 = vmatpush.bf16.msrb.mxu3 %v9236_v54  ;;  %v13192_v43 = vld [vmem:[#allocation2 + $0x7e4] sm:$0xf0]  ;;  %v9588_v51 = vor.u32 %v13128_v38, %v9587_v36 }
  0xc1   :  { %v10477_v55 = vld [vmem:[#allocation2 + $0xce0] sm:$0xf0]  ;;  %v10355_v48 = vld [vmem:[#allocation2 + $0xbc8] sm:$0xf]  ;;  %v9844_v52 = vor.u32 %v13192_v43, %v9843_v39 }
  0xc2   :  { %v10480_v61 = vor.u32 %v13347_v53, %v10477_v55  ;;  %v13275_v63 = vld [vmem:[#allocation2 + $0xa84] sm:$0xf]  ;;  %3066 = vmatpush.bf16.msrb.mxu0 %v10224_v60  ;;  %v13320_v49 = vld [vmem:[#allocation2 + $0xbe4] sm:$0xf0]  ;;  %v10100_v53 = vor.u32 %v13256_v45, %v10099_v44 }
  0xc3   :  { %v10189_v0 = vld [vmem:[#allocation2 + $0xaa0] sm:$0xf0]  ;;  %3092 = vmatpush.bf16.msrb.mxu2 %v8948_v62  ;;  %v9555_v54 = vld [vmem:[#allocation2 + $0x588] sm:$0xf]  ;;  %v10356_v57 = vor.u32 %v13320_v49, %v10355_v48 }
  0xc4   :  { %v13339_v1 = vld [vmem:[#allocation2 + $0xc84] sm:$0xf]  ;;  %v10192_v8 = vor.u32 %v13275_v63, %v10189_v0  ;;  %3079 = vmatpush.bf16.msrb.mxu1 %v10480_v61  ;;  %3105 = vmatpush.bf16.msrb.mxu3 %v9204_v2  ;;  %v13120_v55 = vld [vmem:[#allocation2 + $0x5a4] sm:$0xf0] }
  0xc5   :  { %v10445_v3 = vld [vmem:[#allocation2 + $0xca0] sm:$0xf0]  ;;  %v9811_v56 = vld [vmem:[#allocation2 + $0x788] sm:$0xf]  ;;  %v9556_v63 = vor.u32 %v13120_v55, %v9555_v54 }
  0xc6   :  { %v10448_v9 = vor.u32 %v13339_v1, %v10445_v3  ;;  %v13267_v11 = vld [vmem:[#allocation2 + $0xa44] sm:$0xf]  ;;  %3067 = vmatpush.bf16.msrb.mxu0 %v10192_v8  ;;  %v13184_v58 = vld [vmem:[#allocation2 + $0x7a4] sm:$0xf0] }
  0xc7   :  { %v10157_v12 = vld [vmem:[#allocation2 + $0xa60] sm:$0xf0]  ;;  %3093 = vmatpush.bf16.msrb.mxu2 %v8916_v10  ;;  %v10067_v59 = vld [vmem:[#allocation2 + $0x988] sm:$0xf]  ;;  %v9812_v0 = vor.u32 %v13184_v58, %v9811_v56 }
  0xc8   :  { %v13331_v13 = vld [vmem:[#allocation2 + $0xc44] sm:$0xf]  ;;  %v10160_v24 = vor.u32 %v13267_v11, %v10157_v12  ;;  %3080 = vmatpush.bf16.msrb.mxu1 %v10448_v9  ;;  %3106 = vmatpush.bf16.msrb.mxu3 %v9172_v14  ;;  %v13248_v60 = vld [vmem:[#allocation2 + $0x9a4] sm:$0xf0] }
  0xc9   :  { %v10413_v15 = vld [vmem:[#allocation2 + $0xc60] sm:$0xf0]  ;;  %v10323_v61 = vld [vmem:[#allocation2 + $0xb88] sm:$0xf]  ;;  %v10068_v1 = vor.u32 %v13248_v60, %v10067_v59 }
  0xca   :  { %v13259_v25 = vld [vmem:[#allocation2 + $0xa04] sm:$0xf]  ;;  %v10416_v27 = vor.u32 %v13331_v13, %v10413_v15  ;;  %3068 = vmatpush.bf16.msrb.mxu0 %v10160_v24  ;;  %v13312_v62 = vld [vmem:[#allocation2 + $0xba4] sm:$0xf0] }
  0xcb   :  { %v10125_v26 = vld [vmem:[#allocation2 + $0xa20] sm:$0xf0]  ;;  %3094 = vmatpush.bf16.msrb.mxu2 %v8884_v28  ;;  %v9523_v2 = vld [vmem:[#allocation2 + $0x548] sm:$0xf]  ;;  %v10324_v5 = vor.u32 %v13312_v62, %v10323_v61 }
  0xcc   :  { %v13323_v29 = vld [vmem:[#allocation2 + $0xc04] sm:$0xf]  ;;  %v10128_v42 = vor.u32 %v13259_v25, %v10125_v26  ;;  %3081 = vmatpush.bf16.msrb.mxu1 %v10416_v27  ;;  %3107 = vmatpush.bf16.msrb.mxu3 %v9140_v32  ;;  %v13112_v3 = vld [vmem:[#allocation2 + $0x564] sm:$0xf0] }
  0xcd   :  { %v10381_v30 = vld [vmem:[#allocation2 + $0xc20] sm:$0xf0]  ;;  %v9779_v4 = vld [vmem:[#allocation2 + $0x748] sm:$0xf]  ;;  %v9524_v11 = vor.u32 %v13112_v3, %v9523_v2 }
  0xce   :  { %v10384_v46 = vor.u32 %v13323_v29, %v10381_v30  ;;  %3069 = vmatpush.bf16.msrb.mxu0 %v10128_v42  ;;  %v13176_v6 = vld [vmem:[#allocation2 + $0x764] sm:$0xf0] }
  0xcf   :  { %3095 = vmatpush.bf16.msrb.mxu2 %v8852_v47  ;;  %v10035_v7 = vld [vmem:[#allocation2 + $0x948] sm:$0xf]  ;;  %v9780_v12 = vor.u32 %v13176_v6, %v9779_v4 }
  0xd0   :  { %3082 = vmatpush.bf16.msrb.mxu1 %v10384_v46  ;;  %3108 = vmatpush.bf16.msrb.mxu3 %v9108_v50  ;;  %v13240_v8 = vld [vmem:[#allocation2 + $0x964] sm:$0xf0] }
  0xd1   :  { %3070 = vmatmul.bf16.vlgmr.msrb.gmra.mxu0 %v14333_v41  ;;  %v10291_v9 = vld [vmem:[#allocation2 + $0xb48] sm:$0xf]  ;;  %v10036_v13 = vor.u32 %v13240_v8, %v10035_v7 }
  0xd2   :  { %3114 = vmatpush.bf16.msra.mxu0 %v9588_v51  ;;  %v13304_v10 = vld [vmem:[#allocation2 + $0xb64] sm:$0xf0]  ;;  %3096 = vmatmul.bf16.vlgmr.msrb.gmra.mxu2 %v14313_v19 }
  0xd3   :  { %3140 = vmatpush.bf16.msra.mxu2 %v10100_v53  ;;  %3083 = vmatmul.bf16.vlgmr.msrb.gmra.mxu1 %v14329_v37  ;;  %v9491_v14 = vld [vmem:[#allocation2 + $0x508] sm:$0xf]  ;;  %v10292_v17 = vor.u32 %v13304_v10, %v10291_v9 }
  0xd4   :  { %3127 = vmatpush.bf16.msra.mxu1 %v9844_v52  ;;  %3153 = vmatpush.bf16.msra.mxu3 %v10356_v57  ;;  %v13104_v15 = vld [vmem:[#allocation2 + $0x524] sm:$0xf0] }
  0xd5   :  { %3109 = vmatmul.bf16.vlgmr.msrb.gmra.mxu3 %v14317_v22  ;;  %v9747_v16 = vld [vmem:[#allocation2 + $0x708] sm:$0xf]  ;;  %v9492_v27 = vor.u32 %v13104_v15, %v9491_v14 }
  0xd6   :  { %3115 = vmatpush.bf16.msra.mxu0 %v9556_v63  ;;  %v13168_v21 = vld [vmem:[#allocation2 + $0x724] sm:$0xf0] }
  0xd7   :  { %3141 = vmatpush.bf16.msra.mxu2 %v10068_v1  ;;  %v10003_v23 = vld [vmem:[#allocation2 + $0x908] sm:$0xf]  ;;  %v9748_v28 = vor.u32 %v13168_v21, %v9747_v16  ;;  %v12996_v16 = vld [vmem:[#allocation2 + $0x1cc] sm:$0xf] }
  0xd8   :  { %3128 = vmatpush.bf16.msra.mxu1 %v9812_v0  ;;  %3154 = vmatpush.bf16.msra.mxu3 %v10324_v5  ;;  %v13232_v24 = vld [vmem:[#allocation2 + $0x924] sm:$0xf0]  ;;  %v9077_v21 = vld [vmem:[#allocation2 + $0x1e8] sm:$0xf0] }
  0xd9   :  { %v10259_v25 = vld [vmem:[#allocation2 + $0xb08] sm:$0xf]  ;;  %v10004_v29 = vor.u32 %v13232_v24, %v10003_v23  ;;  %v13060_v23 = vld [vmem:[#allocation2 + $0x3cc] sm:$0xf] }
  0xda   :  { %v13296_v26 = vld [vmem:[#allocation2 + $0xb24] sm:$0xf0]  ;;  %3116 = vmatpush.bf16.msra.mxu0 %v9524_v11  ;;  %v9333_v24 = vld [vmem:[#allocation2 + $0x3e8] sm:$0xf0] }
  0xdb   :  { %3142 = vmatpush.bf16.msra.mxu2 %v10036_v13  ;;  %v9459_v30 = vld [vmem:[#allocation2 + $0x4c8] sm:$0xf]  ;;  %v10260_v33 = vor.u32 %v13296_v26, %v10259_v25 }
  0xdc   :  { %3129 = vmatpush.bf16.msra.mxu1 %v9780_v12  ;;  %v13096_v31 = vld [vmem:[#allocation2 + $0x4e4] sm:$0xf0]  ;;  %3155 = vmatpush.bf16.msra.mxu3 %v10292_v17 }
  0xdd   :  { %v9715_v32 = vld [vmem:[#allocation2 + $0x6c8] sm:$0xf]  ;;  %v9460_v42 = vor.u32 %v13096_v31, %v9459_v30  ;;  %v9080_v31 = vor.u32 %v12996_v16, %v9077_v21  ;;  %v13028_v16 = vld [vmem:[#allocation2 + $0x2cc] sm:$0xf] }
  0xde   :  { %v13160_v34 = vld [vmem:[#allocation2 + $0x6e4] sm:$0xf0]  ;;  %3117 = vmatpush.bf16.msra.mxu0 %v9492_v27  ;;  %v13124_v27 = vld [vmem:[#allocation2 + $0x5cc] sm:$0xf] }
  0xdf   :  { %v9971_v35 = vld [vmem:[#allocation2 + $0x8c8] sm:$0xf]  ;;  %3143 = vmatpush.bf16.msra.mxu2 %v10004_v29  ;;  %v9716_v43 = vor.u32 %v13160_v34, %v9715_v32  ;;  %v9336_v32 = vor.u32 %v13060_v23, %v9333_v24  ;;  %v13092_v21 = vld [vmem:[#allocation2 + $0x4cc] sm:$0xf] }
  0xe0   :  { %v13224_v36 = vld [vmem:[#allocation2 + $0x8e4] sm:$0xf0]  ;;  %3130 = vmatpush.bf16.msra.mxu1 %v9748_v28  ;;  %3156 = vmatpush.bf16.msra.mxu3 %v10260_v33  ;;  %v9589_v28 = vld [vmem:[#allocation2 + $0x5e8] sm:$0xf0] }
  0xe1   :  { %v10227_v38 = vld [vmem:[#allocation2 + $0xac8] sm:$0xf]  ;;  %v9972_v44 = vor.u32 %v13224_v36, %v9971_v35  ;;  %v12988_v35 = vld [vmem:[#allocation2 + $0x18c] sm:$0xf]  ;;  %v9592_v36 = vor.u32 %v13124_v27, %v9589_v28 }
  0xe2   :  { %v13288_v39 = vld [vmem:[#allocation2 + $0xae4] sm:$0xf0]  ;;  %3118 = vmatpush.bf16.msra.mxu0 %v9460_v42  ;;  %v9301_v42 = vld [vmem:[#allocation2 + $0x3a8] sm:$0xf0] }
  0xe3   :  { %v9427_v45 = vld [vmem:[#allocation2 + $0x488] sm:$0xf]  ;;  %v10228_v48 = vor.u32 %v13288_v39, %v10227_v38  ;;  %3144 = vmatpush.bf16.msra.mxu2 %v9972_v44  ;;  %v9045_v38 = vld [vmem:[#allocation2 + $0x1a8] sm:$0xf0] }
  0xe4   :  { %v13088_v46 = vld [vmem:[#allocation2 + $0x4a4] sm:$0xf0]  ;;  %3131 = vmatpush.bf16.msra.mxu1 %v9716_v43  ;;  %v13052_v39 = vld [vmem:[#allocation2 + $0x38c] sm:$0xf] }
  0xe5   :  { %v9683_v47 = vld [vmem:[#allocation2 + $0x688] sm:$0xf]  ;;  %v9428_v54 = vor.u32 %v13088_v46, %v9427_v45  ;;  %3157 = vmatpush.bf16.msra.mxu3 %v10228_v48  ;;  %v13116_v43 = vld [vmem:[#allocation2 + $0x58c] sm:$0xf]  ;;  %v9048_v46 = vor.u32 %v12988_v35, %v9045_v38 }
  0xe6   :  { %v13152_v49 = vld [vmem:[#allocation2 + $0x6a4] sm:$0xf0]  ;;  %v9557_v44 = vld [vmem:[#allocation2 + $0x5a8] sm:$0xf0] }
  0xe7   :  { %v9939_v50 = vld [vmem:[#allocation2 + $0x888] sm:$0xf]  ;;  %v9684_v55 = vor.u32 %v13152_v49, %v9683_v47  ;;  %3119 = vmatpush.bf16.msra.mxu0 %v9428_v54  ;;  %v9304_v47 = vor.u32 %v13052_v39, %v9301_v42  ;;  %v9269_v54 = vld [vmem:[#allocation2 + $0x368] sm:$0xf0] }
  0xe8   :  { %v13216_v51 = vld [vmem:[#allocation2 + $0x8a4] sm:$0xf0]  ;;  %v9461_v23 = vld [vmem:[#allocation2 + $0x4e8] sm:$0xf0] }
  0xe9   :  { %v10195_v52 = vld [vmem:[#allocation2 + $0xa88] sm:$0xf]  ;;  %v9940_v56 = vor.u32 %v13216_v51, %v9939_v50  ;;  %3132 = vmatpush.bf16.msra.mxu1 %v9684_v55  ;;  %v12980_v50 = vld [vmem:[#allocation2 + $0x14c] sm:$0xf]  ;;  %v9560_v51 = vor.u32 %v13116_v43, %v9557_v44 }
  0xea   :  { %v13280_v53 = vld [vmem:[#allocation2 + $0xaa4] sm:$0xf0]  ;;  %v13108_v55 = vld [vmem:[#allocation2 + $0x54c] sm:$0xf] }
  0xeb   :  { %v9395_v57 = vld [vmem:[#allocation2 + $0x448] sm:$0xf]  ;;  %v10196_v60 = vor.u32 %v13280_v53, %v10195_v52  ;;  %3145 = vmatpush.bf16.msra.mxu2 %v9940_v56  ;;  %v9013_v52 = vld [vmem:[#allocation2 + $0x168] sm:$0xf0] }
  0xec   :  { %v13080_v58 = vld [vmem:[#allocation2 + $0x464] sm:$0xf0]  ;;  %v13044_v53 = vld [vmem:[#allocation2 + $0x34c] sm:$0xf] }
  0xed   :  { %v9651_v59 = vld [vmem:[#allocation2 + $0x648] sm:$0xf]  ;;  %v9396_v2 = vor.u32 %v13080_v58, %v9395_v57  ;;  %3158 = vmatpush.bf16.msra.mxu3 %v10196_v60  ;;  %v9525_v56 = vld [vmem:[#allocation2 + $0x568] sm:$0xf0] }
  0xee   :  { %v13144_v61 = vld [vmem:[#allocation2 + $0x664] sm:$0xf0]  ;;  %v12972_v60 = vld [vmem:[#allocation2 + $0x10c] sm:$0xf] }
  0xef   :  { %v9907_v62 = vld [vmem:[#allocation2 + $0x848] sm:$0xf]  ;;  %v9652_v5 = vor.u32 %v13144_v61, %v9651_v59  ;;  %3120 = vmatpush.bf16.msra.mxu0 %v9396_v2  ;;  %v9016_v61 = vor.u32 %v12980_v50, %v9013_v52  ;;  %v9528_v2 = vor.u32 %v13108_v55, %v9525_v56  ;;  %v13084_v35 = vld [vmem:[#allocation2 + $0x48c] sm:$0xf] }
  0xf0   :  { %v13208_v63 = vld [vmem:[#allocation2 + $0x864] sm:$0xf0]  ;;  %v2915_v39 = vpop.f32.mrf.mxu0  ;;  %v8885_v50 = vld [vmem:[#allocation2 + $0x68] sm:$0xf0] }
  0xf1   :  { %v10163_v0 = vld [vmem:[#allocation2 + $0xa48] sm:$0xf]  ;;  %v9908_v6 = vor.u32 %v13208_v63, %v9907_v62  ;;  %3133 = vmatpush.bf16.msra.mxu1 %v9652_v5  ;;  %v9272_v62 = vor.u32 %v13044_v53, %v9269_v54  ;;  %v8981_v63 = vld [vmem:[#allocation2 + $0x128] sm:$0xf0] }
  0xf2   :  { %v13272_v1 = vld [vmem:[#allocation2 + $0xa64] sm:$0xf0]  ;;  %v13100_v5 = vld [vmem:[#allocation2 + $0x50c] sm:$0xf] }
  0xf3   :  { %v9363_v3 = vld [vmem:[#allocation2 + $0x408] sm:$0xf]  ;;  %v10164_v10 = vor.u32 %v13272_v1, %v10163_v0  ;;  %3146 = vmatpush.bf16.msra.mxu2 %v9908_v6  ;;  %v13036_v0 = vld [vmem:[#allocation2 + $0x30c] sm:$0xf] }
  0xf4   :  { %v13072_v4 = vld [vmem:[#allocation2 + $0x424] sm:$0xf0]  ;;  %v9237_v1 = vld [vmem:[#allocation2 + $0x328] sm:$0xf0] }
  0xf5   :  { %v9619_v7 = vld [vmem:[#allocation2 + $0x608] sm:$0xf]  ;;  %v9364_v17 = vor.u32 %v13072_v4, %v9363_v3  ;;  %3159 = vmatpush.bf16.msra.mxu3 %v10164_v10  ;;  %v9493_v6 = vld [vmem:[#allocation2 + $0x528] sm:$0xf0] }
  0xf6   :  { %v13136_v8 = vld [vmem:[#allocation2 + $0x624] sm:$0xf0]  ;;  %v9141_v52 = vld [vmem:[#allocation2 + $0x268] sm:$0xf0] }
  0xf7   :  { %v9875_v9 = vld [vmem:[#allocation2 + $0x808] sm:$0xf]  ;;  %v9620_v25 = vor.u32 %v13136_v8, %v9619_v7  ;;  %3121 = vmatpush.bf16.msra.mxu0 %v9364_v17  ;;  %v8984_v8 = vor.u32 %v12972_v60, %v8981_v63  ;;  %v9205_v17 = vld [vmem:[#allocation2 + $0x2e8] sm:$0xf0] }
  0xf8   :  { %v13200_v11 = vld [vmem:[#allocation2 + $0x824] sm:$0xf0]  ;;  %v9208_v27 = vor.u32 %v13028_v16, %v9205_v17  ;;  %v13076_v53 = vld [vmem:[#allocation2 + $0x44c] sm:$0xf]  ;;  %v2917_v16 = vpop.f32.mrf.mxu0 }
  0xf9   :  { %v10131_v12 = vld [vmem:[#allocation2 + $0xa08] sm:$0xf]  ;;  %v9876_v26 = vor.u32 %v13200_v11, %v9875_v9  ;;  %3134 = vmatpush.bf16.msra.mxu1 %v9620_v25  ;;  %v9240_v9 = vor.u32 %v13036_v0, %v9237_v1  ;;  %v9397_v54 = vld [vmem:[#allocation2 + $0x468] sm:$0xf0]  ;;  %v2941_v0 = vpop.f32.mrf.mxu2 }
  0xfa   :  { %v13264_v13 = vld [vmem:[#allocation2 + $0xa24] sm:$0xf0]  ;;  %3122 = vmatmul.bf16.vlgmr.msra.gmra.mxu0 %v14311_v18  ;;  %v13004_v63 = vld [vmem:[#allocation2 + $0x20c] sm:$0xf]  ;;  %v9400_v1 = vor.u32 %v13076_v53, %v9397_v54 }
  0xfb   :  { %v10611_v14 = vld [vmem:[#allocation2 + $0xdc8] sm:$0xf]  ;;  %v10132_v29 = vor.u32 %v13264_v13, %v10131_v12  ;;  %3147 = vmatpush.bf16.msra.mxu2 %v9876_v26  ;;  %v12964_v12 = vld [vmem:[#allocation2 + $0xcc] sm:$0xf] }
  0xfc   :  { %v13384_v15 = vld [vmem:[#allocation2 + $0xde4] sm:$0xf0]  ;;  %3135 = vmatmul.bf16.vlgmr.msra.gmra.mxu1 %v14315_v20  ;;  %v10293_v53 = vld [vmem:[#allocation2 + $0xb68] sm:$0xf0] }
  0xfd   :  { %v10612_v30 = vor.u32 %v13384_v15, %v10611_v14  ;;  %v10579_v33 = vld [vmem:[#allocation2 + $0xd88] sm:$0xf]  ;;  %3160 = vmatpush.bf16.msra.mxu3 %v10132_v29  ;;  %3179 = vmatpush.bf16.msrb.mxu1 %v9080_v31  ;;  %v9496_v14 = vor.u32 %v13100_v5, %v9493_v6  ;;  %v8949_v15 = vld [vmem:[#allocation2 + $0xe8] sm:$0xf0]  ;;  %v9464_v31 = vor.u32 %v13092_v21, %v9461_v23  ;;  %v2954_v6 = vpop.f32.mrf.mxu3 }
  0xfe   :  { %v13376_v34 = vld [vmem:[#allocation2 + $0xda4] sm:$0xf0]  ;;  %3148 = vmatmul.bf16.vlgmr.msra.gmra.mxu2 %v14331_v40  ;;  %v8952_v26 = vor.u32 %v12964_v12, %v8949_v15  ;;  %v12956_v29 = vld [vmem:[#allocation2 + $0x8c] sm:$0xf] }
  0xff   :  { %3166 = vmatpush.bf16.msrb.mxu0 %v10612_v30  ;;  %v10580_v45 = vor.u32 %v13376_v34, %v10579_v33  ;;  %3192 = vmatpush.bf16.msrb.mxu2 %v9336_v32  ;;  %v10547_v48 = vld [vmem:[#allocation2 + $0xd48] sm:$0xf]  ;;  %v8917_v32 = vld [vmem:[#allocation2 + $0xa8] sm:$0xf0] }
 0x100   :  { %v13368_v49 = vld [vmem:[#allocation2 + $0xd64] sm:$0xf0]  ;;  %3161 = vmatmul.bf16.vlgmr.msra.gmra.mxu3 %v14333_v41  ;;  %v13020_v33 = vld [vmem:[#allocation2 + $0x28c] sm:$0xf]  ;;  %v8920_v42 = vor.u32 %v12956_v29, %v8917_v32 }
 0x101   :  { %3205 = vmatpush.bf16.msrb.mxu3 %v9592_v36  ;;  %v10548_v57 = vor.u32 %v13368_v49, %v10547_v48  ;;  %v10515_v58 = vld [vmem:[#allocation2 + $0xd08] sm:$0xf]  ;;  %3180 = vmatpush.bf16.msrb.mxu1 %v9048_v46  ;;  %v9173_v34 = vld [vmem:[#allocation2 + $0x2a8] sm:$0xf0]  ;;  %v2928_v48 = vpop.f32.mrf.mxu1 }
 0x102   :  { %v13360_v59 = vld [vmem:[#allocation2 + $0xd24] sm:$0xf0]  ;;  %v9429_v36 = vld [vmem:[#allocation2 + $0x4a8] sm:$0xf0]  ;;  %v9176_v43 = vor.u32 %v13020_v33, %v9173_v34 }
 0x103   :  { %3167 = vmatpush.bf16.msrb.mxu0 %v10580_v45  ;;  %3193 = vmatpush.bf16.msrb.mxu2 %v9304_v47  ;;  %v150_v3 = vld [vmem:[#allocation5] ss:$8 sm:$0xf]  ;;  %v10516_v7 = vor.u32 %v13360_v59, %v10515_v58  ;;  %v12948_v46 = vld [vmem:[#allocation2 + $0x4c] sm:$0xf]  ;;  %v9432_v49 = vor.u32 %v13084_v35, %v9429_v36 }
 0x104   :  { %v151_v4 = vld [vmem:[#allocation5] ss:$8 sm:$0xf0]  ;;  %v8888_v59 = vor.u32 %v12948_v46, %v8885_v50  ;;  %v13316_v12 = vld [vmem:[#allocation2 + $0xbcc] sm:$0xf] }
 0x105   :  { %3206 = vmatpush.bf16.msrb.mxu3 %v9560_v51  ;;  %3181 = vmatpush.bf16.msrb.mxu1 %v9016_v61  ;;  %v10483_v10 = vld [vmem:[#allocation2 + $0xcc8] sm:$0xf]  ;;  %v14351_v13 = vor.u32 %v151_v4, %v150_v3  ;;  %v13012_v51 = vld [vmem:[#allocation2 + $0x24c] sm:$0xf] }
 0x106   :  { %v13352_v11 = vld [vmem:[#allocation2 + $0xce4] sm:$0xf0]  ;;  %v9144_v60 = vor.u32 %v13012_v51, %v9141_v52  ;;  %v12940_v61 = vld [vmem:[#allocation2 + $0xc] sm:$0xf] }
 0x107   :  { %3168 = vmatpush.bf16.msrb.mxu0 %v10548_v57  ;;  %3194 = vmatpush.bf16.msrb.mxu2 %v9272_v62  ;;  %v10484_v24 = vor.u32 %v13352_v11, %v10483_v10  ;;  %v10451_v25 = vld [vmem:[#allocation2 + $0xc88] sm:$0xf]  ;;  %v625_v30 = vperm.slane %v14351_v13, 0  ;;  %v8853_v62 = vld [vmem:[#allocation2 + $0x28] sm:$0xf0] }
 0x108   :  { %v13344_v28 = vld [vmem:[#allocation2 + $0xca4] sm:$0xf0]  ;;  %v13068_v3 = vld [vmem:[#allocation2 + $0x40c] sm:$0xf]  ;;  %v8856_v17 = vor.u32 %v12940_v61, %v8853_v62 }
 0x109   :  { %3207 = vmatpush.bf16.msrb.mxu3 %v9528_v2  ;;  %3182 = vmatpush.bf16.msrb.mxu1 %v8984_v8  ;;  %v10452_v38 = vor.u32 %v13344_v28, %v10451_v25  ;;  %v10419_v44 = vld [vmem:[#allocation2 + $0xc48] sm:$0xf]  ;;  %v2916_v47 = vadd.f32 %v2915_v39, %v625_v30  ;;  %v9109_v2 = vld [vmem:[#allocation2 + $0x228] sm:$0xf0]  ;;  %v2930_v25 = vpop.f32.mrf.mxu1 }
 0x10a   :  { %v13336_v45 = vld [vmem:[#allocation2 + $0xc64] sm:$0xf0]  ;;  %v9365_v4 = vld [vmem:[#allocation2 + $0x428] sm:$0xf0]  ;;  %v9112_v21 = vor.u32 %v13004_v63, %v9109_v2 }
 0x10b   :  { %3169 = vmatpush.bf16.msrb.mxu0 %v10516_v7  ;;  %3195 = vmatpush.bf16.msrb.mxu2 %v9240_v9  ;;  %v2929_v55 = vadd.f32 %v2928_v48, %v2916_v47  ;;  %v10420_v56 = vor.u32 %v13336_v45, %v10419_v44  ;;  %v10387_v57 = vld [vmem:[#allocation2 + $0xc08] sm:$0xf]  ;;  %v13188_v7 = vld [vmem:[#allocation2 + $0x7cc] sm:$0xf]  ;;  %v2956_v44 = vpop.f32.mrf.mxu3 }
 0x10c   :  { %v13328_v58 = vld [vmem:[#allocation2 + $0xc24] sm:$0xf0]  ;;  %v9845_v8 = vld [vmem:[#allocation2 + $0x7e8] sm:$0xf0] }
 0x10d   :  { %3208 = vmatpush.bf16.msrb.mxu3 %v9496_v14  ;;  %3183 = vmatpush.bf16.msrb.mxu1 %v8952_v26  ;;  %v2942_v5 = vadd.f32 %v2941_v0, %v2929_v55  ;;  %v13252_v9 = vld [vmem:[#allocation2 + $0x9cc] sm:$0xf]  ;;  %v10388_v10 = vor.u32 %v13328_v58, %v10387_v57  ;;  %v9368_v26 = vor.u32 %v13068_v3, %v9365_v4 }
 0x10e   :  { %v10101_v11 = vld [vmem:[#allocation2 + $0x9e8] sm:$0xf0] }
 0x10f   :  { %3170 = vmatpush.bf16.msrb.mxu0 %v10484_v24  ;;  %3196 = vmatpush.bf16.msrb.mxu2 %v9208_v27  ;;  %v10357_v14 = vld [vmem:[#allocation2 + $0xbe8] sm:$0xf0]  ;;  %v14354_v15 = vadd.f32 %v2954_v6, %v2942_v5  ;;  %v9848_v27 = vor.u32 %v13188_v7, %v9845_v8  ;;  %v10104_v28 = vor.u32 %v13252_v9, %v10101_v11  ;;  %v2967_v5 = vpop.f32.mrf.mxu0 }
 0x110   :  { %v13380_v23 = vld [vmem:[#allocation2 + $0xdcc] sm:$0xf]  ;;  %v10360_v29 = vor.u32 %v13316_v12, %v10357_v14 }
 0x111   :  { %3209 = vmatpush.bf16.msrb.mxu3 %v9464_v31  ;;  %3184 = vmatpush.bf16.msrb.mxu1 %v8920_v42  ;;  %v10613_v24 = vld [vmem:[#allocation2 + $0xde8] sm:$0xf0]  ;;  %v2943_v42 = vpop.f32.mrf.mxu2  ;;  %v2980_v6 = vpop.f32.mrf.mxu1  ;;  %v2968_v12 = vadd.f32 %v2967_v5, %v14354_v15 }
 0x112   :  { %v13180_v30 = vld [vmem:[#allocation2 + $0x78c] sm:$0xf]  ;;  %v10616_v33 = vor.u32 %v13380_v23, %v10613_v24 }
 0x113   :  { %3171 = vmatpush.bf16.msrb.mxu0 %v10452_v38  ;;  %3197 = vmatpush.bf16.msrb.mxu2 %v9176_v43  ;;  %v9813_v31 = vld [vmem:[#allocation2 + $0x7a8] sm:$0xf0]  ;;  %v2981_v25 = vadd.f32 %v2980_v6, %v2968_v12  ;;  %v14363_v42 = vpop.f32.mrf.mxu3  ;;  %v9083_v6 = vld [vmem:[#allocation2 + $0x1d0] sm:$0xf] }
 0x114   :  { %v13244_v32 = vld [vmem:[#allocation2 + $0x98c] sm:$0xf]  ;;  %v9816_v43 = vor.u32 %v13180_v30, %v9813_v31  ;;  %v9595_v12 = vld [vmem:[#allocation2 + $0x5d0] sm:$0xf] }
 0x115   :  { %3210 = vmatpush.bf16.msrb.mxu3 %v9432_v49  ;;  %3185 = vmatpush.bf16.msrb.mxu1 %v8888_v59  ;;  %v10069_v34 = vld [vmem:[#allocation2 + $0x9a8] sm:$0xf0] }
 0x116   :  { %v13308_v35 = vld [vmem:[#allocation2 + $0xb8c] sm:$0xf]  ;;  %v10072_v45 = vor.u32 %v13244_v32, %v10069_v34 }
 0x117   :  { %3172 = vmatpush.bf16.msrb.mxu0 %v10420_v56  ;;  %3198 = vmatpush.bf16.msrb.mxu2 %v9144_v60  ;;  %v10325_v36 = vld [vmem:[#allocation2 + $0xba8] sm:$0xf0]  ;;  %v2969_v44 = vpop.f32.mrf.mxu0 }
 0x118   :  { %v13372_v38 = vld [vmem:[#allocation2 + $0xd8c] sm:$0xf]  ;;  %v10328_v46 = vor.u32 %v13308_v35, %v10325_v36 }
 0x119   :  { %3211 = vmatpush.bf16.msrb.mxu3 %v9400_v1  ;;  %3186 = vmatpush.bf16.msrb.mxu1 %v8856_v17  ;;  %v10581_v39 = vld [vmem:[#allocation2 + $0xda8] sm:$0xf0]  ;;  %v2993_v32 = vpop.f32.mrf.mxu2 }
 0x11a   :  { %v13172_v47 = vld [vmem:[#allocation2 + $0x74c] sm:$0xf]  ;;  %v10584_v50 = vor.u32 %v13372_v38, %v10581_v39  ;;  %v14361_v36 = vadd.f32 %v2993_v32, %v2981_v25  ;;  %v13057_v32 = vld [vmem:[#allocation2 + $0x3ac] sm:$0xf0] }
 0x11b   :  { %3173 = vmatpush.bf16.msrb.mxu0 %v10388_v10  ;;  %3199 = vmatpush.bf16.msrb.mxu2 %v9112_v21  ;;  %v9781_v48 = vld [vmem:[#allocation2 + $0x768] sm:$0xf0] }
 0x11c   :  { %v13236_v49 = vld [vmem:[#allocation2 + $0x94c] sm:$0xf]  ;;  %v9784_v56 = vor.u32 %v13172_v47, %v9781_v48  ;;  %3187 = vmatmul.bf16.vlgmr.msrb.gmra.mxu1 %v14313_v19 }
 0x11d   :  { %3212 = vmatpush.bf16.msrb.mxu3 %v9368_v26  ;;  %3231 = vmatpush.bf16.msra.mxu1 %v10104_v28  ;;  %v10037_v51 = vld [vmem:[#allocation2 + $0x968] sm:$0xf0] }
 0x11e   :  { %3174 = vmatmul.bf16.vlgmr.msrb.gmra.mxu0 %v14329_v37  ;;  %v13300_v52 = vld [vmem:[#allocation2 + $0xb4c] sm:$0xf]  ;;  %3200 = vmatmul.bf16.vlgmr.msrb.gmra.mxu2 %v14317_v22  ;;  %v10040_v57 = vor.u32 %v13236_v49, %v10037_v51 }
 0x11f   :  { %3218 = vmatpush.bf16.msra.mxu0 %v9848_v27  ;;  %3244 = vmatpush.bf16.msra.mxu2 %v10360_v29  ;;  %v13364_v54 = vld [vmem:[#allocation2 + $0xd4c] sm:$0xf]  ;;  %v10296_v58 = vor.u32 %v13300_v52, %v10293_v53 }
 0x120   :  { %v10549_v55 = vld [vmem:[#allocation2 + $0xd68] sm:$0xf0]  ;;  %3213 = vmatmul.bf16.vlgmr.msrb.gmra.mxu3 %v14311_v18 }
 0x121   :  { %3257 = vmatpush.bf16.msra.mxu3 %v10616_v33  ;;  %3232 = vmatpush.bf16.msra.mxu1 %v10072_v45  ;;  %v13164_v59 = vld [vmem:[#allocation2 + $0x70c] sm:$0xf]  ;;  %v10552_v62 = vor.u32 %v13364_v54, %v10549_v55  ;;  %v2982_v45 = vpop.f32.mrf.mxu1 }
 0x122   :  { %v9749_v60 = vld [vmem:[#allocation2 + $0x728] sm:$0xf0]  ;;  %v12985_v45 = vld [vmem:[#allocation2 + $0x16c] sm:$0xf0] }
 0x123   :  { %3219 = vmatpush.bf16.msra.mxu0 %v9816_v43  ;;  %3245 = vmatpush.bf16.msra.mxu2 %v10328_v46  ;;  %v13228_v61 = vld [vmem:[#allocation2 + $0x90c] sm:$0xf]  ;;  %v9752_v4 = vor.u32 %v13164_v59, %v9749_v60 }
 0x124   :  { %v10005_v63 = vld [vmem:[#allocation2 + $0x928] sm:$0xf0] }
 0x125   :  { %3258 = vmatpush.bf16.msra.mxu3 %v10584_v50  ;;  %v13292_v0 = vld [vmem:[#allocation2 + $0xb0c] sm:$0xf]  ;;  %3233 = vmatpush.bf16.msra.mxu1 %v10040_v57  ;;  %v10008_v7 = vor.u32 %v13228_v61, %v10005_v63 }
 0x126   :  { %v10261_v1 = vld [vmem:[#allocation2 + $0xb28] sm:$0xf0] }
 0x127   :  { %v13356_v2 = vld [vmem:[#allocation2 + $0xd0c] sm:$0xf]  ;;  %3220 = vmatpush.bf16.msra.mxu0 %v9784_v56  ;;  %3246 = vmatpush.bf16.msra.mxu2 %v10296_v58  ;;  %v10264_v8 = vor.u32 %v13292_v0, %v10261_v1  ;;  %v2995_v1 = vpop.f32.mrf.mxu2 }
 0x128   :  { %v10517_v3 = vld [vmem:[#allocation2 + $0xd28] sm:$0xf0]  ;;  %v9755_v1 = vld [vmem:[#allocation2 + $0x710] sm:$0xf] }
 0x129   :  { %v13156_v9 = vld [vmem:[#allocation2 + $0x6cc] sm:$0xf]  ;;  %3259 = vmatpush.bf16.msra.mxu3 %v10552_v62  ;;  %v10520_v14 = vor.u32 %v13356_v2, %v10517_v3  ;;  %3234 = vmatpush.bf16.msra.mxu1 %v10008_v7  ;;  %v13001_v7 = vld [vmem:[#allocation2 + $0x1ec] sm:$0xf0] }
 0x12a   :  { %v9717_v10 = vld [vmem:[#allocation2 + $0x6e8] sm:$0xf0]  ;;  %v9084_v25 = vor.u32 %v13001_v7, %v9083_v6  ;;  %v8955_v7 = vld [vmem:[#allocation2 + $0xd0] sm:$0xf] }
 0x12b   :  { %v13220_v11 = vld [vmem:[#allocation2 + $0x8cc] sm:$0xf]  ;;  %3221 = vmatpush.bf16.msra.mxu0 %v9752_v4  ;;  %v9720_v26 = vor.u32 %v13156_v9, %v9717_v10  ;;  %3247 = vmatpush.bf16.msra.mxu2 %v10264_v8  ;;  %v9339_v8 = vld [vmem:[#allocation2 + $0x3d0] sm:$0xf]  ;;  %v3008_v9 = vpop.f32.mrf.mxu3 }
 0x12c   :  { %v9973_v16 = vld [vmem:[#allocation2 + $0x8e8] sm:$0xf0] }
 0x12d   :  { %v13284_v17 = vld [vmem:[#allocation2 + $0xacc] sm:$0xf]  ;;  %v9976_v27 = vor.u32 %v13220_v11, %v9973_v16  ;;  %3260 = vmatpush.bf16.msra.mxu3 %v10520_v14  ;;  %v13065_v11 = vld [vmem:[#allocation2 + $0x3ec] sm:$0xf0] }
 0x12e   :  { %v10229_v21 = vld [vmem:[#allocation2 + $0xae8] sm:$0xf0]  ;;  %v13129_v14 = vld [vmem:[#allocation2 + $0x5ec] sm:$0xf0] }
 0x12f   :  { %v13348_v23 = vld [vmem:[#allocation2 + $0xccc] sm:$0xf]  ;;  %v10232_v28 = vor.u32 %v13284_v17, %v10229_v21  ;;  %3222 = vmatpush.bf16.msra.mxu0 %v9720_v26  ;;  %3235 = vmatpush.bf16.msra.mxu1 %v9976_v27  ;;  %v9851_v21 = vld [vmem:[#allocation2 + $0x7d0] sm:$0xf]  ;;  %v9340_v26 = vor.u32 %v13065_v11, %v9339_v8  ;;  %v9596_v27 = vor.u32 %v13129_v14, %v9595_v12 }
 0x130   :  { %v10485_v24 = vld [vmem:[#allocation2 + $0xce8] sm:$0xf0]  ;;  %v12969_v8 = vld [vmem:[#allocation2 + $0xec] sm:$0xf0] }
 0x131   :  { %v13148_v29 = vld [vmem:[#allocation2 + $0x68c] sm:$0xf]  ;;  %v10488_v15 = vor.u32 %v13348_v23, %v10485_v24  ;;  %3248 = vmatpush.bf16.msra.mxu2 %v10232_v28  ;;  %v13193_v23 = vld [vmem:[#allocation2 + $0x7ec] sm:$0xf0] }
 0x132   :  { %v9685_v30 = vld [vmem:[#allocation2 + $0x6a8] sm:$0xf0]  ;;  %v9051_v28 = vld [vmem:[#allocation2 + $0x190] sm:$0xf] }
 0x133   :  { %v13212_v31 = vld [vmem:[#allocation2 + $0x88c] sm:$0xf]  ;;  %v9688_v43 = vor.u32 %v13148_v29, %v9685_v30  ;;  %3261 = vmatpush.bf16.msra.mxu3 %v10488_v15  ;;  %v12993_v29 = vld [vmem:[#allocation2 + $0x1ac] sm:$0xf0] }
 0x134   :  { %v9941_v33 = vld [vmem:[#allocation2 + $0x8a8] sm:$0xf0]  ;;  %v9307_v30 = vld [vmem:[#allocation2 + $0x390] sm:$0xf] }
 0x135   :  { %v13276_v34 = vld [vmem:[#allocation2 + $0xa8c] sm:$0xf]  ;;  %v9944_v46 = vor.u32 %v13212_v31, %v9941_v33  ;;  %3223 = vmatpush.bf16.msra.mxu0 %v9688_v43  ;;  %v9852_v31 = vor.u32 %v13193_v23, %v9851_v21  ;;  %v9563_v15 = vld [vmem:[#allocation2 + $0x590] sm:$0xf]  ;;  %v9308_v43 = vor.u32 %v13057_v32, %v9307_v30  ;;  %v3045_v30 = vpop.f32.mrf.mxu2 }
 0x136   :  { %v10197_v35 = vld [vmem:[#allocation2 + $0xaa8] sm:$0xf0]  ;;  %v13121_v33 = vld [vmem:[#allocation2 + $0x5ac] sm:$0xf0] }
 0x137   :  { %v13340_v38 = vld [vmem:[#allocation2 + $0xc8c] sm:$0xf]  ;;  %v10200_v47 = vor.u32 %v13276_v34, %v10197_v35  ;;  %3236 = vmatpush.bf16.msra.mxu1 %v9944_v46  ;;  %v9819_v34 = vld [vmem:[#allocation2 + $0x790] sm:$0xf]  ;;  %v9564_v44 = vor.u32 %v13121_v33, %v9563_v15 }
 0x138   :  { %v10453_v39 = vld [vmem:[#allocation2 + $0xca8] sm:$0xf0]  ;;  %v13185_v35 = vld [vmem:[#allocation2 + $0x7ac] sm:$0xf0] }
 0x139   :  { %v13140_v48 = vld [vmem:[#allocation2 + $0x64c] sm:$0xf]  ;;  %v10456_v51 = vor.u32 %v13340_v38, %v10453_v39  ;;  %3249 = vmatpush.bf16.msra.mxu2 %v10200_v47  ;;  %v9052_v38 = vor.u32 %v12993_v29, %v9051_v28  ;;  %v9019_v39 = vld [vmem:[#allocation2 + $0x150] sm:$0xf]  ;;  %v626_v47 = vperm.slane %v14351_v13, 1 }
 0x13a   :  { %v9653_v49 = vld [vmem:[#allocation2 + $0x668] sm:$0xf0]  ;;  %v9275_v46 = vld [vmem:[#allocation2 + $0x350] sm:$0xf] }
 0x13b   :  { %v13204_v50 = vld [vmem:[#allocation2 + $0x84c] sm:$0xf]  ;;  %v9656_v57 = vor.u32 %v13140_v48, %v9653_v49  ;;  %3262 = vmatpush.bf16.msra.mxu3 %v10456_v51  ;;  %v9820_v48 = vor.u32 %v13185_v35, %v9819_v34  ;;  %v13049_v49 = vld [vmem:[#allocation2 + $0x36c] sm:$0xf0]  ;;  %v3058_v35 = vpop.f32.mrf.mxu3 }
 0x13c   :  { %v9909_v52 = vld [vmem:[#allocation2 + $0x868] sm:$0xf0]  ;;  %v13113_v51 = vld [vmem:[#allocation2 + $0x56c] sm:$0xf0] }
 0x13d   :  { %v13268_v53 = vld [vmem:[#allocation2 + $0xa4c] sm:$0xf]  ;;  %v9912_v60 = vor.u32 %v13204_v50, %v9909_v52  ;;  %3224 = vmatpush.bf16.msra.mxu0 %v9656_v57  ;;  %v9531_v50 = vld [vmem:[#allocation2 + $0x550] sm:$0xf]  ;;  %v3007_v57 = vadd.f32 %v14363_v42, %v626_v47 }
 0x13e   :  { %v10165_v54 = vld [vmem:[#allocation2 + $0xa68] sm:$0xf0]  ;;  %v9787_v52 = vld [vmem:[#allocation2 + $0x750] sm:$0xf] }
 0x13f   :  { %v13332_v55 = vld [vmem:[#allocation2 + $0xc4c] sm:$0xf]  ;;  %v10168_v61 = vor.u32 %v13268_v53, %v10165_v54  ;;  %3237 = vmatpush.bf16.msra.mxu1 %v9912_v60  ;;  %v13177_v53 = vld [vmem:[#allocation2 + $0x76c] sm:$0xf0]  ;;  %v9020_v54 = vor.u32 %v12985_v45, %v9019_v39 }
 0x140   :  { %v10421_v56 = vld [vmem:[#allocation2 + $0xc68] sm:$0xf0]  ;;  %v9243_v60 = vld [vmem:[#allocation2 + $0x310] sm:$0xf] }
 0x141   :  { %v13132_v58 = vld [vmem:[#allocation2 + $0x60c] sm:$0xf]  ;;  %v10424_v2 = vor.u32 %v13332_v55, %v10421_v56  ;;  %3250 = vmatpush.bf16.msra.mxu2 %v10168_v61  ;;  %v9276_v55 = vor.u32 %v13049_v49, %v9275_v46  ;;  %v9532_v56 = vor.u32 %v13113_v51, %v9531_v50  ;;  %v9788_v61 = vor.u32 %v13177_v53, %v9787_v52  ;;  %v9211_v42 = vld [vmem:[#allocation2 + $0x2d0] sm:$0xf] }
 0x142   :  { %v9621_v59 = vld [vmem:[#allocation2 + $0x628] sm:$0xf0]  ;;  %v13033_v12 = vld [vmem:[#allocation2 + $0x2ec] sm:$0xf0] }
 0x143   :  { %v13196_v62 = vld [vmem:[#allocation2 + $0x80c] sm:$0xf]  ;;  %v9624_v10 = vor.u32 %v13132_v58, %v9621_v59  ;;  %3263 = vmatpush.bf16.msra.mxu3 %v10424_v2  ;;  %v8987_v58 = vld [vmem:[#allocation2 + $0x110] sm:$0xf] }
 0x144   :  { %v9877_v63 = vld [vmem:[#allocation2 + $0x828] sm:$0xf0]  ;;  %v12977_v59 = vld [vmem:[#allocation2 + $0x12c] sm:$0xf0] }
 0x145   :  { %v13260_v0 = vld [vmem:[#allocation2 + $0xa0c] sm:$0xf]  ;;  %v9880_v16 = vor.u32 %v13196_v62, %v9877_v63  ;;  %3225 = vmatpush.bf16.msra.mxu0 %v9624_v10  ;;  %v13041_v62 = vld [vmem:[#allocation2 + $0x32c] sm:$0xf0]  ;;  %v3032_v10 = vpop.f32.mrf.mxu1 }
 0x146   :  { %v10133_v3 = vld [vmem:[#allocation2 + $0xa28] sm:$0xf0]  ;;  %v9499_v63 = vld [vmem:[#allocation2 + $0x510] sm:$0xf] }
 0x147   :  { %v13324_v4 = vld [vmem:[#allocation2 + $0xc0c] sm:$0xf]  ;;  %v10136_v17 = vor.u32 %v13260_v0, %v10133_v3  ;;  %3238 = vmatpush.bf16.msra.mxu1 %v9880_v16  ;;  %v13105_v0 = vld [vmem:[#allocation2 + $0x52c] sm:$0xf0]  ;;  %v8988_v3 = vor.u32 %v12977_v59, %v8987_v58 }
 0x148   :  { %v10389_v5 = vld [vmem:[#allocation2 + $0xc28] sm:$0xf0]  ;;  %3226 = vmatmul.bf16.vlgmr.msra.gmra.mxu0 %v14315_v20  ;;  %v13169_v2 = vld [vmem:[#allocation2 + $0x72c] sm:$0xf0]  ;;  %v9500_v6 = vor.u32 %v13105_v0, %v9499_v63 }
 0x149   :  { %v10392_v24 = vor.u32 %v13324_v4, %v10389_v5  ;;  %3251 = vmatpush.bf16.msra.mxu2 %v10136_v17  ;;  %3270 = vmatpush.bf16.msrb.mxu0 %v9084_v25  ;;  %v3019_v4 = vpop.f32.mrf.mxu0  ;;  %v9244_v5 = vor.u32 %v13041_v62, %v9243_v60  ;;  %v9756_v11 = vor.u32 %v13169_v2, %v9755_v1  ;;  %v9467_v14 = vld [vmem:[#allocation2 + $0x4d0] sm:$0xf]  ;;  %v3047_v2 = vpop.f32.mrf.mxu2 }
 0x14a   :  { %3239 = vmatmul.bf16.vlgmr.msra.gmra.mxu1 %v14331_v40  ;;  %v3020_v9 = vadd.f32 %v3019_v4, %v3007_v57  ;;  %v13097_v16 = vld [vmem:[#allocation2 + $0x4ec] sm:$0xf0]  ;;  %v9212_v25 = vor.u32 %v13033_v12, %v9211_v42  ;;  %v8989_v2 = vld [vmem:[#allocation2 + $0x130] sm:$0xf0] }
 0x14b   :  { %3264 = vmatpush.bf16.msra.mxu3 %v10392_v24  ;;  %3283 = vmatpush.bf16.msrb.mxu1 %v9340_v26  ;;  %v9723_v17 = vld [vmem:[#allocation2 + $0x6d0] sm:$0xf]  ;;  %v8956_v24 = vor.u32 %v12969_v8, %v8955_v7  ;;  %v9468_v26 = vor.u32 %v13097_v16, %v9467_v14  ;;  %v3060_v7 = vpop.f32.mrf.mxu3 }
 0x14c   :  { %3252 = vmatmul.bf16.vlgmr.msra.gmra.mxu2 %v14333_v41  ;;  %v13161_v21 = vld [vmem:[#allocation2 + $0x6ec] sm:$0xf0]  ;;  %v3033_v23 = vadd.f32 %v3032_v10, %v3020_v9 }
 0x14d   :  { %3296 = vmatpush.bf16.msrb.mxu2 %v9596_v27  ;;  %3271 = vmatpush.bf16.msrb.mxu0 %v9052_v38  ;;  %v8923_v27 = vld [vmem:[#allocation2 + $0x90] sm:$0xf]  ;;  %v3034_v51 = vpop.f32.mrf.mxu1 }
 0x14e   :  { %3265 = vmatmul.bf16.vlgmr.msra.gmra.mxu3 %v14329_v37  ;;  %v12961_v28 = vld [vmem:[#allocation2 + $0xac] sm:$0xf0]  ;;  %v3046_v34 = vadd.f32 %v3045_v30, %v3033_v23  ;;  %v9085_v23 = vld [vmem:[#allocation2 + $0x1f0] sm:$0xf0] }
 0x14f   :  { %3309 = vmatpush.bf16.msrb.mxu3 %v9852_v31  ;;  %3284 = vmatpush.bf16.msrb.mxu1 %v9308_v43  ;;  %v9179_v29 = vld [vmem:[#allocation2 + $0x290] sm:$0xf]  ;;  %v9724_v31 = vor.u32 %v13161_v21, %v9723_v17  ;;  %v8924_v43 = vor.u32 %v12961_v28, %v8923_v27  ;;  %v12997_v21 = vld [vmem:[#allocation2 + $0x1d4] sm:$0xf] }
 0x150   :  { %v13025_v32 = vld [vmem:[#allocation2 + $0x2ac] sm:$0xf0] }
 0x151   :  { %3297 = vmatpush.bf16.msrb.mxu2 %v9564_v44  ;;  %3272 = vmatpush.bf16.msrb.mxu0 %v9020_v54  ;;  %v9435_v15 = vld [vmem:[#allocation2 + $0x490] sm:$0xf]  ;;  %v14371_v44 = vadd.f32 %v3058_v35, %v3046_v34  ;;  %v3021_v45 = vpop.f32.mrf.mxu0  ;;  %v9180_v46 = vor.u32 %v13025_v32, %v9179_v29  ;;  %v12989_v34 = vld [vmem:[#allocation2 + $0x194] sm:$0xf] }
 0x152   :  { %v13089_v33 = vld [vmem:[#allocation2 + $0x4ac] sm:$0xf0]  ;;  %v9053_v35 = vld [vmem:[#allocation2 + $0x1b0] sm:$0xf0] }
 0x153   :  { %3310 = vmatpush.bf16.msrb.mxu3 %v9820_v48  ;;  %3285 = vmatpush.bf16.msrb.mxu1 %v9276_v55  ;;  %v9691_v38 = vld [vmem:[#allocation2 + $0x690] sm:$0xf]  ;;  %v9436_v47 = vor.u32 %v13089_v33, %v9435_v15 }
 0x154   :  { %v13153_v39 = vld [vmem:[#allocation2 + $0x6ac] sm:$0xf0] }
 0x155   :  { %3298 = vmatpush.bf16.msrb.mxu2 %v9532_v56  ;;  %3273 = vmatpush.bf16.msrb.mxu0 %v8988_v3  ;;  %v8891_v48 = vld [vmem:[#allocation2 + $0x50] sm:$0xf]  ;;  %v9692_v52 = vor.u32 %v13153_v39, %v9691_v38 }
 0x156   :  { %v12953_v49 = vld [vmem:[#allocation2 + $0x6c] sm:$0xf0] }
 0x157   :  { %3311 = vmatpush.bf16.msrb.mxu3 %v9788_v61  ;;  %3286 = vmatpush.bf16.msrb.mxu1 %v9244_v5  ;;  %v9147_v50 = vld [vmem:[#allocation2 + $0x250] sm:$0xf]  ;;  %v8892_v58 = vor.u32 %v12953_v49, %v8891_v48  ;;  %v9056_v48 = vor.u32 %v12989_v34, %v9053_v35  ;;  %v8925_v34 = vld [vmem:[#allocation2 + $0xb0] sm:$0xf0] }
 0x158   :  { %v13017_v53 = vld [vmem:[#allocation2 + $0x26c] sm:$0xf0] }
 0x159   :  { %3299 = vmatpush.bf16.msrb.mxu2 %v9500_v6  ;;  %3274 = vmatpush.bf16.msrb.mxu0 %v8956_v24  ;;  %v9403_v54 = vld [vmem:[#allocation2 + $0x450] sm:$0xf]  ;;  %v9148_v61 = vor.u32 %v13017_v53, %v9147_v50  ;;  %v9021_v53 = vld [vmem:[#allocation2 + $0x170] sm:$0xf0] }
 0x15a   :  { %v13081_v55 = vld [vmem:[#allocation2 + $0x46c] sm:$0xf0] }
 0x15b   :  { %3312 = vmatpush.bf16.msrb.mxu3 %v9756_v11  ;;  %3287 = vmatpush.bf16.msrb.mxu1 %v9212_v25  ;;  %v9659_v56 = vld [vmem:[#allocation2 + $0x650] sm:$0xf]  ;;  %v9404_v62 = vor.u32 %v13081_v55, %v9403_v54 }
 0x15c   :  { %v13145_v57 = vld [vmem:[#allocation2 + $0x66c] sm:$0xf0] }
 0x15d   :  { %3300 = vmatpush.bf16.msrb.mxu2 %v9468_v26  ;;  %3275 = vmatpush.bf16.msrb.mxu0 %v8924_v43  ;;  %v8859_v59 = vld [vmem:[#allocation2 + $0x10] sm:$0xf]  ;;  %v9660_v3 = vor.u32 %v13145_v57, %v9659_v56 }
 0x15e   :  { %v12945_v60 = vld [vmem:[#allocation2 + $0x2c] sm:$0xf0] }
 0x15f   :  { %3313 = vmatpush.bf16.msrb.mxu3 %v9724_v31  ;;  %3288 = vmatpush.bf16.msrb.mxu1 %v9180_v46  ;;  %v9115_v63 = vld [vmem:[#allocation2 + $0x210] sm:$0xf]  ;;  %v8860_v10 = vor.u32 %v12945_v60, %v8859_v59  ;;  %v9088_v31 = vor.u32 %v12997_v21, %v9085_v23  ;;  %v8957_v21 = vld [vmem:[#allocation2 + $0xf0] sm:$0xf0] }
 0x160   :  { %v13009_v0 = vld [vmem:[#allocation2 + $0x22c] sm:$0xf0] }
 0x161   :  { %3301 = vmatpush.bf16.msrb.mxu2 %v9436_v47  ;;  %v9371_v1 = vld [vmem:[#allocation2 + $0x410] sm:$0xf]  ;;  %3276 = vmatpush.bf16.msrb.mxu0 %v8892_v58  ;;  %v9116_v16 = vor.u32 %v13009_v0, %v9115_v63  ;;  %v3071_v0 = vpop.f32.mrf.mxu0 }
 0x162   :  { %v13073_v4 = vld [vmem:[#allocation2 + $0x42c] sm:$0xf0] }
 0x163   :  { %3314 = vmatpush.bf16.msrb.mxu3 %v9692_v52  ;;  %v9627_v5 = vld [vmem:[#allocation2 + $0x610] sm:$0xf]  ;;  %3289 = vmatpush.bf16.msrb.mxu1 %v9148_v61  ;;  %v9372_v17 = vor.u32 %v13073_v4, %v9371_v1  ;;  %v12981_v52 = vld [vmem:[#allocation2 + $0x154] sm:$0xf] }
 0x164   :  { %v13137_v6 = vld [vmem:[#allocation2 + $0x62c] sm:$0xf0]  ;;  %v9024_v60 = vor.u32 %v12981_v52, %v9021_v53  ;;  %v12973_v1 = vld [vmem:[#allocation2 + $0x114] sm:$0xf] }
 0x165   :  { %v10107_v8 = vld [vmem:[#allocation2 + $0x9d0] sm:$0xf]  ;;  %3302 = vmatpush.bf16.msrb.mxu2 %v9404_v62  ;;  %v9628_v24 = vor.u32 %v13137_v6, %v9627_v5  ;;  %3277 = vmatpush.bf16.msrb.mxu0 %v8860_v10  ;;  %v3084_v5 = vpop.f32.mrf.mxu1  ;;  %v8992_v10 = vor.u32 %v12973_v1, %v8989_v2 }
 0x166   :  { %v13257_v42 = vld [vmem:[#allocation2 + $0x9ec] sm:$0xf0] }
 0x167   :  { %v10363_v9 = vld [vmem:[#allocation2 + $0xbd0] sm:$0xf]  ;;  %3315 = vmatpush.bf16.msrb.mxu3 %v9660_v3  ;;  %v10108_v25 = vor.u32 %v13257_v42, %v10107_v8  ;;  %3290 = vmatpush.bf16.msrb.mxu1 %v9116_v16  ;;  %v3072_v3 = vadd.f32 %v3071_v0, %v14371_v44  ;;  %v627_v44 = vperm.slane %v14351_v13, 2 }
 0x168   :  { %v13321_v11 = vld [vmem:[#allocation2 + $0xbec] sm:$0xf0]  ;;  %3278 = vmatmul.bf16.vlgmr.msrb.gmra.mxu0 %v14313_v19 }
 0x169   :  { %v10619_v12 = vld [vmem:[#allocation2 + $0xdd0] sm:$0xf]  ;;  %v10364_v26 = vor.u32 %v13321_v11, %v10363_v9  ;;  %3303 = vmatpush.bf16.msrb.mxu2 %v9372_v17  ;;  %3322 = vmatpush.bf16.msra.mxu0 %v10108_v25  ;;  %v14378_v11 = vadd.f32 %v3084_v5, %v3072_v3  ;;  %v12965_v17 = vld [vmem:[#allocation2 + $0xd4] sm:$0xf] }
 0x16a   :  { %v13385_v14 = vld [vmem:[#allocation2 + $0xdec] sm:$0xf0]  ;;  %3291 = vmatmul.bf16.vlgmr.msrb.gmra.mxu1 %v14317_v22  ;;  %v8861_v5 = vld [vmem:[#allocation2 + $0x30] sm:$0xf0] }
 0x16b   :  { %v10620_v27 = vor.u32 %v13385_v14, %v10619_v12  ;;  %v10075_v28 = vld [vmem:[#allocation2 + $0x990] sm:$0xf]  ;;  %3316 = vmatpush.bf16.msrb.mxu3 %v9628_v24  ;;  %3335 = vmatpush.bf16.msra.mxu1 %v10364_v26 }
 0x16c   :  { %v13249_v29 = vld [vmem:[#allocation2 + $0x9ac] sm:$0xf0]  ;;  %3304 = vmatmul.bf16.vlgmr.msrb.gmra.mxu2 %v14311_v18 }
 0x16d   :  { %v10331_v30 = vld [vmem:[#allocation2 + $0xb90] sm:$0xf]  ;;  %v10076_v38 = vor.u32 %v13249_v29, %v10075_v28  ;;  %3348 = vmatpush.bf16.msra.mxu2 %v10620_v27  ;;  %v8960_v29 = vor.u32 %v12965_v17, %v8957_v21 }
 0x16e   :  { %v13313_v32 = vld [vmem:[#allocation2 + $0xbac] sm:$0xf0]  ;;  %3317 = vmatmul.bf16.vlgmr.msrb.gmra.mxu3 %v14315_v20 }
 0x16f   :  { %v10587_v15 = vld [vmem:[#allocation2 + $0xd90] sm:$0xf]  ;;  %v10332_v39 = vor.u32 %v13313_v32, %v10331_v30  ;;  %3361 = vmatpush.bf16.msra.mxu3 %v9088_v31  ;;  %3323 = vmatpush.bf16.msra.mxu0 %v10076_v38  ;;  %v3110_v38 = vpop.f32.mrf.mxu3 }
 0x170   :  { %v13377_v33 = vld [vmem:[#allocation2 + $0xdac] sm:$0xf0] }
 0x171   :  { %v10588_v43 = vor.u32 %v13377_v33, %v10587_v15  ;;  %v10043_v45 = vld [vmem:[#allocation2 + $0x950] sm:$0xf]  ;;  %3336 = vmatpush.bf16.msra.mxu1 %v10332_v39  ;;  %v3097_v15 = vpop.f32.mrf.mxu2  ;;  %v12957_v33 = vld [vmem:[#allocation2 + $0x94] sm:$0xf]  ;;  %v3073_v39 = vpop.f32.mrf.mxu0 }
 0x172   :  { %v13241_v46 = vld [vmem:[#allocation2 + $0x96c] sm:$0xf0]  ;;  %v3098_v35 = vadd.f32 %v3097_v15, %v627_v44  ;;  %v8928_v52 = vor.u32 %v12957_v33, %v8925_v34  ;;  %v13253_v44 = vld [vmem:[#allocation2 + $0x9d4] sm:$0xf] }
 0x173   :  { %v10299_v47 = vld [vmem:[#allocation2 + $0xb50] sm:$0xf]  ;;  %v10044_v54 = vor.u32 %v13241_v46, %v10043_v45  ;;  %3349 = vmatpush.bf16.msra.mxu2 %v10588_v43  ;;  %3362 = vmatpush.bf16.msra.mxu3 %v9056_v48  ;;  %v3086_v45 = vpop.f32.mrf.mxu1  ;;  %v13181_v15 = vld [vmem:[#allocation2 + $0x794] sm:$0xf] }
 0x174   :  { %v13305_v49 = vld [vmem:[#allocation2 + $0xb6c] sm:$0xf0]  ;;  %v9821_v33 = vld [vmem:[#allocation2 + $0x7b0] sm:$0xf0] }
 0x175   :  { %v10555_v50 = vld [vmem:[#allocation2 + $0xd50] sm:$0xf]  ;;  %v10300_v55 = vor.u32 %v13305_v49, %v10299_v47  ;;  %3324 = vmatpush.bf16.msra.mxu0 %v10044_v54  ;;  %v13245_v34 = vld [vmem:[#allocation2 + $0x994] sm:$0xf] }
 0x176   :  { %v13369_v51 = vld [vmem:[#allocation2 + $0xd6c] sm:$0xf0]  ;;  %v13045_v45 = vld [vmem:[#allocation2 + $0x354] sm:$0xf] }
 0x177   :  { %v10556_v56 = vor.u32 %v13369_v51, %v10555_v50  ;;  %v10011_v57 = vld [vmem:[#allocation2 + $0x910] sm:$0xf]  ;;  %3337 = vmatpush.bf16.msra.mxu1 %v10300_v55  ;;  %3363 = vmatpush.bf16.msra.mxu3 %v9024_v60  ;;  %v14381_v51 = vadd.f32 %v3110_v38, %v3098_v35  ;;  %v10077_v35 = vld [vmem:[#allocation2 + $0x9b0] sm:$0xf0] }
 0x178   :  { %v13233_v58 = vld [vmem:[#allocation2 + $0x92c] sm:$0xf0] }
 0x179   :  { %v10267_v59 = vld [vmem:[#allocation2 + $0xb10] sm:$0xf]  ;;  %v10012_v4 = vor.u32 %v13233_v58, %v10011_v57  ;;  %3350 = vmatpush.bf16.msra.mxu2 %v10556_v56  ;;  %v12949_v56 = vld [vmem:[#allocation2 + $0x54] sm:$0xf] }
 0x17a   :  { %v13297_v61 = vld [vmem:[#allocation2 + $0xb2c] sm:$0xf0]  ;;  %v8893_v57 = vld [vmem:[#allocation2 + $0x70] sm:$0xf0] }
 0x17b   :  { %v10523_v62 = vld [vmem:[#allocation2 + $0xd10] sm:$0xf]  ;;  %v10268_v6 = vor.u32 %v13297_v61, %v10267_v59  ;;  %3325 = vmatpush.bf16.msra.mxu0 %v10012_v4  ;;  %3364 = vmatpush.bf16.msra.mxu3 %v8992_v10  ;;  %v8896_v2 = vor.u32 %v12949_v56, %v8893_v57  ;;  %v12941_v4 = vld [vmem:[#allocation2 + $0x14] sm:$0xf] }
 0x17c   :  { %v13361_v63 = vld [vmem:[#allocation2 + $0xd2c] sm:$0xf0] }
 0x17d   :  { %v10524_v7 = vor.u32 %v13361_v63, %v10523_v62  ;;  %v9979_v8 = vld [vmem:[#allocation2 + $0x8d0] sm:$0xf]  ;;  %3338 = vmatpush.bf16.msra.mxu1 %v10268_v6  ;;  %v3099_v6 = vpop.f32.mrf.mxu2 }
 0x17e   :  { %v13225_v42 = vld [vmem:[#allocation2 + $0x8ec] sm:$0xf0] }
 0x17f   :  { %v10235_v9 = vld [vmem:[#allocation2 + $0xad0] sm:$0xf]  ;;  %v9980_v23 = vor.u32 %v13225_v42, %v9979_v8  ;;  %3351 = vmatpush.bf16.msra.mxu2 %v10524_v7  ;;  %3365 = vmatpush.bf16.msra.mxu3 %v8960_v29  ;;  %v13061_v7 = vld [vmem:[#allocation2 + $0x3d4] sm:$0xf] }
 0x180   :  { %v13289_v12 = vld [vmem:[#allocation2 + $0xaec] sm:$0xf0]  ;;  %v9341_v8 = vld [vmem:[#allocation2 + $0x3f0] sm:$0xf0] }
 0x181   :  { %v10491_v14 = vld [vmem:[#allocation2 + $0xcd0] sm:$0xf]  ;;  %v10236_v24 = vor.u32 %v13289_v12, %v10235_v9  ;;  %3326 = vmatpush.bf16.msra.mxu0 %v9980_v23  ;;  %v13125_v42 = vld [vmem:[#allocation2 + $0x5d4] sm:$0xf]  ;;  %v3112_v9 = vpop.f32.mrf.mxu3 }
 0x182   :  { %v13353_v16 = vld [vmem:[#allocation2 + $0xcec] sm:$0xf0]  ;;  %v9597_v12 = vld [vmem:[#allocation2 + $0x5f0] sm:$0xf0] }
 0x183   :  { %v10492_v25 = vor.u32 %v13353_v16, %v10491_v14  ;;  %v9947_v26 = vld [vmem:[#allocation2 + $0x890] sm:$0xf]  ;;  %3339 = vmatpush.bf16.msra.mxu1 %v10236_v24  ;;  %3366 = vmatpush.bf16.msra.mxu3 %v8928_v52  ;;  %v13189_v14 = vld [vmem:[#allocation2 + $0x7d4] sm:$0xf]  ;;  %v8864_v24 = vor.u32 %v12941_v4, %v8861_v5  ;;  %v3123_v4 = vpop.f32.mrf.mxu0 }
 0x184   :  { %v13217_v27 = vld [vmem:[#allocation2 + $0x8ac] sm:$0xf0]  ;;  %v9853_v16 = vld [vmem:[#allocation2 + $0x7f0] sm:$0xf0]  ;;  %v3124_v9 = vadd.f32 %v3123_v4, %v14381_v51 }
 0x185   :  { %v10203_v28 = vld [vmem:[#allocation2 + $0xa90] sm:$0xf]  ;;  %v9948_v43 = vor.u32 %v13217_v27, %v9947_v26  ;;  %3352 = vmatpush.bf16.msra.mxu2 %v10492_v25  ;;  %v10109_v23 = vld [vmem:[#allocation2 + $0x9f0] sm:$0xf0]  ;;  %v9344_v25 = vor.u32 %v13061_v7, %v9341_v8  ;;  %v9600_v26 = vor.u32 %v13125_v42, %v9597_v12  ;;  %v9856_v27 = vor.u32 %v13189_v14, %v9853_v16 }
 0x186   :  { %v13281_v30 = vld [vmem:[#allocation2 + $0xaac] sm:$0xf0]  ;;  %v9309_v29 = vld [vmem:[#allocation2 + $0x3b0] sm:$0xf0] }
 0x187   :  { %v10459_v31 = vld [vmem:[#allocation2 + $0xc90] sm:$0xf]  ;;  %v10204_v46 = vor.u32 %v13281_v30, %v10203_v28  ;;  %3327 = vmatpush.bf16.msra.mxu0 %v9948_v43  ;;  %3367 = vmatpush.bf16.msra.mxu3 %v8896_v2  ;;  %v13053_v28 = vld [vmem:[#allocation2 + $0x394] sm:$0xf]  ;;  %v9824_v43 = vor.u32 %v13181_v15, %v9821_v33 }
 0x188   :  { %v13345_v32 = vld [vmem:[#allocation2 + $0xcac] sm:$0xf0]  ;;  %v13117_v30 = vld [vmem:[#allocation2 + $0x594] sm:$0xf]  ;;  %v9312_v38 = vor.u32 %v13053_v28, %v9309_v29 }
 0x189   :  { %v10460_v47 = vor.u32 %v13345_v32, %v10459_v31  ;;  %v9915_v48 = vld [vmem:[#allocation2 + $0x850] sm:$0xf]  ;;  %3340 = vmatpush.bf16.msra.mxu1 %v10204_v46  ;;  %v10112_v31 = vor.u32 %v13253_v44, %v10109_v23  ;;  %v9565_v32 = vld [vmem:[#allocation2 + $0x5b0] sm:$0xf0] }
 0x18a   :  { %v13209_v49 = vld [vmem:[#allocation2 + $0x86c] sm:$0xf0]  ;;  %v9568_v39 = vor.u32 %v13117_v30, %v9565_v32  ;;  %v9277_v46 = vld [vmem:[#allocation2 + $0x370] sm:$0xf0]  ;;  %v3149_v30 = vpop.f32.mrf.mxu2 }
 0x18b   :  { %v10171_v50 = vld [vmem:[#allocation2 + $0xa50] sm:$0xf]  ;;  %v9916_v58 = vor.u32 %v13209_v49, %v9915_v48  ;;  %3353 = vmatpush.bf16.msra.mxu2 %v10460_v47  ;;  %3368 = vmatpush.bf16.msra.mxu3 %v8864_v24  ;;  %v13109_v47 = vld [vmem:[#allocation2 + $0x554] sm:$0xf]  ;;  %v10080_v48 = vor.u32 %v13245_v34, %v10077_v35  ;;  %v3162_v34 = vpop.f32.mrf.mxu3 }
 0x18c   :  { %v13273_v53 = vld [vmem:[#allocation2 + $0xa6c] sm:$0xf0]  ;;  %v9533_v49 = vld [vmem:[#allocation2 + $0x570] sm:$0xf0] }
 0x18d   :  { %v10427_v54 = vld [vmem:[#allocation2 + $0xc50] sm:$0xf]  ;;  %v10172_v61 = vor.u32 %v13273_v53, %v10171_v50  ;;  %3328 = vmatpush.bf16.msra.mxu0 %v9916_v58  ;;  %v13173_v50 = vld [vmem:[#allocation2 + $0x754] sm:$0xf]  ;;  %v9536_v56 = vor.u32 %v13109_v47, %v9533_v49 }
 0x18e   :  { %v13337_v55 = vld [vmem:[#allocation2 + $0xc6c] sm:$0xf0]  ;;  %v9789_v52 = vld [vmem:[#allocation2 + $0x770] sm:$0xf0]  ;;  %3369 = vmatmul.bf16.vlgmr.msra.gmra.mxu3 %v14313_v19 }
 0x18f   :  { %v9883_v59 = vld [vmem:[#allocation2 + $0x810] sm:$0xf]  ;;  %v10428_v62 = vor.u32 %v13337_v55, %v10427_v54  ;;  %3341 = vmatpush.bf16.msra.mxu1 %v10172_v61  ;;  %3413 = vmatpush.bf16.msrb.mxu3 %v10112_v31  ;;  %v13237_v53 = vld [vmem:[#allocation2 + $0x954] sm:$0xf]  ;;  %v9280_v55 = vor.u32 %v13045_v45, %v9277_v46  ;;  %v9792_v57 = vor.u32 %v13173_v50, %v9789_v52  ;;  %v3125_v45 = vpop.f32.mrf.mxu0 }
 0x190   :  { %v13201_v60 = vld [vmem:[#allocation2 + $0x82c] sm:$0xf0]  ;;  %v10045_v54 = vld [vmem:[#allocation2 + $0x970] sm:$0xf0] }
 0x191   :  { %v10139_v63 = vld [vmem:[#allocation2 + $0xa10] sm:$0xf]  ;;  %v9884_v10 = vor.u32 %v13201_v60, %v9883_v59  ;;  %3354 = vmatpush.bf16.msra.mxu2 %v10428_v62  ;;  %v13037_v58 = vld [vmem:[#allocation2 + $0x314] sm:$0xf]  ;;  %v10048_v61 = vor.u32 %v13237_v53, %v10045_v54 }
 0x192   :  { %v13265_v0 = vld [vmem:[#allocation2 + $0xa2c] sm:$0xf0]  ;;  %v9245_v59 = vld [vmem:[#allocation2 + $0x330] sm:$0xf0] }
 0x193   :  { %v10395_v1 = vld [vmem:[#allocation2 + $0xc10] sm:$0xf]  ;;  %v10140_v17 = vor.u32 %v13265_v0, %v10139_v63  ;;  %3329 = vmatpush.bf16.msra.mxu0 %v9884_v10  ;;  %v13101_v60 = vld [vmem:[#allocation2 + $0x514] sm:$0xf]  ;;  %3414 = vmatpush.bf16.msrb.mxu3 %v10080_v48  ;;  %v3136_v10 = vpop.f32.mrf.mxu1 }
 0x194   :  { %v13329_v3 = vld [vmem:[#allocation2 + $0xc2c] sm:$0xf0]  ;;  %v9501_v62 = vld [vmem:[#allocation2 + $0x530] sm:$0xf0]  ;;  %v3137_v23 = vadd.f32 %v3136_v10, %v3124_v9 }
 0x195   :  { %v10396_v21 = vor.u32 %v13329_v3, %v10395_v1  ;;  %3342 = vmatpush.bf16.msra.mxu1 %v10140_v17  ;;  %v13165_v63 = vld [vmem:[#allocation2 + $0x714] sm:$0xf]  ;;  %v9248_v3 = vor.u32 %v13037_v58, %v9245_v59  ;;  %v9504_v5 = vor.u32 %v13101_v60, %v9501_v62 }
 0x196   :  { %3330 = vmatmul.bf16.vlgmr.msra.gmra.mxu0 %v14331_v40  ;;  %v9757_v0 = vld [vmem:[#allocation2 + $0x730] sm:$0xf0]  ;;  %v3150_v33 = vadd.f32 %v3149_v30, %v3137_v23  ;;  %v9347_v23 = vld [vmem:[#allocation2 + $0x3d8] sm:$0xf] }
 0x197   :  { %3355 = vmatpush.bf16.msra.mxu2 %v10396_v21  ;;  %3374 = vmatpush.bf16.msrb.mxu0 %v9344_v25  ;;  %v13229_v1 = vld [vmem:[#allocation2 + $0x914] sm:$0xf]  ;;  %v9760_v6 = vor.u32 %v13165_v63, %v9757_v0 }
 0x198   :  { %3343 = vmatmul.bf16.vlgmr.msra.gmra.mxu1 %v14333_v41  ;;  %v10013_v2 = vld [vmem:[#allocation2 + $0x930] sm:$0xf0]  ;;  %3415 = vmatpush.bf16.msrb.mxu3 %v10048_v61 }
 0x199   :  { %3387 = vmatpush.bf16.msrb.mxu1 %v9600_v26  ;;  %v13029_v7 = vld [vmem:[#allocation2 + $0x2d4] sm:$0xf]  ;;  %v10016_v12 = vor.u32 %v13229_v1, %v10013_v2 }
 0x19a   :  { %3356 = vmatmul.bf16.vlgmr.msra.gmra.mxu2 %v14329_v37  ;;  %v9213_v8 = vld [vmem:[#allocation2 + $0x2f0] sm:$0xf0] }
 0x19b   :  { %3400 = vmatpush.bf16.msrb.mxu2 %v9856_v27  ;;  %3375 = vmatpush.bf16.msrb.mxu0 %v9312_v38  ;;  %v13093_v42 = vld [vmem:[#allocation2 + $0x4d4] sm:$0xf]  ;;  %v9216_v24 = vor.u32 %v13029_v7, %v9213_v8  ;;  %v3138_v52 = vpop.f32.mrf.mxu1  ;;  %v3164_v8 = vpop.f32.mrf.mxu3 }
 0x19c   :  { %v9469_v14 = vld [vmem:[#allocation2 + $0x4f0] sm:$0xf0]  ;;  %3416 = vmatpush.bf16.msrb.mxu3 %v10016_v12  ;;  %v9027_v52 = vld [vmem:[#allocation2 + $0x158] sm:$0xf] }
 0x19d   :  { %3388 = vmatpush.bf16.msrb.mxu1 %v9568_v39  ;;  %v13157_v16 = vld [vmem:[#allocation2 + $0x6d4] sm:$0xf]  ;;  %v9472_v25 = vor.u32 %v13093_v42, %v9469_v14 }
 0x19e   :  { %v9725_v17 = vld [vmem:[#allocation2 + $0x6f0] sm:$0xf0] }
 0x19f   :  { %3401 = vmatpush.bf16.msrb.mxu2 %v9824_v43  ;;  %3376 = vmatpush.bf16.msrb.mxu0 %v9280_v55  ;;  %v13221_v21 = vld [vmem:[#allocation2 + $0x8d4] sm:$0xf]  ;;  %v9728_v26 = vor.u32 %v13157_v16, %v9725_v17  ;;  %v14388_v43 = vadd.f32 %v3162_v34, %v3150_v33  ;;  %v9091_v16 = vld [vmem:[#allocation2 + $0x1d8] sm:$0xf] }
 0x1a0   :  { %v9981_v44 = vld [vmem:[#allocation2 + $0x8f0] sm:$0xf0]  ;;  %v13002_v17 = vld [vmem:[#allocation2 + $0x1f4] sm:$0xf0] }
 0x1a1   :  { %3389 = vmatpush.bf16.msrb.mxu1 %v9536_v56  ;;  %v13021_v27 = vld [vmem:[#allocation2 + $0x294] sm:$0xf]  ;;  %v9984_v51 = vor.u32 %v13221_v21, %v9981_v44  ;;  %v12994_v33 = vld [vmem:[#allocation2 + $0x1b4] sm:$0xf0] }
 0x1a2   :  { %v9181_v28 = vld [vmem:[#allocation2 + $0x2b0] sm:$0xf0]  ;;  %v9315_v34 = vld [vmem:[#allocation2 + $0x398] sm:$0xf] }
 0x1a3   :  { %3402 = vmatpush.bf16.msrb.mxu2 %v9792_v57  ;;  %3377 = vmatpush.bf16.msrb.mxu0 %v9248_v3  ;;  %v13085_v29 = vld [vmem:[#allocation2 + $0x494] sm:$0xf]  ;;  %v9184_v39 = vor.u32 %v13021_v27, %v9181_v28  ;;  %v3151_v3 = vpop.f32.mrf.mxu2  ;;  %v9092_v28 = vor.u32 %v13002_v17, %v9091_v16 }
 0x1a4   :  { %v9437_v31 = vld [vmem:[#allocation2 + $0x4b0] sm:$0xf0]  ;;  %3417 = vmatpush.bf16.msrb.mxu3 %v9984_v51  ;;  %v9251_v3 = vld [vmem:[#allocation2 + $0x318] sm:$0xf] }
 0x1a5   :  { %3390 = vmatpush.bf16.msrb.mxu1 %v9504_v5  ;;  %v13149_v32 = vld [vmem:[#allocation2 + $0x694] sm:$0xf]  ;;  %v9440_v46 = vor.u32 %v13085_v29, %v9437_v31 }
 0x1a6   :  { %v9693_v15 = vld [vmem:[#allocation2 + $0x6b0] sm:$0xf0] }
 0x1a7   :  { %3403 = vmatpush.bf16.msrb.mxu2 %v9760_v6  ;;  %v13213_v35 = vld [vmem:[#allocation2 + $0x894] sm:$0xf]  ;;  %3378 = vmatpush.bf16.msrb.mxu0 %v9216_v24  ;;  %v9696_v47 = vor.u32 %v13149_v32, %v9693_v15  ;;  %v13066_v24 = vld [vmem:[#allocation2 + $0x3f4] sm:$0xf0] }
 0x1a8   :  { %v9949_v38 = vld [vmem:[#allocation2 + $0x8b0] sm:$0xf0]  ;;  %v9348_v31 = vor.u32 %v13066_v24, %v9347_v23  ;;  %v9059_v15 = vld [vmem:[#allocation2 + $0x198] sm:$0xf] }
 0x1a9   :  { %3391 = vmatpush.bf16.msrb.mxu1 %v9472_v25  ;;  %v13013_v48 = vld [vmem:[#allocation2 + $0x254] sm:$0xf]  ;;  %v9952_v53 = vor.u32 %v13213_v35, %v9949_v38  ;;  %v13058_v35 = vld [vmem:[#allocation2 + $0x3b4] sm:$0xf0]  ;;  %v9060_v45 = vor.u32 %v12994_v33, %v9059_v15 }
 0x1aa   :  { %v9149_v49 = vld [vmem:[#allocation2 + $0x270] sm:$0xf0]  ;;  %v9219_v23 = vld [vmem:[#allocation2 + $0x2d8] sm:$0xf] }
 0x1ab   :  { %3404 = vmatpush.bf16.msrb.mxu2 %v9728_v26  ;;  %v13077_v50 = vld [vmem:[#allocation2 + $0x454] sm:$0xf]  ;;  %3379 = vmatpush.bf16.msrb.mxu0 %v9184_v39  ;;  %v9152_v59 = vor.u32 %v13013_v48, %v9149_v49  ;;  %v9316_v49 = vor.u32 %v13058_v35, %v9315_v34  ;;  %v13034_v24 = vld [vmem:[#allocation2 + $0x2f4] sm:$0xf0]  ;;  %v3201_v33 = vpop.f32.mrf.mxu2  ;;  %v3214_v34 = vpop.f32.mrf.mxu3 }
 0x1ac   :  { %v9405_v54 = vld [vmem:[#allocation2 + $0x470] sm:$0xf0]  ;;  %3418 = vmatpush.bf16.msrb.mxu3 %v9952_v53  ;;  %v12986_v53 = vld [vmem:[#allocation2 + $0x174] sm:$0xf0] }
 0x1ad   :  { %v13141_v55 = vld [vmem:[#allocation2 + $0x654] sm:$0xf]  ;;  %3392 = vmatpush.bf16.msrb.mxu1 %v9440_v46  ;;  %v9408_v62 = vor.u32 %v13077_v50, %v9405_v54  ;;  %v9283_v54 = vld [vmem:[#allocation2 + $0x358] sm:$0xf] }
 0x1ae   :  { %v9661_v56 = vld [vmem:[#allocation2 + $0x670] sm:$0xf0]  ;;  %v12962_v15 = vld [vmem:[#allocation2 + $0xb4] sm:$0xf0] }
 0x1af   :  { %v13205_v57 = vld [vmem:[#allocation2 + $0x854] sm:$0xf]  ;;  %3405 = vmatpush.bf16.msrb.mxu2 %v9696_v47  ;;  %v9664_v63 = vor.u32 %v13141_v55, %v9661_v56  ;;  %3380 = vmatpush.bf16.msrb.mxu0 %v9152_v59  ;;  %v13050_v55 = vld [vmem:[#allocation2 + $0x374] sm:$0xf0] }
 0x1b0   :  { %v9917_v58 = vld [vmem:[#allocation2 + $0x870] sm:$0xf0]  ;;  %v9187_v35 = vld [vmem:[#allocation2 + $0x298] sm:$0xf] }
 0x1b1   :  { %v13005_v60 = vld [vmem:[#allocation2 + $0x214] sm:$0xf]  ;;  %v9920_v4 = vor.u32 %v13205_v57, %v9917_v58  ;;  %3393 = vmatpush.bf16.msrb.mxu1 %v9408_v62  ;;  %v9028_v58 = vor.u32 %v12986_v53, %v9027_v52  ;;  %v9284_v62 = vor.u32 %v13050_v55, %v9283_v54 }
 0x1b2   :  { %v9117_v61 = vld [vmem:[#allocation2 + $0x230] sm:$0xf0] }
 0x1b3   :  { %v13069_v0 = vld [vmem:[#allocation2 + $0x414] sm:$0xf]  ;;  %v9120_v12 = vor.u32 %v13005_v60, %v9117_v61  ;;  %3406 = vmatpush.bf16.msrb.mxu2 %v9664_v63  ;;  %3419 = vmatpush.bf16.msrb.mxu3 %v9920_v4  ;;  %v13042_v4 = vld [vmem:[#allocation2 + $0x334] sm:$0xf0] }
 0x1b4   :  { %v9373_v1 = vld [vmem:[#allocation2 + $0x430] sm:$0xf0]  ;;  %v9252_v16 = vor.u32 %v13042_v4, %v9251_v3  ;;  %v8867_v4 = vld [vmem:[#allocation2 + $0x18] sm:$0xf] }
 0x1b5   :  { %v13133_v2 = vld [vmem:[#allocation2 + $0x614] sm:$0xf]  ;;  %v9376_v21 = vor.u32 %v13069_v0, %v9373_v1  ;;  %3381 = vmatpush.bf16.msrb.mxu0 %v9120_v12  ;;  %v8995_v0 = vld [vmem:[#allocation2 + $0x118] sm:$0xf] }
 0x1b6   :  { %v9629_v5 = vld [vmem:[#allocation2 + $0x630] sm:$0xf0]  ;;  %v12978_v1 = vld [vmem:[#allocation2 + $0x134] sm:$0xf0] }
 0x1b7   :  { %v13197_v6 = vld [vmem:[#allocation2 + $0x814] sm:$0xf]  ;;  %v9632_v44 = vor.u32 %v13133_v2, %v9629_v5  ;;  %3394 = vmatpush.bf16.msrb.mxu1 %v9376_v21  ;;  %v3175_v2 = vpop.f32.mrf.mxu0  ;;  %v628_v5 = vperm.slane %v14351_v13, 3  ;;  %v8963_v21 = vld [vmem:[#allocation2 + $0xd8] sm:$0xf] }
 0x1b8   :  { %v9885_v7 = vld [vmem:[#allocation2 + $0x830] sm:$0xf0]  ;;  %3382 = vmatmul.bf16.vlgmr.msrb.gmra.mxu0 %v14317_v22 }
 0x1b9   :  { %v13317_v42 = vld [vmem:[#allocation2 + $0xbd4] sm:$0xf]  ;;  %v9888_v25 = vor.u32 %v13197_v6, %v9885_v7  ;;  %3407 = vmatpush.bf16.msrb.mxu2 %v9632_v44  ;;  %v14396_v6 = vadd.f32 %v3175_v2, %v14388_v43  ;;  %v12970_v44 = vld [vmem:[#allocation2 + $0xf4] sm:$0xf0] }
 0x1ba   :  { %v10365_v9 = vld [vmem:[#allocation2 + $0xbf0] sm:$0xf0]  ;;  %3395 = vmatmul.bf16.vlgmr.msrb.gmra.mxu1 %v14311_v18 }
 0x1bb   :  { %v13381_v10 = vld [vmem:[#allocation2 + $0xdd4] sm:$0xf]  ;;  %v10368_v26 = vor.u32 %v13317_v42, %v10365_v9  ;;  %3420 = vmatpush.bf16.msrb.mxu3 %v9888_v25  ;;  %v8996_v42 = vor.u32 %v12978_v1, %v8995_v0 }
 0x1bc   :  { %v10621_v14 = vld [vmem:[#allocation2 + $0xdf0] sm:$0xf0]  ;;  %3408 = vmatmul.bf16.vlgmr.msrb.gmra.mxu2 %v14315_v20 }
 0x1bd   :  { %v10624_v27 = vor.u32 %v13381_v10, %v10621_v14  ;;  %v13309_v29 = vld [vmem:[#allocation2 + $0xb94] sm:$0xf]  ;;  %3426 = vmatpush.bf16.msra.mxu0 %v10368_v26  ;;  %3452 = vmatpush.bf16.msra.mxu2 %v9092_v28  ;;  %v3188_v14 = vpop.f32.mrf.mxu1 }
 0x1be   :  { %v10333_v30 = vld [vmem:[#allocation2 + $0xbb0] sm:$0xf0]  ;;  %3421 = vmatmul.bf16.vlgmr.msrb.gmra.mxu3 %v14331_v40  ;;  %v3189_v25 = vadd.f32 %v3188_v14, %v628_v5  ;;  %v13130_v14 = vld [vmem:[#allocation2 + $0x5f4] sm:$0xf0] }
 0x1bf   :  { %v13373_v51 = vld [vmem:[#allocation2 + $0xd94] sm:$0xf]  ;;  %v10336_v38 = vor.u32 %v13309_v29, %v10333_v30  ;;  %3439 = vmatpush.bf16.msra.mxu1 %v10624_v27  ;;  %3465 = vmatpush.bf16.msra.mxu3 %v9348_v31  ;;  %v8964_v27 = vor.u32 %v12970_v44, %v8963_v21  ;;  %v13194_v21 = vld [vmem:[#allocation2 + $0x7f4] sm:$0xf0] }
 0x1c0   :  { %v10589_v32 = vld [vmem:[#allocation2 + $0xdb0] sm:$0xf0]  ;;  %v10115_v44 = vld [vmem:[#allocation2 + $0x9d8] sm:$0xf] }
 0x1c1   :  { %v10592_v39 = vor.u32 %v13373_v51, %v10589_v32  ;;  %v13301_v46 = vld [vmem:[#allocation2 + $0xb54] sm:$0xf]  ;;  %3427 = vmatpush.bf16.msra.mxu0 %v10336_v38  ;;  %3453 = vmatpush.bf16.msra.mxu2 %v9060_v45  ;;  %v9220_v51 = vor.u32 %v13034_v24, %v9219_v23  ;;  %v8931_v32 = vld [vmem:[#allocation2 + $0x98] sm:$0xf]  ;;  %v3177_v45 = vpop.f32.mrf.mxu0 }
 0x1c2   :  { %v10301_v47 = vld [vmem:[#allocation2 + $0xb70] sm:$0xf0]  ;;  %v13026_v38 = vld [vmem:[#allocation2 + $0x2b4] sm:$0xf0] }
 0x1c3   :  { %v13365_v48 = vld [vmem:[#allocation2 + $0xd54] sm:$0xf]  ;;  %v10304_v56 = vor.u32 %v13301_v46, %v10301_v47  ;;  %3440 = vmatpush.bf16.msra.mxu1 %v10592_v39  ;;  %3466 = vmatpush.bf16.msra.mxu3 %v9316_v49  ;;  %v3202_v39 = vadd.f32 %v3201_v33, %v3189_v25  ;;  %v9188_v55 = vor.u32 %v13026_v38, %v9187_v35  ;;  %v13258_v23 = vld [vmem:[#allocation2 + $0x9f4] sm:$0xf0] }
 0x1c4   :  { %v10557_v50 = vld [vmem:[#allocation2 + $0xd70] sm:$0xf0]  ;;  %v13186_v33 = vld [vmem:[#allocation2 + $0x7b4] sm:$0xf0] }
 0x1c5   :  { %v10560_v57 = vor.u32 %v13365_v48, %v10557_v50  ;;  %v13293_v59 = vld [vmem:[#allocation2 + $0xb14] sm:$0xf]  ;;  %3428 = vmatpush.bf16.msra.mxu0 %v10304_v56  ;;  %3454 = vmatpush.bf16.msra.mxu2 %v9028_v58  ;;  %v8932_v48 = vor.u32 %v12962_v15, %v8931_v32  ;;  %v14398_v53 = vadd.f32 %v3214_v34, %v3202_v39  ;;  %v3190_v54 = vpop.f32.mrf.mxu1  ;;  %v12954_v58 = vld [vmem:[#allocation2 + $0x74] sm:$0xf0] }
 0x1c6   :  { %v10269_v60 = vld [vmem:[#allocation2 + $0xb30] sm:$0xf0]  ;;  %v9827_v32 = vld [vmem:[#allocation2 + $0x798] sm:$0xf] }
 0x1c7   :  { %v13357_v61 = vld [vmem:[#allocation2 + $0xd14] sm:$0xf]  ;;  %v10272_v7 = vor.u32 %v13293_v59, %v10269_v60  ;;  %3441 = vmatpush.bf16.msra.mxu1 %v10560_v57  ;;  %3467 = vmatpush.bf16.msra.mxu3 %v9284_v62  ;;  %v8899_v57 = vld [vmem:[#allocation2 + $0x58] sm:$0xf] }
 0x1c8   :  { %v10525_v63 = vld [vmem:[#allocation2 + $0xd30] sm:$0xf0]  ;;  %v9155_v59 = vld [vmem:[#allocation2 + $0x258] sm:$0xf]  ;;  %v8900_v1 = vor.u32 %v12954_v58, %v8899_v57 }
 0x1c9   :  { %v10528_v8 = vor.u32 %v13357_v61, %v10525_v63  ;;  %v13285_v9 = vld [vmem:[#allocation2 + $0xad4] sm:$0xf]  ;;  %3429 = vmatpush.bf16.msra.mxu0 %v10272_v7  ;;  %3455 = vmatpush.bf16.msra.mxu2 %v8996_v42  ;;  %v13018_v60 = vld [vmem:[#allocation2 + $0x274] sm:$0xf0] }
 0x1ca   :  { %v10237_v10 = vld [vmem:[#allocation2 + $0xaf0] sm:$0xf0]  ;;  %v9156_v5 = vor.u32 %v13018_v60, %v9155_v59  ;;  %v12946_v7 = vld [vmem:[#allocation2 + $0x34] sm:$0xf0] }
 0x1cb   :  { %v13349_v12 = vld [vmem:[#allocation2 + $0xcd4] sm:$0xf]  ;;  %v10240_v43 = vor.u32 %v13285_v9, %v10237_v10  ;;  %3442 = vmatpush.bf16.msra.mxu1 %v10528_v8  ;;  %3468 = vmatpush.bf16.msra.mxu3 %v9252_v16  ;;  %v9123_v8 = vld [vmem:[#allocation2 + $0x218] sm:$0xf]  ;;  %v3203_v9 = vpop.f32.mrf.mxu2  ;;  %v3216_v10 = vpop.f32.mrf.mxu3  ;;  %v8868_v25 = vor.u32 %v12946_v7, %v8867_v4 }
 0x1cc   :  { %v10493_v17 = vld [vmem:[#allocation2 + $0xcf0] sm:$0xf0]  ;;  %v13010_v42 = vld [vmem:[#allocation2 + $0x234] sm:$0xf0] }
 0x1cd   :  { %v10496_v26 = vor.u32 %v13349_v12, %v10493_v17  ;;  %v13277_v28 = vld [vmem:[#allocation2 + $0xa94] sm:$0xf]  ;;  %3430 = vmatpush.bf16.msra.mxu0 %v10240_v43  ;;  %3456 = vmatpush.bf16.msra.mxu2 %v8964_v27  ;;  %v9603_v12 = vld [vmem:[#allocation2 + $0x5d8] sm:$0xf]  ;;  %v9124_v27 = vor.u32 %v13010_v42, %v9123_v8  ;;  %v3227_v42 = vpop.f32.mrf.mxu0 }
 0x1ce   :  { %v10205_v29 = vld [vmem:[#allocation2 + $0xab0] sm:$0xf0]  ;;  %v9859_v16 = vld [vmem:[#allocation2 + $0x7d8] sm:$0xf] }
 0x1cf   :  { %v13341_v30 = vld [vmem:[#allocation2 + $0xc94] sm:$0xf]  ;;  %v10208_v46 = vor.u32 %v13277_v28, %v10205_v29  ;;  %3443 = vmatpush.bf16.msra.mxu1 %v10496_v26  ;;  %3469 = vmatpush.bf16.msra.mxu3 %v9220_v51  ;;  %v10371_v43 = vld [vmem:[#allocation2 + $0xbd8] sm:$0xf]  ;;  %v9604_v28 = vor.u32 %v13130_v14, %v9603_v12  ;;  %v9860_v29 = vor.u32 %v13194_v21, %v9859_v16  ;;  %v3240_v14 = vpop.f32.mrf.mxu1 }
 0x1d0   :  { %v10461_v31 = vld [vmem:[#allocation2 + $0xcb0] sm:$0xf0]  ;;  %v13322_v26 = vld [vmem:[#allocation2 + $0xbf4] sm:$0xf0]  ;;  %v3228_v12 = vadd.f32 %v3227_v42, %v14398_v53 }
 0x1d1   :  { %v10464_v47 = vor.u32 %v13341_v30, %v10461_v31  ;;  %v13269_v49 = vld [vmem:[#allocation2 + $0xa54] sm:$0xf]  ;;  %3431 = vmatpush.bf16.msra.mxu0 %v10208_v46  ;;  %3457 = vmatpush.bf16.msra.mxu2 %v8932_v48  ;;  %v10116_v30 = vor.u32 %v13258_v23, %v10115_v44  ;;  %v9571_v51 = vld [vmem:[#allocation2 + $0x598] sm:$0xf]  ;;  %v10372_v15 = vor.u32 %v13322_v26, %v10371_v43 }
 0x1d2   :  { %v10173_v50 = vld [vmem:[#allocation2 + $0xa70] sm:$0xf0]  ;;  %v13122_v31 = vld [vmem:[#allocation2 + $0x5b4] sm:$0xf0]  ;;  %v9828_v46 = vor.u32 %v13186_v33, %v9827_v32  ;;  %v3241_v43 = vadd.f32 %v3240_v14, %v3228_v12 }
 0x1d3   :  { %v13333_v52 = vld [vmem:[#allocation2 + $0xc54] sm:$0xf]  ;;  %v10176_v61 = vor.u32 %v13269_v49, %v10173_v50  ;;  %3444 = vmatpush.bf16.msra.mxu1 %v10464_v47  ;;  %3470 = vmatpush.bf16.msra.mxu3 %v9188_v55  ;;  %v10083_v34 = vld [vmem:[#allocation2 + $0x998] sm:$0xf]  ;;  %v9572_v45 = vor.u32 %v13122_v31, %v9571_v51  ;;  %v3253_v51 = vpop.f32.mrf.mxu2 }
 0x1d4   :  { %v10429_v56 = vld [vmem:[#allocation2 + $0xc70] sm:$0xf0]  ;;  %v13250_v35 = vld [vmem:[#allocation2 + $0x9b4] sm:$0xf0]  ;;  %v3254_v33 = vadd.f32 %v3253_v51, %v3241_v43  ;;  %v9349_v43 = vld [vmem:[#allocation2 + $0x3f8] sm:$0xf0] }
 0x1d5   :  { %v13261_v62 = vld [vmem:[#allocation2 + $0xa14] sm:$0xf]  ;;  %v10432_v0 = vor.u32 %v13333_v52, %v10429_v56  ;;  %3432 = vmatpush.bf16.msra.mxu0 %v10176_v61  ;;  %3458 = vmatpush.bf16.msra.mxu2 %v8900_v1  ;;  %v10339_v38 = vld [vmem:[#allocation2 + $0xb98] sm:$0xf]  ;;  %v10084_v47 = vor.u32 %v13250_v35, %v10083_v34  ;;  %v3266_v34 = vpop.f32.mrf.mxu3 }
 0x1d6   :  { %v10141_v63 = vld [vmem:[#allocation2 + $0xa30] sm:$0xf0]  ;;  %v13314_v39 = vld [vmem:[#allocation2 + $0xbb4] sm:$0xf0] }
 0x1d7   :  { %v13325_v2 = vld [vmem:[#allocation2 + $0xc14] sm:$0xf]  ;;  %v10144_v17 = vor.u32 %v13261_v62, %v10141_v63  ;;  %3445 = vmatpush.bf16.msra.mxu1 %v10432_v0  ;;  %3471 = vmatpush.bf16.msra.mxu3 %v9156_v5  ;;  %v9539_v48 = vld [vmem:[#allocation2 + $0x558] sm:$0xf]  ;;  %v10340_v52 = vor.u32 %v13314_v39, %v10339_v38 }
 0x1d8   :  { %v10397_v3 = vld [vmem:[#allocation2 + $0xc30] sm:$0xf0]  ;;  %v13114_v49 = vld [vmem:[#allocation2 + $0x574] sm:$0xf0] }
 0x1d9   :  { %v10400_v24 = vor.u32 %v13325_v2, %v10397_v3  ;;  %3433 = vmatpush.bf16.msra.mxu0 %v10144_v17  ;;  %3459 = vmatpush.bf16.msra.mxu2 %v8868_v25  ;;  %v9795_v50 = vld [vmem:[#allocation2 + $0x758] sm:$0xf]  ;;  %v9540_v59 = vor.u32 %v13114_v49, %v9539_v48  ;;  %v3229_v49 = vpop.f32.mrf.mxu0 }
 0x1da   :  { %v13178_v54 = vld [vmem:[#allocation2 + $0x774] sm:$0xf0] }
 0x1db   :  { %3446 = vmatpush.bf16.msra.mxu1 %v10400_v24  ;;  %3472 = vmatpush.bf16.msra.mxu3 %v9124_v27  ;;  %v10051_v55 = vld [vmem:[#allocation2 + $0x958] sm:$0xf]  ;;  %v9796_v60 = vor.u32 %v13178_v54, %v9795_v50  ;;  %v3255_v42 = vpop.f32.mrf.mxu2 }
 0x1dc   :  { %3434 = vmatmul.bf16.vlgmr.msra.gmra.mxu0 %v14333_v41  ;;  %v13242_v56 = vld [vmem:[#allocation2 + $0x974] sm:$0xf0]  ;;  %3460 = vmatmul.bf16.vlgmr.msra.gmra.mxu2 %v14313_v19  ;;  %v9253_v42 = vld [vmem:[#allocation2 + $0x338] sm:$0xf0] }
 0x1dd   :  { %3478 = vmatpush.bf16.msrb.mxu0 %v9604_v28  ;;  %3504 = vmatpush.bf16.msrb.mxu2 %v10116_v30  ;;  %v10307_v57 = vld [vmem:[#allocation2 + $0xb58] sm:$0xf]  ;;  %v10052_v61 = vor.u32 %v13242_v56, %v10051_v55 }
 0x1de   :  { %3447 = vmatmul.bf16.vlgmr.msra.gmra.mxu1 %v14329_v37  ;;  %v13306_v58 = vld [vmem:[#allocation2 + $0xb74] sm:$0xf0]  ;;  %3473 = vmatmul.bf16.vlgmr.msra.gmra.mxu3 %v14317_v22 }
 0x1df   :  { %3491 = vmatpush.bf16.msrb.mxu1 %v9860_v29  ;;  %3517 = vmatpush.bf16.msrb.mxu3 %v10372_v15  ;;  %v9507_v62 = vld [vmem:[#allocation2 + $0x518] sm:$0xf]  ;;  %v10308_v1 = vor.u32 %v13306_v58, %v10307_v57  ;;  %v3242_v57 = vpop.f32.mrf.mxu1 }
 0x1e0   :  { %v13106_v63 = vld [vmem:[#allocation2 + $0x534] sm:$0xf0]  ;;  %v9029_v57 = vld [vmem:[#allocation2 + $0x178] sm:$0xf0] }
 0x1e1   :  { %3479 = vmatpush.bf16.msrb.mxu0 %v9572_v45  ;;  %3505 = vmatpush.bf16.msrb.mxu2 %v10084_v47  ;;  %v9763_v0 = vld [vmem:[#allocation2 + $0x718] sm:$0xf]  ;;  %v9508_v8 = vor.u32 %v13106_v63, %v9507_v62  ;;  %v14405_v47 = vadd.f32 %v3266_v34, %v3254_v33  ;;  %v12990_v33 = vld [vmem:[#allocation2 + $0x19c] sm:$0xf] }
 0x1e2   :  { %v13170_v2 = vld [vmem:[#allocation2 + $0x734] sm:$0xf0] }
 0x1e3   :  { %3492 = vmatpush.bf16.msrb.mxu1 %v9828_v46  ;;  %3518 = vmatpush.bf16.msrb.mxu3 %v10340_v52  ;;  %v10019_v3 = vld [vmem:[#allocation2 + $0x918] sm:$0xf]  ;;  %v9764_v9 = vor.u32 %v13170_v2, %v9763_v0 }
 0x1e4   :  { %v13234_v4 = vld [vmem:[#allocation2 + $0x934] sm:$0xf0] }
 0x1e5   :  { %v10275_v5 = vld [vmem:[#allocation2 + $0xb18] sm:$0xf]  ;;  %3480 = vmatpush.bf16.msrb.mxu0 %v9540_v59  ;;  %3506 = vmatpush.bf16.msrb.mxu2 %v10052_v61  ;;  %v10020_v10 = vor.u32 %v13234_v4, %v10019_v3 }
 0x1e6   :  { %v13298_v7 = vld [vmem:[#allocation2 + $0xb34] sm:$0xf0] }
 0x1e7   :  { %3493 = vmatpush.bf16.msrb.mxu1 %v9796_v60  ;;  %v9475_v16 = vld [vmem:[#allocation2 + $0x4d8] sm:$0xf]  ;;  %3519 = vmatpush.bf16.msrb.mxu3 %v10308_v1  ;;  %v10276_v44 = vor.u32 %v13298_v7, %v10275_v5 }
 0x1e8   :  { %v13098_v17 = vld [vmem:[#allocation2 + $0x4f4] sm:$0xf0] }
 0x1e9   :  { %v9731_v21 = vld [vmem:[#allocation2 + $0x6d8] sm:$0xf]  ;;  %3481 = vmatpush.bf16.msrb.mxu0 %v9508_v8  ;;  %v9476_v28 = vor.u32 %v13098_v17, %v9475_v16  ;;  %3507 = vmatpush.bf16.msrb.mxu2 %v10020_v10  ;;  %v3268_v16 = vpop.f32.mrf.mxu3 }
 0x1ea   :  { %v13162_v23 = vld [vmem:[#allocation2 + $0x6f4] sm:$0xf0]  ;;  %v3292_v16 = vpop.f32.mrf.mxu1 }
 0x1eb   :  { %v9987_v24 = vld [vmem:[#allocation2 + $0x8d8] sm:$0xf]  ;;  %3494 = vmatpush.bf16.msrb.mxu1 %v9764_v9  ;;  %v9732_v29 = vor.u32 %v13162_v23, %v9731_v21  ;;  %3520 = vmatpush.bf16.msrb.mxu3 %v10276_v44  ;;  %v12998_v44 = vld [vmem:[#allocation2 + $0x1dc] sm:$0xf] }
 0x1ec   :  { %v13226_v25 = vld [vmem:[#allocation2 + $0x8f4] sm:$0xf0] }
 0x1ed   :  { %v10243_v26 = vld [vmem:[#allocation2 + $0xad8] sm:$0xf]  ;;  %v9988_v30 = vor.u32 %v13226_v25, %v9987_v24  ;;  %3482 = vmatpush.bf16.msrb.mxu0 %v9476_v28  ;;  %v9093_v24 = vld [vmem:[#allocation2 + $0x1f8] sm:$0xf0] }
 0x1ee   :  { %v13290_v27 = vld [vmem:[#allocation2 + $0xaf4] sm:$0xf0]  ;;  %v13062_v25 = vld [vmem:[#allocation2 + $0x3dc] sm:$0xf] }
 0x1ef   :  { %v9443_v53 = vld [vmem:[#allocation2 + $0x498] sm:$0xf]  ;;  %v10244_v15 = vor.u32 %v13290_v27, %v10243_v26  ;;  %3495 = vmatpush.bf16.msrb.mxu1 %v9732_v29  ;;  %3508 = vmatpush.bf16.msrb.mxu2 %v9988_v30  ;;  %v13126_v28 = vld [vmem:[#allocation2 + $0x5dc] sm:$0xf] }
 0x1f0   :  { %v13090_v31 = vld [vmem:[#allocation2 + $0x4b4] sm:$0xf0]  ;;  %v9605_v29 = vld [vmem:[#allocation2 + $0x5f8] sm:$0xf0] }
 0x1f1   :  { %v9699_v32 = vld [vmem:[#allocation2 + $0x698] sm:$0xf]  ;;  %v9444_v48 = vor.u32 %v13090_v31, %v9443_v53  ;;  %3521 = vmatpush.bf16.msrb.mxu3 %v10244_v15  ;;  %v9096_v53 = vor.u32 %v12998_v44, %v9093_v24  ;;  %v9352_v31 = vor.u32 %v13062_v25, %v9349_v43  ;;  %v9608_v34 = vor.u32 %v13126_v28, %v9605_v29  ;;  %v12966_v24 = vld [vmem:[#allocation2 + $0xdc] sm:$0xf] }
 0x1f2   :  { %v13154_v35 = vld [vmem:[#allocation2 + $0x6b4] sm:$0xf0]  ;;  %v9221_v28 = vld [vmem:[#allocation2 + $0x2f8] sm:$0xf0] }
 0x1f3   :  { %v9955_v38 = vld [vmem:[#allocation2 + $0x898] sm:$0xf]  ;;  %v9700_v50 = vor.u32 %v13154_v35, %v9699_v32  ;;  %3483 = vmatpush.bf16.msrb.mxu0 %v9444_v48  ;;  %v9061_v35 = vld [vmem:[#allocation2 + $0x1b8] sm:$0xf0] }
 0x1f4   :  { %v13218_v39 = vld [vmem:[#allocation2 + $0x8b4] sm:$0xf0]  ;;  %v9064_v49 = vor.u32 %v12990_v33, %v9061_v35  ;;  %v13094_v29 = vld [vmem:[#allocation2 + $0x4dc] sm:$0xf]  ;;  %v3305_v35 = vpop.f32.mrf.mxu2 }
 0x1f5   :  { %v10211_v45 = vld [vmem:[#allocation2 + $0xa98] sm:$0xf]  ;;  %v9956_v52 = vor.u32 %v13218_v39, %v9955_v38  ;;  %3496 = vmatpush.bf16.msrb.mxu1 %v9700_v50  ;;  %v13054_v38 = vld [vmem:[#allocation2 + $0x39c] sm:$0xf] }
 0x1f6   :  { %v13282_v46 = vld [vmem:[#allocation2 + $0xab4] sm:$0xf0]  ;;  %v9317_v39 = vld [vmem:[#allocation2 + $0x3b8] sm:$0xf0] }
 0x1f7   :  { %v9411_v54 = vld [vmem:[#allocation2 + $0x458] sm:$0xf]  ;;  %v10212_v58 = vor.u32 %v13282_v46, %v10211_v45  ;;  %3509 = vmatpush.bf16.msrb.mxu2 %v9956_v52  ;;  %v13118_v45 = vld [vmem:[#allocation2 + $0x59c] sm:$0xf]  ;;  %v9320_v50 = vor.u32 %v13054_v38, %v9317_v39 }
 0x1f8   :  { %v13082_v55 = vld [vmem:[#allocation2 + $0x474] sm:$0xf0]  ;;  %v9573_v46 = vld [vmem:[#allocation2 + $0x5b8] sm:$0xf0] }
 0x1f9   :  { %v9667_v56 = vld [vmem:[#allocation2 + $0x658] sm:$0xf]  ;;  %v9412_v0 = vor.u32 %v13082_v55, %v9411_v54  ;;  %3522 = vmatpush.bf16.msrb.mxu3 %v10212_v58  ;;  %v12982_v55 = vld [vmem:[#allocation2 + $0x15c] sm:$0xf] }
 0x1fa   :  { %v13146_v59 = vld [vmem:[#allocation2 + $0x674] sm:$0xf0]  ;;  %v13046_v58 = vld [vmem:[#allocation2 + $0x35c] sm:$0xf] }
 0x1fb   :  { %v9923_v60 = vld [vmem:[#allocation2 + $0x858] sm:$0xf]  ;;  %v9668_v3 = vor.u32 %v13146_v59, %v9667_v56  ;;  %3484 = vmatpush.bf16.msrb.mxu0 %v9412_v0  ;;  %v9576_v56 = vor.u32 %v13118_v45, %v9573_v46  ;;  %v9285_v59 = vld [vmem:[#allocation2 + $0x378] sm:$0xf0]  ;;  %v9032_v0 = vor.u32 %v12982_v55, %v9029_v57 }
 0x1fc   :  { %v13210_v61 = vld [vmem:[#allocation2 + $0x874] sm:$0xf0]  ;;  %v8933_v39 = vld [vmem:[#allocation2 + $0xb8] sm:$0xf0] }
 0x1fd   :  { %v10179_v62 = vld [vmem:[#allocation2 + $0xa58] sm:$0xf]  ;;  %v9924_v4 = vor.u32 %v13210_v61, %v9923_v60  ;;  %3497 = vmatpush.bf16.msrb.mxu1 %v9668_v3  ;;  %v13110_v60 = vld [vmem:[#allocation2 + $0x55c] sm:$0xf] }
 0x1fe   :  { %v13274_v63 = vld [vmem:[#allocation2 + $0xa74] sm:$0xf0]  ;;  %v9541_v61 = vld [vmem:[#allocation2 + $0x578] sm:$0xf0] }
 0x1ff   :  { %v9379_v1 = vld [vmem:[#allocation2 + $0x418] sm:$0xf]  ;;  %v10180_v9 = vor.u32 %v13274_v63, %v10179_v62  ;;  %3510 = vmatpush.bf16.msrb.mxu2 %v9924_v4  ;;  %v12974_v3 = vld [vmem:[#allocation2 + $0x11c] sm:$0xf]  ;;  %v629_v4 = vperm.slane %v14351_v13, 4 }
 0x200   :  { %v13074_v2 = vld [vmem:[#allocation2 + $0x434] sm:$0xf0]  ;;  %v13022_v45 = vld [vmem:[#allocation2 + $0x29c] sm:$0xf] }
 0x201   :  { %v9635_v5 = vld [vmem:[#allocation2 + $0x618] sm:$0xf]  ;;  %v9380_v23 = vor.u32 %v13074_v2, %v9379_v1  ;;  %3523 = vmatpush.bf16.msrb.mxu3 %v10180_v9  ;;  %v9288_v1 = vor.u32 %v13046_v58, %v9285_v59  ;;  %v13102_v9 = vld [vmem:[#allocation2 + $0x51c] sm:$0xf] }
 0x202   :  { %v13138_v7 = vld [vmem:[#allocation2 + $0x634] sm:$0xf0]  ;;  %v9189_v46 = vld [vmem:[#allocation2 + $0x2b8] sm:$0xf0] }
 0x203   :  { %v9891_v8 = vld [vmem:[#allocation2 + $0x818] sm:$0xf]  ;;  %v9636_v26 = vor.u32 %v13138_v7, %v9635_v5  ;;  %3485 = vmatpush.bf16.msrb.mxu0 %v9380_v23  ;;  %v9544_v5 = vor.u32 %v13110_v60, %v9541_v61  ;;  %v8997_v7 = vld [vmem:[#allocation2 + $0x138] sm:$0xf0]  ;;  %v9192_v59 = vor.u32 %v13022_v45, %v9189_v46 }
 0x204   :  { %v13202_v10 = vld [vmem:[#allocation2 + $0x834] sm:$0xf0]  ;;  %v13246_v45 = vld [vmem:[#allocation2 + $0x99c] sm:$0xf] }
 0x205   :  { %v10147_v12 = vld [vmem:[#allocation2 + $0xa18] sm:$0xf]  ;;  %v9892_v27 = vor.u32 %v13202_v10, %v9891_v8  ;;  %3498 = vmatpush.bf16.msrb.mxu1 %v9636_v26  ;;  %v13038_v8 = vld [vmem:[#allocation2 + $0x31c] sm:$0xf] }
 0x206   :  { %v13266_v14 = vld [vmem:[#allocation2 + $0xa34] sm:$0xf0]  ;;  %3486 = vmatmul.bf16.vlgmr.msrb.gmra.mxu0 %v14311_v18  ;;  %v9509_v10 = vld [vmem:[#allocation2 + $0x538] sm:$0xf0] }
 0x207   :  { %v10627_v17 = vld [vmem:[#allocation2 + $0xdd8] sm:$0xf]  ;;  %v10148_v30 = vor.u32 %v13266_v14, %v10147_v12  ;;  %3511 = vmatpush.bf16.msrb.mxu2 %v9892_v27  ;;  %v3279_v14 = vpop.f32.mrf.mxu0  ;;  %v9512_v43 = vor.u32 %v13102_v9, %v9509_v10  ;;  %v8965_v26 = vld [vmem:[#allocation2 + $0xf8] sm:$0xf0] }
 0x208   :  { %v13386_v21 = vld [vmem:[#allocation2 + $0xdf4] sm:$0xf0]  ;;  %3499 = vmatmul.bf16.vlgmr.msrb.gmra.mxu1 %v14315_v20  ;;  %v3280_v25 = vadd.f32 %v3279_v14, %v629_v4  ;;  %v13030_v27 = vld [vmem:[#allocation2 + $0x2dc] sm:$0xf] }
 0x209   :  { %v10628_v51 = vor.u32 %v13386_v21, %v10627_v17  ;;  %v10595_v32 = vld [vmem:[#allocation2 + $0xd98] sm:$0xf]  ;;  %3524 = vmatpush.bf16.msrb.mxu3 %v10148_v30  ;;  %3543 = vmatpush.bf16.msra.mxu1 %v9096_v53  ;;  %v9000_v17 = vor.u32 %v12974_v3, %v8997_v7  ;;  %v9256_v21 = vor.u32 %v13038_v8, %v9253_v42  ;;  %v9477_v30 = vld [vmem:[#allocation2 + $0x4f8] sm:$0xf0] }
 0x20a   :  { %v13378_v15 = vld [vmem:[#allocation2 + $0xdb4] sm:$0xf0]  ;;  %3512 = vmatmul.bf16.vlgmr.msrb.gmra.mxu2 %v14331_v40  ;;  %v9480_v38 = vor.u32 %v13094_v29, %v9477_v30  ;;  %v13078_v3 = vld [vmem:[#allocation2 + $0x45c] sm:$0xf] }
 0x20b   :  { %3530 = vmatpush.bf16.msra.mxu0 %v10628_v51  ;;  %v10596_v48 = vor.u32 %v13378_v15, %v10595_v32  ;;  %3556 = vmatpush.bf16.msra.mxu2 %v9352_v31  ;;  %v10563_v52 = vld [vmem:[#allocation2 + $0xd58] sm:$0xf]  ;;  %v3293_v51 = vadd.f32 %v3292_v16, %v3280_v25  ;;  %v8968_v31 = vor.u32 %v12966_v24, %v8965_v26  ;;  %v9413_v4 = vld [vmem:[#allocation2 + $0x478] sm:$0xf0]  ;;  %v3307_v16 = vpop.f32.mrf.mxu2 }
 0x20c   :  { %v13370_v54 = vld [vmem:[#allocation2 + $0xd74] sm:$0xf0]  ;;  %3525 = vmatmul.bf16.vlgmr.msrb.gmra.mxu3 %v14333_v41  ;;  %v9224_v32 = vor.u32 %v13030_v27, %v9221_v28  ;;  %v12942_v10 = vld [vmem:[#allocation2 + $0x1c] sm:$0xf] }
 0x20d   :  { %3569 = vmatpush.bf16.msra.mxu3 %v9608_v34  ;;  %v10564_v62 = vor.u32 %v13370_v54, %v10563_v52  ;;  %v10531_v63 = vld [vmem:[#allocation2 + $0xd18] sm:$0xf]  ;;  %3544 = vmatpush.bf16.msra.mxu1 %v9064_v49  ;;  %v12958_v34 = vld [vmem:[#allocation2 + $0x9c] sm:$0xf]  ;;  %v3318_v52 = vpop.f32.mrf.mxu3 }
 0x20e   :  { %v13362_v2 = vld [vmem:[#allocation2 + $0xd34] sm:$0xf0]  ;;  %v13086_v49 = vld [vmem:[#allocation2 + $0x49c] sm:$0xf]  ;;  %v8936_v58 = vor.u32 %v12958_v34, %v8933_v39 }
 0x20f   :  { %3531 = vmatpush.bf16.msra.mxu0 %v10596_v48  ;;  %3557 = vmatpush.bf16.msra.mxu2 %v9320_v50  ;;  %v10532_v12 = vor.u32 %v13362_v2, %v10531_v63  ;;  %v10499_v44 = vld [vmem:[#allocation2 + $0xcd8] sm:$0xf]  ;;  %v3306_v48 = vadd.f32 %v3305_v35, %v3293_v51  ;;  %v9445_v50 = vld [vmem:[#allocation2 + $0x4b8] sm:$0xf0]  ;;  %v3281_v55 = vpop.f32.mrf.mxu0 }
 0x210   :  { %v13354_v23 = vld [vmem:[#allocation2 + $0xcf4] sm:$0xf0]  ;;  %v9448_v63 = vor.u32 %v13086_v49, %v9445_v50  ;;  %v9157_v2 = vld [vmem:[#allocation2 + $0x278] sm:$0xf0] }
 0x211   :  { %3570 = vmatpush.bf16.msra.mxu3 %v9576_v56  ;;  %3545 = vmatpush.bf16.msra.mxu1 %v9032_v0  ;;  %v10500_v53 = vor.u32 %v13354_v23, %v10499_v44  ;;  %v10467_v15 = vld [vmem:[#allocation2 + $0xc98] sm:$0xf]  ;;  %v3294_v56 = vpop.f32.mrf.mxu1  ;;  %v14412_v57 = vadd.f32 %v3318_v52, %v3306_v48  ;;  %v8901_v0 = vld [vmem:[#allocation2 + $0x78] sm:$0xf0] }
 0x212   :  { %v13346_v33 = vld [vmem:[#allocation2 + $0xcb4] sm:$0xf0]  ;;  %v13006_v14 = vld [vmem:[#allocation2 + $0x21c] sm:$0xf] }
 0x213   :  { %3532 = vmatpush.bf16.msra.mxu0 %v10564_v62  ;;  %3558 = vmatpush.bf16.msra.mxu2 %v9288_v1  ;;  %v10468_v54 = vor.u32 %v13346_v33, %v10467_v15  ;;  %v10435_v60 = vld [vmem:[#allocation2 + $0xc58] sm:$0xf]  ;;  %v12950_v62 = vld [vmem:[#allocation2 + $0x5c] sm:$0xf] }
 0x214   :  { %v13338_v61 = vld [vmem:[#allocation2 + $0xc74] sm:$0xf0]  ;;  %v13014_v1 = vld [vmem:[#allocation2 + $0x25c] sm:$0xf]  ;;  %v8904_v42 = vor.u32 %v12950_v62, %v8901_v0 }
 0x215   :  { %3571 = vmatpush.bf16.msra.mxu3 %v9544_v5  ;;  %3546 = vmatpush.bf16.msra.mxu1 %v9000_v17  ;;  %v10436_v5 = vor.u32 %v13338_v61, %v10435_v60  ;;  %v10403_v7 = vld [vmem:[#allocation2 + $0xc18] sm:$0xf]  ;;  %v9160_v9 = vor.u32 %v13014_v1, %v9157_v2  ;;  %v9416_v17 = vor.u32 %v13078_v3, %v9413_v4  ;;  %v13070_v44 = vld [vmem:[#allocation2 + $0x41c] sm:$0xf]  ;;  %v3320_v26 = vpop.f32.mrf.mxu3 }
 0x216   :  { %v13330_v8 = vld [vmem:[#allocation2 + $0xc34] sm:$0xf0]  ;;  %v9381_v23 = vld [vmem:[#allocation2 + $0x438] sm:$0xf0] }
 0x217   :  { %3533 = vmatpush.bf16.msra.mxu0 %v10532_v12  ;;  %3559 = vmatpush.bf16.msra.mxu2 %v9256_v21  ;;  %v8869_v12 = vld [vmem:[#allocation2 + $0x38] sm:$0xf0]  ;;  %v10404_v27 = vor.u32 %v13330_v8, %v10403_v7  ;;  %v9384_v15 = vor.u32 %v13070_v44, %v9381_v23 }
 0x218   :  { %v9125_v21 = vld [vmem:[#allocation2 + $0x238] sm:$0xf0]  ;;  %v8872_v51 = vor.u32 %v12942_v10, %v8869_v12 }
 0x219   :  { %3572 = vmatpush.bf16.msra.mxu3 %v9512_v43  ;;  %3547 = vmatpush.bf16.msra.mxu1 %v8968_v31  ;;  %v13190_v24 = vld [vmem:[#allocation2 + $0x7dc] sm:$0xf]  ;;  %v3344_v44 = vpop.f32.mrf.mxu1 }
 0x21a   :  { %v9861_v25 = vld [vmem:[#allocation2 + $0x7f8] sm:$0xf0] }
 0x21b   :  { %3534 = vmatpush.bf16.msra.mxu0 %v10500_v53  ;;  %3560 = vmatpush.bf16.msra.mxu2 %v9224_v32  ;;  %v13254_v43 = vld [vmem:[#allocation2 + $0x9dc] sm:$0xf]  ;;  %v9128_v53 = vor.u32 %v13006_v14, %v9125_v21  ;;  %v9864_v33 = vor.u32 %v13190_v24, %v9861_v25  ;;  %v3331_v21 = vpop.f32.mrf.mxu0 }
 0x21c   :  { %v10117_v28 = vld [vmem:[#allocation2 + $0x9f8] sm:$0xf0]  ;;  %v3332_v24 = vadd.f32 %v3331_v21, %v14412_v57 }
 0x21d   :  { %3573 = vmatpush.bf16.msra.mxu3 %v9480_v38  ;;  %3548 = vmatpush.bf16.msra.mxu1 %v8936_v58  ;;  %v13318_v29 = vld [vmem:[#allocation2 + $0xbdc] sm:$0xf]  ;;  %v10120_v34 = vor.u32 %v13254_v43, %v10117_v28 }
 0x21e   :  { %v10373_v30 = vld [vmem:[#allocation2 + $0xbf8] sm:$0xf0] }
 0x21f   :  { %3535 = vmatpush.bf16.msra.mxu0 %v10468_v54  ;;  %3561 = vmatpush.bf16.msra.mxu2 %v9192_v59  ;;  %v13382_v31 = vld [vmem:[#allocation2 + $0xddc] sm:$0xf]  ;;  %v10376_v35 = vor.u32 %v13318_v29, %v10373_v30 }
 0x220   :  { %v10629_v32 = vld [vmem:[#allocation2 + $0xdf8] sm:$0xf0] }
 0x221   :  { %3574 = vmatpush.bf16.msra.mxu3 %v9448_v63  ;;  %3549 = vmatpush.bf16.msra.mxu1 %v8904_v42  ;;  %v13182_v38 = vld [vmem:[#allocation2 + $0x79c] sm:$0xf]  ;;  %v10632_v46 = vor.u32 %v13382_v31, %v10629_v32 }
 0x222   :  { %v9829_v39 = vld [vmem:[#allocation2 + $0x7b8] sm:$0xf0] }
 0x223   :  { %3536 = vmatpush.bf16.msra.mxu0 %v10436_v5  ;;  %3562 = vmatpush.bf16.msra.mxu2 %v9160_v9  ;;  %v10085_v48 = vld [vmem:[#allocation2 + $0x9b8] sm:$0xf0]  ;;  %v9832_v55 = vor.u32 %v13182_v38, %v9829_v39 }
 0x224   :  { %v13310_v49 = vld [vmem:[#allocation2 + $0xb9c] sm:$0xf]  ;;  %v10088_v56 = vor.u32 %v13246_v45, %v10085_v48 }
 0x225   :  { %3575 = vmatpush.bf16.msra.mxu3 %v9416_v17  ;;  %v10341_v50 = vld [vmem:[#allocation2 + $0xbb8] sm:$0xf0]  ;;  %3550 = vmatpush.bf16.msra.mxu1 %v8872_v51  ;;  %v3345_v51 = vadd.f32 %v3344_v44, %v3332_v24 }
 0x226   :  { %v13374_v52 = vld [vmem:[#allocation2 + $0xd9c] sm:$0xf]  ;;  %v10344_v58 = vor.u32 %v13310_v49, %v10341_v50 }
 0x227   :  { %3537 = vmatpush.bf16.msra.mxu0 %v10404_v27  ;;  %3563 = vmatpush.bf16.msra.mxu2 %v9128_v53  ;;  %v10597_v54 = vld [vmem:[#allocation2 + $0xdb8] sm:$0xf0] }
 0x228   :  { %v13174_v59 = vld [vmem:[#allocation2 + $0x75c] sm:$0xf]  ;;  %v10600_v62 = vor.u32 %v13374_v52, %v10597_v54  ;;  %3551 = vmatmul.bf16.vlgmr.msra.gmra.mxu1 %v14313_v19  ;;  %v3370_v54 = vpop.f32.mrf.mxu3 }
 0x229   :  { %3576 = vmatpush.bf16.msra.mxu3 %v9384_v15  ;;  %3595 = vmatpush.bf16.msrb.mxu1 %v10120_v34  ;;  %v9797_v60 = vld [vmem:[#allocation2 + $0x778] sm:$0xf0]  ;;  %v3357_v34 = vpop.f32.mrf.mxu2 }
 0x22a   :  { %v13238_v61 = vld [vmem:[#allocation2 + $0x95c] sm:$0xf]  ;;  %3538 = vmatmul.bf16.vlgmr.msra.gmra.mxu0 %v14329_v37  ;;  %3564 = vmatmul.bf16.vlgmr.msra.gmra.mxu2 %v14317_v22  ;;  %v9800_v4 = vor.u32 %v13174_v59, %v9797_v60  ;;  %v14419_v45 = vadd.f32 %v3357_v34, %v3345_v51 }
 0x22b   :  { %3582 = vmatpush.bf16.msrb.mxu0 %v9864_v33  ;;  %3608 = vmatpush.bf16.msrb.mxu2 %v10376_v35  ;;  %v10053_v63 = vld [vmem:[#allocation2 + $0x978] sm:$0xf0] }
 0x22c   :  { %v13302_v0 = vld [vmem:[#allocation2 + $0xb5c] sm:$0xf]  ;;  %3577 = vmatmul.bf16.vlgmr.msra.gmra.mxu3 %v14311_v18  ;;  %v10056_v5 = vor.u32 %v13238_v61, %v10053_v63 }
 0x22d   :  { %3621 = vmatpush.bf16.msrb.mxu3 %v10632_v46  ;;  %v10309_v1 = vld [vmem:[#allocation2 + $0xb78] sm:$0xf0]  ;;  %3596 = vmatpush.bf16.msrb.mxu1 %v10088_v56  ;;  %v3333_v56 = vpop.f32.mrf.mxu0 }
 0x22e   :  { %v13366_v2 = vld [vmem:[#allocation2 + $0xd5c] sm:$0xf]  ;;  %v10312_v7 = vor.u32 %v13302_v0, %v10309_v1 }
 0x22f   :  { %v10565_v3 = vld [vmem:[#allocation2 + $0xd78] sm:$0xf0]  ;;  %3583 = vmatpush.bf16.msrb.mxu0 %v9832_v55  ;;  %3609 = vmatpush.bf16.msrb.mxu2 %v10344_v58  ;;  %v3346_v58 = vpop.f32.mrf.mxu1 }
 0x230   :  { %v13166_v8 = vld [vmem:[#allocation2 + $0x71c] sm:$0xf]  ;;  %v10568_v10 = vor.u32 %v13366_v2, %v10565_v3 }
 0x231   :  { %v9765_v42 = vld [vmem:[#allocation2 + $0x738] sm:$0xf0]  ;;  %3622 = vmatpush.bf16.msrb.mxu3 %v10600_v62  ;;  %3597 = vmatpush.bf16.msrb.mxu1 %v10056_v5 }
 0x232   :  { %v13230_v9 = vld [vmem:[#allocation2 + $0x91c] sm:$0xf]  ;;  %v9768_v18 = vor.u32 %v13166_v8, %v9765_v42 }
 0x233   :  { %v10021_v12 = vld [vmem:[#allocation2 + $0x938] sm:$0xf0]  ;;  %3584 = vmatpush.bf16.msrb.mxu0 %v9800_v4  ;;  %3610 = vmatpush.bf16.msrb.mxu2 %v10312_v7 }
 0x234   :  { %v13294_v14 = vld [vmem:[#allocation2 + $0xb1c] sm:$0xf]  ;;  %v10024_v19 = vor.u32 %v13230_v9, %v10021_v12 }
 0x235   :  { %v10277_v22 = vld [vmem:[#allocation2 + $0xb38] sm:$0xf0]  ;;  %3623 = vmatpush.bf16.msrb.mxu3 %v10568_v10 }
 0x236   :  { %v13358_v16 = vld [vmem:[#allocation2 + $0xd1c] sm:$0xf]  ;;  %v10280_v23 = vor.u32 %v13294_v14, %v10277_v22  ;;  %3598 = vmatpush.bf16.msrb.mxu1 %v10024_v19  ;;  %v3359_v14 = vpop.f32.mrf.mxu2  ;;  %v3372_v19 = vpop.f32.mrf.mxu3 }
 0x237   :  { %v10533_v17 = vld [vmem:[#allocation2 + $0xd38] sm:$0xf0]  ;;  %3585 = vmatpush.bf16.msrb.mxu0 %v9768_v18 }
 0x238   :  { %v13158_v25 = vld [vmem:[#allocation2 + $0x6dc] sm:$0xf]  ;;  %v10536_v27 = vor.u32 %v13358_v16, %v10533_v17  ;;  %3611 = vmatpush.bf16.msrb.mxu2 %v10280_v23 }
 0x239   :  { %v9733_v43 = vld [vmem:[#allocation2 + $0x6f8] sm:$0xf0] }
 0x23a   :  { %v13222_v26 = vld [vmem:[#allocation2 + $0x8dc] sm:$0xf]  ;;  %v9736_v32 = vor.u32 %v13158_v25, %v9733_v43  ;;  %3624 = vmatpush.bf16.msrb.mxu3 %v10536_v27 }
 0x23b   :  { %v9989_v28 = vld [vmem:[#allocation2 + $0x8f8] sm:$0xf0] }
 0x23c   :  { %v13286_v29 = vld [vmem:[#allocation2 + $0xadc] sm:$0xf]  ;;  %v9992_v15 = vor.u32 %v13222_v26, %v9989_v28  ;;  %3586 = vmatpush.bf16.msrb.mxu0 %v9736_v32  ;;  %v630_v26 = vperm.slane %v14351_v13, 5  ;;  %v3383_v28 = vpop.f32.mrf.mxu0 }
 0x23d   :  { %v10245_v30 = vld [vmem:[#allocation2 + $0xaf8] sm:$0xf0] }
 0x23e   :  { %v13350_v53 = vld [vmem:[#allocation2 + $0xcdc] sm:$0xf]  ;;  %v10248_v33 = vor.u32 %v13286_v29, %v10245_v30  ;;  %3599 = vmatpush.bf16.msrb.mxu1 %v9992_v15  ;;  %v3371_v27 = vadd.f32 %v3370_v54, %v630_v26  ;;  %v3396_v30 = vpop.f32.mrf.mxu1  ;;  %v3646_v26 = vmul.f32 %v14396_v6, %v14396_v6 }
 0x23f   :  { %v10501_v31 = vld [vmem:[#allocation2 + $0xcf8] sm:$0xf0] }
 0x240   :  { %v13150_v35 = vld [vmem:[#allocation2 + $0x69c] sm:$0xf]  ;;  %v10504_v39 = vor.u32 %v13350_v53, %v10501_v31  ;;  %3612 = vmatpush.bf16.msrb.mxu2 %v10248_v33  ;;  %v3384_v29 = vadd.f32 %v3383_v28, %v3371_v27  ;;  %v3409_v53 = vpop.f32.mrf.mxu2 }
 0x241   :  { %v9701_v57 = vld [vmem:[#allocation2 + $0x6b8] sm:$0xf0]  ;;  %v3422_v32 = vpop.f32.mrf.mxu3 }
 0x242   :  { %v13214_v38 = vld [vmem:[#allocation2 + $0x89c] sm:$0xf]  ;;  %v9704_v55 = vor.u32 %v13150_v35, %v9701_v57  ;;  %3625 = vmatpush.bf16.msrb.mxu3 %v10504_v39  ;;  %v3397_v51 = vadd.f32 %v3396_v30, %v3384_v29 }
 0x243   :  { %v9957_v46 = vld [vmem:[#allocation2 + $0x8b8] sm:$0xf0] }
 0x244   :  { %v13278_v48 = vld [vmem:[#allocation2 + $0xa9c] sm:$0xf]  ;;  %v9960_v59 = vor.u32 %v13214_v38, %v9957_v46  ;;  %3587 = vmatpush.bf16.msrb.mxu0 %v9704_v55  ;;  %v3410_v31 = vadd.f32 %v3409_v53, %v3397_v51  ;;  %v3385_v33 = vpop.f32.mrf.mxu0  ;;  %v3647_v53 = vmul.f32 %v14405_v47, %v14405_v47 }
 0x245   :  { %v10213_v49 = vld [vmem:[#allocation2 + $0xab8] sm:$0xf0] }
 0x246   :  { %v13342_v50 = vld [vmem:[#allocation2 + $0xc9c] sm:$0xf]  ;;  %v10216_v60 = vor.u32 %v13278_v48, %v10213_v49  ;;  %3600 = vmatpush.bf16.msrb.mxu1 %v9960_v59  ;;  %v3423_v15 = vadd.f32 %v3422_v32, %v3410_v31  ;;  %v3398_v34 = vpop.f32.mrf.mxu1 }
 0x247   :  { %v10469_v52 = vld [vmem:[#allocation2 + $0xcb8] sm:$0xf0] }
 0x248   :  { %v13142_v61 = vld [vmem:[#allocation2 + $0x65c] sm:$0xf]  ;;  %v10472_v0 = vor.u32 %v13342_v50, %v10469_v52  ;;  %3613 = vmatpush.bf16.msrb.mxu2 %v10216_v60 }
 0x249   :  { %v9669_v62 = vld [vmem:[#allocation2 + $0x678] sm:$0xf0]  ;;  %v3424_v35 = vpop.f32.mrf.mxu3 }
 0x24a   :  { %v13206_v63 = vld [vmem:[#allocation2 + $0x85c] sm:$0xf]  ;;  %v9672_v7 = vor.u32 %v13142_v61, %v9669_v62  ;;  %3626 = vmatpush.bf16.msrb.mxu3 %v10472_v0  ;;  %v3648_v35 = vmul.f32 %v14419_v45, %v14419_v45 }
 0x24b   :  { %v9925_v1 = vld [vmem:[#allocation2 + $0x878] sm:$0xf0] }
 0x24c   :  { %v13270_v2 = vld [vmem:[#allocation2 + $0xa5c] sm:$0xf]  ;;  %v9928_v8 = vor.u32 %v13206_v63, %v9925_v1  ;;  %3588 = vmatpush.bf16.msrb.mxu0 %v9672_v7 }
 0x24d   :  { %v10181_v3 = vld [vmem:[#allocation2 + $0xa78] sm:$0xf0] }
 0x24e   :  { %v13334_v4 = vld [vmem:[#allocation2 + $0xc5c] sm:$0xf]  ;;  %v10184_v42 = vor.u32 %v13270_v2, %v10181_v3  ;;  %3601 = vmatpush.bf16.msrb.mxu1 %v9928_v8 }
 0x24f   :  { %v10437_v5 = vld [vmem:[#allocation2 + $0xc78] sm:$0xf0] }
 0x250   :  { %v13134_v9 = vld [vmem:[#allocation2 + $0x61c] sm:$0xf]  ;;  %v10440_v22 = vor.u32 %v13334_v4, %v10437_v5  ;;  %3614 = vmatpush.bf16.msrb.mxu2 %v10184_v42 }
 0x251   :  { %v9637_v10 = vld [vmem:[#allocation2 + $0x638] sm:$0xf0] }
 0x252   :  { %v13198_v12 = vld [vmem:[#allocation2 + $0x81c] sm:$0xf]  ;;  %v9640_v23 = vor.u32 %v13134_v9, %v9637_v10  ;;  %3627 = vmatpush.bf16.msrb.mxu3 %v10440_v22  ;;  %v632_v9 = vperm.slane %v14351_v13, 7 }
 0x253   :  { %v9893_v16 = vld [vmem:[#allocation2 + $0x838] sm:$0xf0] }
 0x254   :  { %v13262_v17 = vld [vmem:[#allocation2 + $0xa1c] sm:$0xf]  ;;  %v9896_v24 = vor.u32 %v13198_v12, %v9893_v16  ;;  %3589 = vmatpush.bf16.msrb.mxu0 %v9640_v23  ;;  %v3634_v16 = vadd.f32 %v14378_v11, %v14361_v36 }
 0x255   :  { %v10149_v18 = vld [vmem:[#allocation2 + $0xa38] sm:$0xf0] }
 0x256   :  { %v13326_v21 = vld [vmem:[#allocation2 + $0xc1c] sm:$0xf]  ;;  %v10152_v25 = vor.u32 %v13262_v17, %v10149_v18  ;;  %3602 = vmatpush.bf16.msrb.mxu1 %v9896_v24  ;;  %v3635_v19 = vadd.f32 %v3634_v16, %v14396_v6  ;;  %v3645_v24 = vmul.f32 %v14378_v11, %v14378_v11 }
 0x257   :  { %v10405_v44 = vld [vmem:[#allocation2 + $0xc38] sm:$0xf0]  ;;  %3590 = vmatmul.bf16.vlgmr.msrb.gmra.mxu0 %v14315_v20  ;;  %v3411_v20 = vpop.f32.mrf.mxu2 }
 0x258   :  { %v10408_v43 = vor.u32 %v13326_v21, %v10405_v44  ;;  %3615 = vmatpush.bf16.msrb.mxu2 %v10152_v25  ;;  %v3636_v25 = vadd.f32 %v3635_v19, %v14405_v47 }
 0x259   :  { %3603 = vmatmul.bf16.vlgmr.msrb.gmra.mxu1 %v14331_v40  ;;  %v3435_v57 = vpop.f32.mrf.mxu0 }
 0x25a   :  { %3628 = vmatpush.bf16.msrb.mxu3 %v10408_v43  ;;  %v3436_v38 = vadd.f32 %v3435_v57, %v3423_v15  ;;  %v3644_v43 = vmul.f32 %v14361_v36, %v14361_v36  ;;  %v3637_v27 = vadd.f32 %v3636_v25, %v14419_v45 }
 0x25b   :  { %3616 = vmatmul.bf16.vlgmr.msrb.gmra.mxu2 %v14333_v41  ;;  %v3448_v40 = vpop.f32.mrf.mxu1 }
 0x25c   :  { %v14426_v39 = vadd.f32 %v3448_v40, %v3436_v38  ;;  %v3652_v51 = vadd.f32 %v3645_v24, %v3644_v43 }
 0x25d   :  { %3629 = vmatmul.bf16.vlgmr.msrb.gmra.mxu3 %v14329_v37  ;;  %v631_v37 = vperm.slane %v14351_v13, 6 }
 0x25e   :  { %v3638_v33 = vadd.f32 %v3637_v27, %v14426_v39  ;;  %v3653_v20 = vadd.f32 %v3652_v51, %v3646_v26 }
 0x25f   :  { %v3461_v41 = vpop.f32.mrf.mxu2 }
 0x260   :  { %v3462_v46 = vadd.f32 %v3461_v41, %v631_v37  ;;  %v3654_v40 = vadd.f32 %v3653_v20, %v3647_v53  ;;  %v3649_v37 = vmul.f32 %v14426_v39, %v14426_v39 }
 0x261   :  { %v3474_v48 = vpop.f32.mrf.mxu3  ;;  %v3437_v49 = vpop.f32.mrf.mxu0 }
 0x262   :  { %v3475_v52 = vadd.f32 %v3474_v48, %v3462_v46  ;;  %v3655_v46 = vadd.f32 %v3654_v40, %v3648_v35 }
 0x263   :  { %v3450_v50 = vpop.f32.mrf.mxu1 }
 0x267   :  { %v3463_v54 = vpop.f32.mrf.mxu2 }
 0x268   :  { %v3656_v54 = vadd.f32 %v3655_v46, %v3649_v37 }
 0x269   :  { %v3476_v55 = vpop.f32.mrf.mxu3 }
 0x283   :  { %v3487_v56 = vpop.f32.mrf.mxu0 }
 0x284   :  { %v3488_v10 = vadd.f32 %v3487_v56, %v3475_v52 }
 0x285   :  { %v3500_v58 = vpop.f32.mrf.mxu1 }
 0x286   :  { %v3501_v14 = vadd.f32 %v3500_v58, %v3488_v10 }
 0x28b   :  { %v3489_v61 = vpop.f32.mrf.mxu0 }
 0x28d   :  { %v3513_v59 = vpop.f32.mrf.mxu2  ;;  %v3502_v62 = vpop.f32.mrf.mxu1 }
 0x28e   :  { %v3514_v17 = vadd.f32 %v3513_v59, %v3501_v14 }
 0x28f   :  { %v3526_v60 = vpop.f32.mrf.mxu3 }
 0x290   :  { %v3527_v13 = vadd.f32 %v3526_v60, %v3514_v17 }
 0x295   :  { %v3515_v63 = vpop.f32.mrf.mxu2 }
 0x297   :  { %v3528_v0 = vpop.f32.mrf.mxu3 }
 0x2a5   :  { %v3552_v2 = vpop.f32.mrf.mxu1 }
 0x2a6   :  { %v3553_v12 = vadd.f32 %v3552_v2, %v632_v9 }
 0x2a7   :  { %v3539_v1 = vpop.f32.mrf.mxu0 }
 0x2a8   :  { %v14441_v28 = vadd.f32 %v3539_v1, %v3527_v13 }
 0x2aa   :  { %v3639_v38 = vadd.f32 %v3638_v33, %v14441_v28  ;;  %v3650_v48 = vmul.f32 %v14441_v28, %v14441_v28 }
 0x2ac   :  { %v3657_v55 = vadd.f32 %v3656_v54, %v3650_v48 }
 0x2ad   :  { %v3565_v3 = vpop.f32.mrf.mxu2  ;;  %v3554_v7 = vpop.f32.mrf.mxu1 }
 0x2ae   :  { %v3566_v22 = vadd.f32 %v3565_v3, %v3553_v12  ;;  %v154_v3 = vld [vmem:[#allocation5 + $0x1] ss:$8 sm:$0xf] }
 0x2af   :  { %v3578_v4 = vpop.f32.mrf.mxu3  ;;  %v3541_v5 = vpop.f32.mrf.mxu0 }
 0x2b0   :  { %v3579_v18 = vadd.f32 %v3578_v4, %v3566_v22  ;;  %v155_v4 = vld [vmem:[#allocation5 + $0x1] ss:$8 sm:$0xf0] }
 0x2b1   :  { %v14462_v7 = vor.u32 %v155_v4, %v154_v3 }
 0x2b3   :  { %v3692_v14 = vperm.slane %v14462_v7, 0  ;;  %v3693_v22 = vperm.slane %v14462_v7, 1  ;;  %v3694_v16 = vperm.slane %v14462_v7, 2  ;;  %v3695_v17 = vperm.slane %v14462_v7, 3 }
 0x2b4   :  { %v3696_v25 = vperm.slane %v14462_v7, 4  ;;  %v3698_v46 = vperm.slane %v14462_v7, 6  ;;  %v3699_v54 = vperm.slane %v14462_v7, 7 }
 0x2b5   :  { %v3567_v8 = vpop.f32.mrf.mxu2 }
 0x2b6   :  { %v158_v8 = vld [vmem:[#allocation5 + $0x2] ss:$8 sm:$0xf] }
 0x2b7   :  { %v3580_v42 = vpop.f32.mrf.mxu3 }
 0x2b8   :  { %v159_v42 = vld [vmem:[#allocation5 + $0x2] ss:$8 sm:$0xf0] }
 0x2b9   :  { %v14464_v12 = vor.u32 %v159_v42, %v158_v8 }
 0x2bb   :  { %v3717_v43 = vperm.slane %v14464_v12, 0  ;;  %v3719_v26 = vperm.slane %v14464_v12, 2  ;;  %v3720_v51 = vperm.slane %v14464_v12, 3  ;;  %v3721_v20 = vperm.slane %v14464_v12, 4 }
 0x2bc   :  { %v3724_v3 = vperm.slane %v14464_v12, 7 }
 0x2d4   :  { %v3591_v21 = vpop.f32.mrf.mxu0 }
 0x2d5   :  { %v3592_v23 = vadd.f32 %v3591_v21, %v3579_v18 }
 0x2d6   :  { %v3604_v44 = vpop.f32.mrf.mxu1 }
 0x2d7   :  { %v3605_v29 = vadd.f32 %v3604_v44, %v3592_v23 }
 0x2dc   :  { %v3593_v15 = vpop.f32.mrf.mxu0 }
 0x2de   :  { %v3617_v30 = vpop.f32.mrf.mxu2  ;;  %v3606_v34 = vpop.f32.mrf.mxu1 }
 0x2df   :  { %v3618_v31 = vadd.f32 %v3617_v30, %v3605_v29  ;;  %v3697_v34 = vperm.slane %v14462_v7, 5 }
 0x2e0   :  { %v3630_v32 = vpop.f32.mrf.mxu3 }
 0x2e1   :  { %v14448_v57 = vadd.f32 %v3630_v32, %v3618_v31 }
 0x2e3   :  { %v3640_v41 = vadd.f32 %v3639_v38, %v14448_v57  ;;  %v3651_v52 = vmul.f32 %v14448_v57, %v14448_v57 }
 0x2e5   :  { %3641 = vadd.xlane.f32.xlu0 %v3640_v41  ;;  %v3658_v56 = vadd.f32 %v3657_v55, %v3651_v52 }
 0x2e6   :  { %v3619_v49 = vpop.f32.mrf.mxu2 }
 0x2e8   :  { %v3632_v50 = vpop.f32.mrf.mxu3 }
 0x2ed   :  { %3659 = vadd.xlane.f32.xlu0 %v3658_v56 }
 0x358   :  { %v3642_v58 = vpop.xlane.xlu0 %3641 }
 0x359   :  { %v14458_v59 = vmul.f32 0.001, %v3642_v58 }
 0x35b   :  { %v3662_v61 = vmul.f32 %v14458_v59, %v14458_v59  ;;  %v3675_v21 = vsub.f32 %v14361_v36, %v14458_v59  ;;  %v3676_v44 = vsub.f32 %v14378_v11, %v14458_v59  ;;  %v3677_v19 = vsub.f32 %v14396_v6, %v14458_v59 }
 0x35c   :  { %v3678_v23 = vsub.f32 %v14405_v47, %v14458_v59  ;;  %v3679_v24 = vsub.f32 %v14419_v45, %v14458_v59  ;;  %v3718_v36 = vperm.slane %v14464_v12, 1  ;;  %v3680_v6 = vsub.f32 %v14426_v39, %v14458_v59 }
 0x35d   :  { %v3681_v15 = vsub.f32 %v14441_v28, %v14458_v59  ;;  %v3682_v37 = vsub.f32 %v14448_v57, %v14458_v59  ;;  %v3722_v57 = vperm.slane %v14464_v12, 5 }
 0x360   :  { %v3660_v60 = vpop.xlane.xlu0 %3659 }
 0x361   :  { %v3661_v62 = vmul.f32 0.001, %v3660_v60 }
 0x363   :  { %v3663_v63 = vsub.f32 %v3661_v62, %v3662_v61  ;;  %v3723_v61 = vperm.slane %v14464_v12, 6 }
 0x365   :  { %v3664_v0 = vadd.f32 1e-05, %v3663_v63 }
 0x367   :  { %13977 = vrsqrt.f32 %v3664_v0  ;;  %vm3671_vm1 = vweird.f32 %v3664_v0 }
 0x36d   :  { %v13978_v1 = vpop.eup %13977 }
 0x36e   :  { %v3666_v2 = vmul.f32 %v13978_v1, %v3664_v0  ;;  %vm3672_vm0 = vweird.f32 %v13978_v1 }
 0x36f   :  { %vm3673_vm2 = vmor %vm3671_vm1, %vm3672_vm0 }
 0x370   :  { %v3667_v5 = vmul.f32 %v13978_v1, %v3666_v2 }
 0x372   :  { %v3668_v9 = vmul.f32 0.5, %v3667_v5 }
 0x374   :  { %v3669_v10 = vsub.f32 1.5, %v3668_v9 }
 0x376   :  { %v3670_v18 = vmul.f32 %v13978_v1, %v3669_v10 }
 0x378   :  { %v3674_v13 = vsel %vm3673_vm2, %v13978_v1, %v3670_v18 }
 0x379   :  { %v3683_v11 = vmul.f32 %v3675_v21, %v3674_v13  ;;  %v3684_v27 = vmul.f32 %v3676_v44, %v3674_v13  ;;  %v3685_v29 = vmul.f32 %v3677_v19, %v3674_v13  ;;  %v3686_v30 = vmul.f32 %v3678_v23, %v3674_v13 }
 0x37a   :  { %v3687_v47 = vmul.f32 %v3679_v24, %v3674_v13  ;;  %v3688_v33 = vmul.f32 %v3680_v6, %v3674_v13  ;;  %v3689_v41 = vmul.f32 %v3681_v15, %v3674_v13  ;;  %v3690_v52 = vmul.f32 %v3682_v37, %v3674_v13 }
 0x37b   :  { %v3708_v45 = vmul.f32 %v3692_v14, %v3683_v11  ;;  %v3709_v53 = vmul.f32 %v3693_v22, %v3684_v27  ;;  %v3710_v31 = vmul.f32 %v3694_v16, %v3685_v29  ;;  %v3711_v32 = vmul.f32 %v3695_v17, %v3686_v30 }
 0x37c   :  { %v3712_v35 = vmul.f32 %v3696_v25, %v3687_v47  ;;  %v3713_v55 = vmul.f32 %v3697_v34, %v3688_v33  ;;  %v3714_v62 = vmul.f32 %v3698_v46, %v3689_v41  ;;  %v3715_v2 = vmul.f32 %v3699_v54, %v3690_v52 }
 0x37d   :  { %v14491_v38 = vadd.f32 %v3717_v43, %v3708_v45  ;;  %v14493_v40 = vadd.f32 %v3718_v36, %v3709_v53  ;;  %v14495_v39 = vadd.f32 %v3719_v26, %v3710_v31  ;;  %v14500_v48 = vadd.f32 %v3720_v51, %v3711_v32 }
 0x37e   :  { %v14510_v56 = vadd.f32 %v3721_v20, %v3712_v35  ;;  %v14520_v4 = vadd.f32 %v3722_v57, %v3713_v55  ;;  %v14525_v42 = vadd.f32 %v3723_v61, %v3714_v62  ;;  %v14528_v14 = vadd.f32 %v3724_v3, %v3715_v2 }
 0x37f   :  { %v3741_v28 = vadd.f32 %v14493_v40, %v14491_v38  ;;  %v3756_v49 = vmul.f32 %v14491_v38, %v14491_v38  ;;  %v3757_v50 = vmul.f32 %v14493_v40, %v14493_v40  ;;  %v3758_v59 = vmul.f32 %v14495_v39, %v14495_v39 }
 0x380   :  { %v3759_v0 = vmul.f32 %v14500_v48, %v14500_v48  ;;  %v3760_v7 = vmul.f32 %v14510_v56, %v14510_v56  ;;  %v3761_v12 = vmul.f32 %v14520_v4, %v14520_v4  ;;  %v3762_v18 = vmul.f32 %v14525_v42, %v14525_v42 }
 0x381   :  { %v3742_v58 = vadd.f32 %v3741_v28, %v14495_v39  ;;  %v3764_v60 = vadd.f32 %v3757_v50, %v3756_v49  ;;  %v3763_v44 = vmul.f32 %v14528_v14, %v14528_v14  ;;  %v14239_v23 = vmov 7999.0  }
 0x382   :  { %13979 = vrcp.f32 %v14239_v23  ;;  %v117_v54 = vlaneseq }
 0x383   :  { %v3743_v63 = vadd.f32 %v3742_v58, %v14500_v48  ;;  %v3765_v1 = vadd.f32 %v3764_v60, %v3758_v59 }
 0x384   :  { %v14545_v58 = vand.u32 127, %v117_v54 }
 0x385   :  { %v3744_v5 = vadd.f32 %v3743_v63, %v14510_v56  ;;  %v3766_v8 = vadd.f32 %v3765_v1, %v3759_v0 }
 0x386   :  { %vm8797_vm5 = vcmp.eq.s32.totalorder %v14545_v58, 0  ;;  %vm8799_vm6 = vcmp.eq.s32.totalorder %v14545_v58, 1  ;;  %vm8802_vm13 = vcmp.eq.s32.totalorder %v14545_v58, 2  ;;  %vm8805_vm14 = vcmp.eq.s32.totalorder %v14545_v58, 3 }
 0x387   :  { %v3745_v9 = vadd.f32 %v3744_v5, %v14520_v4  ;;  %v3767_v10 = vadd.f32 %v3766_v8, %v3760_v7 }
 0x388   :  { %v13980_v25 = vpop.eup %13979 }
 0x389   :  { %v3746_v22 = vadd.f32 %v3745_v9, %v14525_v42  ;;  %v3768_v17 = vadd.f32 %v3767_v10, %v3761_v12  ;;  %v3784_v36 = vmul.f32 7999.0, %v13980_v25  ;;  %vm3788_vm3 = vweird.f32 %v13980_v25 }
 0x38b   :  { %v3747_v16 = vadd.f32 %v3746_v22, %v14528_v14  ;;  %v3769_v21 = vadd.f32 %v3768_v17, %v3762_v18  ;;  %v3785_v27 = vsub.f32 1.0, %v3784_v36 }
 0x38d   :  { %3748 = vadd.xlane.f32.xlu1 %v3747_v16  ;;  %v3770_v19 = vadd.f32 %v3769_v21, %v3763_v44  ;;  %v3786_v45 = vmul.f32 %v13980_v25, %v3785_v27 }
 0x38f   :  { %v3787_v33 = vadd.f32 %v13980_v25, %v3786_v45 }
 0x391   :  { %v14542_v37 = vsel %vm3788_vm3, %v13980_v25, %v3787_v33 }
 0x395   :  { %3771 = vadd.xlane.f32.xlu1 %v3770_v19 }
 0x400   :  { %v3749_v24 = vpop.xlane.xlu1 %3748 }
 0x401   :  { %v3750_v13 = vrot.slane %v3749_v24, 4 }
 0x403   :  { %v3751_v43 = vadd.f32 %v3750_v13, %v3749_v24 }
 0x405   :  { %v3752_v26 = vrot.slane %v3751_v43, 2 }
 0x407   :  { %v3753_v11 = vadd.f32 %v3752_v26, %v3751_v43 }
 0x408   :  { %v3772_v29 = vpop.xlane.xlu1 %3771 }
 0x409   :  { %v3754_v30 = vrot.slane %v3753_v11, 1  ;;  %v3773_v6 = vrot.slane %v3772_v29, 4 }
 0x40b   :  { %v3755_v47 = vadd.f32 %v3754_v30, %v3753_v11  ;;  %v3774_v51 = vadd.f32 %v3773_v6, %v3772_v29 }
 0x40d   :  { %v14538_v53 = vmul.f32 0.000125, %v3755_v47  ;;  %v3775_v31 = vrot.slane %v3774_v51, 2 }
 0x40f   :  { %v3780_v32 = vmul.f32 8000.0, %v14538_v53  ;;  %v3776_v15 = vadd.f32 %v3775_v31, %v3774_v51  ;;  %v8798_v1 = vsel %vm8797_vm5, %v14538_v53, 0.0  ;;  %v3820_v17 = vsub.f32 %v14491_v38, %v14538_v53 }
 0x410   :  { %v3821_v18 = vsub.f32 %v14493_v40, %v14538_v53  ;;  %v3822_v44 = vsub.f32 %v14495_v39, %v14538_v53  ;;  %v3823_v19 = vsub.f32 %v14500_v48, %v14538_v53  ;;  %v3824_v24 = vsub.f32 %v14510_v56, %v14538_v53 }
 0x411   :  { %v3777_v34 = vrot.slane %v3776_v15, 1  ;;  %v3781_v20 = vmul.f32 %v3780_v32, %v14538_v53  ;;  %v3825_v25 = vsub.f32 %v14520_v4, %v14538_v53  ;;  %v3827_v13 = vsub.f32 %v14528_v14, %v14538_v53 }
 0x412   :  { %v3826_v27 = vsub.f32 %v14525_v42, %v14538_v53 }
 0x413   :  { %v3778_v35 = vadd.f32 %v3777_v34, %v3776_v15 }
 0x415   :  { %v3782_v41 = vsub.f32 %v3778_v35, %v3781_v20 }
 0x417   :  { %v3790_v46 = vmul.f32 %v14542_v37, %v3782_v41 }
 0x419   :  { %v3791_v28 = vmax.f32 %v3790_v46, 0.0 }
 0x41b   :  { %13981 = vrsqrt.f32 %v3791_v28  ;;  %vm3799_vm4 = vcmp.eq.f32.partialorder %v3791_v28, inf  ;;  %v3802_v61 = vand.u32 2147483648, %v3791_v28  ;;  %vm3801_vm7 = vcmp.eq.f32.partialorder %v3791_v28, 0.0 }
 0x421   :  { %v13982_v49 = vpop.eup %13981 }
 0x422   :  { %v3793_v50 = vmul.f32 %v13982_v49, %v3791_v28 }
 0x424   :  { %v3794_v52 = vmul.f32 %v13982_v49, %v3793_v50 }
 0x426   :  { %v3795_v55 = vmul.f32 0.5, %v3794_v52 }
 0x428   :  { %v3796_v57 = vsub.f32 1.5, %v3795_v55 }
 0x42a   :  { %v3797_v59 = vmul.f32 %v13982_v49, %v3796_v57 }
 0x42c   :  { %v3798_v60 = vmul.f32 %v3797_v59, %v3791_v28 }
 0x42e   :  { %v3800_v62 = vsel %vm3799_vm4, %v3791_v28, %v3798_v60 }
 0x42f   :  { %v3803_v63 = vsel %vm3801_vm7, %v3802_v61, %v3800_v62 }
 0x430   :  { %v14549_v0 = vmax.f32 %v3803_v63, 1e-30  ;;  %v8800_v2 = vsel %vm8799_vm6, %v3803_v63, 0.0 }
 0x431   :  { %v14556_v3 = vadd.f32 %v8800_v2, %v8798_v1 }
 0x432   :  { %13983 = vrcp.f32 %v14549_v0  ;;  %v3816_v9 = vand.u32 2147483648, %v14549_v0  ;;  %v3814_v22 = vand.u32 2147483647, %v14549_v0  ;;  %vm3810_vm9 = vweird.f32 %v14549_v0 }
 0x434   :  { %v3817_v16 = vor.u32 1.1754944e-38, %v3816_v9  ;;  %vm3815_vm11 = vcmp.eq.f32.partialorder %v3814_v22, 8.507059e+37 }
 0x438   :  { %v13984_v5 = vpop.eup %13983 }
 0x439   :  { %v3806_v7 = vmul.f32 %v13984_v5, %v14549_v0  ;;  %vm3811_vm8 = vweird.f32 %v13984_v5 }
 0x43a   :  { %vm3812_vm10 = vmor %vm3810_vm9, %vm3811_vm8  ;;  %vm8782_vm8 = vcmp.lt.s32.totalorder %v14545_v58, 10 }
 0x43b   :  { %v3807_v8 = vsub.f32 1.0, %v3806_v7 }
 0x43d   :  { %v3808_v10 = vmul.f32 %v13984_v5, %v3807_v8 }
 0x43f   :  { %v3809_v12 = vadd.f32 %v13984_v5, %v3808_v10 }
 0x441   :  { %v3813_v21 = vsel %vm3812_vm10, %v13984_v5, %v3809_v12  ;;  %v125_v5 = vadd.s32 896, %v14545_v58 }
 0x442   :  { %v3818_v23 = vsel %vm3815_vm11, %v3817_v16, %v3813_v21  ;;  %v14240_v21 = vmov 0.0  }
 0x443   :  { %v3828_v43 = vmul.f32 %v3820_v17, %v3818_v23  ;;  %v3829_v36 = vmul.f32 %v3821_v18, %v3818_v23  ;;  %v3830_v26 = vmul.f32 %v3822_v44, %v3818_v23  ;;  %v3831_v11 = vmul.f32 %v3823_v19, %v3818_v23 }
 0x444   :  { %v3832_v29 = vmul.f32 %v3824_v24, %v3818_v23  ;;  %v3833_v30 = vmul.f32 %v3825_v25, %v3818_v23  ;;  %v3835_v6 = vmul.f32 %v3827_v13, %v3818_v23  ;;  %v3834_v32 = vmul.f32 %v3826_v27, %v3818_v23  ;;  %v13511_v27 = vld [vmem:[#allocation7 + $0x3dc] sm:$0xf0] }
 0x445   :  { %v3836_v47 = vmul.f32 %v3828_v43, %v3828_v43  ;;  %v3837_v51 = vmul.f32 %v3829_v36, %v3829_v36  ;;  %v3838_v45 = vmul.f32 %v3830_v26, %v3830_v26  ;;  %v3839_v31 = vmul.f32 %v3831_v11, %v3831_v11  ;;  %v10860_v43 = vld [vmem:[#allocation7 + $0x1c0] sm:$0xf] }
 0x446   :  { %v3840_v15 = vmul.f32 %v3832_v29, %v3832_v29  ;;  %v3841_v33 = vmul.f32 %v3833_v30, %v3833_v30  ;;  %v3843_v41 = vmul.f32 %v3835_v6, %v3835_v6  ;;  %v3842_v50 = vmul.f32 %v3834_v32, %v3834_v32  ;;  %v13447_v36 = vld [vmem:[#allocation7 + $0x1dc] sm:$0xf0] }
 0x447   :  { %v3844_v34 = vmul.f32 -0.5, %v3836_v47  ;;  %v3845_v20 = vmul.f32 -0.5, %v3837_v51  ;;  %v3846_v35 = vmul.f32 -0.5, %v3838_v45  ;;  %v3847_v46 = vmul.f32 -0.5, %v3839_v31  ;;  %v11116_v26 = vld [vmem:[#allocation7 + $0x3c0] sm:$0xf] }
 0x448   :  { %v3848_v52 = vmul.f32 -0.5, %v3840_v15  ;;  %v3849_v54 = vmul.f32 -0.5, %v3841_v33  ;;  %v3851_v55 = vmul.f32 -0.5, %v3843_v41  ;;  %v3850_v59 = vmul.f32 -0.5, %v3842_v50  ;;  %v11372_v29 = vld [vmem:[#allocation7 + $0x5c0] sm:$0xf] }
 0x449   :  { %v3852_v28 = vmul.f32 1.442695, %v3844_v34  ;;  %v3854_v49 = vmul.f32 1.442695, %v3845_v20  ;;  %v3856_v53 = vmul.f32 1.442695, %v3846_v35  ;;  %v10861_v11 = vor.u32 %v13447_v36, %v10860_v43 }
 0x44a   :  { %v3858_v57 = vmul.f32 1.442695, %v3847_v46  ;;  %v3860_v60 = vmul.f32 1.442695, %v3848_v52  ;;  %v3862_v61 = vmul.f32 1.442695, %v3849_v54  ;;  %v11117_v6 = vor.u32 %v13511_v27, %v11116_v26 }
 0x44b   :  { %13985 = vpow2.f32 %v3852_v28  ;;  %v3866_v62 = vmul.f32 1.442695, %v3851_v55  ;;  %v3864_v2 = vmul.f32 1.442695, %v3850_v59  ;;  %vm133_vm12 = vcmp.lt.s32.totalorder %v125_v5, 1000  ;;  %7030 = vmatpush.bf16.msra.mxu0 %v10861_v11 }
 0x44c   :  { %13987 = vpow2.f32 %v3854_v49  ;;  %v14581_v44 = vsel %vm133_vm12, 1.0, %v14240_v21  ;;  %v13575_v30 = vld [vmem:[#allocation7 + $0x5dc] sm:$0xf0]  ;;  %7043 = vmatpush.bf16.msra.mxu1 %v11117_v6 }
 0x44d   :  { %13989 = vpow2.f32 %v3856_v53  ;;  %v11373_v47 = vor.u32 %v13575_v30, %v11372_v29  ;;  %v11628_v51 = vld [vmem:[#allocation7 + $0x7c0] sm:$0xf] }
 0x44e   :  { %13991 = vpow2.f32 %v3858_v57  ;;  %v13639_v45 = vld [vmem:[#allocation7 + $0x7dc] sm:$0xf0] }
 0x44f   :  { %13993 = vpow2.f32 %v3860_v60  ;;  %v11629_v31 = vor.u32 %v13639_v45, %v11628_v51  ;;  %7056 = vmatpush.bf16.msra.mxu2 %v11373_v47  ;;  %v10828_v32 = vld [vmem:[#allocation7 + $0x180] sm:$0xf] }
 0x450   :  { %13995 = vpow2.f32 %v3862_v61  ;;  %v13439_v15 = vld [vmem:[#allocation7 + $0x19c] sm:$0xf0] }
 0x451   :  { %v13986_v63 = vpop.eup %13985  ;;  %13997 = vpow2.f32 %v3866_v62  ;;  %v11084_v33 = vld [vmem:[#allocation7 + $0x380] sm:$0xf]  ;;  %7069 = vmatpush.bf16.msra.mxu3 %v11629_v31  ;;  %v10829_v34 = vor.u32 %v13439_v15, %v10828_v32 }
 0x452   :  { %v13988_v1 = vpop.eup %13987  ;;  %13999 = vpow2.f32 %v3864_v2  ;;  %v13503_v20 = vld [vmem:[#allocation7 + $0x39c] sm:$0xf0] }
 0x453   :  { %v3876_v7 = vadd.f32 %v13988_v1, %v13986_v63  ;;  %v13990_v8 = vpop.eup %13989  ;;  %v11340_v35 = vld [vmem:[#allocation7 + $0x580] sm:$0xf]  ;;  %v11085_v46 = vor.u32 %v13503_v20, %v11084_v33  ;;  %7031 = vmatpush.bf16.msra.mxu0 %v10829_v34  ;;  %14001 = vlog2.f32 %v14549_v0 }
 0x454   :  { %v13992_v10 = vpop.eup %13991  ;;  %v13567_v41 = vld [vmem:[#allocation7 + $0x59c] sm:$0xf0] }
 0x455   :  { %v3877_v9 = vadd.f32 %v13990_v8, %v3876_v7  ;;  %v13994_v12 = vpop.eup %13993  ;;  %v11341_v28 = vor.u32 %v13567_v41, %v11340_v35  ;;  %v11596_v49 = vld [vmem:[#allocation7 + $0x780] sm:$0xf]  ;;  %7044 = vmatpush.bf16.msra.mxu1 %v11085_v46 }
 0x456   :  { %v13996_v16 = vpop.eup %13995  ;;  %v13631_v50 = vld [vmem:[#allocation7 + $0x79c] sm:$0xf0] }
 0x457   :  { %v3878_v22 = vadd.f32 %v13992_v10, %v3877_v9  ;;  %v13998_v18 = vpop.eup %13997  ;;  %v11597_v52 = vor.u32 %v13631_v50, %v11596_v49  ;;  %7057 = vmatpush.bf16.msra.mxu2 %v11341_v28  ;;  %v10796_v53 = vld [vmem:[#allocation7 + $0x140] sm:$0xf] }
 0x458   :  { %v14000_v23 = vpop.eup %13999  ;;  %v3875_v24 = vmul.f32 %v13998_v18, %v14581_v44  ;;  %v13431_v54 = vld [vmem:[#allocation7 + $0x15c] sm:$0xf0] }
 0x459   :  { %v3879_v17 = vadd.f32 %v13994_v12, %v3878_v22  ;;  %v11052_v55 = vld [vmem:[#allocation7 + $0x340] sm:$0xf]  ;;  %7070 = vmatpush.bf16.msra.mxu3 %v11597_v52  ;;  %v10797_v57 = vor.u32 %v13431_v54, %v10796_v53 }
 0x45a   :  { %v13495_v59 = vld [vmem:[#allocation7 + $0x35c] sm:$0xf0] }
 0x45b   :  { %v3880_v19 = vadd.f32 %v13996_v16, %v3879_v17  ;;  %v11308_v60 = vld [vmem:[#allocation7 + $0x540] sm:$0xf]  ;;  %v11053_v62 = vor.u32 %v13495_v59, %v11052_v55  ;;  %7032 = vmatpush.bf16.msra.mxu0 %v10797_v57 }
 0x45c   :  { %v13559_v61 = vld [vmem:[#allocation7 + $0x55c] sm:$0xf0] }
 0x45d   :  { %v3881_v25 = vadd.f32 %v14000_v23, %v3880_v19  ;;  %v11309_v63 = vor.u32 %v13559_v61, %v11308_v60  ;;  %v11564_v1 = vld [vmem:[#allocation7 + $0x740] sm:$0xf]  ;;  %7045 = vmatpush.bf16.msra.mxu1 %v11053_v62 }
 0x45e   :  { %v13623_v2 = vld [vmem:[#allocation7 + $0x75c] sm:$0xf0] }
 0x45f   :  { %v3882_v13 = vadd.f32 %v3881_v25, %v3875_v24  ;;  %v11565_v5 = vor.u32 %v13623_v2, %v11564_v1  ;;  %7058 = vmatpush.bf16.msra.mxu2 %v11309_v63  ;;  %v10764_v7 = vld [vmem:[#allocation7 + $0x100] sm:$0xf] }
 0x460   :  { %v13423_v8 = vld [vmem:[#allocation7 + $0x11c] sm:$0xf0] }
 0x461   :  { %3883 = vadd.xlane.f32.xlu2 %v3882_v13  ;;  %v11020_v9 = vld [vmem:[#allocation7 + $0x300] sm:$0xf]  ;;  %7071 = vmatpush.bf16.msra.mxu3 %v11565_v5  ;;  %v10765_v10 = vor.u32 %v13423_v8, %v10764_v7 }
 0x462   :  { %v13487_v22 = vld [vmem:[#allocation7 + $0x31c] sm:$0xf0] }
 0x463   :  { %v11276_v12 = vld [vmem:[#allocation7 + $0x500] sm:$0xf]  ;;  %v11021_v17 = vor.u32 %v13487_v22, %v11020_v9  ;;  %7033 = vmatpush.bf16.msra.mxu0 %v10765_v10 }
 0x464   :  { %v13551_v16 = vld [vmem:[#allocation7 + $0x51c] sm:$0xf0] }
 0x465   :  { %v11277_v18 = vor.u32 %v13551_v16, %v11276_v12  ;;  %v11532_v19 = vld [vmem:[#allocation7 + $0x700] sm:$0xf]  ;;  %7046 = vmatpush.bf16.msra.mxu1 %v11021_v17 }
 0x466   :  { %v13615_v23 = vld [vmem:[#allocation7 + $0x71c] sm:$0xf0] }
 0x467   :  { %v11533_v24 = vor.u32 %v13615_v23, %v11532_v19  ;;  %7059 = vmatpush.bf16.msra.mxu2 %v11277_v18  ;;  %v10732_v25 = vld [vmem:[#allocation7 + $0xc0] sm:$0xf] }
 0x468   :  { %v13415_v13 = vld [vmem:[#allocation7 + $0xdc] sm:$0xf0] }
 0x469   :  { %v10988_v43 = vld [vmem:[#allocation7 + $0x2c0] sm:$0xf]  ;;  %7072 = vmatpush.bf16.msra.mxu3 %v11533_v24  ;;  %v10733_v36 = vor.u32 %v13415_v13, %v10732_v25 }
 0x46a   :  { %v13479_v26 = vld [vmem:[#allocation7 + $0x2dc] sm:$0xf0] }
 0x46b   :  { %v11244_v11 = vld [vmem:[#allocation7 + $0x4c0] sm:$0xf]  ;;  %v10989_v29 = vor.u32 %v13479_v26, %v10988_v43  ;;  %7034 = vmatpush.bf16.msra.mxu0 %v10733_v36 }
 0x46c   :  { %v13543_v27 = vld [vmem:[#allocation7 + $0x4dc] sm:$0xf0] }
 0x46d   :  { %v11245_v30 = vor.u32 %v13543_v27, %v11244_v11  ;;  %v11500_v6 = vld [vmem:[#allocation7 + $0x6c0] sm:$0xf]  ;;  %7047 = vmatpush.bf16.msra.mxu1 %v10989_v29 }
 0x46e   :  { %v13607_v47 = vld [vmem:[#allocation7 + $0x6dc] sm:$0xf0] }
 0x46f   :  { %v11501_v51 = vor.u32 %v13607_v47, %v11500_v6  ;;  %7060 = vmatpush.bf16.msra.mxu2 %v11245_v30  ;;  %v10700_v45 = vld [vmem:[#allocation7 + $0x80] sm:$0xf] }
 0x470   :  { %v13407_v31 = vld [vmem:[#allocation7 + $0x9c] sm:$0xf0] }
 0x471   :  { %v10956_v32 = vld [vmem:[#allocation7 + $0x280] sm:$0xf]  ;;  %7073 = vmatpush.bf16.msra.mxu3 %v11501_v51  ;;  %v10701_v15 = vor.u32 %v13407_v31, %v10700_v45 }
 0x472   :  { %v13471_v33 = vld [vmem:[#allocation7 + $0x29c] sm:$0xf0] }
 0x473   :  { %v11212_v34 = vld [vmem:[#allocation7 + $0x480] sm:$0xf]  ;;  %v10957_v35 = vor.u32 %v13471_v33, %v10956_v32  ;;  %7035 = vmatpush.bf16.msra.mxu0 %v10701_v15 }
 0x474   :  { %v13535_v20 = vld [vmem:[#allocation7 + $0x49c] sm:$0xf0] }
 0x475   :  { %v11213_v41 = vor.u32 %v13535_v20, %v11212_v34  ;;  %v11468_v46 = vld [vmem:[#allocation7 + $0x680] sm:$0xf]  ;;  %7048 = vmatpush.bf16.msra.mxu1 %v10957_v35 }
 0x476   :  { %v13599_v28 = vld [vmem:[#allocation7 + $0x69c] sm:$0xf0] }
 0x477   :  { %v11469_v49 = vor.u32 %v13599_v28, %v11468_v46  ;;  %7061 = vmatpush.bf16.msra.mxu2 %v11213_v41  ;;  %v10668_v50 = vld [vmem:[#allocation7 + $0x40] sm:$0xf] }
 0x478   :  { %v13399_v52 = vld [vmem:[#allocation7 + $0x5c] sm:$0xf0] }
 0x479   :  { %v10924_v53 = vld [vmem:[#allocation7 + $0x240] sm:$0xf]  ;;  %7074 = vmatpush.bf16.msra.mxu3 %v11469_v49  ;;  %v10669_v55 = vor.u32 %v13399_v52, %v10668_v50 }
 0x47a   :  { %v13463_v57 = vld [vmem:[#allocation7 + $0x25c] sm:$0xf0] }
 0x47b   :  { %v11180_v59 = vld [vmem:[#allocation7 + $0x440] sm:$0xf]  ;;  %v10925_v62 = vor.u32 %v13463_v57, %v10924_v53  ;;  %7036 = vmatpush.bf16.msra.mxu0 %v10669_v55 }
 0x47c   :  { %v13527_v60 = vld [vmem:[#allocation7 + $0x45c] sm:$0xf0] }
 0x47d   :  { %v11181_v63 = vor.u32 %v13527_v60, %v11180_v59  ;;  %v11436_v1 = vld [vmem:[#allocation7 + $0x640] sm:$0xf]  ;;  %7049 = vmatpush.bf16.msra.mxu1 %v10925_v62 }
 0x47e   :  { %v13591_v2 = vld [vmem:[#allocation7 + $0x65c] sm:$0xf0] }
 0x47f   :  { %v11437_v5 = vor.u32 %v13591_v2, %v11436_v1  ;;  %7062 = vmatpush.bf16.msra.mxu2 %v11181_v63  ;;  %v10636_v8 = vld [vmem:[#allocation7] sm:$0xf] }
 0x480   :  { %v13391_v9 = vld [vmem:[#allocation7 + $0x1c] sm:$0xf0] }
 0x481   :  { %v10892_v10 = vld [vmem:[#allocation7 + $0x200] sm:$0xf]  ;;  %7075 = vmatpush.bf16.msra.mxu3 %v11437_v5  ;;  %v10637_v22 = vor.u32 %v13391_v9, %v10636_v8 }
 0x482   :  { %v13455_v12 = vld [vmem:[#allocation7 + $0x21c] sm:$0xf0] }
 0x483   :  { %v11148_v16 = vld [vmem:[#allocation7 + $0x400] sm:$0xf]  ;;  %v10893_v19 = vor.u32 %v13455_v12, %v10892_v10  ;;  %7037 = vmatpush.bf16.msra.mxu0 %v10637_v22  ;;  %v14002_v10 = vpop.eup %14001 }
 0x484   :  { %v13519_v17 = vld [vmem:[#allocation7 + $0x41c] sm:$0xf0] }
 0x485   :  { %v11149_v23 = vor.u32 %v13519_v17, %v11148_v16  ;;  %v11404_v24 = vld [vmem:[#allocation7 + $0x600] sm:$0xf]  ;;  %7050 = vmatpush.bf16.msra.mxu1 %v10893_v19 }
 0x486   :  { %v13583_v25 = vld [vmem:[#allocation7 + $0x61c] sm:$0xf0] }
 0x487   :  { %v11405_v13 = vor.u32 %v13583_v25, %v11404_v24  ;;  %v11884_v43 = vld [vmem:[#allocation7 + $0x9c0] sm:$0xf]  ;;  %7063 = vmatpush.bf16.msra.mxu2 %v11149_v23 }
 0x488   :  { %v13703_v36 = vld [vmem:[#allocation7 + $0x9dc] sm:$0xf0] }
 0x489   :  { %v12140_v26 = vld [vmem:[#allocation7 + $0xbc0] sm:$0xf]  ;;  %v11885_v27 = vor.u32 %v13703_v36, %v11884_v43  ;;  %7076 = vmatpush.bf16.msra.mxu3 %v11405_v13  ;;  %v3895_v36 = vmul.f32 0.6931472, %v14002_v10 }
 0x48a   :  { %v13767_v29 = vld [vmem:[#allocation7 + $0xbdc] sm:$0xf0] }
 0x48b   :  { %v12396_v30 = vld [vmem:[#allocation7 + $0xdc0] sm:$0xf]  ;;  %v12141_v47 = vor.u32 %v13767_v29, %v12140_v26  ;;  %7082 = vmatpush.bf16.msrb.mxu0 %v11885_v27 }
 0x48c   :  { %v13831_v6 = vld [vmem:[#allocation7 + $0xddc] sm:$0xf0] }
 0x48d   :  { %v12397_v51 = vor.u32 %v13831_v6, %v12396_v30  ;;  %v12652_v45 = vld [vmem:[#allocation7 + $0xfc0] sm:$0xf]  ;;  %7095 = vmatpush.bf16.msrb.mxu1 %v12141_v47 }
 0x48e   :  { %v13895_v31 = vld [vmem:[#allocation7 + $0xfdc] sm:$0xf0] }
 0x48f   :  { %v11852_v32 = vld [vmem:[#allocation7 + $0x980] sm:$0xf]  ;;  %v12653_v33 = vor.u32 %v13895_v31, %v12652_v45  ;;  %7108 = vmatpush.bf16.msrb.mxu2 %v12397_v51 }
 0x490   :  { %v13695_v34 = vld [vmem:[#allocation7 + $0x99c] sm:$0xf0] }
 0x491   :  { %v12108_v20 = vld [vmem:[#allocation7 + $0xb80] sm:$0xf]  ;;  %v11853_v35 = vor.u32 %v13695_v34, %v11852_v32  ;;  %7121 = vmatpush.bf16.msrb.mxu3 %v12653_v33 }
 0x492   :  { %v13759_v41 = vld [vmem:[#allocation7 + $0xb9c] sm:$0xf0] }
 0x493   :  { %v12364_v46 = vld [vmem:[#allocation7 + $0xd80] sm:$0xf]  ;;  %v12109_v50 = vor.u32 %v13759_v41, %v12108_v20  ;;  %7083 = vmatpush.bf16.msrb.mxu0 %v11853_v35 }
 0x494   :  { %v13823_v28 = vld [vmem:[#allocation7 + $0xd9c] sm:$0xf0] }
 0x495   :  { %v12365_v52 = vor.u32 %v13823_v28, %v12364_v46  ;;  %v12620_v53 = vld [vmem:[#allocation7 + $0xf80] sm:$0xf]  ;;  %7096 = vmatpush.bf16.msrb.mxu1 %v12109_v50 }
 0x496   :  { %v11820_v57 = vld [vmem:[#allocation7 + $0x940] sm:$0xf] }
 0x497   :  { %v13687_v59 = vld [vmem:[#allocation7 + $0x95c] sm:$0xf0]  ;;  %7109 = vmatpush.bf16.msrb.mxu2 %v12365_v52 }
 0x498   :  { %v12076_v60 = vld [vmem:[#allocation7 + $0xb40] sm:$0xf]  ;;  %v11821_v62 = vor.u32 %v13687_v59, %v11820_v57 }
 0x499   :  { %v13751_v0 = vld [vmem:[#allocation7 + $0xb5c] sm:$0xf0] }
 0x49a   :  { %v12332_v63 = vld [vmem:[#allocation7 + $0xd40] sm:$0xf]  ;;  %v12077_v1 = vor.u32 %v13751_v0, %v12076_v60  ;;  %7084 = vmatpush.bf16.msrb.mxu0 %v11821_v62 }
 0x49b   :  { %v13815_v2 = vld [vmem:[#allocation7 + $0xd5c] sm:$0xf0] }
 0x49c   :  { %v12588_v5 = vld [vmem:[#allocation7 + $0xf40] sm:$0xf]  ;;  %v12333_v8 = vor.u32 %v13815_v2, %v12332_v63  ;;  %7097 = vmatpush.bf16.msrb.mxu1 %v12077_v1 }
 0x49d   :  { %v11788_v22 = vld [vmem:[#allocation7 + $0x900] sm:$0xf] }
 0x49e   :  { %v13679_v12 = vld [vmem:[#allocation7 + $0x91c] sm:$0xf0]  ;;  %7110 = vmatpush.bf16.msrb.mxu2 %v12333_v8 }
 0x49f   :  { %v12044_v16 = vld [vmem:[#allocation7 + $0xb00] sm:$0xf]  ;;  %v11789_v17 = vor.u32 %v13679_v12, %v11788_v22 }
 0x4a0   :  { %v12300_v19 = vld [vmem:[#allocation7 + $0xd00] sm:$0xf] }
 0x4a1   :  { %v13807_v23 = vld [vmem:[#allocation7 + $0xd1c] sm:$0xf0]  ;;  %7085 = vmatpush.bf16.msrb.mxu0 %v11789_v17 }
 0x4a2   :  { %v12301_v25 = vor.u32 %v13807_v23, %v12300_v19  ;;  %v12556_v13 = vld [vmem:[#allocation7 + $0xf00] sm:$0xf] }
 0x4a3   :  { %v13871_v43 = vld [vmem:[#allocation7 + $0xf1c] sm:$0xf0] }
 0x4a4   :  { %v12557_v26 = vor.u32 %v13871_v43, %v12556_v13  ;;  %v13671_v27 = vld [vmem:[#allocation7 + $0x8dc] sm:$0xf0]  ;;  %7111 = vmatpush.bf16.msrb.mxu2 %v12301_v25 }
 0x4a5   :  { %v12012_v29 = vld [vmem:[#allocation7 + $0xac0] sm:$0xf] }
 0x4a6   :  { %v13735_v47 = vld [vmem:[#allocation7 + $0xadc] sm:$0xf0] }
 0x4a7   :  { %v12268_v51 = vld [vmem:[#allocation7 + $0xcc0] sm:$0xf]  ;;  %v12013_v32 = vor.u32 %v13735_v47, %v12012_v29 }
 0x4a8   :  { %v13799_v45 = vld [vmem:[#allocation7 + $0xcdc] sm:$0xf0] }
 0x4a9   :  { %v12524_v33 = vld [vmem:[#allocation7 + $0xec0] sm:$0xf] }
 0x4aa   :  { %v13863_v34 = vld [vmem:[#allocation7 + $0xedc] sm:$0xf0] }
 0x4ab   :  { %v12525_v20 = vor.u32 %v13863_v34, %v12524_v33  ;;  %v11724_v35 = vld [vmem:[#allocation7 + $0x880] sm:$0xf] }
 0x4ac   :  { %v13663_v41 = vld [vmem:[#allocation7 + $0x89c] sm:$0xf0] }
 0x4ad   :  { %v11980_v46 = vld [vmem:[#allocation7 + $0xa80] sm:$0xf] }
 0x4ae   :  { %v12236_v50 = vld [vmem:[#allocation7 + $0xc80] sm:$0xf] }
 0x4af   :  { %v13791_v52 = vld [vmem:[#allocation7 + $0xc9c] sm:$0xf0] }
 0x4b0   :  { %v11692_v57 = vld [vmem:[#allocation7 + $0x840] sm:$0xf] }
 0x4b1   :  { %v13655_v62 = vld [vmem:[#allocation7 + $0x85c] sm:$0xf0] }
 0x4b2   :  { %v11948_v0 = vld [vmem:[#allocation7 + $0xa40] sm:$0xf]  ;;  %v11693_v10 = vor.u32 %v13655_v62, %v11692_v57  ;;  %v10862_v57 = vld [vmem:[#allocation7 + $0x1e0] sm:$0xf0] }
 0x4b3   :  { %v13719_v1 = vld [vmem:[#allocation7 + $0xa5c] sm:$0xf0] }
 0x4b4   :  { %v12204_v2 = vld [vmem:[#allocation7 + $0xc40] sm:$0xf]  ;;  %v11949_v19 = vor.u32 %v13719_v1, %v11948_v0  ;;  %v13571_v0 = vld [vmem:[#allocation7 + $0x5c4] sm:$0xf] }
 0x4b5   :  { %v13847_v22 = vld [vmem:[#allocation7 + $0xe5c] sm:$0xf0] }
 0x4b6   :  { %v11660_v12 = vld [vmem:[#allocation7 + $0x800] sm:$0xf] }
 0x4b7   :  { %v13711_v13 = vld [vmem:[#allocation7 + $0xa1c] sm:$0xf0] }
 0x4b8   :  { %v12172_v43 = vld [vmem:[#allocation7 + $0xc00] sm:$0xf] }
 0x4d4   :  { %v3884_v54 = vpop.xlane.xlu2 %3883 }
 0x4d5   :  { %v3885_v61 = vrot.slane %v3884_v54, 4 }
 0x4d7   :  { %v3886_v7 = vadd.f32 %v3885_v61, %v3884_v54  ;;  %v13887_v54 = vld [vmem:[#allocation7 + $0xf9c] sm:$0xf0] }
 0x4d8   :  { %v12621_v55 = vor.u32 %v13887_v54, %v12620_v53  ;;  %v11725_v53 = vor.u32 %v13663_v41, %v11724_v35  ;;  %v12492_v54 = vld [vmem:[#allocation7 + $0xe80] sm:$0xf] }
 0x4d9   :  { %v3887_v18 = vrot.slane %v3886_v7, 2 }
 0x4da   :  { %7122 = vmatpush.bf16.msrb.mxu3 %v12621_v55  ;;  %v13855_v55 = vld [vmem:[#allocation7 + $0xe9c] sm:$0xf0] }
 0x4db   :  { %v3888_v11 = vadd.f32 %v3887_v18, %v3886_v7  ;;  %v13879_v7 = vld [vmem:[#allocation7 + $0xf5c] sm:$0xf0]  ;;  %v12493_v63 = vor.u32 %v13855_v55, %v12492_v54 }
 0x4dc   :  { %v12589_v9 = vor.u32 %v13879_v7, %v12588_v5  ;;  %v13743_v18 = vld [vmem:[#allocation7 + $0xb1c] sm:$0xf0] }
 0x4dd   :  { %v3889_v15 = vrot.slane %v3888_v11, 1  ;;  %v12045_v24 = vor.u32 %v13743_v18, %v12044_v16  ;;  %v13783_v5 = vld [vmem:[#allocation7 + $0xc5c] sm:$0xf0] }
 0x4de   :  { %7123 = vmatpush.bf16.msrb.mxu3 %v12589_v9  ;;  %v12460_v9 = vld [vmem:[#allocation7 + $0xe40] sm:$0xf]  ;;  %v12205_v23 = vor.u32 %v13783_v5, %v12204_v2 }
 0x4df   :  { %v3890_v49 = vadd.f32 %v3889_v15, %v3888_v11  ;;  %v11756_v11 = vld [vmem:[#allocation7 + $0x8c0] sm:$0xf]  ;;  %7098 = vmatpush.bf16.msrb.mxu1 %v12045_v24  ;;  %v12269_v15 = vor.u32 %v13799_v45, %v12268_v51  ;;  %v12461_v25 = vor.u32 %v13847_v22, %v12460_v9 }
 0x4e0   :  { %v11757_v6 = vor.u32 %v13671_v27, %v11756_v11  ;;  %v13647_v16 = vld [vmem:[#allocation7 + $0x81c] sm:$0xf0] }
 0x4e1   :  { %v3891_v61 = vmax.f32 %v3890_v49, 1e-30  ;;  %v13727_v49 = vld [vmem:[#allocation7 + $0xa9c] sm:$0xf0]  ;;  %7112 = vmatpush.bf16.msrb.mxu2 %v12269_v15  ;;  %v11661_v29 = vor.u32 %v13647_v16, %v11660_v12  ;;  %v13435_v12 = vld [vmem:[#allocation7 + $0x184] sm:$0xf] }
 0x4e2   :  { %7124 = vmatpush.bf16.msrb.mxu3 %v12557_v26  ;;  %7086 = vmatpush.bf16.msrb.mxu0 %v11757_v6  ;;  %v11981_v60 = vor.u32 %v13727_v49, %v11980_v46  ;;  %v11916_v24 = vld [vmem:[#allocation7 + $0xa00] sm:$0xf]  ;;  %v10830_v16 = vld [vmem:[#allocation7 + $0x1a0] sm:$0xf0] }
 0x4e3   :  { %14003 = vlog2.f32 %v3891_v61  ;;  %7099 = vmatpush.bf16.msrb.mxu1 %v12013_v32  ;;  %v12237_v61 = vor.u32 %v13791_v52, %v12236_v50  ;;  %v12428_v27 = vld [vmem:[#allocation7 + $0xe00] sm:$0xf]  ;;  %v11917_v47 = vor.u32 %v13711_v13, %v11916_v24  ;;  %v13443_v50 = vld [vmem:[#allocation7 + $0x1c4] sm:$0xf] }
 0x4e4   :  { %v11342_v24 = vld [vmem:[#allocation7 + $0x5a0] sm:$0xf0] }
 0x4e5   :  { %7113 = vmatpush.bf16.msrb.mxu2 %v12237_v61  ;;  %v11118_v61 = vld [vmem:[#allocation7 + $0x3e0] sm:$0xf0] }
 0x4e6   :  { %7125 = vmatpush.bf16.msrb.mxu3 %v12525_v20  ;;  %7087 = vmatpush.bf16.msrb.mxu0 %v11725_v53  ;;  %v11598_v13 = vld [vmem:[#allocation7 + $0x7a0] sm:$0xf0] }
 0x4e7   :  { %7100 = vmatpush.bf16.msrb.mxu1 %v11981_v60  ;;  %v13507_v60 = vld [vmem:[#allocation7 + $0x3c4] sm:$0xf] }
 0x4e9   :  { %v14004_v30 = vpop.eup %14003  ;;  %7114 = vmatpush.bf16.msrb.mxu2 %v12205_v23  ;;  %v11086_v23 = vld [vmem:[#allocation7 + $0x3a0] sm:$0xf0] }
 0x4ea   :  { %v3893_v31 = vmul.f32 0.6931472, %v14004_v30  ;;  %7126 = vmatpush.bf16.msrb.mxu3 %v12493_v63  ;;  %7088 = vmatpush.bf16.msrb.mxu0 %v11693_v10  ;;  %v13839_v30 = vld [vmem:[#allocation7 + $0xe1c] sm:$0xf0]  ;;  %v11374_v63 = vld [vmem:[#allocation7 + $0x5e0] sm:$0xf0] }
 0x4eb   :  { %7101 = vmatpush.bf16.msrb.mxu1 %v11949_v19  ;;  %v12429_v45 = vor.u32 %v13839_v30, %v12428_v27  ;;  %v13491_v30 = vld [vmem:[#allocation7 + $0x344] sm:$0xf] }
 0x4ec   :  { %v3896_v28 = vsub.f32 %v3893_v31, %v3895_v36  ;;  %v13775_v36 = vld [vmem:[#allocation7 + $0xc1c] sm:$0xf0] }
 0x4ed   :  { %v12173_v51 = vor.u32 %v13775_v36, %v12172_v43 }
 0x4ee   :  { %v14585_v59 = vadd.f32 -0.9189385, %v3896_v28  ;;  %7127 = vmatpush.bf16.msrb.mxu3 %v12461_v25  ;;  %7089 = vmatpush.bf16.msrb.mxu0 %v11661_v29  ;;  %v13627_v25 = vld [vmem:[#allocation7 + $0x784] sm:$0xf] }
 0x4ef   :  { %7102 = vmatpush.bf16.msrb.mxu1 %v11917_v47  ;;  %7115 = vmatpush.bf16.msrb.mxu2 %v12173_v51  ;;  %v10798_v29 = vld [vmem:[#allocation7 + $0x160] sm:$0xf0]  ;;  %v11601_v51 = vor.u32 %v13627_v25, %v11598_v13 }
 0x4f0   :  { %v3899_v7 = vand.u32 2147483647, %v14585_v59  ;;  %v3907_v8 = vsub.f32 0.0, %v14585_v59  ;;  %v3898_v49 = vmax.f32 %v14585_v59, 0.0  ;;  %v13635_v59 = vld [vmem:[#allocation7 + $0x7c4] sm:$0xf] }
 0x4f2   :  { %v3900_v17 = vsub.f32 0.0, %v3899_v7  ;;  %v3909_v18 = vand.u32 2147483647, %v3907_v8  ;;  %7128 = vmatpush.bf16.msrb.mxu3 %v12429_v45  ;;  %v3908_v35 = vmax.f32 %v3907_v8, 0.0  ;;  %v11630_v7 = vld [vmem:[#allocation7 + $0x7e0] sm:$0xf0]  ;;  %v11121_v8 = vor.u32 %v13507_v60, %v11118_v61 }
 0x4f3   :  { %v11633_v19 = vor.u32 %v13635_v59, %v11630_v7  ;;  %v13555_v45 = vld [vmem:[#allocation7 + $0x544] sm:$0xf] }
 0x4f4   :  { %v3901_v26 = vmul.f32 1.442695, %v3900_v17  ;;  %v3910_v11 = vsub.f32 0.0, %v3909_v18  ;;  %v13499_v17 = vld [vmem:[#allocation7 + $0x384] sm:$0xf]  ;;  %v11377_v18 = vor.u32 %v13571_v0, %v11374_v63 }
 0x4f5   :  { %v11089_v27 = vor.u32 %v13499_v17, %v11086_v23  ;;  %v13611_v60 = vld [vmem:[#allocation7 + $0x704] sm:$0xf] }
 0x4f6   :  { %14005 = vpow2.f32 %v3901_v26  ;;  %v3911_v6 = vmul.f32 1.442695, %v3910_v11  ;;  %v13427_v26 = vld [vmem:[#allocation7 + $0x144] sm:$0xf]  ;;  %v10833_v11 = vor.u32 %v13435_v12, %v10830_v16 }
 0x4f7   :  { %v11534_v61 = vld [vmem:[#allocation7 + $0x720] sm:$0xf0] }
 0x4f8   :  { %14007 = vpow2.f32 %v3911_v6  ;;  %v11054_v6 = vld [vmem:[#allocation7 + $0x360] sm:$0xf0] }
 0x4f9   :  { %v11502_v12 = vld [vmem:[#allocation7 + $0x6e0] sm:$0xf0] }
 0x4fc   :  { %v14006_v31 = vpop.eup %14005 }
 0x4fd   :  { %v3903_v32 = vadd.f32 1.0, %v14006_v31  ;;  %v11310_v31 = vld [vmem:[#allocation7 + $0x560] sm:$0xf0] }
 0x4fe   :  { %v14008_v15 = vpop.eup %14007 }
 0x4ff   :  { %v3913_v33 = vadd.f32 1.0, %v14008_v15  ;;  %14009 = vlog2.f32 %v3903_v32  ;;  %v11566_v15 = vld [vmem:[#allocation7 + $0x760] sm:$0xf0] }
 0x501   :  { %14011 = vlog2.f32 %v3913_v33  ;;  %v10801_v33 = vor.u32 %v13427_v26, %v10798_v29  ;;  %v10958_v26 = vld [vmem:[#allocation7 + $0x2a0] sm:$0xf0] }
 0x502   :  { %v13595_v29 = vld [vmem:[#allocation7 + $0x684] sm:$0xf] }
 0x505   :  { %v14010_v34 = vpop.eup %14009 }
 0x506   :  { %v3905_v46 = vmul.f32 0.6931472, %v14010_v34  ;;  %v11057_v34 = vor.u32 %v13491_v30, %v11054_v6  ;;  %v11470_v30 = vld [vmem:[#allocation7 + $0x6a0] sm:$0xf0] }
 0x507   :  { %v14012_v20 = vpop.eup %14011 }
 0x508   :  { %v3915_v41 = vmul.f32 0.6931472, %v14012_v20  ;;  %v3906_v62 = vadd.f32 %v3905_v46, %v3898_v49  ;;  %v11313_v20 = vor.u32 %v13555_v45, %v11310_v31  ;;  %v10670_v45 = vld [vmem:[#allocation7 + $0x60] sm:$0xf0] }
 0x50a   :  { %v14589_v28 = vadd.f32 %v3915_v41, %v3908_v35  ;;  %v8806_v43 = vsel %vm8805_vm14, %v3906_v62, 0.0  ;;  %v13419_v35 = vld [vmem:[#allocation7 + $0x104] sm:$0xf] }
 0x50b   :  { %v10766_v41 = vld [vmem:[#allocation7 + $0x120] sm:$0xf0] }
 0x50c   :  { %v3917_v52 = vmul.f32 %v14589_v28, %v14491_v38  ;;  %v3918_v53 = vmul.f32 %v14589_v28, %v14493_v40  ;;  %v3919_v54 = vmul.f32 %v14589_v28, %v14495_v39  ;;  %v3920_v55 = vmul.f32 %v14589_v28, %v14500_v48  ;;  %v10734_v62 = vld [vmem:[#allocation7 + $0xe0] sm:$0xf0] }
 0x50d   :  { %v14604_v40 = vsel %vm8802_vm13, 8000.0, %v14240_v21  ;;  %v10865_v39 = vor.u32 %v13443_v50, %v10862_v57  ;;  %v13563_v21 = vld [vmem:[#allocation7 + $0x584] sm:$0xf]  ;;  %v3921_v46 = vmul.f32 %v14589_v28, %v14510_v56  ;;  %v3922_v49 = vmul.f32 %v14589_v28, %v14520_v4 }
 0x50e   :  { %v3925_v1 = vmax.f32 %v3917_v52, 0.0  ;;  %v3926_v2 = vmax.f32 %v3918_v53, 0.0  ;;  %v3927_v5 = vmax.f32 %v3919_v54, 0.0  ;;  %v3928_v38 = vmax.f32 %v3920_v55, 0.0  ;;  %v13483_v52 = vld [vmem:[#allocation7 + $0x304] sm:$0xf] }
 0x50f   :  { %v8804_v36 = vadd.f32 %v14604_v40, %v14556_v3  ;;  %v11345_v47 = vor.u32 %v13563_v21, %v11342_v24  ;;  %v13619_v3 = vld [vmem:[#allocation7 + $0x744] sm:$0xf]  ;;  %v3923_v55 = vmul.f32 %v14589_v28, %v14525_v42  ;;  %v3924_v57 = vmul.f32 %v14589_v28, %v14528_v14 }
 0x510   :  { %v14607_v48 = vpack.c.bf16 %v3925_v1, %v3925_v1  ;;  %v14609_v9 = vpack.c.bf16 %v3926_v2, %v3926_v2  ;;  %v14611_v10 = vpack.c.bf16 %v3927_v5, %v3927_v5  ;;  %v14613_v22 = vpack.c.bf16 %v3928_v38, %v3928_v38  ;;  %v11022_v53 = vld [vmem:[#allocation7 + $0x320] sm:$0xf0] }
 0x511   :  { %v8807_v32 = vadd.f32 %v8806_v43, %v8804_v36  ;;  %v11569_v50 = vor.u32 %v13619_v3, %v11566_v15  ;;  %v13547_v54 = vld [vmem:[#allocation7 + $0x504] sm:$0xf]  ;;  %v10769_v0 = vor.u32 %v13419_v35, %v10766_v41  ;;  %v11025_v63 = vor.u32 %v13483_v52, %v11022_v53 }
 0x512   :  { %7038 = vmatmul.bf16.vlgmr.msra.gmra.mxu0 %v14607_v48  ;;  %7051 = vmatmul.bf16.vlgmr.msra.gmra.mxu1 %v14609_v9  ;;  %v11278_v56 = vld [vmem:[#allocation7 + $0x520] sm:$0xf0]  ;;  %v3929_v59 = vmax.f32 %v3921_v46, 0.0  ;;  %v3930_v1 = vmax.f32 %v3922_v49, 0.0  ;;  %v11537_v42 = vor.u32 %v13611_v60, %v11534_v61  ;;  %v3931_v7 = vmax.f32 %v3923_v55, 0.0 }
 0x513   :  { %7064 = vmatmul.bf16.vlgmr.msra.gmra.mxu2 %v14611_v10  ;;  %7077 = vmatmul.bf16.vlgmr.msra.gmra.mxu3 %v14613_v22  ;;  %8808 = vst [vmem:[%s14882_s8] sm:$0x1] %v8807_v32  ;;  %v13411_v4 = vld [vmem:[#allocation7 + $0xc4] sm:$0xf]  ;;  %v11281_v38 = vor.u32 %v13547_v54, %v11278_v56  ;;  %v11473_v32 = vor.u32 %v13595_v29, %v11470_v30 }
 0x514   :  { %7134 = vmatpush.bf16.msra.mxu0 %v10865_v39  ;;  %7147 = vmatpush.bf16.msra.mxu1 %v11121_v8  ;;  %v13475_v2 = vld [vmem:[#allocation7 + $0x2c4] sm:$0xf]  ;;  %v3932_v39 = vmax.f32 %v3924_v57, 0.0  ;;  %v10737_v16 = vor.u32 %v13411_v4, %v10734_v62  ;;  %v14638_v25 = vpack.c.bf16 %v3931_v7, %v3931_v7 }
 0x515   :  { %7160 = vmatpush.bf16.msra.mxu2 %v11377_v18  ;;  %7173 = vmatpush.bf16.msra.mxu3 %v11633_v19  ;;  %v10990_v5 = vld [vmem:[#allocation7 + $0x2e0] sm:$0xf0]  ;;  %v14634_v18 = vpack.c.bf16 %v3929_v59, %v3929_v59  ;;  %v14636_v19 = vpack.c.bf16 %v3930_v1, %v3930_v1 }
 0x516   :  { %v13539_v14 = vld [vmem:[#allocation7 + $0x4c4] sm:$0xf]  ;;  %v10993_v17 = vor.u32 %v13475_v2, %v10990_v5  ;;  %v14640_v13 = vpack.c.bf16 %v3932_v39, %v3932_v39 }
 0x517   :  { %v11246_v28 = vld [vmem:[#allocation7 + $0x4e0] sm:$0xf0] }
 0x518   :  { %7135 = vmatpush.bf16.msra.mxu0 %v10833_v11  ;;  %7148 = vmatpush.bf16.msra.mxu1 %v11089_v27  ;;  %v13603_v8 = vld [vmem:[#allocation7 + $0x6c4] sm:$0xf]  ;;  %v11249_v23 = vor.u32 %v13539_v14, %v11246_v28 }
 0x519   :  { %7161 = vmatpush.bf16.msra.mxu2 %v11345_v47  ;;  %7174 = vmatpush.bf16.msra.mxu3 %v11601_v51  ;;  %v13403_v21 = vld [vmem:[#allocation7 + $0x84] sm:$0xf]  ;;  %v11505_v43 = vor.u32 %v13603_v8, %v11502_v12 }
 0x51a   :  { %v10702_v24 = vld [vmem:[#allocation7 + $0xa0] sm:$0xf0] }
 0x51b   :  { %v13467_v36 = vld [vmem:[#allocation7 + $0x284] sm:$0xf]  ;;  %v10705_v6 = vor.u32 %v13403_v21, %v10702_v24 }
 0x51c   :  { %7136 = vmatpush.bf16.msra.mxu0 %v10801_v33  ;;  %7149 = vmatpush.bf16.msra.mxu1 %v11057_v34  ;;  %v13531_v11 = vld [vmem:[#allocation7 + $0x484] sm:$0xf]  ;;  %v10961_v47 = vor.u32 %v13467_v36, %v10958_v26 }
 0x51d   :  { %7162 = vmatpush.bf16.msra.mxu2 %v11313_v20  ;;  %7175 = vmatpush.bf16.msra.mxu3 %v11569_v50  ;;  %v11214_v27 = vld [vmem:[#allocation7 + $0x4a0] sm:$0xf0] }
 0x51e   :  { %v13395_v51 = vld [vmem:[#allocation7 + $0x44] sm:$0xf]  ;;  %v11217_v31 = vor.u32 %v13531_v11, %v11214_v27 }
 0x51f   :  { %v13459_v3 = vld [vmem:[#allocation7 + $0x244] sm:$0xf]  ;;  %v10673_v46 = vor.u32 %v13395_v51, %v10670_v45 }
 0x520   :  { %7137 = vmatpush.bf16.msra.mxu0 %v10769_v0  ;;  %7150 = vmatpush.bf16.msra.mxu1 %v11025_v63  ;;  %v10926_v15 = vld [vmem:[#allocation7 + $0x260] sm:$0xf0] }
 0x521   :  { %7163 = vmatpush.bf16.msra.mxu2 %v11281_v38  ;;  %7176 = vmatpush.bf16.msra.mxu3 %v11537_v42  ;;  %v13523_v33 = vld [vmem:[#allocation7 + $0x444] sm:$0xf]  ;;  %v10929_v49 = vor.u32 %v13459_v3, %v10926_v15 }
 0x522   :  { %7090 = vmatmul.bf16.vlgmr.msrb.gmra.mxu0 %v14634_v18  ;;  %7103 = vmatmul.bf16.vlgmr.msrb.gmra.mxu1 %v14636_v19  ;;  %v11182_v34 = vld [vmem:[#allocation7 + $0x460] sm:$0xf0] }
 0x523   :  { %7116 = vmatmul.bf16.vlgmr.msrb.gmra.mxu2 %v14638_v25  ;;  %7129 = vmatmul.bf16.vlgmr.msrb.gmra.mxu3 %v14640_v13  ;;  %v13587_v20 = vld [vmem:[#allocation7 + $0x644] sm:$0xf]  ;;  %v11185_v54 = vor.u32 %v13523_v33, %v11182_v34 }
 0x524   :  { %7138 = vmatpush.bf16.msra.mxu0 %v10737_v16  ;;  %7151 = vmatpush.bf16.msra.mxu1 %v10993_v17  ;;  %v11438_v35 = vld [vmem:[#allocation7 + $0x660] sm:$0xf0] }
 0x525   :  { %7164 = vmatpush.bf16.msra.mxu2 %v11249_v23  ;;  %7177 = vmatpush.bf16.msra.mxu3 %v11505_v43  ;;  %v13387_v41 = vld [vmem:[#allocation7 + $0x4] sm:$0xf]  ;;  %v11441_v55 = vor.u32 %v13587_v20, %v11438_v35 }
 0x526   :  { %v10638_v50 = vld [vmem:[#allocation7 + $0x20] sm:$0xf0] }
 0x527   :  { %v13451_v52 = vld [vmem:[#allocation7 + $0x204] sm:$0xf]  ;;  %v10641_v1 = vor.u32 %v13387_v41, %v10638_v50 }
 0x528   :  { %7139 = vmatpush.bf16.msra.mxu0 %v10705_v6  ;;  %7152 = vmatpush.bf16.msra.mxu1 %v10961_v47  ;;  %v10894_v53 = vld [vmem:[#allocation7 + $0x220] sm:$0xf0] }
 0x529   :  { %7165 = vmatpush.bf16.msra.mxu2 %v11217_v31  ;;  %7178 = vmatpush.bf16.msra.mxu3 %v11473_v32  ;;  %v13515_v57 = vld [vmem:[#allocation7 + $0x404] sm:$0xf]  ;;  %v10897_v2 = vor.u32 %v13451_v52, %v10894_v53 }
 0x52a   :  { %v11150_v56 = vld [vmem:[#allocation7 + $0x420] sm:$0xf0] }
 0x52b   :  { %v13579_v60 = vld [vmem:[#allocation7 + $0x604] sm:$0xf]  ;;  %v11153_v7 = vor.u32 %v13515_v57, %v11150_v56 }
 0x52c   :  { %v11406_v61 = vld [vmem:[#allocation7 + $0x620] sm:$0xf0]  ;;  %7140 = vmatpush.bf16.msra.mxu0 %v10673_v46  ;;  %7153 = vmatpush.bf16.msra.mxu1 %v10929_v49 }
 0x52d   :  { %v13699_v4 = vld [vmem:[#allocation7 + $0x9c4] sm:$0xf]  ;;  %7166 = vmatpush.bf16.msra.mxu2 %v11185_v54  ;;  %7179 = vmatpush.bf16.msra.mxu3 %v11441_v55  ;;  %v11409_v39 = vor.u32 %v13579_v60, %v11406_v61 }
 0x52e   :  { %v11886_v62 = vld [vmem:[#allocation7 + $0x9e0] sm:$0xf0] }
 0x52f   :  { %v13763_v0 = vld [vmem:[#allocation7 + $0xbc4] sm:$0xf]  ;;  %v11889_v14 = vor.u32 %v13699_v4, %v11886_v62 }
 0x530   :  { %v12142_v63 = vld [vmem:[#allocation7 + $0xbe0] sm:$0xf0]  ;;  %7141 = vmatpush.bf16.msra.mxu0 %v10641_v1  ;;  %7154 = vmatpush.bf16.msra.mxu1 %v10897_v2 }
 0x531   :  { %v13827_v59 = vld [vmem:[#allocation7 + $0xdc4] sm:$0xf]  ;;  %v12145_v28 = vor.u32 %v13763_v0, %v12142_v63  ;;  %7167 = vmatpush.bf16.msra.mxu2 %v11153_v7  ;;  %7180 = vmatpush.bf16.msra.mxu3 %v11409_v39 }
 0x532   :  { %v12398_v5 = vld [vmem:[#allocation7 + $0xde0] sm:$0xf0] }
 0x533   :  { %v13891_v38 = vld [vmem:[#allocation7 + $0xfc4] sm:$0xf]  ;;  %v12401_v16 = vor.u32 %v13827_v59, %v12398_v5  ;;  %7142 = vmatmul.bf16.vlgmr.msra.gmra.mxu0 %v14607_v48  ;;  %7155 = vmatmul.bf16.vlgmr.msra.gmra.mxu1 %v14609_v9 }
 0x534   :  { %v12654_v42 = vld [vmem:[#allocation7 + $0xfe0] sm:$0xf0]  ;;  %7186 = vmatpush.bf16.msrb.mxu0 %v11889_v14  ;;  %7199 = vmatpush.bf16.msrb.mxu1 %v12145_v28 }
 0x535   :  { %v13691_v8 = vld [vmem:[#allocation7 + $0x984] sm:$0xf]  ;;  %v12657_v17 = vor.u32 %v13891_v38, %v12654_v42  ;;  %7212 = vmatpush.bf16.msrb.mxu2 %v12401_v16  ;;  %7181 = vmatmul.bf16.vlgmr.msra.gmra.mxu3 %v14613_v22 }
 0x536   :  { %v11854_v12 = vld [vmem:[#allocation7 + $0x9a0] sm:$0xf0]  ;;  %7168 = vmatmul.bf16.vlgmr.msra.gmra.mxu2 %v14611_v10 }
 0x537   :  { %v13755_v23 = vld [vmem:[#allocation7 + $0xb84] sm:$0xf]  ;;  %v11857_v11 = vor.u32 %v13691_v8, %v11854_v12  ;;  %7225 = vmatpush.bf16.msrb.mxu3 %v12657_v17 }
 0x538   :  { %v12110_v21 = vld [vmem:[#allocation7 + $0xba0] sm:$0xf0] }
 0x539   :  { %v13819_v24 = vld [vmem:[#allocation7 + $0xd84] sm:$0xf]  ;;  %v12113_v27 = vor.u32 %v13755_v23, %v12110_v21  ;;  %7187 = vmatpush.bf16.msrb.mxu0 %v11857_v11 }
 0x53a   :  { %v12366_v43 = vld [vmem:[#allocation7 + $0xda0] sm:$0xf0] }
 0x53b   :  { %v13883_v36 = vld [vmem:[#allocation7 + $0xf84] sm:$0xf]  ;;  %v12369_v6 = vor.u32 %v13819_v24, %v12366_v43  ;;  %7200 = vmatpush.bf16.msrb.mxu1 %v12113_v27 }
 0x53c   :  { %v12622_v26 = vld [vmem:[#allocation7 + $0xfa0] sm:$0xf0] }
 0x53d   :  { %v13683_v29 = vld [vmem:[#allocation7 + $0x944] sm:$0xf]  ;;  %v12625_v47 = vor.u32 %v13883_v36, %v12622_v26  ;;  %7213 = vmatpush.bf16.msrb.mxu2 %v12369_v6 }
 0x53e   :  { %v11822_v30 = vld [vmem:[#allocation7 + $0x960] sm:$0xf0] }
 0x53f   :  { %v13747_v51 = vld [vmem:[#allocation7 + $0xb44] sm:$0xf]  ;;  %v11825_v33 = vor.u32 %v13683_v29, %v11822_v30  ;;  %7226 = vmatpush.bf16.msrb.mxu3 %v12625_v47 }
 0x540   :  { %v12078_v45 = vld [vmem:[#allocation7 + $0xb60] sm:$0xf0] }
 0x541   :  { %v13811_v31 = vld [vmem:[#allocation7 + $0xd44] sm:$0xf]  ;;  %v12081_v34 = vor.u32 %v13747_v51, %v12078_v45  ;;  %7188 = vmatpush.bf16.msrb.mxu0 %v11825_v33 }
 0x542   :  { %v12334_v32 = vld [vmem:[#allocation7 + $0xd60] sm:$0xf0] }
 0x543   :  { %v13875_v3 = vld [vmem:[#allocation7 + $0xf44] sm:$0xf]  ;;  %v12337_v41 = vor.u32 %v13811_v31, %v12334_v32  ;;  %7201 = vmatpush.bf16.msrb.mxu1 %v12081_v34 }
 0x544   :  { %v12590_v15 = vld [vmem:[#allocation7 + $0xf60] sm:$0xf0] }
 0x545   :  { %v13675_v20 = vld [vmem:[#allocation7 + $0x904] sm:$0xf]  ;;  %v12593_v46 = vor.u32 %v13875_v3, %v12590_v15  ;;  %7214 = vmatpush.bf16.msrb.mxu2 %v12337_v41 }
 0x546   :  { %v11790_v35 = vld [vmem:[#allocation7 + $0x920] sm:$0xf0] }
 0x547   :  { %v13739_v49 = vld [vmem:[#allocation7 + $0xb04] sm:$0xf]  ;;  %v11793_v57 = vor.u32 %v13675_v20, %v11790_v35  ;;  %7227 = vmatpush.bf16.msrb.mxu3 %v12593_v46 }
 0x548   :  { %v12046_v50 = vld [vmem:[#allocation7 + $0xb20] sm:$0xf0] }
 0x549   :  { %v13803_v52 = vld [vmem:[#allocation7 + $0xd04] sm:$0xf]  ;;  %v12049_v56 = vor.u32 %v13739_v49, %v12046_v50  ;;  %7189 = vmatpush.bf16.msrb.mxu0 %v11793_v57  ;;  %v11380_v57 = vld [vmem:[#allocation7 + $0x5c8] sm:$0xf] }
 0x54a   :  { %v12302_v53 = vld [vmem:[#allocation7 + $0xd20] sm:$0xf0] }
 0x54b   :  { %v13867_v54 = vld [vmem:[#allocation7 + $0xf04] sm:$0xf]  ;;  %v12305_v4 = vor.u32 %v13803_v52, %v12302_v53  ;;  %7202 = vmatpush.bf16.msrb.mxu1 %v12049_v56  ;;  %v10868_v52 = vld [vmem:[#allocation7 + $0x1c8] sm:$0xf] }
 0x54c   :  { %v12558_v55 = vld [vmem:[#allocation7 + $0xf20] sm:$0xf0]  ;;  %v13448_v53 = vld [vmem:[#allocation7 + $0x1e4] sm:$0xf0] }
 0x54d   :  { %v13667_v60 = vld [vmem:[#allocation7 + $0x8c4] sm:$0xf]  ;;  %v12561_v62 = vor.u32 %v13867_v54, %v12558_v55  ;;  %7215 = vmatpush.bf16.msrb.mxu2 %v12305_v4  ;;  %v11124_v54 = vld [vmem:[#allocation7 + $0x3c8] sm:$0xf] }
 0x54e   :  { %v11758_v61 = vld [vmem:[#allocation7 + $0x8e0] sm:$0xf0]  ;;  %v13512_v55 = vld [vmem:[#allocation7 + $0x3e4] sm:$0xf0] }
 0x54f   :  { %v13731_v0 = vld [vmem:[#allocation7 + $0xac4] sm:$0xf]  ;;  %v11761_v38 = vor.u32 %v13667_v60, %v11758_v61  ;;  %7228 = vmatpush.bf16.msrb.mxu3 %v12561_v62  ;;  %v13576_v61 = vld [vmem:[#allocation7 + $0x5e4] sm:$0xf0] }
 0x550   :  { %v12014_v63 = vld [vmem:[#allocation7 + $0xae0] sm:$0xf0]  ;;  %v11636_v4 = vld [vmem:[#allocation7 + $0x7c8] sm:$0xf] }
 0x551   :  { %v13795_v59 = vld [vmem:[#allocation7 + $0xcc4] sm:$0xf]  ;;  %v12017_v42 = vor.u32 %v13731_v0, %v12014_v63  ;;  %7190 = vmatpush.bf16.msrb.mxu0 %v11761_v38  ;;  %v13640_v62 = vld [vmem:[#allocation7 + $0x7e4] sm:$0xf0]  ;;  %v11381_v38 = vor.u32 %v13576_v61, %v11380_v57 }
 0x552   :  { %v12270_v1 = vld [vmem:[#allocation7 + $0xce0] sm:$0xf0]  ;;  %v11252_v57 = vld [vmem:[#allocation7 + $0x4c8] sm:$0xf] }
 0x553   :  { %v13859_v2 = vld [vmem:[#allocation7 + $0xec4] sm:$0xf]  ;;  %v12273_v14 = vor.u32 %v13795_v59, %v12270_v1  ;;  %7203 = vmatpush.bf16.msrb.mxu1 %v12017_v42  ;;  %v10869_v59 = vor.u32 %v13448_v53, %v10868_v52  ;;  %v11125_v1 = vor.u32 %v13512_v55, %v11124_v54  ;;  %v11637_v42 = vor.u32 %v13640_v62, %v11636_v4  ;;  %v10996_v54 = vld [vmem:[#allocation7 + $0x2c8] sm:$0xf] }
 0x554   :  { %v12526_v5 = vld [vmem:[#allocation7 + $0xee0] sm:$0xf0]  ;;  %v13480_v55 = vld [vmem:[#allocation7 + $0x2e4] sm:$0xf0] }
 0x555   :  { %v13659_v7 = vld [vmem:[#allocation7 + $0x884] sm:$0xf]  ;;  %v12529_v28 = vor.u32 %v13859_v2, %v12526_v5  ;;  %7216 = vmatpush.bf16.msrb.mxu2 %v12273_v14  ;;  %v10836_v2 = vld [vmem:[#allocation7 + $0x188] sm:$0xf]  ;;  %v10997_v62 = vor.u32 %v13480_v55, %v10996_v54 }
 0x556   :  { %v11726_v39 = vld [vmem:[#allocation7 + $0x8a0] sm:$0xf0]  ;;  %v13440_v5 = vld [vmem:[#allocation7 + $0x1a4] sm:$0xf0] }
 0x557   :  { %v13723_v8 = vld [vmem:[#allocation7 + $0xa84] sm:$0xf]  ;;  %v11729_v24 = vor.u32 %v13659_v7, %v11726_v39  ;;  %7229 = vmatpush.bf16.msrb.mxu3 %v12529_v28  ;;  %v11092_v7 = vld [vmem:[#allocation7 + $0x388] sm:$0xf] }
 0x558   :  { %v11982_v12 = vld [vmem:[#allocation7 + $0xaa0] sm:$0xf0]  ;;  %v13504_v39 = vld [vmem:[#allocation7 + $0x3a4] sm:$0xf0] }
 0x559   :  { %v13787_v16 = vld [vmem:[#allocation7 + $0xc84] sm:$0xf]  ;;  %v11985_v43 = vor.u32 %v13723_v8, %v11982_v12  ;;  %7191 = vmatpush.bf16.msrb.mxu0 %v11729_v24  ;;  %v11348_v14 = vld [vmem:[#allocation7 + $0x588] sm:$0xf] }
 0x55a   :  { %v12238_v17 = vld [vmem:[#allocation7 + $0xca0] sm:$0xf0]  ;;  %v13568_v28 = vld [vmem:[#allocation7 + $0x5a4] sm:$0xf0] }
 0x55b   :  { %v13851_v23 = vld [vmem:[#allocation7 + $0xe84] sm:$0xf]  ;;  %v12241_v11 = vor.u32 %v13787_v16, %v12238_v17  ;;  %7204 = vmatpush.bf16.msrb.mxu1 %v11985_v43  ;;  %v11604_v8 = vld [vmem:[#allocation7 + $0x788] sm:$0xf]  ;;  %v10837_v16 = vor.u32 %v13440_v5, %v10836_v2  ;;  %v11093_v17 = vor.u32 %v13504_v39, %v11092_v7  ;;  %v11349_v24 = vor.u32 %v13568_v28, %v11348_v14 }
 0x55c   :  { %v12494_v21 = vld [vmem:[#allocation7 + $0xea0] sm:$0xf0]  ;;  %v13632_v12 = vld [vmem:[#allocation7 + $0x7a4] sm:$0xf0] }
 0x55d   :  { %v13651_v36 = vld [vmem:[#allocation7 + $0x844] sm:$0xf]  ;;  %v12497_v27 = vor.u32 %v13851_v23, %v12494_v21  ;;  %7217 = vmatpush.bf16.msrb.mxu2 %v12241_v11  ;;  %v10804_v23 = vld [vmem:[#allocation7 + $0x148] sm:$0xf]  ;;  %v11605_v43 = vor.u32 %v13632_v12, %v11604_v8 }
 0x55e   :  { %v11694_v26 = vld [vmem:[#allocation7 + $0x860] sm:$0xf0]  ;;  %v13432_v21 = vld [vmem:[#allocation7 + $0x164] sm:$0xf0] }
 0x55f   :  { %v13715_v29 = vld [vmem:[#allocation7 + $0xa44] sm:$0xf]  ;;  %v11697_v32 = vor.u32 %v13651_v36, %v11694_v26  ;;  %7230 = vmatpush.bf16.msrb.mxu3 %v12497_v27  ;;  %v11060_v36 = vld [vmem:[#allocation7 + $0x348] sm:$0xf] }
 0x560   :  { %v11950_v30 = vld [vmem:[#allocation7 + $0xa60] sm:$0xf0]  ;;  %v13496_v26 = vld [vmem:[#allocation7 + $0x364] sm:$0xf0] }
 0x561   :  { %v13779_v6 = vld [vmem:[#allocation7 + $0xc44] sm:$0xf]  ;;  %v11953_v3 = vor.u32 %v13715_v29, %v11950_v30  ;;  %7192 = vmatpush.bf16.msrb.mxu0 %v11697_v32  ;;  %v11316_v11 = vld [vmem:[#allocation7 + $0x548] sm:$0xf] }
 0x562   :  { %v12206_v47 = vld [vmem:[#allocation7 + $0xc60] sm:$0xf0]  ;;  %v13560_v27 = vld [vmem:[#allocation7 + $0x564] sm:$0xf0] }
 0x563   :  { %v13843_v51 = vld [vmem:[#allocation7 + $0xe44] sm:$0xf]  ;;  %v12209_v20 = vor.u32 %v13779_v6, %v12206_v47  ;;  %7205 = vmatpush.bf16.msrb.mxu1 %v11953_v3  ;;  %v11572_v29 = vld [vmem:[#allocation7 + $0x748] sm:$0xf]  ;;  %v10805_v6 = vor.u32 %v13432_v21, %v10804_v23  ;;  %v11061_v47 = vor.u32 %v13496_v26, %v11060_v36 }
 0x564   :  { %v12462_v45 = vld [vmem:[#allocation7 + $0xe60] sm:$0xf0]  ;;  %v13624_v30 = vld [vmem:[#allocation7 + $0x764] sm:$0xf0] }
 0x565   :  { %v13643_v31 = vld [vmem:[#allocation7 + $0x804] sm:$0xf]  ;;  %v12465_v35 = vor.u32 %v13843_v51, %v12462_v45  ;;  %7218 = vmatpush.bf16.msrb.mxu2 %v12209_v20  ;;  %v10772_v51 = vld [vmem:[#allocation7 + $0x108] sm:$0xf]  ;;  %v11573_v32 = vor.u32 %v13624_v30, %v11572_v29 }
 0x566   :  { %v11662_v15 = vld [vmem:[#allocation7 + $0x820] sm:$0xf0]  ;;  %v13424_v45 = vld [vmem:[#allocation7 + $0x124] sm:$0xf0] }
 0x567   :  { %v13707_v33 = vld [vmem:[#allocation7 + $0xa04] sm:$0xf]  ;;  %v11665_v56 = vor.u32 %v13643_v31, %v11662_v15  ;;  %7231 = vmatpush.bf16.msrb.mxu3 %v12465_v35  ;;  %v11317_v31 = vor.u32 %v13560_v27, %v11316_v11  ;;  %v11028_v3 = vld [vmem:[#allocation7 + $0x308] sm:$0xf] }
 0x568   :  { %v11918_v34 = vld [vmem:[#allocation7 + $0xa20] sm:$0xf0]  ;;  %v13488_v15 = vld [vmem:[#allocation7 + $0x324] sm:$0xf0] }
 0x569   :  { %v13771_v41 = vld [vmem:[#allocation7 + $0xc04] sm:$0xf]  ;;  %v11921_v60 = vor.u32 %v13707_v33, %v11918_v34  ;;  %7193 = vmatpush.bf16.msrb.mxu0 %v11665_v56  ;;  %v11284_v33 = vld [vmem:[#allocation7 + $0x508] sm:$0xf] }
 0x56a   :  { %v12174_v46 = vld [vmem:[#allocation7 + $0xc20] sm:$0xf0]  ;;  %v13552_v34 = vld [vmem:[#allocation7 + $0x524] sm:$0xf0] }
 0x56b   :  { %v13835_v49 = vld [vmem:[#allocation7 + $0xe04] sm:$0xf]  ;;  %v12177_v0 = vor.u32 %v13771_v41, %v12174_v46  ;;  %7206 = vmatpush.bf16.msrb.mxu1 %v11921_v60  ;;  %v11540_v20 = vld [vmem:[#allocation7 + $0x708] sm:$0xf]  ;;  %v10773_v41 = vor.u32 %v13424_v45, %v10772_v51  ;;  %v11029_v46 = vor.u32 %v13488_v15, %v11028_v3  ;;  %v11285_v52 = vor.u32 %v13552_v34, %v11284_v33 }
 0x56c   :  { %v12430_v50 = vld [vmem:[#allocation7 + $0xe20] sm:$0xf0]  ;;  %7194 = vmatmul.bf16.vlgmr.msrb.gmra.mxu0 %v14634_v18  ;;  %v13616_v35 = vld [vmem:[#allocation7 + $0x724] sm:$0xf0] }
 0x56d   :  { %v12433_v63 = vor.u32 %v13835_v49, %v12430_v50  ;;  %7219 = vmatpush.bf16.msrb.mxu2 %v12177_v0  ;;  %7238 = vmatpush.bf16.msra.mxu0 %v10869_v59  ;;  %v10740_v49 = vld [vmem:[#allocation7 + $0xc8] sm:$0xf]  ;;  %v11541_v53 = vor.u32 %v13616_v35, %v11540_v20 }
 0x56e   :  { %7207 = vmatmul.bf16.vlgmr.msrb.gmra.mxu1 %v14636_v19  ;;  %v13416_v50 = vld [vmem:[#allocation7 + $0xe4] sm:$0xf0] }
 0x56f   :  { %7232 = vmatpush.bf16.msrb.mxu3 %v12433_v63  ;;  %7251 = vmatpush.bf16.msra.mxu1 %v11125_v1  ;;  %v13544_v56 = vld [vmem:[#allocation7 + $0x4e4] sm:$0xf0]  ;;  %v10741_v4 = vor.u32 %v13416_v50, %v10740_v49 }
 0x570   :  { %7220 = vmatmul.bf16.vlgmr.msrb.gmra.mxu2 %v14638_v25  ;;  %v11508_v60 = vld [vmem:[#allocation7 + $0x6c8] sm:$0xf]  ;;  %v11253_v59 = vor.u32 %v13544_v56, %v11252_v57 }
 0x571   :  { %7264 = vmatpush.bf16.msra.mxu2 %v11381_v38  ;;  %7239 = vmatpush.bf16.msra.mxu0 %v10837_v16  ;;  %v13608_v61 = vld [vmem:[#allocation7 + $0x6e4] sm:$0xf0] }
 0x572   :  { %7233 = vmatmul.bf16.vlgmr.msrb.gmra.mxu3 %v14640_v13  ;;  %v10708_v0 = vld [vmem:[#allocation7 + $0x88] sm:$0xf]  ;;  %v11509_v1 = vor.u32 %v13608_v61, %v11508_v60 }
 0x573   :  { %7277 = vmatpush.bf16.msra.mxu3 %v11637_v42  ;;  %7252 = vmatpush.bf16.msra.mxu1 %v11093_v17  ;;  %v13408_v63 = vld [vmem:[#allocation7 + $0xa4] sm:$0xf0] }
 0x574   :  { %v10964_v2 = vld [vmem:[#allocation7 + $0x288] sm:$0xf]  ;;  %v10709_v14 = vor.u32 %v13408_v63, %v10708_v0 }
 0x575   :  { %7265 = vmatpush.bf16.msra.mxu2 %v11349_v24  ;;  %7240 = vmatpush.bf16.msra.mxu0 %v10805_v6  ;;  %v13472_v5 = vld [vmem:[#allocation7 + $0x2a4] sm:$0xf0] }
 0x576   :  { %v11220_v38 = vld [vmem:[#allocation7 + $0x488] sm:$0xf]  ;;  %v10965_v28 = vor.u32 %v13472_v5, %v10964_v2 }
 0x577   :  { %7278 = vmatpush.bf16.msra.mxu3 %v11605_v43  ;;  %7253 = vmatpush.bf16.msra.mxu1 %v11061_v47  ;;  %v13536_v42 = vld [vmem:[#allocation7 + $0x4a4] sm:$0xf0] }
 0x578   :  { %v11476_v7 = vld [vmem:[#allocation7 + $0x688] sm:$0xf]  ;;  %v11221_v16 = vor.u32 %v13536_v42, %v11220_v38 }
 0x579   :  { %7266 = vmatpush.bf16.msra.mxu2 %v11317_v31  ;;  %7241 = vmatpush.bf16.msra.mxu0 %v10773_v41  ;;  %v13600_v39 = vld [vmem:[#allocation7 + $0x6a4] sm:$0xf0] }
 0x57a   :  { %v10676_v8 = vld [vmem:[#allocation7 + $0x48] sm:$0xf]  ;;  %v11477_v17 = vor.u32 %v13600_v39, %v11476_v7 }
 0x57b   :  { %7279 = vmatpush.bf16.msra.mxu3 %v11573_v32  ;;  %7254 = vmatpush.bf16.msra.mxu1 %v11029_v46  ;;  %v13400_v12 = vld [vmem:[#allocation7 + $0x64] sm:$0xf0] }
 0x57c   :  { %v10932_v23 = vld [vmem:[#allocation7 + $0x248] sm:$0xf]  ;;  %v10677_v27 = vor.u32 %v13400_v12, %v10676_v8 }
 0x57d   :  { %7267 = vmatpush.bf16.msra.mxu2 %v11285_v52  ;;  %7242 = vmatpush.bf16.msra.mxu0 %v10741_v4  ;;  %v13464_v21 = vld [vmem:[#allocation7 + $0x264] sm:$0xf0] }
 0x57e   :  { %v11188_v24 = vld [vmem:[#allocation7 + $0x448] sm:$0xf]  ;;  %v10933_v29 = vor.u32 %v13464_v21, %v10932_v23 }
 0x57f   :  { %7280 = vmatpush.bf16.msra.mxu3 %v11541_v53  ;;  %7255 = vmatpush.bf16.msra.mxu1 %v10997_v62  ;;  %v13528_v43 = vld [vmem:[#allocation7 + $0x464] sm:$0xf0] }
 0x580   :  { %v11444_v36 = vld [vmem:[#allocation7 + $0x648] sm:$0xf]  ;;  %v11189_v51 = vor.u32 %v13528_v43, %v11188_v24 }
 0x581   :  { %7268 = vmatpush.bf16.msra.mxu2 %v11253_v59  ;;  %v13592_v26 = vld [vmem:[#allocation7 + $0x664] sm:$0xf0]  ;;  %7243 = vmatpush.bf16.msra.mxu0 %v10709_v14 }
 0x582   :  { %v10644_v11 = vld [vmem:[#allocation7 + $0x8] sm:$0xf]  ;;  %v11445_v45 = vor.u32 %v13592_v26, %v11444_v36 }
 0x583   :  { %7281 = vmatpush.bf16.msra.mxu3 %v11509_v1  ;;  %7256 = vmatpush.bf16.msra.mxu1 %v10965_v28  ;;  %v13392_v30 = vld [vmem:[#allocation7 + $0x24] sm:$0xf0] }
 0x584   :  { %v10900_v6 = vld [vmem:[#allocation7 + $0x208] sm:$0xf]  ;;  %v10645_v46 = vor.u32 %v13392_v30, %v10644_v11 }
 0x585   :  { %v13456_v47 = vld [vmem:[#allocation7 + $0x224] sm:$0xf0]  ;;  %7269 = vmatpush.bf16.msra.mxu2 %v11221_v16  ;;  %7244 = vmatpush.bf16.msra.mxu0 %v10677_v27 }
 0x586   :  { %v11156_v31 = vld [vmem:[#allocation7 + $0x408] sm:$0xf]  ;;  %v10901_v49 = vor.u32 %v13456_v47, %v10900_v6 }
 0x587   :  { %7282 = vmatpush.bf16.msra.mxu3 %v11477_v17  ;;  %v13520_v32 = vld [vmem:[#allocation7 + $0x424] sm:$0xf0]  ;;  %7257 = vmatpush.bf16.msra.mxu1 %v10933_v29 }
 0x588   :  { %v11412_v3 = vld [vmem:[#allocation7 + $0x608] sm:$0xf]  ;;  %v11157_v54 = vor.u32 %v13520_v32, %v11156_v31 }
 0x589   :  { %v13584_v15 = vld [vmem:[#allocation7 + $0x624] sm:$0xf0]  ;;  %7270 = vmatpush.bf16.msra.mxu2 %v11189_v51  ;;  %7245 = vmatpush.bf16.msra.mxu0 %v10645_v46 }
 0x58a   :  { %v11892_v33 = vld [vmem:[#allocation7 + $0x9c8] sm:$0xf]  ;;  %v11413_v55 = vor.u32 %v13584_v15, %v11412_v3 }
 0x58b   :  { %v13704_v34 = vld [vmem:[#allocation7 + $0x9e4] sm:$0xf0]  ;;  %7283 = vmatpush.bf16.msra.mxu3 %v11445_v45  ;;  %7258 = vmatpush.bf16.msra.mxu1 %v10901_v49 }
 0x58c   :  { %v12148_v20 = vld [vmem:[#allocation7 + $0xbc8] sm:$0xf]  ;;  %v11893_v57 = vor.u32 %v13704_v34, %v11892_v33  ;;  %7246 = vmatmul.bf16.vlgmr.msra.gmra.mxu0 %v14607_v48 }
 0x58d   :  { %v13768_v35 = vld [vmem:[#allocation7 + $0xbe4] sm:$0xf0]  ;;  %7271 = vmatpush.bf16.msra.mxu2 %v11157_v54 }
 0x58e   :  { %v12404_v41 = vld [vmem:[#allocation7 + $0xdc8] sm:$0xf]  ;;  %v12149_v56 = vor.u32 %v13768_v35, %v12148_v20  ;;  %7290 = vmatpush.bf16.msrb.mxu0 %v11893_v57  ;;  %7259 = vmatmul.bf16.vlgmr.msra.gmra.mxu1 %v14609_v9 }
 0x58f   :  { %v13832_v50 = vld [vmem:[#allocation7 + $0xde4] sm:$0xf0]  ;;  %7284 = vmatpush.bf16.msra.mxu3 %v11413_v55 }
 0x590   :  { %v12660_v52 = vld [vmem:[#allocation7 + $0xfc8] sm:$0xf]  ;;  %v12405_v4 = vor.u32 %v13832_v50, %v12404_v41  ;;  %7303 = vmatpush.bf16.msrb.mxu1 %v12149_v56  ;;  %7272 = vmatmul.bf16.vlgmr.msra.gmra.mxu2 %v14611_v10 }
 0x591   :  { %v13896_v53 = vld [vmem:[#allocation7 + $0xfe4] sm:$0xf0] }
 0x592   :  { %v11860_v60 = vld [vmem:[#allocation7 + $0x988] sm:$0xf]  ;;  %v12661_v62 = vor.u32 %v13896_v53, %v12660_v52  ;;  %7316 = vmatpush.bf16.msrb.mxu2 %v12405_v4  ;;  %7285 = vmatmul.bf16.vlgmr.msra.gmra.mxu3 %v14613_v22 }
 0x593   :  { %v13696_v61 = vld [vmem:[#allocation7 + $0x9a4] sm:$0xf0] }
 0x594   :  { %v12116_v0 = vld [vmem:[#allocation7 + $0xb88] sm:$0xf]  ;;  %v11861_v38 = vor.u32 %v13696_v61, %v11860_v60  ;;  %7329 = vmatpush.bf16.msrb.mxu3 %v12661_v62 }
 0x595   :  { %v13760_v63 = vld [vmem:[#allocation7 + $0xba4] sm:$0xf0] }
 0x596   :  { %v12372_v59 = vld [vmem:[#allocation7 + $0xd88] sm:$0xf]  ;;  %v12117_v42 = vor.u32 %v13760_v63, %v12116_v0  ;;  %7291 = vmatpush.bf16.msrb.mxu0 %v11861_v38 }
 0x597   :  { %v13824_v1 = vld [vmem:[#allocation7 + $0xda4] sm:$0xf0] }
 0x598   :  { %v12628_v2 = vld [vmem:[#allocation7 + $0xf88] sm:$0xf]  ;;  %v12373_v14 = vor.u32 %v13824_v1, %v12372_v59  ;;  %7304 = vmatpush.bf16.msrb.mxu1 %v12117_v42 }
 0x599   :  { %v13888_v5 = vld [vmem:[#allocation7 + $0xfa4] sm:$0xf0] }
 0x59a   :  { %v11828_v7 = vld [vmem:[#allocation7 + $0x948] sm:$0xf]  ;;  %v12629_v28 = vor.u32 %v13888_v5, %v12628_v2  ;;  %7317 = vmatpush.bf16.msrb.mxu2 %v12373_v14 }
 0x59b   :  { %v13688_v39 = vld [vmem:[#allocation7 + $0x964] sm:$0xf0] }
 0x59c   :  { %v12084_v8 = vld [vmem:[#allocation7 + $0xb48] sm:$0xf]  ;;  %v11829_v24 = vor.u32 %v13688_v39, %v11828_v7  ;;  %7330 = vmatpush.bf16.msrb.mxu3 %v12629_v28 }
 0x59d   :  { %v13752_v12 = vld [vmem:[#allocation7 + $0xb64] sm:$0xf0] }
 0x59e   :  { %v12340_v16 = vld [vmem:[#allocation7 + $0xd48] sm:$0xf]  ;;  %v12085_v43 = vor.u32 %v13752_v12, %v12084_v8  ;;  %7292 = vmatpush.bf16.msrb.mxu0 %v11829_v24 }
 0x59f   :  { %v13816_v17 = vld [vmem:[#allocation7 + $0xd64] sm:$0xf0] }
 0x5a0   :  { %v12596_v23 = vld [vmem:[#allocation7 + $0xf48] sm:$0xf]  ;;  %v12341_v11 = vor.u32 %v13816_v17, %v12340_v16  ;;  %7305 = vmatpush.bf16.msrb.mxu1 %v12085_v43 }
 0x5a1   :  { %v13880_v21 = vld [vmem:[#allocation7 + $0xf64] sm:$0xf0] }
 0x5a2   :  { %v11796_v36 = vld [vmem:[#allocation7 + $0x908] sm:$0xf]  ;;  %v12597_v27 = vor.u32 %v13880_v21, %v12596_v23  ;;  %7318 = vmatpush.bf16.msrb.mxu2 %v12341_v11 }
 0x5a3   :  { %v13680_v26 = vld [vmem:[#allocation7 + $0x924] sm:$0xf0] }
 0x5a4   :  { %v12052_v29 = vld [vmem:[#allocation7 + $0xb08] sm:$0xf]  ;;  %v11797_v31 = vor.u32 %v13680_v26, %v11796_v36  ;;  %7331 = vmatpush.bf16.msrb.mxu3 %v12597_v27 }
 0x5a5   :  { %v13744_v30 = vld [vmem:[#allocation7 + $0xb24] sm:$0xf0] }
 0x5a6   :  { %v12308_v6 = vld [vmem:[#allocation7 + $0xd08] sm:$0xf]  ;;  %v12053_v32 = vor.u32 %v13744_v30, %v12052_v29  ;;  %7293 = vmatpush.bf16.msrb.mxu0 %v11797_v31  ;;  %v13572_v31 = vld [vmem:[#allocation7 + $0x5cc] sm:$0xf] }
 0x5a7   :  { %v13808_v47 = vld [vmem:[#allocation7 + $0xd24] sm:$0xf0] }
 0x5a8   :  { %v12564_v51 = vld [vmem:[#allocation7 + $0xf08] sm:$0xf]  ;;  %v12309_v33 = vor.u32 %v13808_v47, %v12308_v6  ;;  %7306 = vmatpush.bf16.msrb.mxu1 %v12053_v32  ;;  %v13444_v6 = vld [vmem:[#allocation7 + $0x1cc] sm:$0xf] }
 0x5a9   :  { %v13872_v45 = vld [vmem:[#allocation7 + $0xf24] sm:$0xf0]  ;;  %v10870_v47 = vld [vmem:[#allocation7 + $0x1e8] sm:$0xf0] }
 0x5aa   :  { %v11764_v3 = vld [vmem:[#allocation7 + $0x8c8] sm:$0xf]  ;;  %v12565_v34 = vor.u32 %v13872_v45, %v12564_v51  ;;  %7319 = vmatpush.bf16.msrb.mxu2 %v12309_v33  ;;  %v13508_v51 = vld [vmem:[#allocation7 + $0x3cc] sm:$0xf] }
 0x5ab   :  { %v13672_v15 = vld [vmem:[#allocation7 + $0x8e4] sm:$0xf0]  ;;  %v11126_v45 = vld [vmem:[#allocation7 + $0x3e8] sm:$0xf0] }
 0x5ac   :  { %v12020_v20 = vld [vmem:[#allocation7 + $0xac8] sm:$0xf]  ;;  %v11765_v52 = vor.u32 %v13672_v15, %v11764_v3  ;;  %7332 = vmatpush.bf16.msrb.mxu3 %v12565_v34  ;;  %v11382_v34 = vld [vmem:[#allocation7 + $0x5e8] sm:$0xf0] }
 0x5ad   :  { %v13736_v35 = vld [vmem:[#allocation7 + $0xae4] sm:$0xf0] }
 0x5ae   :  { %v12276_v41 = vld [vmem:[#allocation7 + $0xcc8] sm:$0xf]  ;;  %v12021_v53 = vor.u32 %v13736_v35, %v12020_v20  ;;  %7294 = vmatpush.bf16.msrb.mxu0 %v11765_v52  ;;  %v13636_v20 = vld [vmem:[#allocation7 + $0x7cc] sm:$0xf] }
 0x5af   :  { %v13800_v46 = vld [vmem:[#allocation7 + $0xce4] sm:$0xf0]  ;;  %v11638_v35 = vld [vmem:[#allocation7 + $0x7e8] sm:$0xf0] }
 0x5b0   :  { %v12532_v49 = vld [vmem:[#allocation7 + $0xec8] sm:$0xf]  ;;  %v12277_v57 = vor.u32 %v13800_v46, %v12276_v41  ;;  %7307 = vmatpush.bf16.msrb.mxu1 %v12021_v53  ;;  %v13436_v52 = vld [vmem:[#allocation7 + $0x18c] sm:$0xf] }
 0x5b1   :  { %v13864_v50 = vld [vmem:[#allocation7 + $0xee4] sm:$0xf0]  ;;  %v10838_v53 = vld [vmem:[#allocation7 + $0x1a8] sm:$0xf0] }
 0x5b2   :  { %v11732_v54 = vld [vmem:[#allocation7 + $0x888] sm:$0xf]  ;;  %v12533_v56 = vor.u32 %v13864_v50, %v12532_v49  ;;  %7320 = vmatpush.bf16.msrb.mxu2 %v12277_v57  ;;  %v10873_v49 = vor.u32 %v13444_v6, %v10870_v47  ;;  %v11129_v50 = vor.u32 %v13508_v51, %v11126_v45  ;;  %v11641_v57 = vor.u32 %v13636_v20, %v11638_v35  ;;  %v11286_v47 = vld [vmem:[#allocation7 + $0x528] sm:$0xf0] }
 0x5b3   :  { %v13664_v55 = vld [vmem:[#allocation7 + $0x8a4] sm:$0xf0]  ;;  %v13612_v51 = vld [vmem:[#allocation7 + $0x70c] sm:$0xf] }
 0x5b4   :  { %v11988_v60 = vld [vmem:[#allocation7 + $0xa88] sm:$0xf]  ;;  %v11733_v59 = vor.u32 %v13664_v55, %v11732_v54  ;;  %7333 = vmatpush.bf16.msrb.mxu3 %v12533_v56  ;;  %v11385_v55 = vor.u32 %v13572_v31, %v11382_v34  ;;  %v13500_v56 = vld [vmem:[#allocation7 + $0x38c] sm:$0xf] }
 0x5b5   :  { %v13728_v61 = vld [vmem:[#allocation7 + $0xaa4] sm:$0xf0]  ;;  %v11542_v45 = vld [vmem:[#allocation7 + $0x728] sm:$0xf0] }
 0x5b6   :  { %v12244_v4 = vld [vmem:[#allocation7 + $0xc88] sm:$0xf]  ;;  %v11989_v1 = vor.u32 %v13728_v61, %v11988_v60  ;;  %7295 = vmatpush.bf16.msrb.mxu0 %v11733_v59  ;;  %v11094_v60 = vld [vmem:[#allocation7 + $0x3a8] sm:$0xf0]  ;;  %v11545_v34 = vor.u32 %v13612_v51, %v11542_v45 }
 0x5b7   :  { %v13792_v62 = vld [vmem:[#allocation7 + $0xca4] sm:$0xf0]  ;;  %v13564_v61 = vld [vmem:[#allocation7 + $0x58c] sm:$0xf]  ;;  %v11097_v59 = vor.u32 %v13500_v56, %v11094_v60 }
 0x5b8   :  { %v12500_v0 = vld [vmem:[#allocation7 + $0xe88] sm:$0xf]  ;;  %v12245_v38 = vor.u32 %v13792_v62, %v12244_v4  ;;  %7308 = vmatpush.bf16.msrb.mxu1 %v11989_v1  ;;  %v11350_v4 = vld [vmem:[#allocation7 + $0x5a8] sm:$0xf0] }
 0x5b9   :  { %v13856_v63 = vld [vmem:[#allocation7 + $0xea4] sm:$0xf0]  ;;  %v13628_v62 = vld [vmem:[#allocation7 + $0x78c] sm:$0xf] }
 0x5ba   :  { %v11700_v2 = vld [vmem:[#allocation7 + $0x848] sm:$0xf]  ;;  %v12501_v42 = vor.u32 %v13856_v63, %v12500_v0  ;;  %7321 = vmatpush.bf16.msrb.mxu2 %v12245_v38  ;;  %v11606_v0 = vld [vmem:[#allocation7 + $0x7a8] sm:$0xf0]  ;;  %v10841_v63 = vor.u32 %v13436_v52, %v10838_v53  ;;  %v11353_v38 = vor.u32 %v13564_v61, %v11350_v4 }
 0x5bb   :  { %v13656_v5 = vld [vmem:[#allocation7 + $0x864] sm:$0xf0]  ;;  %v13428_v1 = vld [vmem:[#allocation7 + $0x14c] sm:$0xf] }
 0x5bc   :  { %v11956_v7 = vld [vmem:[#allocation7 + $0xa48] sm:$0xf]  ;;  %v11701_v24 = vor.u32 %v13656_v5, %v11700_v2  ;;  %7334 = vmatpush.bf16.msrb.mxu3 %v12501_v42  ;;  %v10806_v2 = vld [vmem:[#allocation7 + $0x168] sm:$0xf0]  ;;  %v11609_v42 = vor.u32 %v13628_v62, %v11606_v0 }
 0x5bd   :  { %v13720_v39 = vld [vmem:[#allocation7 + $0xa64] sm:$0xf0]  ;;  %v13476_v20 = vld [vmem:[#allocation7 + $0x2cc] sm:$0xf] }
 0x5be   :  { %v12212_v14 = vld [vmem:[#allocation7 + $0xc48] sm:$0xf]  ;;  %v11957_v43 = vor.u32 %v13720_v39, %v11956_v7  ;;  %7296 = vmatpush.bf16.msrb.mxu0 %v11701_v24  ;;  %v13492_v7 = vld [vmem:[#allocation7 + $0x34c] sm:$0xf] }
 0x5bf   :  { %v13784_v28 = vld [vmem:[#allocation7 + $0xc64] sm:$0xf0]  ;;  %v11062_v39 = vld [vmem:[#allocation7 + $0x368] sm:$0xf0] }
 0x5c0   :  { %v12468_v8 = vld [vmem:[#allocation7 + $0xe48] sm:$0xf]  ;;  %v12213_v27 = vor.u32 %v13784_v28, %v12212_v14  ;;  %7309 = vmatpush.bf16.msrb.mxu1 %v11957_v43  ;;  %v13556_v14 = vld [vmem:[#allocation7 + $0x54c] sm:$0xf] }
 0x5c1   :  { %v13848_v12 = vld [vmem:[#allocation7 + $0xe64] sm:$0xf0]  ;;  %v11318_v28 = vld [vmem:[#allocation7 + $0x568] sm:$0xf0] }
 0x5c2   :  { %v11668_v16 = vld [vmem:[#allocation7 + $0x808] sm:$0xf]  ;;  %v12469_v29 = vor.u32 %v13848_v12, %v12468_v8  ;;  %7322 = vmatpush.bf16.msrb.mxu2 %v12213_v27  ;;  %v13620_v8 = vld [vmem:[#allocation7 + $0x74c] sm:$0xf] }
 0x5c3   :  { %v13648_v17 = vld [vmem:[#allocation7 + $0x824] sm:$0xf0]  ;;  %v11574_v12 = vld [vmem:[#allocation7 + $0x768] sm:$0xf0] }
 0x5c4   :  { %v11924_v23 = vld [vmem:[#allocation7 + $0xa08] sm:$0xf]  ;;  %v11669_v15 = vor.u32 %v13648_v17, %v11668_v16  ;;  %7335 = vmatpush.bf16.msrb.mxu3 %v12469_v29  ;;  %v7039_v16 = vpop.f32.mrf.mxu0  ;;  %v7052_v17 = vpop.f32.mrf.mxu1  ;;  %v13420_v43 = vld [vmem:[#allocation7 + $0x10c] sm:$0xf] }
 0x5c5   :  { %v13712_v21 = vld [vmem:[#allocation7 + $0xa24] sm:$0xf0]  ;;  %v13484_v27 = vld [vmem:[#allocation7 + $0x30c] sm:$0xf] }
 0x5c6   :  { %v12180_v36 = vld [vmem:[#allocation7 + $0xc08] sm:$0xf]  ;;  %v11925_v33 = vor.u32 %v13712_v21, %v11924_v23  ;;  %7297 = vmatpush.bf16.msrb.mxu0 %v11669_v15  ;;  %v10809_v23 = vor.u32 %v13428_v1, %v10806_v2  ;;  %v11065_v21 = vor.u32 %v13492_v7, %v11062_v39  ;;  %v11030_v29 = vld [vmem:[#allocation7 + $0x328] sm:$0xf0] }
 0x5c7   :  { %v13776_v26 = vld [vmem:[#allocation7 + $0xc24] sm:$0xf0]  ;;  %v10742_v15 = vld [vmem:[#allocation7 + $0xe8] sm:$0xf0] }
 0x5c8   :  { %v12436_v11 = vld [vmem:[#allocation7 + $0xe08] sm:$0xf]  ;;  %v12181_v41 = vor.u32 %v13776_v26, %v12180_v36  ;;  %7310 = vmatpush.bf16.msrb.mxu1 %v11925_v33  ;;  %v10774_v36 = vld [vmem:[#allocation7 + $0x128] sm:$0xf0]  ;;  %v11321_v26 = vor.u32 %v13556_v14, %v11318_v28 }
 0x5c9   :  { %v13840_v30 = vld [vmem:[#allocation7 + $0xe24] sm:$0xf0]  ;;  %7298 = vmatmul.bf16.vlgmr.msrb.gmra.mxu0 %v14634_v18  ;;  %v10777_v31 = vor.u32 %v13420_v43, %v10774_v36  ;;  %v10998_v35 = vld [vmem:[#allocation7 + $0x2e8] sm:$0xf0] }
 0x5ca   :  { %v161_v32 = vld [vmem:[#allocation8] ss:$8 sm:$0xf]  ;;  %v12437_v46 = vor.u32 %v13840_v30, %v12436_v11  ;;  %7323 = vmatpush.bf16.msrb.mxu2 %v12181_v41  ;;  %7342 = vmatpush.bf16.msra.mxu0 %v10873_v49  ;;  %v11577_v11 = vor.u32 %v13620_v8, %v11574_v12  ;;  %v13548_v30 = vld [vmem:[#allocation7 + $0x50c] sm:$0xf]  ;;  %v7078_v49 = vpop.f32.mrf.mxu3  ;;  %v11001_v61 = vor.u32 %v13476_v20, %v10998_v35 }
 0x5cb   :  { %v162_v3 = vld [vmem:[#allocation8] ss:$8 sm:$0xf0]  ;;  %7311 = vmatmul.bf16.vlgmr.msrb.gmra.mxu1 %v14636_v19  ;;  %v11289_v33 = vor.u32 %v13548_v30, %v11286_v47  ;;  %v13540_v41 = vld [vmem:[#allocation7 + $0x4cc] sm:$0xf] }
 0x5cc   :  { %v14658_v54 = vor.u32 %v162_v3, %v161_v32  ;;  %7336 = vmatpush.bf16.msrb.mxu3 %v12437_v46  ;;  %7355 = vmatpush.bf16.msra.mxu1 %v11129_v50  ;;  %v11033_v32 = vor.u32 %v13484_v27, %v11030_v29  ;;  %v13412_v3 = vld [vmem:[#allocation7 + $0xcc] sm:$0xf]  ;;  %v7065_v46 = vpop.f32.mrf.mxu2  ;;  %v7054_v56 = vpop.f32.mrf.mxu1 }
 0x5cd   :  { %7324 = vmatmul.bf16.vlgmr.msrb.gmra.mxu2 %v14638_v25  ;;  %v11254_v50 = vld [vmem:[#allocation7 + $0x4e8] sm:$0xf0]  ;;  %v10745_v60 = vor.u32 %v13412_v3, %v10742_v15 }
 0x5ce   :  { %v4454_v5 = vperm.slane %v14658_v54, 0  ;;  %7368 = vmatpush.bf16.msra.mxu2 %v11385_v55  ;;  %7343 = vmatpush.bf16.msra.mxu0 %v10841_v63  ;;  %v13604_v52 = vld [vmem:[#allocation7 + $0x6cc] sm:$0xf]  ;;  %v11257_v63 = vor.u32 %v13540_v41, %v11254_v50 }
 0x5cf   :  { %7337 = vmatmul.bf16.vlgmr.msrb.gmra.mxu3 %v14640_v13  ;;  %v11510_v53 = vld [vmem:[#allocation7 + $0x6e8] sm:$0xf0] }
 0x5d0   :  { %7381 = vmatpush.bf16.msra.mxu3 %v11641_v57  ;;  %7356 = vmatpush.bf16.msra.mxu1 %v11097_v59  ;;  %v7040_v24 = vadd.f32 %v7039_v16, %v4454_v5  ;;  %v7041_v57 = vpop.f32.mrf.mxu0  ;;  %v13404_v4 = vld [vmem:[#allocation7 + $0x8c] sm:$0xf]  ;;  %v11513_v59 = vor.u32 %v13604_v52, %v11510_v53 }
 0x5d1   :  { %v10710_v62 = vld [vmem:[#allocation7 + $0xa8] sm:$0xf0] }
 0x5d2   :  { %7369 = vmatpush.bf16.msra.mxu2 %v11353_v38  ;;  %v7053_v6 = vadd.f32 %v7052_v17, %v7040_v24  ;;  %7344 = vmatpush.bf16.msra.mxu0 %v10809_v23  ;;  %v13468_v1 = vld [vmem:[#allocation7 + $0x28c] sm:$0xf]  ;;  %v10713_v39 = vor.u32 %v13404_v4, %v10710_v62  ;;  %v7080_v43 = vpop.f32.mrf.mxu3 }
 0x5d3   :  { %v10966_v2 = vld [vmem:[#allocation7 + $0x2a8] sm:$0xf0] }
 0x5d4   :  { %7382 = vmatpush.bf16.msra.mxu3 %v11609_v42  ;;  %7357 = vmatpush.bf16.msra.mxu1 %v11065_v21  ;;  %v7066_v55 = vadd.f32 %v7065_v46, %v7053_v6  ;;  %v13532_v5 = vld [vmem:[#allocation7 + $0x48c] sm:$0xf]  ;;  %v10969_v14 = vor.u32 %v13468_v1, %v10966_v2  ;;  %v7067_v24 = vpop.f32.mrf.mxu2  ;;  %v7104_v29 = vpop.f32.mrf.mxu1 }
 0x5d5   :  { %v11222_v38 = vld [vmem:[#allocation7 + $0x4a8] sm:$0xf0] }
 0x5d6   :  { %7370 = vmatpush.bf16.msra.mxu2 %v11321_v26  ;;  %7345 = vmatpush.bf16.msra.mxu0 %v10777_v31  ;;  %v7079_v0 = vadd.f32 %v7078_v49, %v7066_v55  ;;  %v13596_v42 = vld [vmem:[#allocation7 + $0x68c] sm:$0xf]  ;;  %v11225_v12 = vor.u32 %v13532_v5, %v11222_v38 }
 0x5d7   :  { %v11478_v7 = vld [vmem:[#allocation7 + $0x6a8] sm:$0xf0] }
 0x5d8   :  { %7383 = vmatpush.bf16.msra.mxu3 %v11577_v11  ;;  %7358 = vmatpush.bf16.msra.mxu1 %v11033_v32  ;;  %v13396_v28 = vld [vmem:[#allocation7 + $0x4c] sm:$0xf]  ;;  %v11481_v16 = vor.u32 %v13596_v42, %v11478_v7  ;;  %v7091_v27 = vpop.f32.mrf.mxu0 }
 0x5d9   :  { %v10678_v8 = vld [vmem:[#allocation7 + $0x68] sm:$0xf0]  ;;  %v7092_v51 = vadd.f32 %v7091_v27, %v7079_v0 }
 0x5da   :  { %7371 = vmatpush.bf16.msra.mxu2 %v11289_v33  ;;  %7346 = vmatpush.bf16.msra.mxu0 %v10745_v60  ;;  %v13460_v17 = vld [vmem:[#allocation7 + $0x24c] sm:$0xf]  ;;  %v10681_v6 = vor.u32 %v13396_v28, %v10678_v8  ;;  %v7130_v1 = vpop.f32.mrf.mxu3 }
 0x5db   :  { %v10934_v23 = vld [vmem:[#allocation7 + $0x268] sm:$0xf0]  ;;  %v7105_v35 = vadd.f32 %v7104_v29, %v7092_v51 }
 0x5dc   :  { %7384 = vmatpush.bf16.msra.mxu3 %v11545_v34  ;;  %7359 = vmatpush.bf16.msra.mxu1 %v11001_v61  ;;  %v13524_v21 = vld [vmem:[#allocation7 + $0x44c] sm:$0xf]  ;;  %v10937_v47 = vor.u32 %v13460_v17, %v10934_v23 }
 0x5dd   :  { %v11190_v36 = vld [vmem:[#allocation7 + $0x468] sm:$0xf0] }
 0x5de   :  { %7372 = vmatpush.bf16.msra.mxu2 %v11257_v63  ;;  %v13588_v26 = vld [vmem:[#allocation7 + $0x64c] sm:$0xf]  ;;  %7347 = vmatpush.bf16.msra.mxu0 %v10713_v39  ;;  %v11193_v3 = vor.u32 %v13524_v21, %v11190_v36 }
 0x5df   :  { %v11446_v11 = vld [vmem:[#allocation7 + $0x668] sm:$0xf0] }
 0x5e0   :  { %7385 = vmatpush.bf16.msra.mxu3 %v11513_v59  ;;  %v13388_v30 = vld [vmem:[#allocation7 + $0xc] sm:$0xf]  ;;  %7360 = vmatpush.bf16.msra.mxu1 %v10969_v14  ;;  %v11449_v15 = vor.u32 %v13588_v26, %v11446_v11  ;;  %v7117_v59 = vpop.f32.mrf.mxu2  ;;  %v7093_v39 = vpop.f32.mrf.mxu0 }
 0x5e1   :  { %v10646_v45 = vld [vmem:[#allocation7 + $0x28] sm:$0xf0]  ;;  %v7118_v7 = vadd.f32 %v7117_v59, %v7105_v35  ;;  %v7106_v14 = vpop.f32.mrf.mxu1 }
 0x5e2   :  { %v13452_v31 = vld [vmem:[#allocation7 + $0x20c] sm:$0xf]  ;;  %7373 = vmatpush.bf16.msra.mxu2 %v11225_v12  ;;  %7348 = vmatpush.bf16.msra.mxu0 %v10681_v6  ;;  %v10649_v55 = vor.u32 %v13388_v30, %v10646_v45 }
 0x5e3   :  { %v10902_v32 = vld [vmem:[#allocation7 + $0x228] sm:$0xf0]  ;;  %v14665_v21 = vadd.f32 %v7130_v1, %v7118_v7 }
 0x5e4   :  { %7386 = vmatpush.bf16.msra.mxu3 %v11481_v16  ;;  %v13516_v33 = vld [vmem:[#allocation7 + $0x40c] sm:$0xf]  ;;  %7361 = vmatpush.bf16.msra.mxu1 %v10937_v47  ;;  %v10905_v57 = vor.u32 %v13452_v31, %v10902_v32 }
 0x5e5   :  { %v11158_v34 = vld [vmem:[#allocation7 + $0x428] sm:$0xf0] }
 0x5e6   :  { %v13580_v20 = vld [vmem:[#allocation7 + $0x60c] sm:$0xf]  ;;  %7374 = vmatpush.bf16.msra.mxu2 %v11193_v3  ;;  %v11161_v4 = vor.u32 %v13516_v33, %v11158_v34  ;;  %7349 = vmatpush.bf16.msra.mxu0 %v10649_v55  ;;  %v4455_v33 = vperm.slane %v14658_v54, 1 }
 0x5e7   :  { %v11414_v41 = vld [vmem:[#allocation7 + $0x628] sm:$0xf0] }
 0x5e8   :  { %v13700_v46 = vld [vmem:[#allocation7 + $0x9cc] sm:$0xf]  ;;  %7387 = vmatpush.bf16.msra.mxu3 %v11449_v15  ;;  %v11417_v62 = vor.u32 %v13580_v20, %v11414_v41  ;;  %7362 = vmatpush.bf16.msra.mxu1 %v10905_v57  ;;  %v7119_v3 = vpop.f32.mrf.mxu2  ;;  %v7132_v15 = vpop.f32.mrf.mxu3 }
 0x5e9   :  { %v11894_v49 = vld [vmem:[#allocation7 + $0x9e8] sm:$0xf0]  ;;  %7350 = vmatmul.bf16.vlgmr.msra.gmra.mxu0 %v14607_v48  ;;  %v7143_v57 = vpop.f32.mrf.mxu0 }
 0x5ea   :  { %v13764_v50 = vld [vmem:[#allocation7 + $0xbcc] sm:$0xf]  ;;  %v11897_v0 = vor.u32 %v13700_v46, %v11894_v49  ;;  %7375 = vmatpush.bf16.msra.mxu2 %v11161_v4 }
 0x5eb   :  { %v12150_v52 = vld [vmem:[#allocation7 + $0xbe8] sm:$0xf0]  ;;  %7363 = vmatmul.bf16.vlgmr.msra.gmra.mxu1 %v14609_v9 }
 0x5ec   :  { %v13828_v53 = vld [vmem:[#allocation7 + $0xdcc] sm:$0xf]  ;;  %v12153_v63 = vor.u32 %v13764_v50, %v12150_v52  ;;  %7388 = vmatpush.bf16.msra.mxu3 %v11417_v62  ;;  %7394 = vmatpush.bf16.msrb.mxu0 %v11897_v0 }
 0x5ed   :  { %v12406_v56 = vld [vmem:[#allocation7 + $0xde8] sm:$0xf0]  ;;  %7376 = vmatmul.bf16.vlgmr.msra.gmra.mxu2 %v14611_v10 }
 0x5ee   :  { %v13892_v60 = vld [vmem:[#allocation7 + $0xfcc] sm:$0xf]  ;;  %v12409_v38 = vor.u32 %v13828_v53, %v12406_v56  ;;  %7407 = vmatpush.bf16.msrb.mxu1 %v12153_v63  ;;  %v7156_v56 = vpop.f32.mrf.mxu1 }
 0x5ef   :  { %v12662_v61 = vld [vmem:[#allocation7 + $0xfe8] sm:$0xf0]  ;;  %7389 = vmatmul.bf16.vlgmr.msra.gmra.mxu3 %v14613_v22 }
 0x5f0   :  { %v13692_v2 = vld [vmem:[#allocation7 + $0x98c] sm:$0xf]  ;;  %v12665_v42 = vor.u32 %v13892_v60, %v12662_v61  ;;  %7420 = vmatpush.bf16.msrb.mxu2 %v12409_v38  ;;  %v7144_v60 = vadd.f32 %v7143_v57, %v4455_v33 }
 0x5f1   :  { %v11862_v5 = vld [vmem:[#allocation7 + $0x9a8] sm:$0xf0] }
 0x5f2   :  { %v13756_v28 = vld [vmem:[#allocation7 + $0xb8c] sm:$0xf]  ;;  %v11865_v24 = vor.u32 %v13692_v2, %v11862_v5  ;;  %7433 = vmatpush.bf16.msrb.mxu3 %v12665_v42  ;;  %v7157_v38 = vadd.f32 %v7156_v56, %v7144_v60 }
 0x5f3   :  { %v12118_v8 = vld [vmem:[#allocation7 + $0xba8] sm:$0xf0] }
 0x5f4   :  { %v13820_v12 = vld [vmem:[#allocation7 + $0xd8c] sm:$0xf]  ;;  %v12121_v43 = vor.u32 %v13756_v28, %v12118_v8  ;;  %7395 = vmatpush.bf16.msrb.mxu0 %v11865_v24 }
 0x5f5   :  { %v12374_v16 = vld [vmem:[#allocation7 + $0xda8] sm:$0xf0] }
 0x5f6   :  { %v13884_v17 = vld [vmem:[#allocation7 + $0xf8c] sm:$0xf]  ;;  %v12377_v11 = vor.u32 %v13820_v12, %v12374_v16  ;;  %7408 = vmatpush.bf16.msrb.mxu1 %v12121_v43 }
 0x5f7   :  { %v12630_v23 = vld [vmem:[#allocation7 + $0xfa8] sm:$0xf0] }
 0x5f8   :  { %v13684_v36 = vld [vmem:[#allocation7 + $0x94c] sm:$0xf]  ;;  %v12633_v27 = vor.u32 %v13884_v17, %v12630_v23  ;;  %7421 = vmatpush.bf16.msrb.mxu2 %v12377_v11 }
 0x5f9   :  { %v11830_v26 = vld [vmem:[#allocation7 + $0x968] sm:$0xf0] }
 0x5fa   :  { %v13748_v29 = vld [vmem:[#allocation7 + $0xb4c] sm:$0xf]  ;;  %v11833_v31 = vor.u32 %v13684_v36, %v11830_v26  ;;  %7434 = vmatpush.bf16.msrb.mxu3 %v12633_v27  ;;  %v7169_v36 = vpop.f32.mrf.mxu2  ;;  %v7182_v26 = vpop.f32.mrf.mxu3 }
 0x5fb   :  { %v12086_v30 = vld [vmem:[#allocation7 + $0xb68] sm:$0xf0] }
 0x5fc   :  { %v13812_v6 = vld [vmem:[#allocation7 + $0xd4c] sm:$0xf]  ;;  %v12089_v32 = vor.u32 %v13748_v29, %v12086_v30  ;;  %7396 = vmatpush.bf16.msrb.mxu0 %v11833_v31  ;;  %v7170_v30 = vadd.f32 %v7169_v36, %v7157_v38  ;;  %v11132_v38 = vld [vmem:[#allocation7 + $0x3d0] sm:$0xf] }
 0x5fd   :  { %v12342_v47 = vld [vmem:[#allocation7 + $0xd68] sm:$0xf0]  ;;  %v13441_v36 = vld [vmem:[#allocation7 + $0x1ac] sm:$0xf0] }
 0x5fe   :  { %v13876_v51 = vld [vmem:[#allocation7 + $0xf4c] sm:$0xf]  ;;  %v12345_v35 = vor.u32 %v13812_v6, %v12342_v47  ;;  %7409 = vmatpush.bf16.msrb.mxu1 %v12089_v32  ;;  %v7145_v6 = vpop.f32.mrf.mxu0  ;;  %v7158_v47 = vpop.f32.mrf.mxu1  ;;  %v14672_v3 = vadd.f32 %v7182_v26, %v7170_v30  ;;  %v11356_v30 = vld [vmem:[#allocation7 + $0x590] sm:$0xf] }
 0x5ff   :  { %v12598_v45 = vld [vmem:[#allocation7 + $0xf68] sm:$0xf0]  ;;  %v13569_v6 = vld [vmem:[#allocation7 + $0x5ac] sm:$0xf0] }
 0x600   :  { %v13676_v34 = vld [vmem:[#allocation7 + $0x90c] sm:$0xf]  ;;  %v12601_v41 = vor.u32 %v13876_v51, %v12598_v45  ;;  %7422 = vmatpush.bf16.msrb.mxu2 %v12345_v35  ;;  %v11612_v47 = vld [vmem:[#allocation7 + $0x790] sm:$0xf] }
 0x601   :  { %v11798_v20 = vld [vmem:[#allocation7 + $0x928] sm:$0xf0] }
 0x602   :  { %v13740_v46 = vld [vmem:[#allocation7 + $0xb0c] sm:$0xf]  ;;  %v11801_v61 = vor.u32 %v13676_v34, %v11798_v20  ;;  %7435 = vmatpush.bf16.msrb.mxu3 %v12601_v41 }
 0x603   :  { %v12054_v49 = vld [vmem:[#allocation7 + $0xb28] sm:$0xf0] }
 0x604   :  { %v13804_v50 = vld [vmem:[#allocation7 + $0xd0c] sm:$0xf]  ;;  %v12057_v4 = vor.u32 %v13740_v46, %v12054_v49  ;;  %7397 = vmatpush.bf16.msrb.mxu0 %v11801_v61 }
 0x605   :  { %v12310_v52 = vld [vmem:[#allocation7 + $0xd28] sm:$0xf0] }
 0x606   :  { %v13868_v53 = vld [vmem:[#allocation7 + $0xf0c] sm:$0xf]  ;;  %v12313_v63 = vor.u32 %v13804_v50, %v12310_v52  ;;  %7410 = vmatpush.bf16.msrb.mxu1 %v12057_v4 }
 0x607   :  { %v12566_v55 = vld [vmem:[#allocation7 + $0xf28] sm:$0xf0] }
 0x608   :  { %v13668_v62 = vld [vmem:[#allocation7 + $0x8cc] sm:$0xf]  ;;  %v12569_v59 = vor.u32 %v13868_v53, %v12566_v55  ;;  %7423 = vmatpush.bf16.msrb.mxu2 %v12313_v63  ;;  %v7171_v63 = vpop.f32.mrf.mxu2 }
 0x609   :  { %v11766_v0 = vld [vmem:[#allocation7 + $0x8e8] sm:$0xf0]  ;;  %v11548_v63 = vld [vmem:[#allocation7 + $0x710] sm:$0xf] }
 0x60a   :  { %v13732_v1 = vld [vmem:[#allocation7 + $0xacc] sm:$0xf]  ;;  %v11769_v14 = vor.u32 %v13668_v62, %v11766_v0  ;;  %7436 = vmatpush.bf16.msrb.mxu3 %v12569_v59  ;;  %v7184_v59 = vpop.f32.mrf.mxu3 }
 0x60b   :  { %v12022_v2 = vld [vmem:[#allocation7 + $0xae8] sm:$0xf0]  ;;  %v13617_v59 = vld [vmem:[#allocation7 + $0x72c] sm:$0xf0] }
 0x60c   :  { %v13796_v5 = vld [vmem:[#allocation7 + $0xccc] sm:$0xf]  ;;  %v12025_v28 = vor.u32 %v13732_v1, %v12022_v2  ;;  %7398 = vmatpush.bf16.msrb.mxu0 %v11769_v14  ;;  %v10876_v2 = vld [vmem:[#allocation7 + $0x1d0] sm:$0xf] }
 0x60d   :  { %v12278_v42 = vld [vmem:[#allocation7 + $0xce8] sm:$0xf0] }
 0x60e   :  { %v13860_v7 = vld [vmem:[#allocation7 + $0xecc] sm:$0xf]  ;;  %v12281_v16 = vor.u32 %v13796_v5, %v12278_v42  ;;  %7411 = vmatpush.bf16.msrb.mxu1 %v12025_v28  ;;  %v13449_v5 = vld [vmem:[#allocation7 + $0x1ec] sm:$0xf0] }
 0x60f   :  { %v12534_v39 = vld [vmem:[#allocation7 + $0xee8] sm:$0xf0]  ;;  %v13513_v42 = vld [vmem:[#allocation7 + $0x3ec] sm:$0xf0] }
 0x610   :  { %v13660_v8 = vld [vmem:[#allocation7 + $0x88c] sm:$0xf]  ;;  %v12537_v17 = vor.u32 %v13860_v7, %v12534_v39  ;;  %7424 = vmatpush.bf16.msrb.mxu2 %v12281_v16  ;;  %v11388_v7 = vld [vmem:[#allocation7 + $0x5d0] sm:$0xf] }
 0x611   :  { %v11734_v12 = vld [vmem:[#allocation7 + $0x8a8] sm:$0xf0]  ;;  %v13577_v28 = vld [vmem:[#allocation7 + $0x5ec] sm:$0xf0] }
 0x612   :  { %v13724_v23 = vld [vmem:[#allocation7 + $0xa8c] sm:$0xf]  ;;  %v11737_v51 = vor.u32 %v13660_v8, %v11734_v12  ;;  %7437 = vmatpush.bf16.msrb.mxu3 %v12537_v17  ;;  %v11644_v8 = vld [vmem:[#allocation7 + $0x7d0] sm:$0xf]  ;;  %v11389_v26 = vor.u32 %v13577_v28, %v11388_v7  ;;  %v11549_v28 = vor.u32 %v13617_v59, %v11548_v63 }
 0x613   :  { %v11990_v24 = vld [vmem:[#allocation7 + $0xaa8] sm:$0xf0]  ;;  %v13641_v12 = vld [vmem:[#allocation7 + $0x7ec] sm:$0xf0] }
 0x614   :  { %v13788_v43 = vld [vmem:[#allocation7 + $0xc8c] sm:$0xf]  ;;  %v11993_v45 = vor.u32 %v13724_v23, %v11990_v24  ;;  %7399 = vmatpush.bf16.msrb.mxu0 %v11737_v51  ;;  %v10877_v23 = vor.u32 %v13449_v5, %v10876_v2  ;;  %v11133_v24 = vor.u32 %v13513_v42, %v11132_v38  ;;  %v13633_v51 = vld [vmem:[#allocation7 + $0x7ac] sm:$0xf0]  ;;  %v7208_v2 = vpop.f32.mrf.mxu1 }
 0x615   :  { %v12246_v11 = vld [vmem:[#allocation7 + $0xca8] sm:$0xf0]  ;;  %v10748_v7 = vld [vmem:[#allocation7 + $0xd0] sm:$0xf] }
 0x616   :  { %v13852_v27 = vld [vmem:[#allocation7 + $0xe8c] sm:$0xf]  ;;  %v12249_v15 = vor.u32 %v13788_v43, %v12246_v11  ;;  %7412 = vmatpush.bf16.msrb.mxu1 %v11993_v45  ;;  %v10844_v43 = vld [vmem:[#allocation7 + $0x190] sm:$0xf]  ;;  %v11645_v11 = vor.u32 %v13641_v12, %v11644_v8 }
 0x617   :  { %v12502_v29 = vld [vmem:[#allocation7 + $0xea8] sm:$0xf0]  ;;  %v10845_v45 = vor.u32 %v13441_v36, %v10844_v43  ;;  %v11004_v8 = vld [vmem:[#allocation7 + $0x2d0] sm:$0xf] }
 0x618   :  { %v13652_v31 = vld [vmem:[#allocation7 + $0x84c] sm:$0xf]  ;;  %v12505_v33 = vor.u32 %v13852_v27, %v12502_v29  ;;  %7425 = vmatpush.bf16.msrb.mxu2 %v12249_v15  ;;  %v11100_v27 = vld [vmem:[#allocation7 + $0x390] sm:$0xf] }
 0x619   :  { %v11702_v32 = vld [vmem:[#allocation7 + $0x868] sm:$0xf0]  ;;  %v13505_v29 = vld [vmem:[#allocation7 + $0x3ac] sm:$0xf0] }
 0x61a   :  { %v13716_v34 = vld [vmem:[#allocation7 + $0xa4c] sm:$0xf]  ;;  %v11705_v52 = vor.u32 %v13652_v31, %v11702_v32  ;;  %7438 = vmatpush.bf16.msrb.mxu3 %v12505_v33  ;;  %v11101_v31 = vor.u32 %v13505_v29, %v11100_v27  ;;  %v10812_v32 = vld [vmem:[#allocation7 + $0x150] sm:$0xf]  ;;  %v11357_v33 = vor.u32 %v13569_v6, %v11356_v30 }
 0x61b   :  { %v11958_v20 = vld [vmem:[#allocation7 + $0xa68] sm:$0xf0]  ;;  %v13433_v15 = vld [vmem:[#allocation7 + $0x16c] sm:$0xf0] }
 0x61c   :  { %v13780_v35 = vld [vmem:[#allocation7 + $0xc4c] sm:$0xf]  ;;  %v11961_v53 = vor.u32 %v13716_v34, %v11958_v20  ;;  %7400 = vmatpush.bf16.msrb.mxu0 %v11705_v52  ;;  %v11613_v34 = vor.u32 %v13633_v51, %v11612_v47  ;;  %v11068_v20 = vld [vmem:[#allocation7 + $0x350] sm:$0xf]  ;;  %v10813_v52 = vor.u32 %v13433_v15, %v10812_v32  ;;  %v7221_v51 = vpop.f32.mrf.mxu2 }
 0x61d   :  { %v12214_v41 = vld [vmem:[#allocation7 + $0xc68] sm:$0xf0]  ;;  %v13481_v12 = vld [vmem:[#allocation7 + $0x2ec] sm:$0xf0] }
 0x61e   :  { %v13844_v46 = vld [vmem:[#allocation7 + $0xe4c] sm:$0xf]  ;;  %v12217_v60 = vor.u32 %v13780_v35, %v12214_v41  ;;  %7413 = vmatpush.bf16.msrb.mxu1 %v11961_v53  ;;  %v13497_v35 = vld [vmem:[#allocation7 + $0x36c] sm:$0xf0] }
 0x61f   :  { %v12470_v49 = vld [vmem:[#allocation7 + $0xe68] sm:$0xf0]  ;;  %v11324_v41 = vld [vmem:[#allocation7 + $0x550] sm:$0xf]  ;;  %v11069_v53 = vor.u32 %v13497_v35, %v11068_v20  ;;  %v7210_v20 = vpop.f32.mrf.mxu1 }
 0x620   :  { %v13644_v50 = vld [vmem:[#allocation7 + $0x80c] sm:$0xf]  ;;  %v12473_v61 = vor.u32 %v13844_v46, %v12470_v49  ;;  %7426 = vmatpush.bf16.msrb.mxu2 %v12217_v60  ;;  %v13561_v46 = vld [vmem:[#allocation7 + $0x56c] sm:$0xf0] }
 0x621   :  { %v11670_v55 = vld [vmem:[#allocation7 + $0x828] sm:$0xf0]  ;;  %v11580_v49 = vld [vmem:[#allocation7 + $0x750] sm:$0xf] }
 0x622   :  { %v13708_v57 = vld [vmem:[#allocation7 + $0xa0c] sm:$0xf]  ;;  %v11673_v39 = vor.u32 %v13644_v50, %v11670_v55  ;;  %7439 = vmatpush.bf16.msrb.mxu3 %v12473_v61  ;;  %v13625_v50 = vld [vmem:[#allocation7 + $0x76c] sm:$0xf0] }
 0x623   :  { %v11926_v56 = vld [vmem:[#allocation7 + $0xa28] sm:$0xf0]  ;;  %v10780_v55 = vld [vmem:[#allocation7 + $0x110] sm:$0xf]  ;;  %v11581_v60 = vor.u32 %v13625_v50, %v11580_v49 }
 0x624   :  { %v13772_v4 = vld [vmem:[#allocation7 + $0xc0c] sm:$0xf]  ;;  %v11929_v14 = vor.u32 %v13708_v57, %v11926_v56  ;;  %7401 = vmatpush.bf16.msrb.mxu0 %v11673_v39  ;;  %v13425_v57 = vld [vmem:[#allocation7 + $0x12c] sm:$0xf0]  ;;  %v11325_v56 = vor.u32 %v13561_v46, %v11324_v41 }
 0x625   :  { %v12182_v62 = vld [vmem:[#allocation7 + $0xc28] sm:$0xf0]  ;;  %v11036_v61 = vld [vmem:[#allocation7 + $0x310] sm:$0xf]  ;;  %v10781_v38 = vor.u32 %v13425_v57, %v10780_v55 }
 0x626   :  { %v13836_v0 = vld [vmem:[#allocation7 + $0xe0c] sm:$0xf]  ;;  %v12185_v16 = vor.u32 %v13772_v4, %v12182_v62  ;;  %7414 = vmatpush.bf16.msrb.mxu1 %v11929_v14  ;;  %v13489_v4 = vld [vmem:[#allocation7 + $0x32c] sm:$0xf0] }
 0x627   :  { %v12438_v1 = vld [vmem:[#allocation7 + $0xe28] sm:$0xf0]  ;;  %7402 = vmatmul.bf16.vlgmr.msrb.gmra.mxu0 %v14634_v18  ;;  %v11292_v62 = vld [vmem:[#allocation7 + $0x510] sm:$0xf]  ;;  %v11037_v42 = vor.u32 %v13489_v4, %v11036_v61 }
 0x628   :  { %v12441_v17 = vor.u32 %v13836_v0, %v12438_v1  ;;  %7427 = vmatpush.bf16.msrb.mxu2 %v12185_v16  ;;  %7446 = vmatpush.bf16.msra.mxu0 %v10877_v23  ;;  %v13553_v0 = vld [vmem:[#allocation7 + $0x52c] sm:$0xf0]  ;;  %v7195_v1 = vpop.f32.mrf.mxu0 }
 0x629   :  { %7415 = vmatmul.bf16.vlgmr.msrb.gmra.mxu1 %v14636_v19  ;;  %v7196_v5 = vadd.f32 %v7195_v1, %v14672_v3  ;;  %v13417_v39 = vld [vmem:[#allocation7 + $0xec] sm:$0xf0]  ;;  %v11293_v14 = vor.u32 %v13553_v0, %v11292_v62 }
 0x62a   :  { %7440 = vmatpush.bf16.msrb.mxu3 %v12441_v17  ;;  %7459 = vmatpush.bf16.msra.mxu1 %v11133_v24  ;;  %v11260_v16 = vld [vmem:[#allocation7 + $0x4d0] sm:$0xf]  ;;  %v10749_v36 = vor.u32 %v13417_v39, %v10748_v7 }
 0x62b   :  { %7428 = vmatmul.bf16.vlgmr.msrb.gmra.mxu2 %v14638_v25  ;;  %v7209_v17 = vadd.f32 %v7208_v2, %v7196_v5  ;;  %v13545_v23 = vld [vmem:[#allocation7 + $0x4ec] sm:$0xf0] }
 0x62c   :  { %7472 = vmatpush.bf16.msra.mxu2 %v11389_v26  ;;  %7447 = vmatpush.bf16.msra.mxu0 %v10845_v45  ;;  %v11516_v24 = vld [vmem:[#allocation7 + $0x6d0] sm:$0xf]  ;;  %v11005_v26 = vor.u32 %v13481_v12, %v11004_v8  ;;  %v11261_v27 = vor.u32 %v13545_v23, %v11260_v16  ;;  %v7234_v45 = vpop.f32.mrf.mxu3 }
 0x62d   :  { %7441 = vmatmul.bf16.vlgmr.msrb.gmra.mxu3 %v14640_v13  ;;  %v13609_v43 = vld [vmem:[#allocation7 + $0x6ec] sm:$0xf0] }
 0x62e   :  { %7485 = vmatpush.bf16.msra.mxu3 %v11645_v11  ;;  %7460 = vmatpush.bf16.msra.mxu1 %v11101_v31  ;;  %v10716_v3 = vld [vmem:[#allocation7 + $0x90] sm:$0xf]  ;;  %v11517_v29 = vor.u32 %v13609_v43, %v11516_v24 }
 0x62f   :  { %v13409_v11 = vld [vmem:[#allocation7 + $0xac] sm:$0xf0] }
 0x630   :  { %7473 = vmatpush.bf16.msra.mxu2 %v11357_v33  ;;  %7448 = vmatpush.bf16.msra.mxu0 %v10813_v52  ;;  %v10972_v30 = vld [vmem:[#allocation7 + $0x290] sm:$0xf]  ;;  %v7222_v33 = vadd.f32 %v7221_v51, %v7209_v17  ;;  %v10717_v35 = vor.u32 %v13409_v11, %v10716_v3 }
 0x631   :  { %v13473_v6 = vld [vmem:[#allocation7 + $0x2ac] sm:$0xf0] }
 0x632   :  { %7486 = vmatpush.bf16.msra.mxu3 %v11613_v34  ;;  %7461 = vmatpush.bf16.msra.mxu1 %v11069_v53  ;;  %v11228_v47 = vld [vmem:[#allocation7 + $0x490] sm:$0xf]  ;;  %v7197_v34 = vpop.f32.mrf.mxu0  ;;  %v10973_v41 = vor.u32 %v13473_v6, %v10972_v30  ;;  %v14679_v50 = vadd.f32 %v7234_v45, %v7222_v33 }
 0x633   :  { %v13537_v31 = vld [vmem:[#allocation7 + $0x4ac] sm:$0xf0] }
 0x634   :  { %7474 = vmatpush.bf16.msra.mxu2 %v11325_v56  ;;  %7449 = vmatpush.bf16.msra.mxu0 %v10781_v38  ;;  %v11484_v32 = vld [vmem:[#allocation7 + $0x690] sm:$0xf]  ;;  %v11229_v52 = vor.u32 %v13537_v31, %v11228_v47 }
 0x635   :  { %v13601_v15 = vld [vmem:[#allocation7 + $0x6ac] sm:$0xf0] }
 0x636   :  { %7487 = vmatpush.bf16.msra.mxu3 %v11581_v60  ;;  %7462 = vmatpush.bf16.msra.mxu1 %v11037_v42  ;;  %v10684_v46 = vld [vmem:[#allocation7 + $0x50] sm:$0xf]  ;;  %v11485_v53 = vor.u32 %v13601_v15, %v11484_v32 }
 0x637   :  { %v13401_v49 = vld [vmem:[#allocation7 + $0x6c] sm:$0xf0] }
 0x638   :  { %7475 = vmatpush.bf16.msra.mxu2 %v11293_v14  ;;  %7450 = vmatpush.bf16.msra.mxu0 %v10749_v36  ;;  %v10940_v55 = vld [vmem:[#allocation7 + $0x250] sm:$0xf]  ;;  %v10685_v0 = vor.u32 %v13401_v49, %v10684_v46  ;;  %v7223_v14 = vpop.f32.mrf.mxu2 }
 0x639   :  { %v13465_v57 = vld [vmem:[#allocation7 + $0x26c] sm:$0xf0] }
 0x63a   :  { %7488 = vmatpush.bf16.msra.mxu3 %v11549_v28  ;;  %7463 = vmatpush.bf16.msra.mxu1 %v11005_v26  ;;  %v11196_v56 = vld [vmem:[#allocation7 + $0x450] sm:$0xf]  ;;  %v10941_v63 = vor.u32 %v13465_v57, %v10940_v55  ;;  %v7236_v28 = vpop.f32.mrf.mxu3 }
 0x63b   :  { %v13529_v60 = vld [vmem:[#allocation7 + $0x46c] sm:$0xf0] }
 0x63c   :  { %7476 = vmatpush.bf16.msra.mxu2 %v11261_v27  ;;  %v11452_v61 = vld [vmem:[#allocation7 + $0x650] sm:$0xf]  ;;  %7451 = vmatpush.bf16.msra.mxu0 %v10717_v35  ;;  %v11197_v5 = vor.u32 %v13529_v60, %v11196_v56 }
 0x63d   :  { %v13593_v4 = vld [vmem:[#allocation7 + $0x66c] sm:$0xf0] }
 0x63e   :  { %7489 = vmatpush.bf16.msra.mxu3 %v11517_v29  ;;  %v10652_v62 = vld [vmem:[#allocation7 + $0x10] sm:$0xf]  ;;  %7464 = vmatpush.bf16.msra.mxu1 %v10973_v41  ;;  %v11453_v38 = vor.u32 %v13593_v4, %v11452_v61 }
 0x63f   :  { %v13393_v59 = vld [vmem:[#allocation7 + $0x2c] sm:$0xf0] }
 0x640   :  { %v10908_v1 = vld [vmem:[#allocation7 + $0x210] sm:$0xf]  ;;  %7477 = vmatpush.bf16.msra.mxu2 %v11229_v52  ;;  %7452 = vmatpush.bf16.msra.mxu0 %v10685_v0  ;;  %v10653_v43 = vor.u32 %v13393_v59, %v10652_v62  ;;  %v4456_v59 = vperm.slane %v14658_v54, 2 }
 0x641   :  { %v13457_v2 = vld [vmem:[#allocation7 + $0x22c] sm:$0xf0] }
 0x642   :  { %7490 = vmatpush.bf16.msra.mxu3 %v11485_v53  ;;  %v11164_v42 = vld [vmem:[#allocation7 + $0x410] sm:$0xf]  ;;  %7465 = vmatpush.bf16.msra.mxu1 %v10941_v63  ;;  %v10909_v36 = vor.u32 %v13457_v2, %v10908_v1 }
 0x643   :  { %v13521_v7 = vld [vmem:[#allocation7 + $0x42c] sm:$0xf0] }
 0x644   :  { %v11420_v39 = vld [vmem:[#allocation7 + $0x610] sm:$0xf]  ;;  %7478 = vmatpush.bf16.msra.mxu2 %v11197_v5  ;;  %v11165_v27 = vor.u32 %v13521_v7, %v11164_v42  ;;  %7453 = vmatpush.bf16.msra.mxu0 %v10653_v43 }
 0x645   :  { %v13585_v8 = vld [vmem:[#allocation7 + $0x62c] sm:$0xf0] }
 0x646   :  { %v11900_v12 = vld [vmem:[#allocation7 + $0x9d0] sm:$0xf]  ;;  %7491 = vmatpush.bf16.msra.mxu3 %v11453_v38  ;;  %v11421_v29 = vor.u32 %v13585_v8, %v11420_v39  ;;  %7466 = vmatpush.bf16.msra.mxu1 %v10909_v36 }
 0x647   :  { %v13705_v16 = vld [vmem:[#allocation7 + $0x9ec] sm:$0xf0]  ;;  %7454 = vmatmul.bf16.vlgmr.msra.gmra.mxu0 %v14607_v48 }
 0x648   :  { %v12156_v17 = vld [vmem:[#allocation7 + $0xbd0] sm:$0xf]  ;;  %v11901_v30 = vor.u32 %v13705_v16, %v11900_v12  ;;  %7479 = vmatpush.bf16.msra.mxu2 %v11165_v27  ;;  %v7247_v12 = vpop.f32.mrf.mxu0  ;;  %v7260_v16 = vpop.f32.mrf.mxu1 }
 0x649   :  { %v13769_v23 = vld [vmem:[#allocation7 + $0xbec] sm:$0xf0]  ;;  %7467 = vmatmul.bf16.vlgmr.msra.gmra.mxu1 %v14609_v9 }
 0x64a   :  { %v12412_v24 = vld [vmem:[#allocation7 + $0xdd0] sm:$0xf]  ;;  %v12157_v6 = vor.u32 %v13769_v23, %v12156_v17  ;;  %7492 = vmatpush.bf16.msra.mxu3 %v11421_v29  ;;  %7498 = vmatpush.bf16.msrb.mxu0 %v11901_v30  ;;  %v7248_v17 = vadd.f32 %v7247_v12, %v4456_v59 }
 0x64b   :  { %v13833_v26 = vld [vmem:[#allocation7 + $0xdec] sm:$0xf0]  ;;  %7480 = vmatmul.bf16.vlgmr.msra.gmra.mxu2 %v14611_v10 }
 0x64c   :  { %v12668_v3 = vld [vmem:[#allocation7 + $0xfd0] sm:$0xf]  ;;  %v12413_v45 = vor.u32 %v13833_v26, %v12412_v24  ;;  %7511 = vmatpush.bf16.msrb.mxu1 %v12157_v6  ;;  %v7261_v30 = vadd.f32 %v7260_v16, %v7248_v17 }
 0x64d   :  { %v13897_v11 = vld [vmem:[#allocation7 + $0xfec] sm:$0xf0]  ;;  %7493 = vmatmul.bf16.vlgmr.msra.gmra.mxu3 %v14613_v22 }
 0x64e   :  { %v11868_v47 = vld [vmem:[#allocation7 + $0x990] sm:$0xf]  ;;  %v12669_v31 = vor.u32 %v13897_v11, %v12668_v3  ;;  %7524 = vmatpush.bf16.msrb.mxu2 %v12413_v45 }
 0x64f   :  { %v13697_v51 = vld [vmem:[#allocation7 + $0x9ac] sm:$0xf0] }
 0x650   :  { %v12124_v32 = vld [vmem:[#allocation7 + $0xb90] sm:$0xf]  ;;  %v11869_v41 = vor.u32 %v13697_v51, %v11868_v47  ;;  %7537 = vmatpush.bf16.msrb.mxu3 %v12669_v31 }
 0x651   :  { %v13761_v15 = vld [vmem:[#allocation7 + $0xbac] sm:$0xf0] }
 0x652   :  { %v12380_v33 = vld [vmem:[#allocation7 + $0xd90] sm:$0xf]  ;;  %v12125_v46 = vor.u32 %v13761_v15, %v12124_v32  ;;  %7499 = vmatpush.bf16.msrb.mxu0 %v11869_v41 }
 0x653   :  { %v13825_v34 = vld [vmem:[#allocation7 + $0xdac] sm:$0xf0] }
 0x654   :  { %v12636_v20 = vld [vmem:[#allocation7 + $0xf90] sm:$0xf]  ;;  %v12381_v53 = vor.u32 %v13825_v34, %v12380_v33  ;;  %7512 = vmatpush.bf16.msrb.mxu1 %v12125_v46  ;;  %v7273_v46 = vpop.f32.mrf.mxu2 }
 0x655   :  { %v13889_v35 = vld [vmem:[#allocation7 + $0xfac] sm:$0xf0] }
 0x656   :  { %v11836_v49 = vld [vmem:[#allocation7 + $0x950] sm:$0xf]  ;;  %v12637_v55 = vor.u32 %v13889_v35, %v12636_v20  ;;  %7525 = vmatpush.bf16.msrb.mxu2 %v12381_v53 }
 0x657   :  { %v13689_v52 = vld [vmem:[#allocation7 + $0x96c] sm:$0xf0] }
 0x658   :  { %v12092_v57 = vld [vmem:[#allocation7 + $0xb50] sm:$0xf]  ;;  %v11837_v0 = vor.u32 %v13689_v52, %v11836_v49  ;;  %7538 = vmatpush.bf16.msrb.mxu3 %v12637_v55  ;;  %v7286_v49 = vpop.f32.mrf.mxu3 }
 0x659   :  { %v13753_v56 = vld [vmem:[#allocation7 + $0xb6c] sm:$0xf0] }
 0x65a   :  { %v12348_v60 = vld [vmem:[#allocation7 + $0xd50] sm:$0xf]  ;;  %v12093_v63 = vor.u32 %v13753_v56, %v12092_v57  ;;  %7500 = vmatpush.bf16.msrb.mxu0 %v11837_v0  ;;  %v7274_v57 = vadd.f32 %v7273_v46, %v7261_v30  ;;  %v7249_v56 = vpop.f32.mrf.mxu0  ;;  %v10878_v30 = vld [vmem:[#allocation7 + $0x1f0] sm:$0xf0] }
 0x65b   :  { %v13817_v61 = vld [vmem:[#allocation7 + $0xd6c] sm:$0xf0]  ;;  %v13437_v46 = vld [vmem:[#allocation7 + $0x194] sm:$0xf] }
 0x65c   :  { %v12604_v4 = vld [vmem:[#allocation7 + $0xf50] sm:$0xf]  ;;  %v12349_v5 = vor.u32 %v13817_v61, %v12348_v60  ;;  %7513 = vmatpush.bf16.msrb.mxu1 %v12093_v63  ;;  %v7262_v60 = vpop.f32.mrf.mxu1  ;;  %v14686_v63 = vadd.f32 %v7286_v49, %v7274_v57  ;;  %v10846_v49 = vld [vmem:[#allocation7 + $0x1b0] sm:$0xf0] }
 0x65d   :  { %v13881_v62 = vld [vmem:[#allocation7 + $0xf6c] sm:$0xf0]  ;;  %v11102_v57 = vld [vmem:[#allocation7 + $0x3b0] sm:$0xf0] }
 0x65e   :  { %v11804_v1 = vld [vmem:[#allocation7 + $0x910] sm:$0xf]  ;;  %v12605_v38 = vor.u32 %v13881_v62, %v12604_v4  ;;  %7526 = vmatpush.bf16.msrb.mxu2 %v12349_v5  ;;  %v13565_v56 = vld [vmem:[#allocation7 + $0x594] sm:$0xf] }
 0x65f   :  { %v13681_v2 = vld [vmem:[#allocation7 + $0x92c] sm:$0xf0]  ;;  %v11358_v60 = vld [vmem:[#allocation7 + $0x5b0] sm:$0xf0] }
 0x660   :  { %v12060_v42 = vld [vmem:[#allocation7 + $0xb10] sm:$0xf]  ;;  %v11805_v23 = vor.u32 %v13681_v2, %v11804_v1  ;;  %7539 = vmatpush.bf16.msrb.mxu3 %v12605_v38 }
 0x661   :  { %v13745_v7 = vld [vmem:[#allocation7 + $0xb2c] sm:$0xf0] }
 0x662   :  { %v12316_v39 = vld [vmem:[#allocation7 + $0xd10] sm:$0xf]  ;;  %v12061_v24 = vor.u32 %v13745_v7, %v12060_v42  ;;  %7501 = vmatpush.bf16.msrb.mxu0 %v11805_v23 }
 0x663   :  { %v13809_v14 = vld [vmem:[#allocation7 + $0xd2c] sm:$0xf0] }
 0x664   :  { %v12572_v28 = vld [vmem:[#allocation7 + $0xf10] sm:$0xf]  ;;  %v12317_v26 = vor.u32 %v13809_v14, %v12316_v39  ;;  %7514 = vmatpush.bf16.msrb.mxu1 %v12061_v24 }
 0x665   :  { %v13873_v8 = vld [vmem:[#allocation7 + $0xf2c] sm:$0xf0] }
 0x666   :  { %v11772_v43 = vld [vmem:[#allocation7 + $0x8d0] sm:$0xf]  ;;  %v12573_v3 = vor.u32 %v13873_v8, %v12572_v28  ;;  %7527 = vmatpush.bf16.msrb.mxu2 %v12317_v26 }
 0x667   :  { %v13673_v36 = vld [vmem:[#allocation7 + $0x8ec] sm:$0xf0] }
 0x668   :  { %v12028_v11 = vld [vmem:[#allocation7 + $0xad0] sm:$0xf]  ;;  %v11773_v45 = vor.u32 %v13673_v36, %v11772_v43  ;;  %7540 = vmatpush.bf16.msrb.mxu3 %v12573_v3  ;;  %v7275_v3 = vpop.f32.mrf.mxu2 }
 0x669   :  { %v13737_v27 = vld [vmem:[#allocation7 + $0xaec] sm:$0xf0]  ;;  %v11294_v3 = vld [vmem:[#allocation7 + $0x530] sm:$0xf0] }
 0x66a   :  { %v12284_v29 = vld [vmem:[#allocation7 + $0xcd0] sm:$0xf]  ;;  %v12029_v31 = vor.u32 %v13737_v27, %v12028_v11  ;;  %7502 = vmatpush.bf16.msrb.mxu0 %v11773_v45  ;;  %v7288_v11 = vpop.f32.mrf.mxu3 }
 0x66b   :  { %v13801_v6 = vld [vmem:[#allocation7 + $0xcec] sm:$0xf0]  ;;  %v13613_v11 = vld [vmem:[#allocation7 + $0x714] sm:$0xf] }
 0x66c   :  { %v12540_v47 = vld [vmem:[#allocation7 + $0xed0] sm:$0xf]  ;;  %v12285_v33 = vor.u32 %v13801_v6, %v12284_v29  ;;  %7515 = vmatpush.bf16.msrb.mxu1 %v12029_v31  ;;  %v13445_v29 = vld [vmem:[#allocation7 + $0x1d4] sm:$0xf] }
 0x66d   :  { %v13865_v51 = vld [vmem:[#allocation7 + $0xeec] sm:$0xf0]  ;;  %v13509_v6 = vld [vmem:[#allocation7 + $0x3d4] sm:$0xf] }
 0x66e   :  { %v11740_v32 = vld [vmem:[#allocation7 + $0x890] sm:$0xf]  ;;  %v12541_v34 = vor.u32 %v13865_v51, %v12540_v47  ;;  %7528 = vmatpush.bf16.msrb.mxu2 %v12285_v33  ;;  %v11134_v47 = vld [vmem:[#allocation7 + $0x3f0] sm:$0xf0] }
 0x66f   :  { %v13665_v15 = vld [vmem:[#allocation7 + $0x8ac] sm:$0xf0]  ;;  %v13573_v51 = vld [vmem:[#allocation7 + $0x5d4] sm:$0xf] }
 0x670   :  { %v11996_v20 = vld [vmem:[#allocation7 + $0xa90] sm:$0xf]  ;;  %v11741_v61 = vor.u32 %v13665_v15, %v11740_v32  ;;  %7541 = vmatpush.bf16.msrb.mxu3 %v12541_v34  ;;  %v11390_v32 = vld [vmem:[#allocation7 + $0x5f0] sm:$0xf0] }
 0x671   :  { %v13729_v35 = vld [vmem:[#allocation7 + $0xaac] sm:$0xf0]  ;;  %v13637_v15 = vld [vmem:[#allocation7 + $0x7d4] sm:$0xf] }
 0x672   :  { %v12252_v41 = vld [vmem:[#allocation7 + $0xc90] sm:$0xf]  ;;  %v11997_v4 = vor.u32 %v13729_v35, %v11996_v20  ;;  %7503 = vmatpush.bf16.msrb.mxu0 %v11741_v61  ;;  %v11646_v33 = vld [vmem:[#allocation7 + $0x7f0] sm:$0xf0]  ;;  %v10881_v35 = vor.u32 %v13445_v29, %v10878_v30  ;;  %v7299_v29 = vpop.f32.mrf.mxu0  ;;  %v7312_v30 = vpop.f32.mrf.mxu1 }
 0x673   :  { %v13793_v52 = vld [vmem:[#allocation7 + $0xcac] sm:$0xf0]  ;;  %v13629_v61 = vld [vmem:[#allocation7 + $0x794] sm:$0xf] }
 0x674   :  { %v12508_v53 = vld [vmem:[#allocation7 + $0xe90] sm:$0xf]  ;;  %v12253_v59 = vor.u32 %v13793_v52, %v12252_v41  ;;  %7516 = vmatpush.bf16.msrb.mxu1 %v11997_v4  ;;  %v11137_v41 = vor.u32 %v13509_v6, %v11134_v47  ;;  %v11393_v52 = vor.u32 %v13573_v51, %v11390_v32  ;;  %v11614_v4 = vld [vmem:[#allocation7 + $0x7b0] sm:$0xf0]  ;;  %v7300_v6 = vadd.f32 %v7299_v29, %v14686_v63 }
 0x675   :  { %v13857_v55 = vld [vmem:[#allocation7 + $0xeac] sm:$0xf0]  ;;  %v13405_v63 = vld [vmem:[#allocation7 + $0x94] sm:$0xf] }
 0x676   :  { %v11708_v62 = vld [vmem:[#allocation7 + $0x850] sm:$0xf]  ;;  %v12509_v1 = vor.u32 %v13857_v55, %v12508_v53  ;;  %7529 = vmatpush.bf16.msrb.mxu2 %v12253_v59  ;;  %v11649_v53 = vor.u32 %v13637_v15, %v11646_v33  ;;  %v13501_v55 = vld [vmem:[#allocation7 + $0x394] sm:$0xf] }
 0x677   :  { %v13657_v0 = vld [vmem:[#allocation7 + $0x86c] sm:$0xf0]  ;;  %v13429_v59 = vld [vmem:[#allocation7 + $0x154] sm:$0xf] }
 0x678   :  { %v11964_v2 = vld [vmem:[#allocation7 + $0xa50] sm:$0xf]  ;;  %v11709_v28 = vor.u32 %v13657_v0, %v11708_v62  ;;  %7542 = vmatpush.bf16.msrb.mxu3 %v12509_v1  ;;  %v10849_v62 = vor.u32 %v13437_v46, %v10846_v49  ;;  %v11105_v0 = vor.u32 %v13501_v55, %v11102_v57  ;;  %v10814_v1 = vld [vmem:[#allocation7 + $0x170] sm:$0xf0] }
 0x679   :  { %v13721_v5 = vld [vmem:[#allocation7 + $0xa6c] sm:$0xf0]  ;;  %v13477_v33 = vld [vmem:[#allocation7 + $0x2d4] sm:$0xf] }
 0x67a   :  { %v12220_v38 = vld [vmem:[#allocation7 + $0xc50] sm:$0xf]  ;;  %v11965_v8 = vor.u32 %v13721_v5, %v11964_v2  ;;  %7504 = vmatpush.bf16.msrb.mxu0 %v11709_v28  ;;  %v11361_v2 = vor.u32 %v13565_v56, %v11358_v60  ;;  %v11617_v5 = vor.u32 %v13629_v61, %v11614_v4  ;;  %v11582_v28 = vld [vmem:[#allocation7 + $0x770] sm:$0xf0] }
 0x67b   :  { %v13785_v42 = vld [vmem:[#allocation7 + $0xc6c] sm:$0xf0]  ;;  %v13605_v46 = vld [vmem:[#allocation7 + $0x6d4] sm:$0xf] }
 0x67c   :  { %v12476_v7 = vld [vmem:[#allocation7 + $0xe50] sm:$0xf]  ;;  %v12221_v23 = vor.u32 %v13785_v42, %v12220_v38  ;;  %7517 = vmatpush.bf16.msrb.mxu1 %v11965_v8  ;;  %v13493_v38 = vld [vmem:[#allocation7 + $0x354] sm:$0xf]  ;;  %v10817_v8 = vor.u32 %v13429_v59, %v10814_v1 }
 0x67d   :  { %v13849_v39 = vld [vmem:[#allocation7 + $0xe6c] sm:$0xf0]  ;;  %v11070_v42 = vld [vmem:[#allocation7 + $0x370] sm:$0xf0] }
 0x67e   :  { %v11676_v14 = vld [vmem:[#allocation7 + $0x810] sm:$0xf]  ;;  %v12477_v24 = vor.u32 %v13849_v39, %v12476_v7  ;;  %7530 = vmatpush.bf16.msrb.mxu2 %v12221_v23  ;;  %v13557_v7 = vld [vmem:[#allocation7 + $0x554] sm:$0xf] }
 0x67f   :  { %v13649_v12 = vld [vmem:[#allocation7 + $0x82c] sm:$0xf0]  ;;  %v11326_v39 = vld [vmem:[#allocation7 + $0x570] sm:$0xf0] }
 0x680   :  { %v11932_v16 = vld [vmem:[#allocation7 + $0xa10] sm:$0xf]  ;;  %v11677_v45 = vor.u32 %v13649_v12, %v11676_v14  ;;  %7543 = vmatpush.bf16.msrb.mxu3 %v12477_v24  ;;  %v13621_v14 = vld [vmem:[#allocation7 + $0x754] sm:$0xf]  ;;  %v11073_v12 = vor.u32 %v13493_v38, %v11070_v42  ;;  %v11329_v23 = vor.u32 %v13557_v7, %v11326_v39  ;;  %v7301_v38 = vpop.f32.mrf.mxu0  ;;  %v7314_v42 = vpop.f32.mrf.mxu1 }
 0x681   :  { %v13713_v17 = vld [vmem:[#allocation7 + $0xa2c] sm:$0xf0]  ;;  %v11585_v24 = vor.u32 %v13621_v14, %v11582_v28  ;;  %v11518_v49 = vld [vmem:[#allocation7 + $0x6f0] sm:$0xf0] }
 0x682   :  { %v12188_v43 = vld [vmem:[#allocation7 + $0xc10] sm:$0xf]  ;;  %v11933_v31 = vor.u32 %v13713_v17, %v11932_v16  ;;  %7505 = vmatpush.bf16.msrb.mxu0 %v11677_v45  ;;  %v13421_v16 = vld [vmem:[#allocation7 + $0x114] sm:$0xf]  ;;  %v11521_v56 = vor.u32 %v13605_v46, %v11518_v49 }
 0x683   :  { %v13777_v36 = vld [vmem:[#allocation7 + $0xc2c] sm:$0xf0]  ;;  %v10782_v17 = vld [vmem:[#allocation7 + $0x130] sm:$0xf0] }
 0x684   :  { %v12444_v26 = vld [vmem:[#allocation7 + $0xe10] sm:$0xf]  ;;  %v12189_v34 = vor.u32 %v13777_v36, %v12188_v43  ;;  %7518 = vmatpush.bf16.msrb.mxu1 %v11933_v31  ;;  %v13485_v43 = vld [vmem:[#allocation7 + $0x314] sm:$0xf]  ;;  %v10785_v47 = vor.u32 %v13421_v16, %v10782_v17 }
 0x685   :  { %v13841_v27 = vld [vmem:[#allocation7 + $0xe2c] sm:$0xf0]  ;;  %7506 = vmatmul.bf16.vlgmr.msrb.gmra.mxu0 %v14634_v18  ;;  %v11038_v36 = vld [vmem:[#allocation7 + $0x330] sm:$0xf0] }
 0x686   :  { %v12445_v20 = vor.u32 %v13841_v27, %v12444_v26  ;;  %7531 = vmatpush.bf16.msrb.mxu2 %v12189_v34  ;;  %7550 = vmatpush.bf16.msra.mxu0 %v10881_v35  ;;  %v13549_v26 = vld [vmem:[#allocation7 + $0x514] sm:$0xf]  ;;  %v11041_v51 = vor.u32 %v13485_v43, %v11038_v36  ;;  %v7313_v35 = vadd.f32 %v7312_v30, %v7300_v6 }
 0x687   :  { %7519 = vmatmul.bf16.vlgmr.msrb.gmra.mxu1 %v14636_v19  ;;  %v11550_v27 = vld [vmem:[#allocation7 + $0x730] sm:$0xf0]  ;;  %v11297_v32 = vor.u32 %v13549_v26, %v11294_v3 }
 0x688   :  { %7544 = vmatpush.bf16.msrb.mxu3 %v12445_v20  ;;  %7563 = vmatpush.bf16.msra.mxu1 %v11137_v41  ;;  %v13413_v45 = vld [vmem:[#allocation7 + $0xd4] sm:$0xf]  ;;  %v11553_v15 = vor.u32 %v13613_v11, %v11550_v27 }
 0x689   :  { %7532 = vmatmul.bf16.vlgmr.msrb.gmra.mxu2 %v14638_v25  ;;  %v10750_v31 = vld [vmem:[#allocation7 + $0xf0] sm:$0xf0] }
 0x68a   :  { %7576 = vmatpush.bf16.msra.mxu2 %v11393_v52  ;;  %7551 = vmatpush.bf16.msra.mxu0 %v10849_v62  ;;  %v11006_v34 = vld [vmem:[#allocation7 + $0x2f0] sm:$0xf0]  ;;  %v10753_v52 = vor.u32 %v13413_v45, %v10750_v31  ;;  %v7325_v62 = vpop.f32.mrf.mxu2 }
 0x68b   :  { %7545 = vmatmul.bf16.vlgmr.msrb.gmra.mxu3 %v14640_v13  ;;  %v13541_v20 = vld [vmem:[#allocation7 + $0x4d4] sm:$0xf] }
 0x68c   :  { %7589 = vmatpush.bf16.msra.mxu3 %v11649_v53  ;;  %7564 = vmatpush.bf16.msra.mxu1 %v11105_v0  ;;  %v11262_v41 = vld [vmem:[#allocation7 + $0x4f0] sm:$0xf0]  ;;  %v11009_v53 = vor.u32 %v13477_v33, %v11006_v34  ;;  %v7338_v0 = vpop.f32.mrf.mxu3 }
 0x68d   :  { %v10718_v55 = vld [vmem:[#allocation7 + $0xb0] sm:$0xf0]  ;;  %v11265_v57 = vor.u32 %v13541_v20, %v11262_v41 }
 0x68e   :  { %7577 = vmatpush.bf16.msra.mxu2 %v11361_v2  ;;  %7552 = vmatpush.bf16.msra.mxu0 %v10817_v8  ;;  %v13469_v60 = vld [vmem:[#allocation7 + $0x294] sm:$0xf]  ;;  %v10721_v7 = vor.u32 %v13405_v63, %v10718_v55 }
 0x68f   :  { %v10974_v61 = vld [vmem:[#allocation7 + $0x2b0] sm:$0xf0] }
 0x690   :  { %7590 = vmatpush.bf16.msra.mxu3 %v11617_v5  ;;  %7565 = vmatpush.bf16.msra.mxu1 %v11073_v12  ;;  %v13533_v4 = vld [vmem:[#allocation7 + $0x494] sm:$0xf]  ;;  %v7326_v5 = vadd.f32 %v7325_v62, %v7313_v35  ;;  %v10977_v39 = vor.u32 %v13469_v60, %v10974_v61 }
 0x691   :  { %v11230_v59 = vld [vmem:[#allocation7 + $0x4b0] sm:$0xf0] }
 0x692   :  { %7578 = vmatpush.bf16.msra.mxu2 %v11329_v23  ;;  %7553 = vmatpush.bf16.msra.mxu0 %v10785_v47  ;;  %v13597_v1 = vld [vmem:[#allocation7 + $0x694] sm:$0xf]  ;;  %v14693_v8 = vadd.f32 %v7338_v0, %v7326_v5  ;;  %v11233_v12 = vor.u32 %v13533_v4, %v11230_v59 }
 0x693   :  { %v11486_v2 = vld [vmem:[#allocation7 + $0x6b0] sm:$0xf0] }
 0x694   :  { %7591 = vmatpush.bf16.msra.mxu3 %v11585_v24  ;;  %7566 = vmatpush.bf16.msra.mxu1 %v11041_v51  ;;  %v13397_v14 = vld [vmem:[#allocation7 + $0x54] sm:$0xf]  ;;  %v11489_v16 = vor.u32 %v13597_v1, %v11486_v2  ;;  %v7340_v33 = vpop.f32.mrf.mxu3 }
 0x695   :  { %v10686_v28 = vld [vmem:[#allocation7 + $0x70] sm:$0xf0] }
 0x696   :  { %7579 = vmatpush.bf16.msra.mxu2 %v11297_v32  ;;  %7554 = vmatpush.bf16.msra.mxu0 %v10753_v52  ;;  %v13461_v17 = vld [vmem:[#allocation7 + $0x254] sm:$0xf]  ;;  %v10689_v11 = vor.u32 %v13397_v14, %v10686_v28 }
 0x697   :  { %v10942_v23 = vld [vmem:[#allocation7 + $0x270] sm:$0xf0] }
 0x698   :  { %7592 = vmatpush.bf16.msra.mxu3 %v11553_v15  ;;  %7567 = vmatpush.bf16.msra.mxu1 %v11009_v53  ;;  %v13525_v24 = vld [vmem:[#allocation7 + $0x454] sm:$0xf]  ;;  %v10945_v27 = vor.u32 %v13461_v17, %v10942_v23  ;;  %v7327_v15 = vpop.f32.mrf.mxu2 }
 0x699   :  { %v11198_v43 = vld [vmem:[#allocation7 + $0x470] sm:$0xf0] }
 0x69a   :  { %7580 = vmatpush.bf16.msra.mxu2 %v11265_v57  ;;  %v13589_v36 = vld [vmem:[#allocation7 + $0x654] sm:$0xf]  ;;  %7555 = vmatpush.bf16.msra.mxu0 %v10721_v7  ;;  %v11201_v47 = vor.u32 %v13525_v24, %v11198_v43 }
 0x69b   :  { %v11454_v26 = vld [vmem:[#allocation7 + $0x670] sm:$0xf0] }
 0x69c   :  { %7593 = vmatpush.bf16.msra.mxu3 %v11521_v56  ;;  %v13389_v3 = vld [vmem:[#allocation7 + $0x14] sm:$0xf]  ;;  %7568 = vmatpush.bf16.msra.mxu1 %v10977_v39  ;;  %v11457_v51 = vor.u32 %v13589_v36, %v11454_v26 }
 0x69d   :  { %v10654_v29 = vld [vmem:[#allocation7 + $0x30] sm:$0xf0] }
 0x69e   :  { %v13453_v30 = vld [vmem:[#allocation7 + $0x214] sm:$0xf]  ;;  %7581 = vmatpush.bf16.msra.mxu2 %v11233_v12  ;;  %7556 = vmatpush.bf16.msra.mxu0 %v10689_v11  ;;  %v10657_v52 = vor.u32 %v13389_v3, %v10654_v29 }
 0x69f   :  { %v10910_v6 = vld [vmem:[#allocation7 + $0x230] sm:$0xf0] }
 0x6a0   :  { %7594 = vmatpush.bf16.msra.mxu3 %v11489_v16  ;;  %v13517_v45 = vld [vmem:[#allocation7 + $0x414] sm:$0xf]  ;;  %7569 = vmatpush.bf16.msra.mxu1 %v10945_v27  ;;  %v10913_v53 = vor.u32 %v13453_v30, %v10910_v6  ;;  %v4457_v30 = vperm.slane %v14658_v54, 3 }
 0x6a1   :  { %v11166_v31 = vld [vmem:[#allocation7 + $0x430] sm:$0xf0] }
 0x6a2   :  { %v13581_v32 = vld [vmem:[#allocation7 + $0x614] sm:$0xf]  ;;  %7582 = vmatpush.bf16.msra.mxu2 %v11201_v47  ;;  %v11169_v56 = vor.u32 %v13517_v45, %v11166_v31  ;;  %7557 = vmatpush.bf16.msra.mxu0 %v10657_v52 }
 0x6a3   :  { %v11422_v34 = vld [vmem:[#allocation7 + $0x630] sm:$0xf0] }
 0x6a4   :  { %v13701_v20 = vld [vmem:[#allocation7 + $0x9d4] sm:$0xf]  ;;  %7595 = vmatpush.bf16.msra.mxu3 %v11457_v51  ;;  %v11425_v60 = vor.u32 %v13581_v32, %v11422_v34  ;;  %7570 = vmatpush.bf16.msra.mxu1 %v10913_v53 }
 0x6a5   :  { %v11902_v35 = vld [vmem:[#allocation7 + $0x9f0] sm:$0xf0]  ;;  %7558 = vmatmul.bf16.vlgmr.msra.gmra.mxu0 %v14607_v48 }
 0x6a6   :  { %v13765_v41 = vld [vmem:[#allocation7 + $0xbd4] sm:$0xf]  ;;  %v11905_v61 = vor.u32 %v13701_v20, %v11902_v35  ;;  %7583 = vmatpush.bf16.msra.mxu2 %v11169_v56  ;;  %v7351_v35 = vpop.f32.mrf.mxu0 }
 0x6a7   :  { %v12158_v46 = vld [vmem:[#allocation7 + $0xbf0] sm:$0xf0]  ;;  %7571 = vmatmul.bf16.vlgmr.msra.gmra.mxu1 %v14609_v9 }
 0x6a8   :  { %v13829_v49 = vld [vmem:[#allocation7 + $0xdd4] sm:$0xf]  ;;  %v12161_v4 = vor.u32 %v13765_v41, %v12158_v46  ;;  %7596 = vmatpush.bf16.msra.mxu3 %v11425_v60  ;;  %7602 = vmatpush.bf16.msrb.mxu0 %v11905_v61  ;;  %v7364_v41 = vpop.f32.mrf.mxu1  ;;  %v7352_v46 = vadd.f32 %v7351_v35, %v4457_v30 }
 0x6a9   :  { %v12414_v63 = vld [vmem:[#allocation7 + $0xdf0] sm:$0xf0]  ;;  %7584 = vmatmul.bf16.vlgmr.msra.gmra.mxu2 %v14611_v10 }
 0x6aa   :  { %v13893_v55 = vld [vmem:[#allocation7 + $0xfd4] sm:$0xf]  ;;  %v12417_v59 = vor.u32 %v13829_v49, %v12414_v63  ;;  %7615 = vmatpush.bf16.msrb.mxu1 %v12161_v4  ;;  %v7365_v4 = vadd.f32 %v7364_v41, %v7352_v46 }
 0x6ab   :  { %v12670_v57 = vld [vmem:[#allocation7 + $0xff0] sm:$0xf0]  ;;  %7597 = vmatmul.bf16.vlgmr.msra.gmra.mxu3 %v14613_v22 }
 0x6ac   :  { %v13693_v62 = vld [vmem:[#allocation7 + $0x994] sm:$0xf]  ;;  %v12673_v1 = vor.u32 %v13893_v55, %v12670_v57  ;;  %7628 = vmatpush.bf16.msrb.mxu2 %v12417_v59 }
 0x6ad   :  { %v11870_v0 = vld [vmem:[#allocation7 + $0x9b0] sm:$0xf0] }
 0x6ae   :  { %v13757_v2 = vld [vmem:[#allocation7 + $0xb94] sm:$0xf]  ;;  %v11873_v14 = vor.u32 %v13693_v62, %v11870_v0  ;;  %7641 = vmatpush.bf16.msrb.mxu3 %v12673_v1 }
 0x6af   :  { %v12126_v5 = vld [vmem:[#allocation7 + $0xbb0] sm:$0xf0] }
 0x6b0   :  { %v13821_v38 = vld [vmem:[#allocation7 + $0xd94] sm:$0xf]  ;;  %v12129_v28 = vor.u32 %v13757_v2, %v12126_v5  ;;  %7603 = vmatpush.bf16.msrb.mxu0 %v11873_v14 }
 0x6b1   :  { %v12382_v42 = vld [vmem:[#allocation7 + $0xdb0] sm:$0xf0] }
 0x6b2   :  { %v13885_v7 = vld [vmem:[#allocation7 + $0xf94] sm:$0xf]  ;;  %v12385_v17 = vor.u32 %v13821_v38, %v12382_v42  ;;  %7616 = vmatpush.bf16.msrb.mxu1 %v12129_v28 }
 0x6b3   :  { %v12638_v39 = vld [vmem:[#allocation7 + $0xfb0] sm:$0xf0] }
 0x6b4   :  { %v13685_v12 = vld [vmem:[#allocation7 + $0x954] sm:$0xf]  ;;  %v12641_v23 = vor.u32 %v13885_v7, %v12638_v39  ;;  %7629 = vmatpush.bf16.msrb.mxu2 %v12385_v17 }
 0x6b5   :  { %v11838_v16 = vld [vmem:[#allocation7 + $0x970] sm:$0xf0] }
 0x6b6   :  { %v13749_v24 = vld [vmem:[#allocation7 + $0xb54] sm:$0xf]  ;;  %v11841_v27 = vor.u32 %v13685_v12, %v11838_v16  ;;  %7642 = vmatpush.bf16.msrb.mxu3 %v12641_v23  ;;  %v7377_v12 = vpop.f32.mrf.mxu2  ;;  %v7390_v16 = vpop.f32.mrf.mxu3 }
 0x6b7   :  { %v12094_v43 = vld [vmem:[#allocation7 + $0xb70] sm:$0xf0] }
 0x6b8   :  { %v13813_v36 = vld [vmem:[#allocation7 + $0xd54] sm:$0xf]  ;;  %v12097_v29 = vor.u32 %v13749_v24, %v12094_v43  ;;  %7604 = vmatpush.bf16.msrb.mxu0 %v11841_v27  ;;  %v7378_v43 = vadd.f32 %v7377_v12, %v7365_v4  ;;  %v10884_v4 = vld [vmem:[#allocation7 + $0x1d8] sm:$0xf] }
 0x6b9   :  { %v12350_v26 = vld [vmem:[#allocation7 + $0xd70] sm:$0xf0] }
 0x6ba   :  { %v13877_v3 = vld [vmem:[#allocation7 + $0xf54] sm:$0xf]  ;;  %v12353_v51 = vor.u32 %v13813_v36, %v12350_v26  ;;  %7617 = vmatpush.bf16.msrb.mxu1 %v12097_v29  ;;  %v7353_v36 = vpop.f32.mrf.mxu0  ;;  %v7366_v26 = vpop.f32.mrf.mxu1  ;;  %v14700_v30 = vadd.f32 %v7390_v16, %v7378_v43  ;;  %v10852_v16 = vld [vmem:[#allocation7 + $0x198] sm:$0xf] }
 0x6bb   :  { %v12606_v11 = vld [vmem:[#allocation7 + $0xf70] sm:$0xf0]  ;;  %v11108_v43 = vld [vmem:[#allocation7 + $0x398] sm:$0xf] }
 0x6bc   :  { %v13677_v6 = vld [vmem:[#allocation7 + $0x914] sm:$0xf]  ;;  %v12609_v45 = vor.u32 %v13877_v3, %v12606_v11  ;;  %7630 = vmatpush.bf16.msrb.mxu2 %v12353_v51  ;;  %v13506_v36 = vld [vmem:[#allocation7 + $0x3b4] sm:$0xf0] }
 0x6bd   :  { %v11806_v47 = vld [vmem:[#allocation7 + $0x930] sm:$0xf0]  ;;  %v11364_v26 = vld [vmem:[#allocation7 + $0x598] sm:$0xf] }
 0x6be   :  { %v13741_v31 = vld [vmem:[#allocation7 + $0xb14] sm:$0xf]  ;;  %v11809_v49 = vor.u32 %v13677_v6, %v11806_v47  ;;  %7643 = vmatpush.bf16.msrb.mxu3 %v12609_v45 }
 0x6bf   :  { %v12062_v32 = vld [vmem:[#allocation7 + $0xb30] sm:$0xf0] }
 0x6c0   :  { %v13805_v15 = vld [vmem:[#allocation7 + $0xd14] sm:$0xf]  ;;  %v12065_v52 = vor.u32 %v13741_v31, %v12062_v32  ;;  %7605 = vmatpush.bf16.msrb.mxu0 %v11809_v49 }
 0x6c1   :  { %v12318_v33 = vld [vmem:[#allocation7 + $0xd30] sm:$0xf0] }
 0x6c2   :  { %v13869_v34 = vld [vmem:[#allocation7 + $0xf14] sm:$0xf]  ;;  %v12321_v55 = vor.u32 %v13805_v15, %v12318_v33  ;;  %7618 = vmatpush.bf16.msrb.mxu1 %v12065_v52 }
 0x6c3   :  { %v12574_v20 = vld [vmem:[#allocation7 + $0xf30] sm:$0xf0] }
 0x6c4   :  { %v13669_v53 = vld [vmem:[#allocation7 + $0x8d4] sm:$0xf]  ;;  %v12577_v57 = vor.u32 %v13869_v34, %v12574_v20  ;;  %7631 = vmatpush.bf16.msrb.mxu2 %v12321_v55 }
 0x6c5   :  { %v11774_v63 = vld [vmem:[#allocation7 + $0x8f0] sm:$0xf0] }
 0x6c6   :  { %v13733_v56 = vld [vmem:[#allocation7 + $0xad4] sm:$0xf]  ;;  %v11777_v1 = vor.u32 %v13669_v53, %v11774_v63  ;;  %7644 = vmatpush.bf16.msrb.mxu3 %v12577_v57 }
 0x6c7   :  { %v12030_v60 = vld [vmem:[#allocation7 + $0xaf0] sm:$0xf0] }
 0x6c8   :  { %v13797_v61 = vld [vmem:[#allocation7 + $0xcd4] sm:$0xf]  ;;  %v12033_v2 = vor.u32 %v13733_v56, %v12030_v60  ;;  %7606 = vmatpush.bf16.msrb.mxu0 %v11777_v1  ;;  %v7379_v56 = vpop.f32.mrf.mxu2  ;;  %v7392_v60 = vpop.f32.mrf.mxu3  ;;  %v11396_v1 = vld [vmem:[#allocation7 + $0x5d8] sm:$0xf] }
 0x6c9   :  { %v12286_v62 = vld [vmem:[#allocation7 + $0xcf0] sm:$0xf0]  ;;  %v11300_v56 = vld [vmem:[#allocation7 + $0x518] sm:$0xf] }
 0x6ca   :  { %v13861_v0 = vld [vmem:[#allocation7 + $0xed4] sm:$0xf]  ;;  %v12289_v42 = vor.u32 %v13797_v61, %v12286_v62  ;;  %7619 = vmatpush.bf16.msrb.mxu1 %v12033_v2  ;;  %v13450_v62 = vld [vmem:[#allocation7 + $0x1f4] sm:$0xf0] }
 0x6cb   :  { %v12542_v59 = vld [vmem:[#allocation7 + $0xef0] sm:$0xf0]  ;;  %v13554_v60 = vld [vmem:[#allocation7 + $0x534] sm:$0xf0] }
 0x6cc   :  { %v13661_v5 = vld [vmem:[#allocation7 + $0x894] sm:$0xf]  ;;  %v12545_v7 = vor.u32 %v13861_v0, %v12542_v59  ;;  %7632 = vmatpush.bf16.msrb.mxu2 %v12289_v42  ;;  %v11140_v0 = vld [vmem:[#allocation7 + $0x3d8] sm:$0xf] }
 0x6cd   :  { %v11742_v38 = vld [vmem:[#allocation7 + $0x8b0] sm:$0xf0]  ;;  %v13514_v59 = vld [vmem:[#allocation7 + $0x3f4] sm:$0xf0] }
 0x6ce   :  { %v13725_v39 = vld [vmem:[#allocation7 + $0xa94] sm:$0xf]  ;;  %v11745_v3 = vor.u32 %v13661_v5, %v11742_v38  ;;  %7645 = vmatpush.bf16.msrb.mxu3 %v12545_v7  ;;  %v13578_v38 = vld [vmem:[#allocation7 + $0x5f4] sm:$0xf0]  ;;  %v11141_v12 = vor.u32 %v13514_v59, %v11140_v0  ;;  %v7416_v0 = vpop.f32.mrf.mxu1 }
 0x6cf   :  { %v11998_v14 = vld [vmem:[#allocation7 + $0xab0] sm:$0xf0]  ;;  %v11652_v42 = vld [vmem:[#allocation7 + $0x7d8] sm:$0xf] }
 0x6d0   :  { %v13789_v28 = vld [vmem:[#allocation7 + $0xc94] sm:$0xf]  ;;  %v12001_v11 = vor.u32 %v13725_v39, %v11998_v14  ;;  %7607 = vmatpush.bf16.msrb.mxu0 %v11745_v3  ;;  %v13642_v7 = vld [vmem:[#allocation7 + $0x7f4] sm:$0xf0] }
 0x6d1   :  { %v12254_v17 = vld [vmem:[#allocation7 + $0xcb0] sm:$0xf0]  ;;  %v13570_v3 = vld [vmem:[#allocation7 + $0x5b4] sm:$0xf0] }
 0x6d2   :  { %v13853_v23 = vld [vmem:[#allocation7 + $0xe94] sm:$0xf]  ;;  %v12257_v6 = vor.u32 %v13789_v28, %v12254_v17  ;;  %7620 = vmatpush.bf16.msrb.mxu1 %v12001_v11  ;;  %v10885_v28 = vor.u32 %v13450_v62, %v10884_v4  ;;  %v13442_v17 = vld [vmem:[#allocation7 + $0x1b4] sm:$0xf0]  ;;  %v7403_v62 = vpop.f32.mrf.mxu0 }
 0x6d3   :  { %v12510_v24 = vld [vmem:[#allocation7 + $0xeb0] sm:$0xf0]  ;;  %v11620_v11 = vld [vmem:[#allocation7 + $0x798] sm:$0xf]  ;;  %v7404_v59 = vadd.f32 %v7403_v62, %v14700_v30 }
 0x6d4   :  { %v13653_v27 = vld [vmem:[#allocation7 + $0x854] sm:$0xf]  ;;  %v12513_v47 = vor.u32 %v13853_v23, %v12510_v24  ;;  %7633 = vmatpush.bf16.msrb.mxu2 %v12257_v6  ;;  %v11397_v23 = vor.u32 %v13578_v38, %v11396_v1  ;;  %v11653_v24 = vor.u32 %v13642_v7, %v11652_v42  ;;  %v11109_v6 = vor.u32 %v13506_v36, %v11108_v43  ;;  %v13618_v4 = vld [vmem:[#allocation7 + $0x734] sm:$0xf0] }
 0x6d5   :  { %v11710_v29 = vld [vmem:[#allocation7 + $0x870] sm:$0xf0]  ;;  %v13418_v38 = vld [vmem:[#allocation7 + $0xf4] sm:$0xf0]  ;;  %v11301_v42 = vor.u32 %v13554_v60, %v11300_v56 }
 0x6d6   :  { %v13717_v51 = vld [vmem:[#allocation7 + $0xa54] sm:$0xf]  ;;  %v11713_v20 = vor.u32 %v13653_v27, %v11710_v29  ;;  %7646 = vmatpush.bf16.msrb.mxu3 %v12513_v47  ;;  %v13634_v27 = vld [vmem:[#allocation7 + $0x7b4] sm:$0xf0]  ;;  %v10853_v29 = vor.u32 %v13442_v17, %v10852_v16 }
 0x6d7   :  { %v11966_v45 = vld [vmem:[#allocation7 + $0xa70] sm:$0xf0]  ;;  %v10820_v47 = vld [vmem:[#allocation7 + $0x158] sm:$0xf] }
 0x6d8   :  { %v13781_v31 = vld [vmem:[#allocation7 + $0xc54] sm:$0xf]  ;;  %v11969_v35 = vor.u32 %v13717_v51, %v11966_v45  ;;  %7608 = vmatpush.bf16.msrb.mxu0 %v11713_v20  ;;  %v13434_v51 = vld [vmem:[#allocation7 + $0x174] sm:$0xf0]  ;;  %v11365_v45 = vor.u32 %v13570_v3, %v11364_v26 }
 0x6d9   :  { %v12222_v32 = vld [vmem:[#allocation7 + $0xc70] sm:$0xf0]  ;;  %v11588_v20 = vld [vmem:[#allocation7 + $0x758] sm:$0xf] }
 0x6da   :  { %v13845_v15 = vld [vmem:[#allocation7 + $0xe54] sm:$0xf]  ;;  %v12225_v52 = vor.u32 %v13781_v31, %v12222_v32  ;;  %7621 = vmatpush.bf16.msrb.mxu1 %v11969_v35  ;;  %v11621_v31 = vor.u32 %v13634_v27, %v11620_v11  ;;  %v11076_v32 = vld [vmem:[#allocation7 + $0x358] sm:$0xf] }
 0x6db   :  { %v12478_v33 = vld [vmem:[#allocation7 + $0xe70] sm:$0xf0]  ;;  %v13626_v35 = vld [vmem:[#allocation7 + $0x774] sm:$0xf0] }
 0x6dc   :  { %v13645_v34 = vld [vmem:[#allocation7 + $0x814] sm:$0xf]  ;;  %v12481_v53 = vor.u32 %v13845_v15, %v12478_v33  ;;  %7634 = vmatpush.bf16.msrb.mxu2 %v12225_v52  ;;  %v13498_v15 = vld [vmem:[#allocation7 + $0x374] sm:$0xf0] }
 0x6dd   :  { %v11678_v41 = vld [vmem:[#allocation7 + $0x830] sm:$0xf0]  ;;  %v11332_v33 = vld [vmem:[#allocation7 + $0x558] sm:$0xf] }
 0x6de   :  { %v13709_v46 = vld [vmem:[#allocation7 + $0xa14] sm:$0xf]  ;;  %v11681_v2 = vor.u32 %v13645_v34, %v11678_v41  ;;  %7647 = vmatpush.bf16.msrb.mxu3 %v12481_v53  ;;  %v13562_v34 = vld [vmem:[#allocation7 + $0x574] sm:$0xf0]  ;;  %v10821_v41 = vor.u32 %v13434_v51, %v10820_v47  ;;  %v7442_v47 = vpop.f32.mrf.mxu3 }
 0x6df   :  { %v11934_v49 = vld [vmem:[#allocation7 + $0xa30] sm:$0xf0]  ;;  %v13426_v52 = vld [vmem:[#allocation7 + $0x134] sm:$0xf0]  ;;  %v11333_v53 = vor.u32 %v13562_v34, %v11332_v33  ;;  %v7418_v33 = vpop.f32.mrf.mxu1 }
 0x6e0   :  { %v13773_v63 = vld [vmem:[#allocation7 + $0xc14] sm:$0xf]  ;;  %v11937_v5 = vor.u32 %v13709_v46, %v11934_v49  ;;  %7609 = vmatpush.bf16.msrb.mxu0 %v11681_v2  ;;  %v11077_v46 = vor.u32 %v13498_v15, %v11076_v32  ;;  %v10788_v49 = vld [vmem:[#allocation7 + $0x118] sm:$0xf]  ;;  %v7405_v15 = vpop.f32.mrf.mxu0 }
 0x6e1   :  { %v12190_v55 = vld [vmem:[#allocation7 + $0xc30] sm:$0xf0]  ;;  %v10789_v1 = vor.u32 %v13426_v52, %v10788_v49  ;;  %v13546_v16 = vld [vmem:[#allocation7 + $0x4f4] sm:$0xf0] }
 0x6e2   :  { %v13837_v57 = vld [vmem:[#allocation7 + $0xe14] sm:$0xf]  ;;  %v12193_v39 = vor.u32 %v13773_v63, %v12190_v55  ;;  %7622 = vmatpush.bf16.msrb.mxu1 %v11937_v5  ;;  %v11589_v63 = vor.u32 %v13626_v35, %v11588_v20  ;;  %v11044_v55 = vld [vmem:[#allocation7 + $0x318] sm:$0xf] }
 0x6e3   :  { %v12446_v61 = vld [vmem:[#allocation7 + $0xe30] sm:$0xf0]  ;;  %7610 = vmatmul.bf16.vlgmr.msrb.gmra.mxu0 %v14634_v18  ;;  %v10756_v5 = vld [vmem:[#allocation7 + $0xd8] sm:$0xf] }
 0x6e4   :  { %v12449_v14 = vor.u32 %v13837_v57, %v12446_v61  ;;  %7635 = vmatpush.bf16.msrb.mxu2 %v12193_v39  ;;  %7654 = vmatpush.bf16.msra.mxu0 %v10885_v28  ;;  %v13490_v57 = vld [vmem:[#allocation7 + $0x334] sm:$0xf0] }
 0x6e5   :  { %7623 = vmatmul.bf16.vlgmr.msrb.gmra.mxu1 %v14636_v19  ;;  %v11556_v61 = vld [vmem:[#allocation7 + $0x718] sm:$0xf]  ;;  %v11045_v2 = vor.u32 %v13490_v57, %v11044_v55 }
 0x6e6   :  { %7648 = vmatpush.bf16.msrb.mxu3 %v12449_v14  ;;  %7667 = vmatpush.bf16.msra.mxu1 %v11141_v12  ;;  %v11557_v7 = vor.u32 %v13618_v4, %v11556_v61  ;;  %v11012_v39 = vld [vmem:[#allocation7 + $0x2d8] sm:$0xf]  ;;  %v7417_v12 = vadd.f32 %v7416_v0, %v7404_v59 }
 0x6e7   :  { %7636 = vmatmul.bf16.vlgmr.msrb.gmra.mxu2 %v14638_v25  ;;  %v13482_v14 = vld [vmem:[#allocation7 + $0x2f4] sm:$0xf0] }
 0x6e8   :  { %7680 = vmatpush.bf16.msra.mxu2 %v11397_v23  ;;  %7655 = vmatpush.bf16.msra.mxu0 %v10853_v29  ;;  %v11268_v28 = vld [vmem:[#allocation7 + $0x4d8] sm:$0xf]  ;;  %v11013_v43 = vor.u32 %v13482_v14, %v11012_v39  ;;  %v7444_v14 = vpop.f32.mrf.mxu3 }
 0x6e9   :  { %7649 = vmatmul.bf16.vlgmr.msrb.gmra.mxu3 %v14640_v13  ;;  %v11524_v17 = vld [vmem:[#allocation7 + $0x6d8] sm:$0xf]  ;;  %v11269_v26 = vor.u32 %v13546_v16, %v11268_v28 }
 0x6ea   :  { %7693 = vmatpush.bf16.msra.mxu3 %v11653_v24  ;;  %7668 = vmatpush.bf16.msra.mxu1 %v11109_v6  ;;  %v13610_v23 = vld [vmem:[#allocation7 + $0x6f4] sm:$0xf0]  ;;  %v10757_v24 = vor.u32 %v13418_v38, %v10756_v5  ;;  %v7429_v6 = vpop.f32.mrf.mxu2 }
 0x6eb   :  { %v10724_v30 = vld [vmem:[#allocation7 + $0x98] sm:$0xf]  ;;  %v11525_v3 = vor.u32 %v13610_v23, %v11524_v17  ;;  %v7430_v32 = vadd.f32 %v7429_v6, %v7417_v12 }
 0x6ec   :  { %7681 = vmatpush.bf16.msra.mxu2 %v11365_v45  ;;  %7656 = vmatpush.bf16.msra.mxu0 %v10821_v41  ;;  %v13410_v36 = vld [vmem:[#allocation7 + $0xb4] sm:$0xf0] }
 0x6ed   :  { %v10980_v11 = vld [vmem:[#allocation7 + $0x298] sm:$0xf]  ;;  %v10725_v34 = vor.u32 %v13410_v36, %v10724_v30 }
 0x6ee   :  { %7694 = vmatpush.bf16.msra.mxu3 %v11621_v31  ;;  %7669 = vmatpush.bf16.msra.mxu1 %v11077_v46  ;;  %v13474_v27 = vld [vmem:[#allocation7 + $0x2b4] sm:$0xf0]  ;;  %v14707_v46 = vadd.f32 %v7442_v47, %v7430_v32 }
 0x6ef   :  { %v11236_v29 = vld [vmem:[#allocation7 + $0x498] sm:$0xf]  ;;  %v10981_v20 = vor.u32 %v13474_v27, %v10980_v11 }
 0x6f0   :  { %7682 = vmatpush.bf16.msra.mxu2 %v11333_v53  ;;  %7657 = vmatpush.bf16.msra.mxu0 %v10789_v1  ;;  %v13538_v51 = vld [vmem:[#allocation7 + $0x4b4] sm:$0xf0] }
 0x6f1   :  { %v11492_v45 = vld [vmem:[#allocation7 + $0x698] sm:$0xf]  ;;  %v11237_v49 = vor.u32 %v13538_v51, %v11236_v29 }
 0x6f2   :  { %7695 = vmatpush.bf16.msra.mxu3 %v11589_v63  ;;  %7670 = vmatpush.bf16.msra.mxu1 %v11045_v2  ;;  %v13602_v31 = vld [vmem:[#allocation7 + $0x6b4] sm:$0xf0]  ;;  %v7431_v39 = vpop.f32.mrf.mxu2 }
 0x6f3   :  { %v10692_v35 = vld [vmem:[#allocation7 + $0x58] sm:$0xf]  ;;  %v11493_v52 = vor.u32 %v13602_v31, %v11492_v45 }
 0x6f4   :  { %7683 = vmatpush.bf16.msra.mxu2 %v11301_v42  ;;  %7658 = vmatpush.bf16.msra.mxu0 %v10757_v24  ;;  %v13402_v41 = vld [vmem:[#allocation7 + $0x74] sm:$0xf0] }
 0x6f5   :  { %v10948_v53 = vld [vmem:[#allocation7 + $0x258] sm:$0xf]  ;;  %v10693_v4 = vor.u32 %v13402_v41, %v10692_v35 }
 0x6f6   :  { %7696 = vmatpush.bf16.msra.mxu3 %v11557_v7  ;;  %7671 = vmatpush.bf16.msra.mxu1 %v11013_v43  ;;  %v13466_v63 = vld [vmem:[#allocation7 + $0x274] sm:$0xf0] }
 0x6f7   :  { %v11204_v55 = vld [vmem:[#allocation7 + $0x458] sm:$0xf]  ;;  %v10949_v62 = vor.u32 %v13466_v63, %v10948_v53 }
 0x6f8   :  { %7684 = vmatpush.bf16.msra.mxu2 %v11269_v26  ;;  %v13530_v57 = vld [vmem:[#allocation7 + $0x474] sm:$0xf0]  ;;  %7659 = vmatpush.bf16.msra.mxu0 %v10725_v34 }
 0x6f9   :  { %v11460_v56 = vld [vmem:[#allocation7 + $0x658] sm:$0xf]  ;;  %v11205_v2 = vor.u32 %v13530_v57, %v11204_v55 }
 0x6fa   :  { %7697 = vmatpush.bf16.msra.mxu3 %v11525_v3  ;;  %v13594_v60 = vld [vmem:[#allocation7 + $0x674] sm:$0xf0]  ;;  %7672 = vmatpush.bf16.msra.mxu1 %v10981_v20 }
 0x6fb   :  { %v10660_v61 = vld [vmem:[#allocation7 + $0x18] sm:$0xf]  ;;  %v11461_v5 = vor.u32 %v13594_v60, %v11460_v56 }
 0x6fc   :  { %v13394_v0 = vld [vmem:[#allocation7 + $0x34] sm:$0xf0]  ;;  %7685 = vmatpush.bf16.msra.mxu2 %v11237_v49  ;;  %7660 = vmatpush.bf16.msra.mxu0 %v10693_v4 }
 0x6fd   :  { %v10916_v59 = vld [vmem:[#allocation7 + $0x218] sm:$0xf]  ;;  %v10661_v43 = vor.u32 %v13394_v0, %v10660_v61 }
 0x6fe   :  { %v13458_v1 = vld [vmem:[#allocation7 + $0x234] sm:$0xf0]  ;;  %7698 = vmatpush.bf16.msra.mxu3 %v11493_v52  ;;  %7673 = vmatpush.bf16.msra.mxu1 %v10949_v62 }
 0x6ff   :  { %v11172_v38 = vld [vmem:[#allocation7 + $0x418] sm:$0xf]  ;;  %v10917_v30 = vor.u32 %v13458_v1, %v10916_v59  ;;  %v4458_v1 = vperm.slane %v14658_v54, 4 }
 0x700   :  { %v13522_v42 = vld [vmem:[#allocation7 + $0x434] sm:$0xf0]  ;;  %7686 = vmatpush.bf16.msra.mxu2 %v11205_v2  ;;  %7661 = vmatpush.bf16.msra.mxu0 %v10661_v43 }
 0x701   :  { %v11428_v7 = vld [vmem:[#allocation7 + $0x618] sm:$0xf]  ;;  %v11173_v11 = vor.u32 %v13522_v42, %v11172_v38 }
 0x702   :  { %v13586_v28 = vld [vmem:[#allocation7 + $0x634] sm:$0xf0]  ;;  %7699 = vmatpush.bf16.msra.mxu3 %v11461_v5  ;;  %7674 = vmatpush.bf16.msra.mxu1 %v10917_v30 }
 0x703   :  { %v11908_v12 = vld [vmem:[#allocation7 + $0x9d8] sm:$0xf]  ;;  %v11429_v27 = vor.u32 %v13586_v28, %v11428_v7  ;;  %7662 = vmatmul.bf16.vlgmr.msra.gmra.mxu0 %v14607_v48 }
 0x704   :  { %v13706_v16 = vld [vmem:[#allocation7 + $0x9f4] sm:$0xf0]  ;;  %7687 = vmatpush.bf16.msra.mxu2 %v11173_v11 }
 0x705   :  { %v12164_v17 = vld [vmem:[#allocation7 + $0xbd8] sm:$0xf]  ;;  %v11909_v29 = vor.u32 %v13706_v16, %v11908_v12  ;;  %7675 = vmatmul.bf16.vlgmr.msra.gmra.mxu1 %v14609_v9 }
 0x706   :  { %v13770_v23 = vld [vmem:[#allocation7 + $0xbf4] sm:$0xf0]  ;;  %7700 = vmatpush.bf16.msra.mxu3 %v11429_v27 }
 0x707   :  { %v12420_v24 = vld [vmem:[#allocation7 + $0xdd8] sm:$0xf]  ;;  %v12165_v6 = vor.u32 %v13770_v23, %v12164_v17  ;;  %7706 = vmatpush.bf16.msrb.mxu0 %v11909_v29  ;;  %7688 = vmatmul.bf16.vlgmr.msra.gmra.mxu2 %v14611_v10  ;;  %v7455_v17 = vpop.f32.mrf.mxu0  ;;  %v7468_v23 = vpop.f32.mrf.mxu1 }
 0x708   :  { %v13834_v36 = vld [vmem:[#allocation7 + $0xdf4] sm:$0xf0] }
 0x709   :  { %v12676_v26 = vld [vmem:[#allocation7 + $0xfd8] sm:$0xf]  ;;  %v12421_v45 = vor.u32 %v13834_v36, %v12420_v24  ;;  %7719 = vmatpush.bf16.msrb.mxu1 %v12165_v6  ;;  %7701 = vmatmul.bf16.vlgmr.msra.gmra.mxu3 %v14613_v22  ;;  %v7456_v24 = vadd.f32 %v7455_v17, %v4458_v1 }
 0x70a   :  { %v13898_v3 = vld [vmem:[#allocation7 + $0xff4] sm:$0xf0] }
 0x70b   :  { %v11876_v47 = vld [vmem:[#allocation7 + $0x998] sm:$0xf]  ;;  %v12677_v31 = vor.u32 %v13898_v3, %v12676_v26  ;;  %7732 = vmatpush.bf16.msrb.mxu2 %v12421_v45 }
 0x70c   :  { %v13698_v51 = vld [vmem:[#allocation7 + $0x9b4] sm:$0xf0] }
 0x70d   :  { %v12132_v32 = vld [vmem:[#allocation7 + $0xb98] sm:$0xf]  ;;  %v11877_v41 = vor.u32 %v13698_v51, %v11876_v47  ;;  %7745 = vmatpush.bf16.msrb.mxu3 %v12677_v31  ;;  %v7469_v47 = vadd.f32 %v7468_v23, %v7456_v24 }
 0x70e   :  { %v13762_v15 = vld [vmem:[#allocation7 + $0xbb4] sm:$0xf0] }
 0x70f   :  { %v12388_v33 = vld [vmem:[#allocation7 + $0xd98] sm:$0xf]  ;;  %v12133_v49 = vor.u32 %v13762_v15, %v12132_v32  ;;  %7707 = vmatpush.bf16.msrb.mxu0 %v11877_v41 }
 0x710   :  { %v13826_v34 = vld [vmem:[#allocation7 + $0xdb4] sm:$0xf0] }
 0x711   :  { %v12644_v20 = vld [vmem:[#allocation7 + $0xf98] sm:$0xf]  ;;  %v12389_v63 = vor.u32 %v13826_v34, %v12388_v33  ;;  %7720 = vmatpush.bf16.msrb.mxu1 %v12133_v49 }
 0x712   :  { %v13890_v35 = vld [vmem:[#allocation7 + $0xfb4] sm:$0xf0] }
 0x713   :  { %v11844_v52 = vld [vmem:[#allocation7 + $0x958] sm:$0xf]  ;;  %v12645_v55 = vor.u32 %v13890_v35, %v12644_v20  ;;  %7733 = vmatpush.bf16.msrb.mxu2 %v12389_v63  ;;  %v7494_v63 = vpop.f32.mrf.mxu3 }
 0x714   :  { %v13690_v53 = vld [vmem:[#allocation7 + $0x974] sm:$0xf0] }
 0x715   :  { %v12100_v57 = vld [vmem:[#allocation7 + $0xb58] sm:$0xf]  ;;  %v11845_v0 = vor.u32 %v13690_v53, %v11844_v52  ;;  %7746 = vmatpush.bf16.msrb.mxu3 %v12645_v55  ;;  %v7481_v53 = vpop.f32.mrf.mxu2 }
 0x716   :  { %v13754_v56 = vld [vmem:[#allocation7 + $0xb74] sm:$0xf0] }
 0x717   :  { %v12356_v60 = vld [vmem:[#allocation7 + $0xd58] sm:$0xf]  ;;  %v12101_v59 = vor.u32 %v13754_v56, %v12100_v57  ;;  %7708 = vmatpush.bf16.msrb.mxu0 %v11845_v0 }
 0x718   :  { %v13818_v61 = vld [vmem:[#allocation7 + $0xd74] sm:$0xf0] }
 0x719   :  { %v12612_v4 = vld [vmem:[#allocation7 + $0xf58] sm:$0xf]  ;;  %v12357_v38 = vor.u32 %v13818_v61, %v12356_v60  ;;  %7721 = vmatpush.bf16.msrb.mxu1 %v12101_v59  ;;  %v7482_v60 = vadd.f32 %v7481_v53, %v7469_v47  ;;  %v7457_v61 = vpop.f32.mrf.mxu0 }
 0x71a   :  { %v13882_v62 = vld [vmem:[#allocation7 + $0xf74] sm:$0xf0]  ;;  %v13502_v61 = vld [vmem:[#allocation7 + $0x39c] sm:$0xf] }
 0x71b   :  { %v11812_v2 = vld [vmem:[#allocation7 + $0x918] sm:$0xf]  ;;  %v12613_v42 = vor.u32 %v13882_v62, %v12612_v4  ;;  %7734 = vmatpush.bf16.msrb.mxu2 %v12357_v38  ;;  %v7470_v4 = vpop.f32.mrf.mxu1 }
 0x71c   :  { %v13682_v5 = vld [vmem:[#allocation7 + $0x934] sm:$0xf0]  ;;  %v11110_v4 = vld [vmem:[#allocation7 + $0x3b8] sm:$0xf0] }
 0x71d   :  { %v12068_v7 = vld [vmem:[#allocation7 + $0xb18] sm:$0xf]  ;;  %v11813_v43 = vor.u32 %v13682_v5, %v11812_v2  ;;  %7747 = vmatpush.bf16.msrb.mxu3 %v12613_v42  ;;  %v14714_v2 = vadd.f32 %v7494_v63, %v7482_v60 }
 0x71e   :  { %v13746_v39 = vld [vmem:[#allocation7 + $0xb34] sm:$0xf0] }
 0x71f   :  { %v12324_v14 = vld [vmem:[#allocation7 + $0xd18] sm:$0xf]  ;;  %v12069_v30 = vor.u32 %v13746_v39, %v12068_v7  ;;  %7709 = vmatpush.bf16.msrb.mxu0 %v11813_v43 }
 0x720   :  { %v13810_v28 = vld [vmem:[#allocation7 + $0xd34] sm:$0xf0] }
 0x721   :  { %v12580_v12 = vld [vmem:[#allocation7 + $0xf18] sm:$0xf]  ;;  %v12325_v3 = vor.u32 %v13810_v28, %v12324_v14  ;;  %7722 = vmatpush.bf16.msrb.mxu1 %v12069_v30 }
 0x722   :  { %v13874_v16 = vld [vmem:[#allocation7 + $0xf34] sm:$0xf0] }
 0x723   :  { %v11780_v36 = vld [vmem:[#allocation7 + $0x8d8] sm:$0xf]  ;;  %v12581_v11 = vor.u32 %v13874_v16, %v12580_v12  ;;  %7735 = vmatpush.bf16.msrb.mxu2 %v12325_v3 }
 0x724   :  { %v13674_v26 = vld [vmem:[#allocation7 + $0x8f4] sm:$0xf0] }
 0x725   :  { %v12036_v27 = vld [vmem:[#allocation7 + $0xad8] sm:$0xf]  ;;  %v11781_v32 = vor.u32 %v13674_v26, %v11780_v36  ;;  %7748 = vmatpush.bf16.msrb.mxu3 %v12581_v11 }
 0x726   :  { %v13738_v29 = vld [vmem:[#allocation7 + $0xaf4] sm:$0xf0] }
 0x727   :  { %v12292_v6 = vld [vmem:[#allocation7 + $0xcd8] sm:$0xf]  ;;  %v12037_v15 = vor.u32 %v13738_v29, %v12036_v27  ;;  %7710 = vmatpush.bf16.msrb.mxu0 %v11781_v32  ;;  %v7483_v29 = vpop.f32.mrf.mxu2  ;;  %v11142_v32 = vld [vmem:[#allocation7 + $0x3f8] sm:$0xf0] }
 0x728   :  { %v13802_v51 = vld [vmem:[#allocation7 + $0xcf4] sm:$0xf0]  ;;  %v11046_v29 = vld [vmem:[#allocation7 + $0x338] sm:$0xf0] }
 0x729   :  { %v12548_v45 = vld [vmem:[#allocation7 + $0xed8] sm:$0xf]  ;;  %v12293_v20 = vor.u32 %v13802_v51, %v12292_v6  ;;  %7723 = vmatpush.bf16.msrb.mxu1 %v12037_v15  ;;  %v7496_v6 = vpop.f32.mrf.mxu3  ;;  %v13446_v51 = vld [vmem:[#allocation7 + $0x1dc] sm:$0xf] }
 0x72a   :  { %v13866_v31 = vld [vmem:[#allocation7 + $0xef4] sm:$0xf0]  ;;  %v13574_v15 = vld [vmem:[#allocation7 + $0x5dc] sm:$0xf] }
 0x72b   :  { %v11748_v33 = vld [vmem:[#allocation7 + $0x898] sm:$0xf]  ;;  %v12549_v35 = vor.u32 %v13866_v31, %v12548_v45  ;;  %7736 = vmatpush.bf16.msrb.mxu2 %v12293_v20  ;;  %v10886_v45 = vld [vmem:[#allocation7 + $0x1f8] sm:$0xf0] }
 0x72c   :  { %v13666_v34 = vld [vmem:[#allocation7 + $0x8b4] sm:$0xf0]  ;;  %v13510_v31 = vld [vmem:[#allocation7 + $0x3dc] sm:$0xf]  ;;  %v10889_v53 = vor.u32 %v13446_v51, %v10886_v45 }
 0x72d   :  { %v12004_v41 = vld [vmem:[#allocation7 + $0xa98] sm:$0xf]  ;;  %v11749_v62 = vor.u32 %v13666_v34, %v11748_v33  ;;  %7749 = vmatpush.bf16.msrb.mxu3 %v12549_v35  ;;  %v11398_v20 = vld [vmem:[#allocation7 + $0x5f8] sm:$0xf0]  ;;  %v11145_v63 = vor.u32 %v13510_v31, %v11142_v32  ;;  %v7507_v31 = vpop.f32.mrf.mxu0  ;;  %v7520_v32 = vpop.f32.mrf.mxu1 }
 0x72e   :  { %v13730_v49 = vld [vmem:[#allocation7 + $0xab4] sm:$0xf0]  ;;  %v13638_v35 = vld [vmem:[#allocation7 + $0x7dc] sm:$0xf] }
 0x72f   :  { %v12260_v52 = vld [vmem:[#allocation7 + $0xc98] sm:$0xf]  ;;  %v12005_v0 = vor.u32 %v13730_v49, %v12004_v41  ;;  %7711 = vmatpush.bf16.msrb.mxu0 %v11749_v62  ;;  %v11654_v41 = vld [vmem:[#allocation7 + $0x7f8] sm:$0xf0] }
 0x730   :  { %v13794_v55 = vld [vmem:[#allocation7 + $0xcb4] sm:$0xf0]  ;;  %v11657_v60 = vor.u32 %v13638_v35, %v11654_v41  ;;  %v13566_v62 = vld [vmem:[#allocation7 + $0x59c] sm:$0xf] }
 0x731   :  { %v12516_v57 = vld [vmem:[#allocation7 + $0xe98] sm:$0xf]  ;;  %v12261_v5 = vor.u32 %v13794_v55, %v12260_v52  ;;  %7724 = vmatpush.bf16.msrb.mxu1 %v12005_v0  ;;  %v13438_v55 = vld [vmem:[#allocation7 + $0x19c] sm:$0xf] }
 0x732   :  { %v13858_v56 = vld [vmem:[#allocation7 + $0xeb4] sm:$0xf0]  ;;  %v11366_v0 = vld [vmem:[#allocation7 + $0x5b8] sm:$0xf0] }
 0x733   :  { %v11716_v59 = vld [vmem:[#allocation7 + $0x858] sm:$0xf]  ;;  %v12517_v38 = vor.u32 %v13858_v56, %v12516_v57  ;;  %7737 = vmatpush.bf16.msrb.mxu2 %v12261_v5  ;;  %v10854_v57 = vld [vmem:[#allocation7 + $0x1b8] sm:$0xf0]  ;;  %v11401_v56 = vor.u32 %v13574_v15, %v11398_v20  ;;  %v7508_v15 = vadd.f32 %v7507_v31, %v14714_v2 }
 0x734   :  { %v13658_v1 = vld [vmem:[#allocation7 + $0x874] sm:$0xf0]  ;;  %v10857_v5 = vor.u32 %v13438_v55, %v10854_v57  ;;  %v13550_v6 = vld [vmem:[#allocation7 + $0x51c] sm:$0xf] }
 0x735   :  { %v11972_v42 = vld [vmem:[#allocation7 + $0xa58] sm:$0xf]  ;;  %v11717_v17 = vor.u32 %v13658_v1, %v11716_v59  ;;  %7750 = vmatpush.bf16.msrb.mxu3 %v12517_v38  ;;  %v13630_v59 = vld [vmem:[#allocation7 + $0x79c] sm:$0xf]  ;;  %v11113_v38 = vor.u32 %v13502_v61, %v11110_v4  ;;  %v7521_v55 = vadd.f32 %v7520_v32, %v7508_v15 }
 0x736   :  { %v13722_v7 = vld [vmem:[#allocation7 + $0xa74] sm:$0xf0]  ;;  %v11622_v1 = vld [vmem:[#allocation7 + $0x7b8] sm:$0xf0] }
 0x737   :  { %v12228_v39 = vld [vmem:[#allocation7 + $0xc58] sm:$0xf]  ;;  %v11973_v23 = vor.u32 %v13722_v7, %v11972_v42  ;;  %7712 = vmatpush.bf16.msrb.mxu0 %v11717_v17  ;;  %v13430_v42 = vld [vmem:[#allocation7 + $0x15c] sm:$0xf] }
 0x738   :  { %v13786_v14 = vld [vmem:[#allocation7 + $0xc74] sm:$0xf0]  ;;  %v10822_v7 = vld [vmem:[#allocation7 + $0x178] sm:$0xf0] }
 0x739   :  { %v12484_v28 = vld [vmem:[#allocation7 + $0xe58] sm:$0xf]  ;;  %v12229_v36 = vor.u32 %v13786_v14, %v12228_v39  ;;  %7725 = vmatpush.bf16.msrb.mxu1 %v11973_v23  ;;  %v11369_v39 = vor.u32 %v13566_v62, %v11366_v0  ;;  %v11625_v14 = vor.u32 %v13630_v59, %v11622_v1  ;;  %v11334_v17 = vld [vmem:[#allocation7 + $0x578] sm:$0xf0] }
 0x73a   :  { %v13850_v12 = vld [vmem:[#allocation7 + $0xe74] sm:$0xf0]  ;;  %v13622_v23 = vld [vmem:[#allocation7 + $0x75c] sm:$0xf] }
 0x73b   :  { %v11684_v16 = vld [vmem:[#allocation7 + $0x818] sm:$0xf]  ;;  %v12485_v26 = vor.u32 %v13850_v12, %v12484_v28  ;;  %7738 = vmatpush.bf16.msrb.mxu2 %v12229_v36  ;;  %v13494_v28 = vld [vmem:[#allocation7 + $0x35c] sm:$0xf] }
 0x73c   :  { %v13650_v24 = vld [vmem:[#allocation7 + $0x834] sm:$0xf0]  ;;  %v11078_v12 = vld [vmem:[#allocation7 + $0x378] sm:$0xf0] }
 0x73d   :  { %v11940_v43 = vld [vmem:[#allocation7 + $0xa18] sm:$0xf]  ;;  %v11685_v33 = vor.u32 %v13650_v24, %v11684_v16  ;;  %7751 = vmatpush.bf16.msrb.mxu3 %v12485_v26  ;;  %v13558_v16 = vld [vmem:[#allocation7 + $0x55c] sm:$0xf] }
 0x73e   :  { %v13714_v30 = vld [vmem:[#allocation7 + $0xa34] sm:$0xf0]  ;;  %v11590_v24 = vld [vmem:[#allocation7 + $0x778] sm:$0xf0] }
 0x73f   :  { %v12196_v3 = vld [vmem:[#allocation7 + $0xc18] sm:$0xf]  ;;  %v11941_v34 = vor.u32 %v13714_v30, %v11940_v43  ;;  %7713 = vmatpush.bf16.msrb.mxu0 %v11685_v33  ;;  %v10825_v43 = vor.u32 %v13430_v42, %v10822_v7  ;;  %v11081_v30 = vor.u32 %v13494_v28, %v11078_v12  ;;  %v13422_v36 = vld [vmem:[#allocation7 + $0x11c] sm:$0xf]  ;;  %v7533_v42 = vpop.f32.mrf.mxu2  ;;  %v7546_v7 = vpop.f32.mrf.mxu3 }
 0x740   :  { %v13778_v11 = vld [vmem:[#allocation7 + $0xc34] sm:$0xf0]  ;;  %v10790_v26 = vld [vmem:[#allocation7 + $0x138] sm:$0xf0]  ;;  %v7534_v12 = vadd.f32 %v7533_v42, %v7521_v55 }
 0x741   :  { %v12452_v27 = vld [vmem:[#allocation7 + $0xe18] sm:$0xf]  ;;  %v12197_v49 = vor.u32 %v13778_v11, %v12196_v3  ;;  %7726 = vmatpush.bf16.msrb.mxu1 %v11941_v34  ;;  %v11337_v3 = vor.u32 %v13558_v16, %v11334_v17  ;;  %v11593_v11 = vor.u32 %v13622_v23, %v11590_v24  ;;  %v13614_v51 = vld [vmem:[#allocation7 + $0x71c] sm:$0xf]  ;;  %v10793_v33 = vor.u32 %v13422_v36, %v10790_v26  ;;  %v7509_v16 = vpop.f32.mrf.mxu0  ;;  %v7522_v17 = vpop.f32.mrf.mxu1 }
 0x742   :  { %v13842_v47 = vld [vmem:[#allocation7 + $0xe34] sm:$0xf0]  ;;  %7714 = vmatmul.bf16.vlgmr.msrb.gmra.mxu0 %v14634_v18  ;;  %v11558_v45 = vld [vmem:[#allocation7 + $0x738] sm:$0xf0]  ;;  %v14721_v36 = vadd.f32 %v7546_v7, %v7534_v12 }
 0x743   :  { %v12453_v52 = vor.u32 %v13842_v47, %v12452_v27  ;;  %7739 = vmatpush.bf16.msrb.mxu2 %v12197_v49  ;;  %7758 = vmatpush.bf16.msra.mxu0 %v10889_v53  ;;  %v13486_v27 = vld [vmem:[#allocation7 + $0x31c] sm:$0xf]  ;;  %v11561_v49 = vor.u32 %v13614_v51, %v11558_v45 }
 0x744   :  { %7727 = vmatmul.bf16.vlgmr.msrb.gmra.mxu1 %v14636_v19  ;;  %v11302_v47 = vld [vmem:[#allocation7 + $0x538] sm:$0xf0]  ;;  %v11049_v34 = vor.u32 %v13486_v27, %v11046_v29 }
 0x745   :  { %7752 = vmatpush.bf16.msrb.mxu3 %v12453_v52  ;;  %7771 = vmatpush.bf16.msra.mxu1 %v11145_v63  ;;  %v13414_v20 = vld [vmem:[#allocation7 + $0xdc] sm:$0xf]  ;;  %v11305_v41 = vor.u32 %v13550_v6, %v11302_v47 }
 0x746   :  { %7740 = vmatmul.bf16.vlgmr.msrb.gmra.mxu2 %v14638_v25  ;;  %v10758_v35 = vld [vmem:[#allocation7 + $0xf8] sm:$0xf0] }
 0x747   :  { %7784 = vmatpush.bf16.msra.mxu2 %v11401_v56  ;;  %7759 = vmatpush.bf16.msra.mxu0 %v10857_v5  ;;  %v13478_v52 = vld [vmem:[#allocation7 + $0x2dc] sm:$0xf]  ;;  %v10761_v61 = vor.u32 %v13414_v20, %v10758_v35 }
 0x748   :  { %7753 = vmatmul.bf16.vlgmr.msrb.gmra.mxu3 %v14640_v13  ;;  %v11014_v53 = vld [vmem:[#allocation7 + $0x2f8] sm:$0xf0] }
 0x749   :  { %7797 = vmatpush.bf16.msra.mxu3 %v11657_v60  ;;  %7772 = vmatpush.bf16.msra.mxu1 %v11113_v38  ;;  %v13542_v63 = vld [vmem:[#allocation7 + $0x4dc] sm:$0xf]  ;;  %v11017_v4 = vor.u32 %v13478_v52, %v11014_v53  ;;  %v7535_v53 = vpop.f32.mrf.mxu2 }
 0x74a   :  { %v11270_v57 = vld [vmem:[#allocation7 + $0x4f8] sm:$0xf0] }
 0x74b   :  { %7785 = vmatpush.bf16.msra.mxu2 %v11369_v39  ;;  %7760 = vmatpush.bf16.msra.mxu0 %v10825_v43  ;;  %v13606_v56 = vld [vmem:[#allocation7 + $0x6dc] sm:$0xf]  ;;  %v11273_v0 = vor.u32 %v13542_v63, %v11270_v57  ;;  %v7548_v63 = vpop.f32.mrf.mxu3 }
 0x74c   :  { %v11526_v60 = vld [vmem:[#allocation7 + $0x6f8] sm:$0xf0] }
 0x74d   :  { %7798 = vmatpush.bf16.msra.mxu3 %v11625_v14  ;;  %7773 = vmatpush.bf16.msra.mxu1 %v11081_v30  ;;  %v13406_v2 = vld [vmem:[#allocation7 + $0x9c] sm:$0xf]  ;;  %v11529_v59 = vor.u32 %v13606_v56, %v11526_v60 }
 0x74e   :  { %v10726_v62 = vld [vmem:[#allocation7 + $0xb8] sm:$0xf0] }
 0x74f   :  { %7786 = vmatpush.bf16.msra.mxu2 %v11337_v3  ;;  %7761 = vmatpush.bf16.msra.mxu0 %v10793_v33  ;;  %v13470_v1 = vld [vmem:[#allocation7 + $0x29c] sm:$0xf]  ;;  %v10729_v23 = vor.u32 %v13406_v2, %v10726_v62 }
 0x750   :  { %v10982_v5 = vld [vmem:[#allocation7 + $0x2b8] sm:$0xf0] }
 0x751   :  { %7799 = vmatpush.bf16.msra.mxu3 %v11593_v11  ;;  %7774 = vmatpush.bf16.msra.mxu1 %v11049_v34  ;;  %v13534_v38 = vld [vmem:[#allocation7 + $0x49c] sm:$0xf]  ;;  %v10985_v24 = vor.u32 %v13470_v1, %v10982_v5 }
 0x752   :  { %v11238_v39 = vld [vmem:[#allocation7 + $0x4b8] sm:$0xf0] }
 0x753   :  { %7787 = vmatpush.bf16.msra.mxu2 %v11305_v41  ;;  %v13598_v14 = vld [vmem:[#allocation7 + $0x69c] sm:$0xf]  ;;  %7762 = vmatpush.bf16.msra.mxu0 %v10761_v61  ;;  %v11241_v26 = vor.u32 %v13534_v38, %v11238_v39 }
 0x754   :  { %v11494_v28 = vld [vmem:[#allocation7 + $0x6b8] sm:$0xf0] }
 0x755   :  { %7800 = vmatpush.bf16.msra.mxu3 %v11561_v49  ;;  %7775 = vmatpush.bf16.msra.mxu1 %v11017_v4  ;;  %v13398_v43 = vld [vmem:[#allocation7 + $0x5c] sm:$0xf]  ;;  %v11497_v3 = vor.u32 %v13598_v14, %v11494_v28 }
 0x756   :  { %v10694_v30 = vld [vmem:[#allocation7 + $0x78] sm:$0xf0] }
 0x757   :  { %7788 = vmatpush.bf16.msra.mxu2 %v11273_v0  ;;  %v13462_v11 = vld [vmem:[#allocation7 + $0x25c] sm:$0xf]  ;;  %7763 = vmatpush.bf16.msra.mxu0 %v10729_v23  ;;  %v10697_v31 = vor.u32 %v13398_v43, %v10694_v30 }
 0x758   :  { %v10950_v27 = vld [vmem:[#allocation7 + $0x278] sm:$0xf0] }
 0x759   :  { %7801 = vmatpush.bf16.msra.mxu3 %v11529_v59  ;;  %v13526_v29 = vld [vmem:[#allocation7 + $0x45c] sm:$0xf]  ;;  %7776 = vmatpush.bf16.msra.mxu1 %v10985_v24  ;;  %v10953_v32 = vor.u32 %v13462_v11, %v10950_v27 }
 0x75a   :  { %v11206_v6 = vld [vmem:[#allocation7 + $0x478] sm:$0xf0] }
 0x75b   :  { %v13590_v47 = vld [vmem:[#allocation7 + $0x65c] sm:$0xf]  ;;  %7789 = vmatpush.bf16.msra.mxu2 %v11241_v26  ;;  %v11209_v20 = vor.u32 %v13526_v29, %v11206_v6  ;;  %7764 = vmatpush.bf16.msra.mxu0 %v10697_v31 }
 0x75c   :  { %v11462_v51 = vld [vmem:[#allocation7 + $0x678] sm:$0xf0] }
 0x75d   :  { %v13390_v45 = vld [vmem:[#allocation7 + $0x1c] sm:$0xf]  ;;  %7802 = vmatpush.bf16.msra.mxu3 %v11497_v3  ;;  %v11465_v35 = vor.u32 %v13590_v47, %v11462_v51  ;;  %7777 = vmatpush.bf16.msra.mxu1 %v10953_v32 }
 0x75e   :  { %v10662_v15 = vld [vmem:[#allocation7 + $0x38] sm:$0xf0] }
 0x75f   :  { %v13454_v33 = vld [vmem:[#allocation7 + $0x21c] sm:$0xf]  ;;  %v10665_v2 = vor.u32 %v13390_v45, %v10662_v15  ;;  %7790 = vmatpush.bf16.msra.mxu2 %v11209_v20  ;;  %v4459_v20 = vperm.slane %v14658_v54, 5 }
 0x760   :  { %v10918_v34 = vld [vmem:[#allocation7 + $0x238] sm:$0xf0] }
 0x761   :  { %v13518_v41 = vld [vmem:[#allocation7 + $0x41c] sm:$0xf]  ;;  %v10921_v62 = vor.u32 %v13454_v33, %v10918_v34  ;;  %7803 = vmatpush.bf16.msra.mxu3 %v11465_v35  ;;  %7765 = vmatpush.bf16.msra.mxu0 %v10665_v2 }
 0x762   :  { %v11174_v49 = vld [vmem:[#allocation7 + $0x438] sm:$0xf0] }
 0x763   :  { %v13582_v52 = vld [vmem:[#allocation7 + $0x61c] sm:$0xf]  ;;  %v11177_v5 = vor.u32 %v13518_v41, %v11174_v49  ;;  %7778 = vmatpush.bf16.msra.mxu1 %v10921_v62 }
 0x764   :  { %v11430_v55 = vld [vmem:[#allocation7 + $0x638] sm:$0xf0]  ;;  %7766 = vmatmul.bf16.vlgmr.msra.gmra.mxu0 %v14607_v48 }
 0x765   :  { %v13702_v57 = vld [vmem:[#allocation7 + $0x9dc] sm:$0xf]  ;;  %v11433_v38 = vor.u32 %v13582_v52, %v11430_v55  ;;  %7791 = vmatpush.bf16.msra.mxu2 %v11177_v5 }
 0x766   :  { %v11910_v56 = vld [vmem:[#allocation7 + $0x9f8] sm:$0xf0]  ;;  %7779 = vmatmul.bf16.vlgmr.msra.gmra.mxu1 %v14609_v9 }
 0x767   :  { %v13766_v60 = vld [vmem:[#allocation7 + $0xbdc] sm:$0xf]  ;;  %v11913_v42 = vor.u32 %v13702_v57, %v11910_v56  ;;  %7804 = vmatpush.bf16.msra.mxu3 %v11433_v38  ;;  %v7559_v57 = vpop.f32.mrf.mxu0 }
 0x768   :  { %v12166_v61 = vld [vmem:[#allocation7 + $0xbf8] sm:$0xf0]  ;;  %7792 = vmatmul.bf16.vlgmr.msra.gmra.mxu2 %v14611_v10  ;;  %v7560_v56 = vadd.f32 %v7559_v57, %v4459_v20 }
 0x769   :  { %v13830_v4 = vld [vmem:[#allocation7 + $0xddc] sm:$0xf]  ;;  %v12169_v7 = vor.u32 %v13766_v60, %v12166_v61  ;;  %7810 = vmatpush.bf16.msrb.mxu0 %v11913_v42 }
 0x76a   :  { %v12422_v0 = vld [vmem:[#allocation7 + $0xdf8] sm:$0xf0]  ;;  %7805 = vmatmul.bf16.vlgmr.msra.gmra.mxu3 %v14613_v22  ;;  %v7572_v22 = vpop.f32.mrf.mxu1 }
 0x76b   :  { %v13894_v59 = vld [vmem:[#allocation7 + $0xfdc] sm:$0xf]  ;;  %v12425_v28 = vor.u32 %v13830_v4, %v12422_v0  ;;  %7823 = vmatpush.bf16.msrb.mxu1 %v12169_v7  ;;  %v7573_v38 = vadd.f32 %v7572_v22, %v7560_v56 }
 0x76c   :  { %v12678_v1 = vld [vmem:[#allocation7 + $0xff8] sm:$0xf0] }
 0x76d   :  { %v13694_v39 = vld [vmem:[#allocation7 + $0x99c] sm:$0xf]  ;;  %v12681_v12 = vor.u32 %v13894_v59, %v12678_v1  ;;  %7836 = vmatpush.bf16.msrb.mxu2 %v12425_v28 }
 0x76e   :  { %v11878_v14 = vld [vmem:[#allocation7 + $0x9b8] sm:$0xf0] }
 0x76f   :  { %v13758_v16 = vld [vmem:[#allocation7 + $0xb9c] sm:$0xf]  ;;  %v11881_v26 = vor.u32 %v13694_v39, %v11878_v14  ;;  %7849 = vmatpush.bf16.msrb.mxu3 %v12681_v12 }
 0x770   :  { %v12134_v17 = vld [vmem:[#allocation7 + $0xbb8] sm:$0xf0] }
 0x771   :  { %v13822_v23 = vld [vmem:[#allocation7 + $0xd9c] sm:$0xf]  ;;  %v12137_v3 = vor.u32 %v13758_v16, %v12134_v17  ;;  %7811 = vmatpush.bf16.msrb.mxu0 %v11881_v26  ;;  %v7585_v26 = vpop.f32.mrf.mxu2 }
 0x772   :  { %v12390_v24 = vld [vmem:[#allocation7 + $0xdb8] sm:$0xf0] }
 0x773   :  { %v13886_v43 = vld [vmem:[#allocation7 + $0xf9c] sm:$0xf]  ;;  %v12393_v29 = vor.u32 %v13822_v23, %v12390_v24  ;;  %7824 = vmatpush.bf16.msrb.mxu1 %v12137_v3  ;;  %v7598_v3 = vpop.f32.mrf.mxu3 }
 0x774   :  { %v12646_v30 = vld [vmem:[#allocation7 + $0xfb8] sm:$0xf0] }
 0x775   :  { %v13686_v11 = vld [vmem:[#allocation7 + $0x95c] sm:$0xf]  ;;  %v12649_v6 = vor.u32 %v13886_v43, %v12646_v30  ;;  %7837 = vmatpush.bf16.msrb.mxu2 %v12393_v29 }
 0x776   :  { %v11846_v27 = vld [vmem:[#allocation7 + $0x978] sm:$0xf0] }
 0x777   :  { %v13750_v47 = vld [vmem:[#allocation7 + $0xb5c] sm:$0xf]  ;;  %v11849_v33 = vor.u32 %v13686_v11, %v11846_v27  ;;  %7850 = vmatpush.bf16.msrb.mxu3 %v12649_v6  ;;  %v7586_v6 = vadd.f32 %v7585_v26, %v7573_v38 }
 0x778   :  { %v12102_v51 = vld [vmem:[#allocation7 + $0xb78] sm:$0xf0] }
 0x779   :  { %v13814_v45 = vld [vmem:[#allocation7 + $0xd5c] sm:$0xf]  ;;  %v12105_v34 = vor.u32 %v13750_v47, %v12102_v51  ;;  %7812 = vmatpush.bf16.msrb.mxu0 %v11849_v33  ;;  %v7561_v47 = vpop.f32.mrf.mxu0  ;;  %v7574_v51 = vpop.f32.mrf.mxu1  ;;  %v7599_v33 = vadd.f32 %v7598_v3, %v7586_v6 }
 0x77a   :  { %v12358_v31 = vld [vmem:[#allocation7 + $0xd78] sm:$0xf0] }
 0x77b   :  { %v13878_v32 = vld [vmem:[#allocation7 + $0xf5c] sm:$0xf]  ;;  %v12361_v48 = vor.u32 %v13814_v45, %v12358_v31  ;;  %7825 = vmatpush.bf16.msrb.mxu1 %v12105_v34 }
 0x77c   :  { %v12614_v15 = vld [vmem:[#allocation7 + $0xf78] sm:$0xf0] }
 0x77d   :  { %v13678_v35 = vld [vmem:[#allocation7 + $0x91c] sm:$0xf]  ;;  %v12617_v49 = vor.u32 %v13878_v32, %v12614_v15  ;;  %7838 = vmatpush.bf16.msrb.mxu2 %v12361_v48 }
 0x77e   :  { %v11814_v41 = vld [vmem:[#allocation7 + $0x938] sm:$0xf0] }
 0x77f   :  { %v13742_v9 = vld [vmem:[#allocation7 + $0xb1c] sm:$0xf]  ;;  %v11817_v60 = vor.u32 %v13678_v35, %v11814_v41  ;;  %7851 = vmatpush.bf16.msrb.mxu3 %v12617_v49 }
 0x780   :  { %v12070_v52 = vld [vmem:[#allocation7 + $0xb38] sm:$0xf0] }
 0x781   :  { %v13806_v53 = vld [vmem:[#allocation7 + $0xd1c] sm:$0xf]  ;;  %v12073_v61 = vor.u32 %v13742_v9, %v12070_v52  ;;  %7813 = vmatpush.bf16.msrb.mxu0 %v11817_v60 }
 0x782   :  { %v12326_v63 = vld [vmem:[#allocation7 + $0xd38] sm:$0xf0] }
 0x783   :  { %v13870_v55 = vld [vmem:[#allocation7 + $0xf1c] sm:$0xf]  ;;  %v12329_v62 = vor.u32 %v13806_v53, %v12326_v63  ;;  %7826 = vmatpush.bf16.msrb.mxu1 %v12073_v61 }
 0x784   :  { %v12582_v10 = vld [vmem:[#allocation7 + $0xf38] sm:$0xf0] }
 0x785   :  { %v13670_v4 = vld [vmem:[#allocation7 + $0x8dc] sm:$0xf]  ;;  %v12585_v0 = vor.u32 %v13870_v55, %v12582_v10  ;;  %7839 = vmatpush.bf16.msrb.mxu2 %v12329_v62 }
 0x786   :  { %v11782_v2 = vld [vmem:[#allocation7 + $0x8f8] sm:$0xf0] }
 0x787   :  { %v13734_v59 = vld [vmem:[#allocation7 + $0xadc] sm:$0xf]  ;;  %v11785_v14 = vor.u32 %v13670_v4, %v11782_v2  ;;  %7852 = vmatpush.bf16.msrb.mxu3 %v12585_v0  ;;  %v7587_v4 = vpop.f32.mrf.mxu2  ;;  %v7600_v2 = vpop.f32.mrf.mxu3 }
 0x788   :  { %v12038_v1 = vld [vmem:[#allocation7 + $0xaf8] sm:$0xf0]  ;;  %v7873_v2 = vmul.f32 %v14679_v50, %v14679_v50 }
 0x789   :  { %v13798_v5 = vld [vmem:[#allocation7 + $0xcdc] sm:$0xf]  ;;  %v12041_v28 = vor.u32 %v13734_v59, %v12038_v1  ;;  %7814 = vmatpush.bf16.msrb.mxu0 %v11785_v14 }
 0x78a   :  { %v12294_v42 = vld [vmem:[#allocation7 + $0xcf8] sm:$0xf0] }
 0x78b   :  { %v13862_v7 = vld [vmem:[#allocation7 + $0xedc] sm:$0xf]  ;;  %v12297_v17 = vor.u32 %v13798_v5, %v12294_v42  ;;  %7827 = vmatpush.bf16.msrb.mxu1 %v12041_v28 }
 0x78c   :  { %v12550_v39 = vld [vmem:[#allocation7 + $0xef8] sm:$0xf0] }
 0x78d   :  { %v13662_v12 = vld [vmem:[#allocation7 + $0x89c] sm:$0xf]  ;;  %v12553_v23 = vor.u32 %v13862_v7, %v12550_v39  ;;  %7840 = vmatpush.bf16.msrb.mxu2 %v12297_v17  ;;  %v7611_v7 = vpop.f32.mrf.mxu0  ;;  %v7624_v39 = vpop.f32.mrf.mxu1 }
 0x78e   :  { %v11750_v16 = vld [vmem:[#allocation7 + $0x8b8] sm:$0xf0]  ;;  %v7612_v14 = vadd.f32 %v7611_v7, %v7599_v33 }
 0x78f   :  { %v13726_v24 = vld [vmem:[#allocation7 + $0xa9c] sm:$0xf]  ;;  %v11753_v45 = vor.u32 %v13662_v12, %v11750_v16  ;;  %7853 = vmatpush.bf16.msrb.mxu3 %v12553_v23  ;;  %v7637_v12 = vpop.f32.mrf.mxu2  ;;  %v7650_v16 = vpop.f32.mrf.mxu3 }
 0x790   :  { %v12006_v43 = vld [vmem:[#allocation7 + $0xab8] sm:$0xf0]  ;;  %v7625_v28 = vadd.f32 %v7624_v39, %v7612_v14  ;;  %v7875_v14 = vmul.f32 %v14707_v46, %v14707_v46 }
 0x791   :  { %v13790_v30 = vld [vmem:[#allocation7 + $0xc9c] sm:$0xf]  ;;  %v12009_v31 = vor.u32 %v13726_v24, %v12006_v43  ;;  %7815 = vmatpush.bf16.msrb.mxu0 %v11753_v45 }
 0x792   :  { %v12262_v11 = vld [vmem:[#allocation7 + $0xcb8] sm:$0xf0]  ;;  %v7638_v17 = vadd.f32 %v7637_v12, %v7625_v28 }
 0x793   :  { %v13854_v27 = vld [vmem:[#allocation7 + $0xe9c] sm:$0xf]  ;;  %v12265_v34 = vor.u32 %v13790_v30, %v12262_v11  ;;  %7828 = vmatpush.bf16.msrb.mxu1 %v12009_v31 }
 0x794   :  { %v12518_v29 = vld [vmem:[#allocation7 + $0xeb8] sm:$0xf0]  ;;  %v14732_v43 = vadd.f32 %v7650_v16, %v7638_v17  ;;  %v7876_v17 = vmul.f32 %v14721_v36, %v14721_v36 }
 0x795   :  { %v13654_v32 = vld [vmem:[#allocation7 + $0x85c] sm:$0xf]  ;;  %v12521_v20 = vor.u32 %v13854_v27, %v12518_v29  ;;  %7841 = vmatpush.bf16.msrb.mxu2 %v12265_v34  ;;  %v7613_v23 = vpop.f32.mrf.mxu0  ;;  %v7626_v24 = vpop.f32.mrf.mxu1 }
 0x796   :  { %v11718_v15 = vld [vmem:[#allocation7 + $0x878] sm:$0xf0] }
 0x797   :  { %v13718_v35 = vld [vmem:[#allocation7 + $0xa5c] sm:$0xf]  ;;  %v11721_v53 = vor.u32 %v13654_v32, %v11718_v15  ;;  %7854 = vmatpush.bf16.msrb.mxu3 %v12521_v20  ;;  %v7639_v30 = vpop.f32.mrf.mxu2  ;;  %v7652_v26 = vpop.f32.mrf.mxu3 }
 0x798   :  { %v11974_v41 = vld [vmem:[#allocation7 + $0xa78] sm:$0xf0]  ;;  %v7877_v26 = vmul.f32 %v14732_v43, %v14732_v43 }
 0x799   :  { %v13782_v48 = vld [vmem:[#allocation7 + $0xc5c] sm:$0xf]  ;;  %v11977_v63 = vor.u32 %v13718_v35, %v11974_v41  ;;  %7816 = vmatpush.bf16.msrb.mxu0 %v11721_v53 }
 0x79a   :  { %v12230_v49 = vld [vmem:[#allocation7 + $0xc78] sm:$0xf0] }
 0x79b   :  { %v13846_v9 = vld [vmem:[#allocation7 + $0xe5c] sm:$0xf]  ;;  %v12233_v57 = vor.u32 %v13782_v48, %v12230_v49  ;;  %7829 = vmatpush.bf16.msrb.mxu1 %v11977_v63 }
 0x79c   :  { %v12486_v52 = vld [vmem:[#allocation7 + $0xe78] sm:$0xf0] }
 0x79d   :  { %v13646_v55 = vld [vmem:[#allocation7 + $0x81c] sm:$0xf]  ;;  %v12489_v22 = vor.u32 %v13846_v9, %v12486_v52  ;;  %7842 = vmatpush.bf16.msrb.mxu2 %v12233_v57  ;;  %v7676_v3 = vpop.f32.mrf.mxu1 }
 0x79e   :  { %v11686_v10 = vld [vmem:[#allocation7 + $0x838] sm:$0xf0] }
 0x79f   :  { %v13710_v56 = vld [vmem:[#allocation7 + $0xa1c] sm:$0xf]  ;;  %v11689_v1 = vor.u32 %v13646_v55, %v11686_v10  ;;  %7855 = vmatpush.bf16.msrb.mxu3 %v12489_v22  ;;  %v7702_v27 = vpop.f32.mrf.mxu3  ;;  %v4461_v10 = vperm.slane %v14658_v54, 7 }
 0x7a0   :  { %v11942_v60 = vld [vmem:[#allocation7 + $0xa38] sm:$0xf0] }
 0x7a1   :  { %v13774_v61 = vld [vmem:[#allocation7 + $0xc1c] sm:$0xf]  ;;  %v11945_v5 = vor.u32 %v13710_v56, %v11942_v60  ;;  %7817 = vmatpush.bf16.msrb.mxu0 %v11689_v1  ;;  %v7874_v1 = vmul.f32 %v14693_v8, %v14693_v8 }
 0x7a2   :  { %v12198_v62 = vld [vmem:[#allocation7 + $0xc38] sm:$0xf0] }
 0x7a3   :  { %v13838_v0 = vld [vmem:[#allocation7 + $0xe1c] sm:$0xf]  ;;  %v12201_v38 = vor.u32 %v13774_v61, %v12198_v62  ;;  %7830 = vmatpush.bf16.msrb.mxu1 %v11945_v5 }
 0x7a4   :  { %v12454_v59 = vld [vmem:[#allocation7 + $0xe38] sm:$0xf0]  ;;  %7818 = vmatmul.bf16.vlgmr.msrb.gmra.mxu0 %v14634_v18  ;;  %v4460_v18 = vperm.slane %v14658_v54, 6 }
 0x7a5   :  { %v12457_v42 = vor.u32 %v13838_v0, %v12454_v59  ;;  %7843 = vmatpush.bf16.msrb.mxu2 %v12201_v38  ;;  %v7678_v47 = vpop.f32.mrf.mxu1  ;;  %v7872_v0 = vmul.f32 %v14665_v21, %v14665_v21  ;;  %v7862_v59 = vadd.f32 %v14679_v50, %v14665_v21 }
 0x7a6   :  { %7831 = vmatmul.bf16.vlgmr.msrb.gmra.mxu1 %v14636_v19  ;;  %v7663_v19 = vpop.f32.mrf.mxu0 }
 0x7a7   :  { %7856 = vmatpush.bf16.msrb.mxu3 %v12457_v42  ;;  %v7704_v31 = vpop.f32.mrf.mxu3  ;;  %v7880_v7 = vadd.f32 %v7873_v2, %v7872_v0  ;;  %v7863_v39 = vadd.f32 %v7862_v59, %v14693_v8 }
 0x7a8   :  { %7844 = vmatmul.bf16.vlgmr.msrb.gmra.mxu2 %v14638_v25  ;;  %v7664_v25 = vadd.f32 %v7663_v19, %v4460_v18 }
 0x7a9   :  { %v7881_v12 = vadd.f32 %v7880_v7, %v7874_v1  ;;  %v7864_v16 = vadd.f32 %v7863_v39, %v14707_v46 }
 0x7aa   :  { %7857 = vmatmul.bf16.vlgmr.msrb.gmra.mxu3 %v14640_v13  ;;  %v7677_v11 = vadd.f32 %v7676_v3, %v7664_v25  ;;  %v7689_v13 = vpop.f32.mrf.mxu2 }
 0x7ab   :  { %v7882_v24 = vadd.f32 %v7881_v12, %v7875_v14  ;;  %v7865_v30 = vadd.f32 %v7864_v16, %v14721_v36 }
 0x7ac   :  { %v7690_v29 = vadd.f32 %v7689_v13, %v7677_v11 }
 0x7ad   :  { %v7883_v25 = vadd.f32 %v7882_v24, %v7876_v17  ;;  %v7866_v11 = vadd.f32 %v7865_v30, %v14732_v43 }
 0x7ae   :  { %v7665_v6 = vpop.f32.mrf.mxu0  ;;  %v7703_v51 = vadd.f32 %v7702_v27, %v7690_v29 }
 0x7b2   :  { %v7691_v45 = vpop.f32.mrf.mxu2 }
 0x7b3   :  { %v7884_v45 = vadd.f32 %v7883_v25, %v7877_v26 }
 0x7bf   :  { %v7715_v32 = vpop.f32.mrf.mxu0 }
 0x7c0   :  { %v7716_v60 = vadd.f32 %v7715_v32, %v7703_v51 }
 0x7c1   :  { %v7728_v15 = vpop.f32.mrf.mxu1 }
 0x7c2   :  { %v7729_v62 = vadd.f32 %v7728_v15, %v7716_v60 }
 0x7c7   :  { %v7717_v20 = vpop.f32.mrf.mxu0 }
 0x7c9   :  { %v7741_v33 = vpop.f32.mrf.mxu2  ;;  %v7730_v35 = vpop.f32.mrf.mxu1 }
 0x7ca   :  { %v7742_v54 = vadd.f32 %v7741_v33, %v7729_v62 }
 0x7cb   :  { %v7754_v34 = vpop.f32.mrf.mxu3 }
 0x7cc   :  { %v14750_v23 = vadd.f32 %v7754_v34, %v7742_v54 }
 0x7ce   :  { %v7878_v13 = vmul.f32 %v14750_v23, %v14750_v23  ;;  %v7867_v51 = vadd.f32 %v7866_v11, %v14750_v23 }
 0x7d0   :  { %v7885_v15 = vadd.f32 %v7884_v45, %v7878_v13 }
 0x7d1   :  { %v7743_v41 = vpop.f32.mrf.mxu2 }
 0x7d3   :  { %v7756_v48 = vpop.f32.mrf.mxu3 }
 0x7e1   :  { %v7767_v49 = vpop.f32.mrf.mxu0 }
 0x7e2   :  { %v7768_v56 = vadd.f32 %v7767_v49, %v4461_v10  ;;  %v166_v10 = vld [vmem:[#allocation8 + $0x1] ss:$8 sm:$0xf0] }
 0x7e3   :  { %v7780_v9 = vpop.f32.mrf.mxu1 }
 0x7e4   :  { %v7781_v61 = vadd.f32 %v7780_v9, %v7768_v56  ;;  %v170_v56 = vld [vmem:[#allocation8 + $0x2] ss:$8 sm:$0xf0] }
 0x7e9   :  { %v7769_v63 = vpop.f32.mrf.mxu0 }
 0x7eb   :  { %v7793_v52 = vpop.f32.mrf.mxu2  ;;  %v7782_v55 = vpop.f32.mrf.mxu1 }
 0x7ec   :  { %v7794_v4 = vadd.f32 %v7793_v52, %v7781_v61  ;;  %v165_v55 = vld [vmem:[#allocation8 + $0x1] ss:$8 sm:$0xf] }
 0x7ed   :  { %v7806_v53 = vpop.f32.mrf.mxu3  ;;  %v167_v61 = vor.u32 %v166_v10, %v165_v55 }
 0x7ee   :  { %v7807_v5 = vadd.f32 %v7806_v53, %v7794_v4 }
 0x7ef   :  { %v7920_v0 = vperm.slane %v167_v61, 0  ;;  %v7921_v59 = vperm.slane %v167_v61, 1  ;;  %v7922_v1 = vperm.slane %v167_v61, 2  ;;  %v7923_v54 = vperm.slane %v167_v61, 3 }
 0x7f3   :  { %v7795_v57 = vpop.f32.mrf.mxu2 }
 0x7f5   :  { %v7808_v22 = vpop.f32.mrf.mxu3 }
 0x7f6   :  { %v169_v22 = vld [vmem:[#allocation8 + $0x2] ss:$8 sm:$0xf] }
 0x7f7   :  { %v14764_v2 = vor.u32 %v170_v56, %v169_v22 }
 0x7f9   :  { %v7945_v7 = vperm.slane %v14764_v2, 0  ;;  %v7946_v39 = vperm.slane %v14764_v2, 1  ;;  %v7947_v26 = vperm.slane %v14764_v2, 2 }
 0x821   :  { %v7819_v38 = vpop.f32.mrf.mxu0 }
 0x822   :  { %v7820_v28 = vadd.f32 %v7819_v38, %v7807_v5  ;;  %v7924_v5 = vperm.slane %v167_v61, 4  ;;  %v7925_v38 = vperm.slane %v167_v61, 5 }
 0x823   :  { %v7832_v42 = vpop.f32.mrf.mxu1 }
 0x824   :  { %v7833_v18 = vadd.f32 %v7832_v42, %v7820_v28 }
 0x829   :  { %v7821_v29 = vpop.f32.mrf.mxu0 }
 0x82b   :  { %v7845_v19 = vpop.f32.mrf.mxu2  ;;  %v7834_v6 = vpop.f32.mrf.mxu1 }
 0x82c   :  { %v7846_v27 = vadd.f32 %v7845_v19, %v7833_v18 }
 0x82d   :  { %v7858_v3 = vpop.f32.mrf.mxu3 }
 0x82e   :  { %v14758_v47 = vadd.f32 %v7858_v3, %v7846_v27 }
 0x830   :  { %v7868_v31 = vadd.f32 %v7867_v51, %v14758_v47  ;;  %v7879_v32 = vmul.f32 %v14758_v47, %v14758_v47  ;;  %v7949_v51 = vperm.slane %v14764_v2, 4 }
 0x832   :  { %7869 = vadd.xlane.f32.xlu2 %v7868_v31  ;;  %v7886_v33 = vadd.f32 %v7885_v15, %v7879_v32 }
 0x833   :  { %v7847_v34 = vpop.f32.mrf.mxu2 }
 0x834   :  { %7887 = vadd.xlane.f32.xlu0 %v7886_v33  ;;  %v7927_v33 = vperm.slane %v167_v61, 7 }
 0x835   :  { %v7860_v20 = vpop.f32.mrf.mxu3 }
 0x836   :  { %v7950_v20 = vperm.slane %v14764_v2, 5 }
 0x8a5   :  { %v7870_v35 = vpop.xlane.xlu2 %7869 }
 0x8a6   :  { %v7871_v41 = vmul.f32 0.001, %v7870_v35 }
 0x8a7   :  { %v7888_v48 = vpop.xlane.xlu0 %7887 }
 0x8a8   :  { %v7889_v49 = vmul.f32 0.001, %v7888_v48  ;;  %v7890_v9 = vmul.f32 %v7871_v41, %v7871_v41  ;;  %v7903_v14 = vsub.f32 %v14665_v21, %v7871_v41  ;;  %v7904_v28 = vsub.f32 %v14679_v50, %v7871_v41 }
 0x8a9   :  { %v7905_v12 = vsub.f32 %v14693_v8, %v7871_v41  ;;  %v7906_v16 = vsub.f32 %v14707_v46, %v7871_v41  ;;  %v7907_v24 = vsub.f32 %v14721_v36, %v7871_v41  ;;  %v7908_v30 = vsub.f32 %v14732_v43, %v7871_v41 }
 0x8aa   :  { %v7891_v52 = vsub.f32 %v7889_v49, %v7890_v9  ;;  %v7909_v11 = vsub.f32 %v14750_v23, %v7871_v41  ;;  %v7948_v50 = vperm.slane %v14764_v2, 3  ;;  %v7910_v36 = vsub.f32 %v14758_v47, %v7871_v41 }
 0x8ab   :  { %v7926_v43 = vperm.slane %v167_v61, 6  ;;  %v7951_v9 = vperm.slane %v14764_v2, 6 }
 0x8ac   :  { %v7892_v53 = vadd.f32 1e-05, %v7891_v52 }
 0x8ae   :  { %14013 = vrsqrt.f32 %v7892_v53  ;;  %vm7899_vm0 = vweird.f32 %v7892_v53 }
 0x8b4   :  { %v14014_v63 = vpop.eup %14013 }
 0x8b5   :  { %v7894_v57 = vmul.f32 %v14014_v63, %v7892_v53  ;;  %vm7900_vm15 = vweird.f32 %v14014_v63 }
 0x8b6   :  { %vm7901_vm1 = vmor %vm7899_vm0, %vm7900_vm15 }
 0x8b7   :  { %v7895_v60 = vmul.f32 %v14014_v63, %v7894_v57  ;;  %v7952_v57 = vperm.slane %v14764_v2, 7 }
 0x8b9   :  { %v7896_v4 = vmul.f32 0.5, %v7895_v60 }
 0x8bb   :  { %v7897_v62 = vsub.f32 1.5, %v7896_v4 }
 0x8bd   :  { %v7898_v42 = vmul.f32 %v14014_v63, %v7897_v62 }
 0x8bf   :  { %v7902_v17 = vsel %vm7901_vm1, %v14014_v63, %v7898_v42 }
 0x8c0   :  { %v7911_v18 = vmul.f32 %v7903_v14, %v7902_v17  ;;  %v7912_v19 = vmul.f32 %v7904_v28, %v7902_v17  ;;  %v7913_v3 = vmul.f32 %v7905_v12, %v7902_v17  ;;  %v7914_v25 = vmul.f32 %v7906_v16, %v7902_v17 }
 0x8c1   :  { %v7915_v21 = vmul.f32 %v7907_v24, %v7902_v17  ;;  %v7916_v13 = vmul.f32 %v7908_v30, %v7902_v17  ;;  %v7917_v6 = vmul.f32 %v7909_v11, %v7902_v17  ;;  %v7918_v15 = vmul.f32 %v7910_v36, %v7902_v17 }
 0x8c2   :  { %v7936_v8 = vmul.f32 %v7920_v0, %v7911_v18  ;;  %v7937_v27 = vmul.f32 %v7921_v59, %v7912_v19  ;;  %v7938_v46 = vmul.f32 %v7922_v1, %v7913_v3  ;;  %v7939_v29 = vmul.f32 %v7923_v54, %v7914_v25 }
 0x8c3   :  { %v7940_v45 = vmul.f32 %v7924_v5, %v7915_v21  ;;  %v7941_v34 = vmul.f32 %v7925_v38, %v7916_v13  ;;  %v7942_v49 = vmul.f32 %v7926_v43, %v7917_v6  ;;  %v7943_v10 = vmul.f32 %v7927_v33, %v7918_v15 }
 0x8c4   :  { %v14779_v31 = vadd.f32 %v7945_v7, %v7936_v8  ;;  %v14781_v32 = vadd.f32 %v7946_v39, %v7937_v27  ;;  %v14783_v23 = vadd.f32 %v7947_v26, %v7938_v46  ;;  %v14786_v35 = vadd.f32 %v7948_v50, %v7939_v29 }
 0x8c5   :  { %v14795_v52 = vadd.f32 %v7949_v51, %v7940_v45  ;;  %v14801_v22 = vadd.f32 %v7950_v20, %v7941_v34  ;;  %v14806_v4 = vadd.f32 %v7951_v9, %v7942_v49  ;;  %v14811_v1 = vadd.f32 %v7952_v57, %v7943_v10 }
 0x8c6   :  { %v7969_v47 = vadd.f32 %v14781_v32, %v14779_v31  ;;  %v7984_v41 = vmul.f32 %v14779_v31, %v14779_v31  ;;  %v7985_v48 = vmul.f32 %v14781_v32, %v14781_v32  ;;  %v7986_v63 = vmul.f32 %v14783_v23, %v14783_v23 }
 0x8c7   :  { %v7987_v60 = vmul.f32 %v14786_v35, %v14786_v35  ;;  %v7988_v0 = vmul.f32 %v14795_v52, %v14795_v52  ;;  %v7989_v54 = vmul.f32 %v14801_v22, %v14801_v22  ;;  %v7990_v42 = vmul.f32 %v14806_v4, %v14806_v4 }
 0x8c8   :  { %v7970_v53 = vadd.f32 %v7969_v47, %v14783_v23  ;;  %v7992_v55 = vadd.f32 %v7985_v48, %v7984_v41  ;;  %v7991_v14 = vmul.f32 %v14811_v1, %v14811_v1 }
 0x8ca   :  { %v7971_v56 = vadd.f32 %v7970_v53, %v14786_v35  ;;  %v7993_v61 = vadd.f32 %v7992_v55, %v7986_v63 }
 0x8cc   :  { %v7972_v62 = vadd.f32 %v7971_v56, %v14795_v52  ;;  %v7994_v59 = vadd.f32 %v7993_v61, %v7987_v60 }
 0x8ce   :  { %v7973_v2 = vadd.f32 %v7972_v62, %v14801_v22  ;;  %v7995_v5 = vadd.f32 %v7994_v59, %v7988_v0 }
 0x8d0   :  { %v7974_v38 = vadd.f32 %v7973_v2, %v14806_v4  ;;  %v7996_v7 = vadd.f32 %v7995_v5, %v7989_v54 }
 0x8d2   :  { %v7975_v39 = vadd.f32 %v7974_v38, %v14811_v1  ;;  %v7997_v28 = vadd.f32 %v7996_v7, %v7990_v42 }
 0x8d4   :  { %7976 = vadd.xlane.f32.xlu1 %v7975_v39  ;;  %v7998_v12 = vadd.f32 %v7997_v28, %v7991_v14 }
 0x8d6   :  { %7999 = vadd.xlane.f32.xlu2 %v7998_v12 }
 0x947   :  { %v7977_v16 = vpop.xlane.xlu1 %7976 }
 0x948   :  { %v7978_v17 = vrot.slane %v7977_v16, 4 }
 0x949   :  { %v8000_v24 = vpop.xlane.xlu2 %7999 }
 0x94a   :  { %v7979_v30 = vadd.f32 %v7978_v17, %v7977_v16  ;;  %v8001_v26 = vrot.slane %v8000_v24, 4 }
 0x94c   :  { %v7980_v18 = vrot.slane %v7979_v30, 2  ;;  %v8002_v19 = vadd.f32 %v8001_v26, %v8000_v24 }
 0x94e   :  { %v7981_v3 = vadd.f32 %v7980_v18, %v7979_v30  ;;  %v8003_v25 = vrot.slane %v8002_v19, 2 }
 0x950   :  { %v7982_v11 = vrot.slane %v7981_v3, 1  ;;  %v8004_v21 = vadd.f32 %v8003_v25, %v8002_v19 }
 0x952   :  { %v7983_v13 = vadd.f32 %v7982_v11, %v7981_v3  ;;  %v8005_v8 = vrot.slane %v8004_v21, 1 }
 0x954   :  { %v8007_v50 = vmul.f32 0.000125, %v7983_v13  ;;  %v8006_v46 = vadd.f32 %v8005_v8, %v8004_v21 }
 0x956   :  { %v8008_v27 = vmul.f32 8000.0, %v8007_v50  ;;  %v8809_v53 = vsel %vm8797_vm5, %v8007_v50, 0.0  ;;  %v8041_v59 = vsub.f32 %v14779_v31, %v8007_v50  ;;  %v8042_v2 = vsub.f32 %v14781_v32, %v8007_v50 }
 0x957   :  { %v8043_v5 = vsub.f32 %v14783_v23, %v8007_v50  ;;  %v8044_v38 = vsub.f32 %v14786_v35, %v8007_v50  ;;  %v8045_v7 = vsub.f32 %v14795_v52, %v8007_v50  ;;  %v8046_v39 = vsub.f32 %v14801_v22, %v8007_v50 }
 0x958   :  { %v8009_v29 = vmul.f32 %v8008_v27, %v8007_v50  ;;  %v8048_v14 = vsub.f32 %v14811_v1, %v8007_v50  ;;  %v8047_v24 = vsub.f32 %v14806_v4, %v8007_v50 }
 0x95a   :  { %v8010_v36 = vsub.f32 %v8006_v46, %v8009_v29 }
 0x95c   :  { %v8011_v6 = vmul.f32 %v8010_v36, %v14542_v37 }
 0x95e   :  { %v8012_v43 = vmax.f32 %v8011_v6, 0.0 }
 0x960   :  { %14015 = vrsqrt.f32 %v8012_v43  ;;  %vm8020_vm2 = vcmp.eq.f32.partialorder %v8012_v43, inf  ;;  %v8023_v41 = vand.u32 2147483648, %v8012_v43  ;;  %vm8022_vm3 = vcmp.eq.f32.partialorder %v8012_v43, 0.0 }
 0x966   :  { %v14016_v51 = vpop.eup %14015 }
 0x967   :  { %v8014_v45 = vmul.f32 %v14016_v51, %v8012_v43 }
 0x969   :  { %v8015_v15 = vmul.f32 %v14016_v51, %v8014_v45 }
 0x96b   :  { %v8016_v33 = vmul.f32 0.5, %v8015_v15 }
 0x96d   :  { %v8017_v34 = vsub.f32 1.5, %v8016_v33 }
 0x96f   :  { %v8018_v20 = vmul.f32 %v14016_v51, %v8017_v34 }
 0x971   :  { %v8019_v47 = vmul.f32 %v8018_v20, %v8012_v43 }
 0x973   :  { %v8021_v48 = vsel %vm8020_vm2, %v8012_v43, %v8019_v47 }
 0x974   :  { %v8024_v49 = vsel %vm8022_vm3, %v8023_v41, %v8021_v48 }
 0x975   :  { %v14823_v9 = vmax.f32 %v8024_v49, 1e-30  ;;  %v8810_v37 = vsel %vm8799_vm6, %v8024_v49, 0.0 }
 0x976   :  { %v14829_v63 = vadd.f32 %v8810_v37, %v8809_v53 }
 0x977   :  { %14017 = vrcp.f32 %v14823_v9  ;;  %v8037_v56 = vand.u32 2147483648, %v14823_v9  ;;  %v8035_v61 = vand.u32 2147483647, %v14823_v9  ;;  %vm8031_vm5 = vweird.f32 %v14823_v9 }
 0x979   :  { %v8038_v0 = vor.u32 1.1754944e-38, %v8037_v56  ;;  %vm8036_vm6 = vcmp.eq.f32.partialorder %v8035_v61, 8.507059e+37 }
 0x97d   :  { %v14018_v55 = vpop.eup %14017 }
 0x97e   :  { %v8027_v10 = vmul.f32 %v14018_v55, %v14823_v9  ;;  %vm8032_vm4 = vweird.f32 %v14018_v55 }
 0x97f   :  { %vm8033_vm7 = vmor %vm8031_vm5, %vm8032_vm4 }
 0x980   :  { %v8028_v57 = vsub.f32 1.0, %v8027_v10 }
 0x982   :  { %v8029_v60 = vmul.f32 %v14018_v55, %v8028_v57 }
 0x984   :  { %v8030_v62 = vadd.f32 %v14018_v55, %v8029_v60 }
 0x986   :  { %v8034_v54 = vsel %vm8033_vm7, %v14018_v55, %v8030_v62 }
 0x987   :  { %v8039_v42 = vsel %vm8036_vm6, %v8038_v0, %v8034_v54 }
 0x988   :  { %v8049_v28 = vmul.f32 %v8041_v59, %v8039_v42  ;;  %v8050_v12 = vmul.f32 %v8042_v2, %v8039_v42  ;;  %v8051_v16 = vmul.f32 %v8043_v5, %v8039_v42  ;;  %v8052_v17 = vmul.f32 %v8044_v38, %v8039_v42 }
 0x989   :  { %v8053_v30 = vmul.f32 %v8045_v7, %v8039_v42  ;;  %v8054_v26 = vmul.f32 %v8046_v39, %v8039_v42  ;;  %v8056_v18 = vmul.f32 %v8048_v14, %v8039_v42  ;;  %v8055_v21 = vmul.f32 %v8047_v24, %v8039_v42  ;;  %v13906_v39 = vld [vmem:[#allocation10 + $0x38] sm:$0xff]  ;;  %v13921_v24 = vld [vmem:[#allocation10 + $0xb0] sm:$0xff] }
 0x98a   :  { %v8057_v19 = vmul.f32 %v8049_v28, %v8049_v28  ;;  %v8058_v3 = vmul.f32 %v8050_v12, %v8050_v12  ;;  %v8059_v25 = vmul.f32 %v8051_v16, %v8051_v16  ;;  %v8060_v11 = vmul.f32 %v8052_v17, %v8052_v17  ;;  %v13914_v14 = vld [vmem:[#allocation10 + $0x78] sm:$0xff]  ;;  %8678 = vmatpush.bf16.msra.mxu0 %v13906_v39  ;;  %v13905_v16 = vld [vmem:[#allocation10 + $0x30] sm:$0xff] }
 0x98b   :  { %v8061_v13 = vmul.f32 %v8053_v30, %v8053_v30  ;;  %v8062_v8 = vmul.f32 %v8054_v26, %v8054_v26  ;;  %v8064_v36 = vmul.f32 %v8056_v18, %v8056_v18  ;;  %v8063_v45 = vmul.f32 %v8055_v21, %v8055_v21  ;;  %v13922_v28 = vld [vmem:[#allocation10 + $0xb8] sm:$0xff]  ;;  %8691 = vmatpush.bf16.msra.mxu1 %v13914_v14  ;;  %v13913_v17 = vld [vmem:[#allocation10 + $0x70] sm:$0xff]  ;;  %v13912_v26 = vld [vmem:[#allocation10 + $0x68] sm:$0xff] }
 0x98c   :  { %v8065_v27 = vmul.f32 -0.5, %v8057_v19  ;;  %v8066_v46 = vmul.f32 -0.5, %v8058_v3  ;;  %v8067_v29 = vmul.f32 -0.5, %v8059_v25  ;;  %v8068_v6 = vmul.f32 -0.5, %v8060_v11  ;;  %v13930_v12 = vld [vmem:[#allocation10 + $0xf8] sm:$0xff]  ;;  %8704 = vmatpush.bf16.msra.mxu2 %v13922_v28  ;;  %v13929_v30 = vld [vmem:[#allocation10 + $0xf0] sm:$0xff] }
 0x98d   :  { %v8069_v15 = vmul.f32 -0.5, %v8061_v13  ;;  %v8070_v33 = vmul.f32 -0.5, %v8062_v8  ;;  %v8072_v34 = vmul.f32 -0.5, %v8064_v36  ;;  %v8071_v47 = vmul.f32 -0.5, %v8063_v45  ;;  %8717 = vmatpush.bf16.msra.mxu3 %v13930_v12  ;;  %v13920_v18 = vld [vmem:[#allocation10 + $0xa8] sm:$0xff]  ;;  %v13903_v11 = vld [vmem:[#allocation10 + $0x20] sm:$0xff] }
 0x98e   :  { %v8073_v43 = vmul.f32 1.442695, %v8065_v27  ;;  %v8075_v51 = vmul.f32 1.442695, %v8066_v46  ;;  %v8077_v50 = vmul.f32 1.442695, %v8067_v29  ;;  %8679 = vmatpush.bf16.msra.mxu0 %v13905_v16 }
 0x98f   :  { %v8079_v20 = vmul.f32 1.442695, %v8068_v6  ;;  %v8081_v41 = vmul.f32 1.442695, %v8069_v15  ;;  %v8083_v48 = vmul.f32 1.442695, %v8070_v33  ;;  %8692 = vmatpush.bf16.msra.mxu1 %v13913_v17 }
 0x990   :  { %14019 = vpow2.f32 %v8073_v43  ;;  %v8087_v49 = vmul.f32 1.442695, %v8072_v34  ;;  %v8085_v55 = vmul.f32 1.442695, %v8071_v47  ;;  %8705 = vmatpush.bf16.msra.mxu2 %v13921_v24  ;;  %v13928_v19 = vld [vmem:[#allocation10 + $0xe8] sm:$0xff]  ;;  %v13911_v21 = vld [vmem:[#allocation10 + $0x60] sm:$0xff] }
 0x991   :  { %14021 = vpow2.f32 %v8075_v51  ;;  %8718 = vmatpush.bf16.msra.mxu3 %v13929_v30  ;;  %v13919_v13 = vld [vmem:[#allocation10 + $0xa0] sm:$0xff]  ;;  %v13902_v29 = vld [vmem:[#allocation10 + $0x18] sm:$0xff]  ;;  %v13901_v15 = vld [vmem:[#allocation10 + $0x10] sm:$0xff] }
 0x992   :  { %14023 = vpow2.f32 %v8077_v50  ;;  %v13927_v27 = vld [vmem:[#allocation10 + $0xe0] sm:$0xff]  ;;  %v13910_v36 = vld [vmem:[#allocation10 + $0x58] sm:$0xff]  ;;  %v13909_v50 = vld [vmem:[#allocation10 + $0x50] sm:$0xff] }
 0x993   :  { %14025 = vpow2.f32 %v8079_v20  ;;  %8693 = vmatpush.bf16.msra.mxu1 %v13912_v26  ;;  %v13918_v6 = vld [vmem:[#allocation10 + $0x98] sm:$0xff]  ;;  %v13917_v33 = vld [vmem:[#allocation10 + $0x90] sm:$0xff]  ;;  %v13936_v14 = vld [vmem:[#allocation10 + $0x128] sm:$0xff] }
 0x994   :  { %14027 = vpow2.f32 %v8081_v41  ;;  %8706 = vmatpush.bf16.msra.mxu2 %v13920_v18  ;;  %v13926_v51 = vld [vmem:[#allocation10 + $0xd8] sm:$0xff]  ;;  %v13925_v20 = vld [vmem:[#allocation10 + $0xd0] sm:$0xff]  ;;  %v13900_v41 = vld [vmem:[#allocation10 + $0x8] sm:$0xff] }
 0x995   :  { %14029 = vpow2.f32 %v8083_v48  ;;  %8719 = vmatpush.bf16.msra.mxu3 %v13928_v19  ;;  %v13908_v48 = vld [vmem:[#allocation10 + $0x48] sm:$0xff]  ;;  %v13935_v26 = vld [vmem:[#allocation10 + $0x120] sm:$0xff] }
 0x996   :  { %v14020_v53 = vpop.eup %14019  ;;  %14031 = vpow2.f32 %v8087_v49  ;;  %v13916_v49 = vld [vmem:[#allocation10 + $0x88] sm:$0xff]  ;;  %v13943_v18 = vld [vmem:[#allocation10 + $0x160] sm:$0xff] }
 0x997   :  { %v14022_v37 = vpop.eup %14021  ;;  %14033 = vpow2.f32 %v8085_v55  ;;  %8694 = vmatpush.bf16.msra.mxu1 %v13911_v21  ;;  %v13907_v55 = vld [vmem:[#allocation10 + $0x40] sm:$0xff]  ;;  %v13944_v28 = vld [vmem:[#allocation10 + $0x168] sm:$0xff] }
 0x998   :  { %v8097_v10 = vadd.f32 %v14022_v37, %v14020_v53  ;;  %v14024_v57 = vpop.eup %14023  ;;  %8707 = vmatpush.bf16.msra.mxu2 %v13919_v13  ;;  %14035 = vlog2.f32 %v14823_v9  ;;  %v13924_v53 = vld [vmem:[#allocation10 + $0xc8] sm:$0xff]  ;;  %v13899_v37 = vld [vmem:[#allocation10] sm:$0xff]  ;;  %v13954_v9 = vld [vmem:[#allocation10 + $0x1b8] sm:$0xff] }
 0x999   :  { %v14026_v60 = vpop.eup %14025  ;;  %8720 = vmatpush.bf16.msra.mxu3 %v13927_v27  ;;  %v13952_v12 = vld [vmem:[#allocation10 + $0x1a8] sm:$0xff]  ;;  %v13951_v19 = vld [vmem:[#allocation10 + $0x1a0] sm:$0xff]  ;;  %v13934_v13 = vld [vmem:[#allocation10 + $0x118] sm:$0xff] }
 0x99a   :  { %v8098_v56 = vadd.f32 %v14024_v57, %v8097_v10  ;;  %v14028_v62 = vpop.eup %14027  ;;  %v13915_v10 = vld [vmem:[#allocation10 + $0x80] sm:$0xff]  ;;  %v13960_v16 = vld [vmem:[#allocation10 + $0x1e8] sm:$0xff]  ;;  %v13950_v27 = vld [vmem:[#allocation10 + $0x198] sm:$0xff] }
 0x99b   :  { %v14030_v0 = vpop.eup %14029  ;;  %8695 = vmatpush.bf16.msra.mxu1 %v13910_v36  ;;  %v13941_v36 = vld [vmem:[#allocation10 + $0x150] sm:$0xff] }
 0x99c   :  { %v8099_v61 = vadd.f32 %v14026_v60, %v8098_v56  ;;  %v14032_v2 = vpop.eup %14031  ;;  %8708 = vmatpush.bf16.msra.mxu2 %v13918_v6  ;;  %v13923_v56 = vld [vmem:[#allocation10 + $0xc0] sm:$0xff]  ;;  %v13938_v60 = vld [vmem:[#allocation10 + $0x138] sm:$0xff]  ;;  %v13949_v6 = vld [vmem:[#allocation10 + $0x190] sm:$0xff] }
 0x99d   :  { %v14034_v5 = vpop.eup %14033  ;;  %v8096_v38 = vmul.f32 %v14032_v2, %v14581_v44  ;;  %v13904_v44 = vld [vmem:[#allocation10 + $0x28] sm:$0xff]  ;;  %8721 = vmatpush.bf16.msra.mxu3 %v13926_v51 }
 0x99e   :  { %v8100_v59 = vadd.f32 %v14028_v62, %v8099_v61  ;;  %8680 = vmatpush.bf16.msra.mxu0 %v13904_v44  ;;  %v14036_v57 = vpop.eup %14035  ;;  %v13946_v61 = vld [vmem:[#allocation10 + $0x178] sm:$0xff] }
 0x99f   :  { %8696 = vmatpush.bf16.msra.mxu1 %v13909_v50  ;;  %v13962_v62 = vld [vmem:[#allocation10 + $0x1f8] sm:$0xff]  ;;  %v13932_v50 = vld [vmem:[#allocation10 + $0x108] sm:$0xff] }
 0x9a0   :  { %v8101_v54 = vadd.f32 %v14030_v0, %v8100_v59  ;;  %8709 = vmatpush.bf16.msra.mxu2 %v13917_v33  ;;  %v8116_v59 = vmul.f32 0.6931472, %v14036_v57  ;;  %v13940_v33 = vld [vmem:[#allocation10 + $0x148] sm:$0xff] }
 0x9a1   :  { %8722 = vmatpush.bf16.msra.mxu3 %v13925_v20  ;;  %v13948_v20 = vld [vmem:[#allocation10 + $0x188] sm:$0xff] }
 0x9a2   :  { %v8102_v42 = vadd.f32 %v14034_v5, %v8101_v54  ;;  %8681 = vmatpush.bf16.msra.mxu0 %v13903_v11  ;;  %v13937_v54 = vld [vmem:[#allocation10 + $0x130] sm:$0xff] }
 0x9a3   :  { %8697 = vmatpush.bf16.msra.mxu1 %v13908_v48  ;;  %v13945_v5 = vld [vmem:[#allocation10 + $0x170] sm:$0xff]  ;;  %v13939_v48 = vld [vmem:[#allocation10 + $0x140] sm:$0xff] }
 0x9a4   :  { %v8103_v7 = vadd.f32 %v8102_v42, %v8096_v38  ;;  %8710 = vmatpush.bf16.msra.mxu2 %v13916_v49  ;;  %v13953_v38 = vld [vmem:[#allocation10 + $0x1b0] sm:$0xff]  ;;  %v13947_v49 = vld [vmem:[#allocation10 + $0x180] sm:$0xff] }
 0x9a5   :  { %8723 = vmatpush.bf16.msra.mxu3 %v13924_v53  ;;  %v13955_v53 = vld [vmem:[#allocation10 + $0x1c0] sm:$0xff] }
 0x9a6   :  { %8104 = vadd.xlane.f32.xlu0 %v8103_v7  ;;  %8682 = vmatpush.bf16.msra.mxu0 %v13902_v29  ;;  %v13961_v7 = vld [vmem:[#allocation10 + $0x1f0] sm:$0xff] }
 0x9a7   :  { %8698 = vmatpush.bf16.msra.mxu1 %v13907_v55  ;;  %v13933_v29 = vld [vmem:[#allocation10 + $0x110] sm:$0xff] }
 0x9a8   :  { %8711 = vmatpush.bf16.msra.mxu2 %v13915_v10 }
 0x9a9   :  { %8724 = vmatpush.bf16.msra.mxu3 %v13923_v56 }
 0x9aa   :  { %8683 = vmatpush.bf16.msra.mxu0 %v13901_v15 }
 0x9ab   :  { %8743 = vmatpush.bf16.msrb.mxu1 %v13946_v61 }
 0x9ac   :  { %8756 = vmatpush.bf16.msrb.mxu2 %v13954_v9  ;;  %v8812_v9 = vadd.f32 %v14829_v63, %v14604_v40 }
 0x9ad   :  { %8769 = vmatpush.bf16.msrb.mxu3 %v13962_v62 }
 0x9ae   :  { %8684 = vmatpush.bf16.msra.mxu0 %v13900_v41  ;;  %v13931_v41 = vld [vmem:[#allocation10 + $0x100] sm:$0xff] }
 0x9af   :  { %8744 = vmatpush.bf16.msrb.mxu1 %v13945_v5 }
 0x9b0   :  { %8757 = vmatpush.bf16.msrb.mxu2 %v13953_v38 }
 0x9b1   :  { %8770 = vmatpush.bf16.msrb.mxu3 %v13961_v7 }
 0x9b2   :  { %8685 = vmatpush.bf16.msra.mxu0 %v13899_v37 }
 0x9b3   :  { %8745 = vmatpush.bf16.msrb.mxu1 %v13944_v28 }
 0x9b4   :  { %8758 = vmatpush.bf16.msrb.mxu2 %v13952_v12 }
 0x9b5   :  { %8771 = vmatpush.bf16.msrb.mxu3 %v13960_v16 }
 0x9b6   :  { %8730 = vmatpush.bf16.msrb.mxu0 %v13938_v60 }
 0x9b7   :  { %8746 = vmatpush.bf16.msrb.mxu1 %v13943_v18 }
 0x9b8   :  { %8759 = vmatpush.bf16.msrb.mxu2 %v13951_v19 }
 0x9ba   :  { %8731 = vmatpush.bf16.msrb.mxu0 %v13937_v54 }
 0x9bc   :  { %8760 = vmatpush.bf16.msrb.mxu2 %v13950_v27 }
 0x9be   :  { %8732 = vmatpush.bf16.msrb.mxu0 %v13936_v14 }
 0x9c0   :  { %8761 = vmatpush.bf16.msrb.mxu2 %v13949_v6 }
 0x9c2   :  { %8733 = vmatpush.bf16.msrb.mxu0 %v13935_v26 }
 0x9c4   :  { %8762 = vmatpush.bf16.msrb.mxu2 %v13948_v20 }
 0x9c6   :  { %8734 = vmatpush.bf16.msrb.mxu0 %v13934_v13 }
 0x9c8   :  { %8763 = vmatpush.bf16.msrb.mxu2 %v13947_v49 }
 0x9ca   :  { %8735 = vmatpush.bf16.msrb.mxu0 %v13933_v29 }
 0x9ce   :  { %8736 = vmatpush.bf16.msrb.mxu0 %v13932_v50 }
 0x9d2   :  { %8737 = vmatpush.bf16.msrb.mxu0 %v13931_v41 }
 0xa19   :  { %v8105_v3 = vpop.xlane.xlu0 %8104 }
 0xa1a   :  { %v8106_v25 = vrot.slane %v8105_v3, 4 }
 0xa1c   :  { %v8107_v8 = vadd.f32 %v8106_v25, %v8105_v3  ;;  %v13959_v3 = vld [vmem:[#allocation10 + $0x1e0] sm:$0xff] }
 0xa1d   :  { %8772 = vmatpush.bf16.msrb.mxu3 %v13959_v3 }
 0xa1e   :  { %v8108_v46 = vrot.slane %v8107_v8, 2 }
 0xa20   :  { %v8109_v43 = vadd.f32 %v8108_v46, %v8107_v8  ;;  %v13942_v8 = vld [vmem:[#allocation10 + $0x158] sm:$0xff] }
 0xa21   :  { %v13958_v46 = vld [vmem:[#allocation10 + $0x1d8] sm:$0xff]  ;;  %8747 = vmatpush.bf16.msrb.mxu1 %v13942_v8 }
 0xa22   :  { %v8110_v45 = vrot.slane %v8109_v43, 1  ;;  %8773 = vmatpush.bf16.msrb.mxu3 %v13958_v46 }
 0xa24   :  { %v8111_v34 = vadd.f32 %v8110_v45, %v8109_v43  ;;  %v13957_v43 = vld [vmem:[#allocation10 + $0x1d0] sm:$0xff] }
 0xa25   :  { %8748 = vmatpush.bf16.msrb.mxu1 %v13941_v36 }
 0xa26   :  { %v8112_v47 = vmax.f32 %v8111_v34, 1e-30  ;;  %8774 = vmatpush.bf16.msrb.mxu3 %v13957_v43 }
 0xa28   :  { %14037 = vlog2.f32 %v8112_v47  ;;  %v13956_v47 = vld [vmem:[#allocation10 + $0x1c8] sm:$0xff] }
 0xa29   :  { %8749 = vmatpush.bf16.msrb.mxu1 %v13940_v33 }
 0xa2a   :  { %8775 = vmatpush.bf16.msrb.mxu3 %v13956_v47 }
 0xa2d   :  { %8750 = vmatpush.bf16.msrb.mxu1 %v13939_v48 }
 0xa2e   :  { %v14038_v0 = vpop.eup %14037  ;;  %8776 = vmatpush.bf16.msrb.mxu3 %v13955_v53 }
 0xa2f   :  { %v8114_v2 = vmul.f32 0.6931472, %v14038_v0 }
 0xa31   :  { %v8117_v42 = vsub.f32 %v8114_v2, %v8116_v59 }
 0xa33   :  { %v14846_v39 = vadd.f32 -0.9189385, %v8117_v42 }
 0xa35   :  { %v8120_v17 = vand.u32 2147483647, %v14846_v39  ;;  %v8128_v24 = vsub.f32 0.0, %v14846_v39  ;;  %v8119_v55 = vmax.f32 %v14846_v39, 0.0 }
 0xa37   :  { %v8121_v30 = vsub.f32 0.0, %v8120_v17  ;;  %v8130_v44 = vand.u32 2147483647, %v8128_v24  ;;  %v8129_v60 = vmax.f32 %v8128_v24, 0.0 }
 0xa39   :  { %v8122_v25 = vmul.f32 1.442695, %v8121_v30  ;;  %v8131_v11 = vsub.f32 0.0, %v8130_v44 }
 0xa3b   :  { %14039 = vpow2.f32 %v8122_v25  ;;  %v8132_v21 = vmul.f32 1.442695, %v8131_v11  ;;  %v13976_v25 = vld [vmem:[#allocation11] ss:$0 sm:$0xff] }
 0xa3d   :  { %14041 = vpow2.f32 %v8132_v21 }
 0xa41   :  { %v14040_v51 = vpop.eup %14039 }
 0xa42   :  { %v8124_v45 = vadd.f32 1.0, %v14040_v51 }
 0xa43   :  { %v14042_v15 = vpop.eup %14041 }
 0xa44   :  { %14043 = vlog2.f32 %v8124_v45  ;;  %v8134_v34 = vadd.f32 1.0, %v14042_v15 }
 0xa46   :  { %14045 = vlog2.f32 %v8134_v34 }
 0xa4a   :  { %v14044_v37 = vpop.eup %14043 }
 0xa4b   :  { %v8126_v10 = vmul.f32 0.6931472, %v14044_v37 }
 0xa4c   :  { %v14046_v57 = vpop.eup %14045 }
 0xa4d   :  { %v8127_v56 = vadd.f32 %v8126_v10, %v8119_v55  ;;  %v8136_v61 = vmul.f32 0.6931472, %v14046_v57 }
 0xa4f   :  { %v8137_v62 = vadd.f32 %v8136_v61, %v8129_v60  ;;  %v8813_v0 = vsel %vm8805_vm14, %v8127_v56, 0.0 }
 0xa50   :  { %v8814_v59 = vadd.f32 %v8813_v0, %v8812_v9 }
 0xa51   :  { %v8138_v2 = vmul.f32 %v8137_v62, %v14779_v31  ;;  %v8139_v54 = vmul.f32 %v8137_v62, %v14781_v32  ;;  %v8140_v5 = vmul.f32 %v8137_v62, %v14783_v23  ;;  %v8141_v38 = vmul.f32 %v8137_v62, %v14786_v35 }
 0xa52   :  { %8815 = vst [vmem:[%s14882_s8 + $0x1] sm:$0x1] %v8814_v59  ;;  %v8142_v31 = vmul.f32 %v8137_v62, %v14795_v52  ;;  %v8143_v32 = vmul.f32 %v8137_v62, %v14801_v22  ;;  %v8144_v23 = vmul.f32 %v8137_v62, %v14806_v4  ;;  %v8145_v35 = vmul.f32 %v8137_v62, %v14811_v1  ;;  %s14241_s8 = smov [#allocation13]  }
 0xa53   :  { %v8146_v42 = vmax.f32 %v8138_v2, 0.0  ;;  %v8147_v7 = vmax.f32 %v8139_v54, 0.0  ;;  %v8148_v40 = vmax.f32 %v8140_v5, 0.0  ;;  %v8149_v63 = vmax.f32 %v8141_v38, 0.0  ;;  %s8821_s21 = sshll.u32 %s14241_s8, 4  ;;  %s8822_s21 = int_to_ptr.vmem [resolvable:$true] %s8821_s21 }
 0xa54   :  { %v8150_v16 = vmax.f32 %v8142_v31, 0.0  ;;  %v8151_v17 = vmax.f32 %v8143_v32, 0.0  ;;  %v8152_v24 = vmax.f32 %v8144_v23, 0.0  ;;  %v8153_v30 = vmax.f32 %v8145_v35, 0.0 }
 0xa55   :  { %v8154_v39 = vpack.c.bf16 %v8146_v42, %v8146_v42  ;;  %v8155_v14 = vpack.c.bf16 %v8147_v7, %v8147_v7  ;;  %v8156_v28 = vpack.c.bf16 %v8148_v40, %v8148_v40  ;;  %v8157_v12 = vpack.c.bf16 %v8149_v63, %v8149_v63 }
 0xa56   :  { %v8158_v44 = vpack.c.bf16 %v8150_v16, %v8150_v16  ;;  %v8159_v26 = vpack.c.bf16 %v8151_v17, %v8151_v17  ;;  %v8160_v18 = vpack.c.bf16 %v8152_v24, %v8152_v24  ;;  %v8161_v19 = vpack.c.bf16 %v8153_v30, %v8153_v30 }
 0xa57   :  { %8686 = vmatmul.bf16.vlgmr.msra.gmra.mxu0 %v8154_v39  ;;  %8699 = vmatmul.bf16.vlgmr.msra.gmra.mxu1 %v8155_v14 }
 0xa58   :  { %8712 = vmatmul.bf16.vlgmr.msra.gmra.mxu2 %v8156_v28  ;;  %8725 = vmatmul.bf16.vlgmr.msra.gmra.mxu3 %v8157_v12 }
 0xa67   :  { %8738 = vmatmul.bf16.vlgmr.msrb.gmra.mxu0 %v8158_v44  ;;  %8751 = vmatmul.bf16.vlgmr.msrb.gmra.mxu1 %v8159_v26 }
 0xa68   :  { %8764 = vmatmul.bf16.vlgmr.msrb.gmra.mxu2 %v8160_v18  ;;  %8777 = vmatmul.bf16.vlgmr.msrb.gmra.mxu3 %v8161_v19 }
 0xad4   :  { %v8687_v3 = vpop.f32.mrf.mxu0  ;;  %v8700_v52 = vpop.f32.mrf.mxu1 }
 0xad5   :  { %v8688_v22 = vadd.f32 %v13976_v25, %v8687_v3 }
 0xad7   :  { %v8701_v13 = vadd.f32 %v8700_v52, %v8688_v22 }
 0xadb   :  { %v8713_v11 = vpop.f32.mrf.mxu2  ;;  %v8726_v4 = vpop.f32.mrf.mxu3 }
 0xadc   :  { %v8689_v21 = vpop.f32.mrf.mxu0  ;;  %v8702_v1 = vpop.f32.mrf.mxu1  ;;  %v8714_v8 = vadd.f32 %v8713_v11, %v8701_v13 }
 0xade   :  { %v8727_v29 = vadd.f32 %v8726_v4, %v8714_v8 }
 0xae3   :  { %v8715_v27 = vpop.f32.mrf.mxu2  ;;  %v8728_v46 = vpop.f32.mrf.mxu3 }
 0xae4   :  { %v8739_v36 = vpop.f32.mrf.mxu0  ;;  %v8752_v6 = vpop.f32.mrf.mxu1 }
 0xae5   :  { %v8740_v43 = vadd.f32 %v8739_v36, %v8727_v29 }
 0xae7   :  { %v8753_v51 = vadd.f32 %v8752_v6, %v8740_v43 }
 0xaeb   :  { %v8765_v45 = vpop.f32.mrf.mxu2  ;;  %v8778_v15 = vpop.f32.mrf.mxu3 }
 0xaec   :  { %v8766_v50 = vadd.f32 %v8765_v45, %v8753_v51  ;;  %v8741_v33 = vpop.f32.mrf.mxu0  ;;  %v8754_v34 = vpop.f32.mrf.mxu1 }
 0xaee   :  { %v8779_v20 = vadd.f32 %v8778_v15, %v8766_v50 }
 0xaf0   :  { %v8785_v47 = vsel %vm8782_vm8, %v8779_v20, -1e+30 }
 0xaf1   :  { %8786 = vmax.xlane.f32.xlu1 %v8785_v47 }
 0xaf3   :  { %v8767_v41 = vpop.f32.mrf.mxu2  ;;  %v8780_v48 = vpop.f32.mrf.mxu3 }
 0xb64   :  { %v8787_v49 = vpop.xlane.xlu1 %8786 }
 0xb65   :  { %v8788_v53 = vsub.f32 %v8785_v47, %v8787_v49 }
 0xb67   :  { %v8789_v37 = vmul.f32 1.442695, %v8788_v53 }
 0xb69   :  { %14047 = vpow2.f32 %v8789_v37 }
 0xb6f   :  { %v14048_v55 = vpop.eup %14047 }
 0xb70   :  { %8791 = vadd.xlane.f32.xlu2 %v14048_v55 }
 0xbe3   :  { %v8792_v10 = vpop.xlane.xlu2 %8791 }
 0xbe4   :  { %14049 = vlog2.f32 %v8792_v10 }
 0xbea   :  { %v14050_v57 = vpop.eup %14049 }
 0xbeb   :  { %v8794_v58 = vmul.f32 0.6931472, %v14050_v57 }
 0xbed   :  { %v8795_v56 = vsub.f32 %v8788_v53, %v8794_v58 }
 0xbef   :  { %8796 = vst [vmem:[#allocation13] sm:$0xff] %v8795_v56 }
 0xbf0   :  { %8826 = dma.vmem_to_hbm [thread:$0]  %s8822_s21, 128, %s8824_s23, [#allocation4]  }
 0xbf1   :  { %14227 = dma.done.wait [#allocation4], 128  }
 0xbf2   :  { %14228 = vsyncadd [#allocation4], 4294967168 }
 0xbf3   :  { %8835 = vsyncpa [#allocation3], 1 }
 0xbf4   :  { %8836 = vsyncpa [#allocation6], 1 }
 0xbf5   :  { %8837 = vsyncpa [#allocation9], 1 }
 0xbf6   :  { %8838 = vsyncpa [#allocation12], 1 }
 0xbf7   :  { %8839 = vsyncpa [#allocation4], 1 }

</bundles_post_ra>
